<compile_context>
chip_gen: v6e
topology: v6e:2x2x1
jax: 0.10.0
libtpu: 0.0.40
codegen_flags: <defaults>
</compile_context>

<pallas_src>
import jax
import jax.numpy as jnp
import numpy as np
from jax.experimental import pallas as pl
from jax.experimental.pallas import tpu as pltpu

ENC_H = 64              # ENCODER_HIDDEN_DIMENSION (from the script)
IN_DIM = 2 * ENC_H      # GRU input size   = encoder_hidden_dim * 2
OUT_DIM = 2 * ENC_H     # bi-GRU output    = 2 * encoder_hidden_dim
GP = 128                # per-gate lane padding (gates at lane offsets 0/128/256)
G3 = 3 * GP             # padded width of one direction's three gates
SEQ = 8                 # words per sentence (serial chain length)
BATCH = 4               # batch rows per sentence
N_SENT = 8              # independent sentences processed per call
SENT_BLK = 4            # sentences per grid step (rows per block R = 2*BATCH*SENT_BLK)


# ---------------------------------------------------------------------------
# Pallas kernel: bi-GRU recurrence + sentence-level attention for one block
# ---------------------------------------------------------------------------
def sentence_encoder_kernel(x_ref, wi_ref, wh_ref, wlin_ref, b_ref,
                            v_ref, gru_ref, gi_scr, hs_scr):
    L, R, _ = gi_scr.shape          # R rows per block: 0:BS forward, BS:R backward
    BS = R // 2
    S = v_ref.shape[1] // L         # sentences in this block
    B = BS // S                     # batch rows per sentence
    H = ENC_H
    OUT = 2 * H
    f32 = jnp.float32

    # ---- packed parameter rows (all lane-aligned, static slices) ----
    bi_f, bi_b = b_ref[0:1, :], b_ref[1:2, :]          # (1, G3) input-hidden biases
    bh_f, bh_b = b_ref[2:3, :], b_ref[3:4, :]          # (1, G3) hidden-hidden biases
    blin = b_ref[4:5, :OUT]                            # (1, 2H)
    wctx = b_ref[5:6, :OUT]                            # (1, 2H)
    bctx = b_ref[6:7, 0:1]                             # (1, 1)

    # ---- loop-invariant bias rows / masks (hoisted out of the recurrence) ----
    row_g = jax.lax.broadcasted_iota(jnp.int32, (R, G3), 0)
    bi_rows = jnp.where(row_g < BS, bi_f, bi_b)        # (R, G3)
    bh_rows = jnp.where(row_g < BS, bh_f, bh_b)        # (R, G3)

    row2 = jax.lax.broadcasted_iota(jnp.int32, (R, 2 * GP), 0)
    lane2 = jax.lax.broadcasted_iota(jnp.int32, (R, 2 * GP), 1)
    keep = ((row2 < BS) & (lane2 < GP)) | ((row2 >= BS) & (lane2 >= GP))

    # ---- hoisted input->hidden projection, both directions, one bf16 matmul ----
    gi = jnp.dot(x_ref[0], wi_ref[...], preferred_element_type=f32)   # (L*R, G3)
    gi_scr[...] = gi.reshape(L, R, G3) + bi_rows[None]                # fold b_ih in

    # ---- serial bidirectional recurrence (block-diagonal hidden matmul, K=256) ----
    # h rows 0:BS = forward hidden, rows BS:R = backward hidden.
    # Lanes H:GP of h stay exactly zero every step (zero-padded weights/biases).
    h = jnp.zeros((R, GP), f32)
    for t in range(L):                                 # L = 8, fully unrolled
        h_bf = h.astype(jnp.bfloat16)
        hh = jnp.concatenate([h_bf, h_bf], axis=1)     # (R, 2GP)
        h_split = jnp.where(keep, hh, 0.0)             # fwd rows -> lanes 0:GP, bwd -> GP:2GP
        gh = jnp.dot(h_split, wh_ref[...],
                     preferred_element_type=f32) + bh_rows            # (R, G3)
        gi_t = gi_scr[t]                                               # (R, G3)
        rz = jax.nn.sigmoid(gi_t[:, :2 * GP] + gh[:, :2 * GP])
        r, z = rz[:, :GP], rz[:, GP:]
        n = jnp.tanh(gi_t[:, 2 * GP:] + r * gh[:, 2 * GP:])
        h = (1.0 - z) * n + z * h
        # aligned stores off the dependency chain (no long live ranges)
        hs_scr[t, :BS] = h[:BS]                        # fwd hidden at time t
        hs_scr[L - 1 - t, BS:] = h[BS:]                # bwd hidden at time L-1-t

    # ---- fwd|bwd concat via one lane roll (pad lanes of h are exactly 0) ----
    hs = hs_scr[...]                                   # (L, R, GP)
    hf = hs[:, :BS, :].reshape(L * BS, GP)
    hb = hs[:, BS:, :].reshape(L * BS, GP)
    g2 = hf + pltpu.roll(hb, shift=H, axis=1)          # (L*BS, 2H)
    gru_ref[0] = g2

    # ---- Attention (exact PyTorch semantics: softmax over dim=1 = batch) ----
    u = jnp.tanh(jnp.dot(g2.astype(jnp.bfloat16), wlin_ref[...],
                         preferred_element_type=f32) + blin)           # (L*BS, 2H)
    u3 = u.reshape(L * S, B, OUT)
    g3d = g2.reshape(L * S, B, OUT)
    cv = jnp.sum(u3 * wctx[None], axis=-1) + bctx      # (L*S, B)
    m = jnp.max(cv, axis=-1, keepdims=True)
    e = jnp.exp(cv - m)
    alpha = e / jnp.sum(e, axis=-1, keepdims=True)     # softmax over batch
    v_ref[0] = jnp.sum(alpha[:, :, None] * g3d, axis=1)  # (L*S, 2H)


# ---------------------------------------------------------------------------
# Parameter packing (layout glue only -- no hidden FLOPs)
# ---------------------------------------------------------------------------
def _pack_params(p):
    f32 = jnp.float32

    def gate_pad_cols(w):        # (rows, 3H) -> (rows, 3*GP); gate g at lane offset g*GP
        pad = jnp.zeros((w.shape[0], GP - ENC_H), f32)
        return jnp.concatenate(
            [w[:, :ENC_H], pad, w[:, ENC_H:2 * ENC_H], pad, w[:, 2 * ENC_H:], pad],
            axis=1)

    def gate_pad_vec(b):         # (3H,) -> (3*GP,)
        pad = jnp.zeros((GP - ENC_H,), f32)
        return jnp.concatenate(
            [b[:ENC_H], pad, b[ENC_H:2 * ENC_H], pad, b[2 * ENC_H:], pad])

    def pad_rows(w):             # (H, cols) -> (GP, cols); pad rows stay zero
        return jnp.concatenate([w, jnp.zeros((GP - ENC_H, w.shape[1]), f32)], axis=0)

    def row_pad(vec):            # (n,) -> (G3,)
        return jnp.zeros((G3,), f32).at[:vec.shape[0]].set(vec)

    # input->hidden weights, both directions stacked along rows (paired with x_aug)
    w_in = jnp.concatenate([gate_pad_cols(p['w_ih_f'].T),
                            gate_pad_cols(p['w_ih_b'].T)], axis=0)            # (2*IN, G3)
    # hidden->hidden weights, block-diagonal over K: rows 0:GP fwd, GP:2GP bwd
    w_hh = jnp.concatenate([pad_rows(gate_pad_cols(p['w_hh_f'].T)),
                            pad_rows(gate_pad_cols(p['w_hh_b'].T))], axis=0)  # (2*GP, G3)
    w_lin = p['w_lin'].T                                                      # (2H, 2H)

    # biases + small attention vectors packed into one (8, G3) f32 array
    b_pack = jnp.stack([
        gate_pad_vec(p['b_ih_f']), gate_pad_vec(p['b_ih_b']),
        gate_pad_vec(p['b_hh_f']), gate_pad_vec(p['b_hh_b']),
        row_pad(p['b_lin']), row_pad(p['w_ctx'][0]), row_pad(p['b_ctx']),
        jnp.zeros((G3,), f32)], axis=0)

    # NOTE: pad lanes of weights/biases are zero by construction, which keeps
    # the h pad lanes exactly zero through the recurrence (the pltpu.roll-based
    # fwd|bwd concat relies on this invariant).
    return (w_in.astype(jnp.bfloat16), w_hh.astype(jnp.bfloat16),
            w_lin.astype(jnp.bfloat16), b_pack)


# ---------------------------------------------------------------------------
# Wrapper: sentence batching + grid over sentence blocks
# ---------------------------------------------------------------------------
def sentence_encoder(word_embed, p, *, sent_block=SENT_BLK):
    """word_embed: (N, L, B, 2*ENC_H) -- N independent sentences.
    Returns (v, gru_out): (N, L, 1, 2H) and (N, L, B, 2H), like the PyTorch model."""
    N, L, B, _ = word_embed.shape
    assert N % sent_block == 0, "pad the sentence count to a multiple of sent_block"
    S = sent_block
    NBLK = N // S
    BS = S * B              # forward rows per block (sentence-major: row = s*B + b)
    R = 2 * BS              # rows per block: fwd rows then bwd rows
    OUT = OUT_DIM
    f32, bf16 = jnp.float32, jnp.bfloat16

    w_in, w_hh, w_lin, b_pack = _pack_params(p)

    # augmented input: fwd rows carry x[t] in cols 0:IN, bwd rows carry x[L-1-t]
    # in cols IN:2*IN, so one hoisted matmul serves both directions.
    we = word_embed.reshape(NBLK, S, L, B, IN_DIM)
    xf = jnp.transpose(we, (0, 2, 1, 3, 4)).reshape(NBLK, L, BS, IN_DIM)
    xb = jnp.transpose(we[:, :, ::-1], (0, 2, 1, 3, 4)).reshape(NBLK, L, BS, IN_DIM)
    zero = jnp.zeros_like(xf)
    x_aug = jnp.concatenate(
        [jnp.concatenate([xf, zero], axis=-1),
         jnp.concatenate([zero, xb], axis=-1)], axis=2)                # (NBLK, L, R, 2*IN)
    x_aug = x_aug.reshape(NBLK, L * R, 2 * IN_DIM).astype(bf16)

    flops = NBLK * (2 * (L * R) * (2 * IN_DIM) * G3        # hoisted gi projection
                    + L * 2 * R * (2 * GP) * G3            # recurrent h @ w_hh
                    + 2 * (L * BS) * OUT * OUT)            # attention linear
    transcendentals = NBLK * L * (R * G3 + BS * OUT + S * B)
    bytes_accessed = int(x_aug.size * 2 + w_in.size * 2 + w_hh.size * 2
                         + w_lin.size * 2 + b_pack.size * 4
                         + NBLK * (L * S * OUT + L * BS * OUT) * 4)

    v2d, gru2d = pl.pallas_call(
        sentence_encoder_kernel,
        out_shape=(
            jax.ShapeDtypeStruct((NBLK, L * S, OUT), f32),    # v per block (lane-dense)
            jax.ShapeDtypeStruct((NBLK, L * BS, OUT), f32),   # gru_out per block
        ),
        grid_spec=pltpu.PrefetchScalarGridSpec(
            num_scalar_prefetch=0,
            grid=(NBLK,),
            in_specs=[
                # x pipelines per sentence block ...
                pl.BlockSpec((1, L * R, 2 * IN_DIM), lambda i: (i, 0, 0)),
                # ... while the weights stay VMEM-resident (constant index maps)
                pl.BlockSpec((2 * IN_DIM, G3), lambda i: (0, 0)),
                pl.BlockSpec((2 * GP, G3), lambda i: (0, 0)),
                pl.BlockSpec((OUT, OUT), lambda i: (0, 0)),
                pl.BlockSpec((8, G3), lambda i: (0, 0)),
            ],
            out_specs=[
                pl.BlockSpec((1, L * S, OUT), lambda i: (i, 0, 0)),
                pl.BlockSpec((1, L * BS, OUT), lambda i: (i, 0, 0)),
            ],
            scratch_shapes=[
                pltpu.VMEM((L, R, G3), f32),     # hoisted gi for all steps
                pltpu.VMEM((L, R, GP), f32),     # per-step hidden states
            ]),
        compiler_params=pltpu.CompilerParams(
            dimension_semantics=("parallel",)),  # sentence blocks shard over v7x's 2 TCs
        cost_estimate=pl.CostEstimate(flops=flops,
                                      transcendentals=transcendentals,
                                      bytes_accessed=bytes_accessed),
    )(x_aug, w_in, w_hh, w_lin, b_pack)

    gru = (gru2d.reshape(NBLK, L, S, B, OUT)
           .transpose(0, 2, 1, 3, 4).reshape(N, L, B, OUT))
    v = (v2d.reshape(NBLK, L, S, OUT)
         .transpose(0, 2, 1, 3).reshape(N, L, OUT))
    return v[:, :, None, :], gru


# ---------------------------------------------------------------------------
# Deterministic parameter init (PyTorch-style uniform bounds, synthetic)
# ---------------------------------------------------------------------------
def make_params(key):
    H = ENC_H
    ks = jax.random.split(key, 12)

    def U(k, shape, bound):
        return jax.random.uniform(k, shape, jnp.float32, -bound, bound)

    kgru = 1.0 / float(np.sqrt(H))
    klin = 1.0 / float(np.sqrt(OUT_DIM))
    return dict(
        # GRU: weight_ih (3H, in), weight_hh (3H, H), gate order [r, z, n]
        w_ih_f=U(ks[0], (3 * H, IN_DIM), kgru), w_hh_f=U(ks[1], (3 * H, H), kgru),
        b_ih_f=U(ks[2], (3 * H,), kgru),        b_hh_f=U(ks[3], (3 * H,), kgru),
        w_ih_b=U(ks[4], (3 * H, IN_DIM), kgru), w_hh_b=U(ks[5], (3 * H, H), kgru),
        b_ih_b=U(ks[6], (3 * H,), kgru),        b_hh_b=U(ks[7], (3 * H,), kgru),
        # Attention: Linear(2H, 2H) and Linear(2H, 1)
        w_lin=U(ks[8], (OUT_DIM, OUT_DIM), klin), b_lin=U(ks[9], (OUT_DIM,), klin),
        w_ctx=U(ks[10], (1, OUT_DIM), klin),      b_ctx=U(ks[11], (1,), klin),
    )


# ---------------------------------------------------------------------------
# Pure-JAX reference (PyTorch semantics) for one sentence.
# mxu_dtype=jnp.bfloat16 reproduces the kernel's bf16 MXU operands exactly.
# ---------------------------------------------------------------------------
def reference_forward(word_embed, p, *, mxu_dtype=jnp.float32):
    L, B, _ = word_embed.shape
    H = ENC_H
    hp = jax.lax.Precision.HIGHEST
    cast = lambda a: a.astype(mxu_dtype).astype(jnp.float32)

    def cell(x_t, h, w_ih, w_hh, b_ih, b_hh):
        gi = jnp.dot(cast(x_t), cast(w_ih.T), precision=hp) + b_ih
        gh = jnp.dot(cast(h), cast(w_hh.T), precision=hp) + b_hh
        r = jax.nn.sigmoid(gi[:, :H] + gh[:, :H])
        z = jax.nn.sigmoid(gi[:, H:2 * H] + gh[:, H:2 * H])
        n = jnp.tanh(gi[:, 2 * H:] + r * gh[:, 2 * H:])
        return (1.0 - z) * n + z * h

    h_f = jnp.zeros((B, H), jnp.float32)
    h_b = jnp.zeros((B, H), jnp.float32)
    outs_f, outs_b = [], [None] * L
    for t in range(L):
        h_f = cell(word_embed[t], h_f, p['w_ih_f'], p['w_hh_f'],
                   p['b_ih_f'], p['b_hh_f'])
        outs_f.append(h_f)
        rt = L - 1 - t
        h_b = cell(word_embed[rt], h_b, p['w_ih_b'], p['w_hh_b'],
                   p['b_ih_b'], p['b_hh_b'])
        outs_b[rt] = h_b
    gru_out = jnp.concatenate([jnp.stack(outs_f), jnp.stack(outs_b)], axis=-1)

    u = jnp.tanh(jnp.matmul(cast(gru_out), cast(p['w_lin'].T), precision=hp)
                 + p['b_lin'])
    cv = jnp.matmul(u, p['w_ctx'].T, precision=hp) + p['b_ctx']   # f32, like the kernel
    alpha = jax.nn.softmax(cv, axis=1)                            # softmax over dim=1
    v = jnp.matmul(jnp.transpose(alpha, (0, 2, 1)), gru_out, precision=hp)
    return v, gru_out


if __name__ == "__main__":
    key = jax.random.PRNGKey(0)
    kx, kp = jax.random.split(key)
    word_embed = jax.random.normal(kx, (N_SENT, SEQ, BATCH, IN_DIM), jnp.float32)
    params = make_params(kp)

    v, gru_out = sentence_encoder(word_embed, params)
    jax.block_until_ready((v, gru_out))

    assert v.shape == (N_SENT, SEQ, 1, OUT_DIM)
    assert gru_out.shape == (N_SENT, SEQ, BATCH, OUT_DIM)

    # Tight check: reference with the kernel's bf16 MXU operands (f32 accumulation).
    v_bf, g_bf = jax.vmap(
        lambda we: reference_forward(we, params, mxu_dtype=jnp.bfloat16))(word_embed)
    np.testing.assert_allclose(np.asarray(gru_out), np.asarray(g_bf),
                               atol=5e-3, rtol=5e-3)
    np.testing.assert_allclose(np.asarray(v), np.asarray(v_bf),
                               atol=5e-3, rtol=5e-3)

    # Accuracy sanity vs. the full-f32 reference (difference = bf16 operand rounding).
    v_f32, g_f32 = jax.vmap(lambda we: reference_forward(we, params))(word_embed)
    np.testing.assert_allclose(np.asarray(gru_out), np.asarray(g_f32),
                               atol=3e-2, rtol=3e-2)
    np.testing.assert_allclose(np.asarray(v), np.asarray(v_f32),
                               atol=3e-2, rtol=3e-2)

    print("KERNEL_OK")
</pallas_src>

<mosaic_0001>
module attributes {stable_mosaic.version = 11 : i64} {
  func.func @sentence_encoder_kernel(%arg0: i32, %arg1: memref<1x256x256xbf16, #tpu.memory_space<vmem>>, %arg2: memref<256x384xbf16, #tpu.memory_space<vmem>>, %arg3: memref<256x384xbf16, #tpu.memory_space<vmem>>, %arg4: memref<128x128xbf16, #tpu.memory_space<vmem>>, %arg5: memref<8x384xf32, #tpu.memory_space<vmem>>, %arg6: memref<1x32x128xf32, #tpu.memory_space<vmem>>, %arg7: memref<1x128x128xf32, #tpu.memory_space<vmem>>, %arg8: memref<8x32x384xf32, #tpu.memory_space<vmem>>, %arg9: memref<8x32x128xf32, #tpu.memory_space<vmem>>) attributes {dimension_semantics = [#tpu.dimension_semantics<parallel>], iteration_bounds = array<i64: 2>, scalar_prefetch = 0 : i64, scratch_operands = 2 : i64, tpu.core_type = #tpu.core_type<tc>, window_params = [{transform_indices = @transform_0, window_bounds = array<i64: 1, 256, 256>}, {pipeline_mode = #tpu.pipeline_mode<synchronous>, transform_indices = @transform_1, window_bounds = array<i64: 256, 384>}, {pipeline_mode = #tpu.pipeline_mode<synchronous>, transform_indices = @transform_2, window_bounds = array<i64: 256, 384>}, {pipeline_mode = #tpu.pipeline_mode<synchronous>, transform_indices = @transform_3, window_bounds = array<i64: 128, 128>}, {pipeline_mode = #tpu.pipeline_mode<synchronous>, transform_indices = @transform_4, window_bounds = array<i64: 8, 384>}, {transform_indices = @transform_5, window_bounds = array<i64: 1, 32, 128>}, {transform_indices = @transform_6, window_bounds = array<i64: 1, 128, 128>}]} {
    %c0 = arith.constant 0 : index
    %c0_0 = arith.constant 0 : index
    %0 = vector.load %arg5[%c0, %c0_0] : memref<8x384xf32, #tpu.memory_space<vmem>>, vector<1x384xf32>
    %c1 = arith.constant 1 : index
    %c0_1 = arith.constant 0 : index
    %1 = vector.load %arg5[%c1, %c0_1] : memref<8x384xf32, #tpu.memory_space<vmem>>, vector<1x384xf32>
    %c2 = arith.constant 2 : index
    %c0_2 = arith.constant 0 : index
    %2 = vector.load %arg5[%c2, %c0_2] : memref<8x384xf32, #tpu.memory_space<vmem>>, vector<1x384xf32>
    %c3 = arith.constant 3 : index
    %c0_3 = arith.constant 0 : index
    %3 = vector.load %arg5[%c3, %c0_3] : memref<8x384xf32, #tpu.memory_space<vmem>>, vector<1x384xf32>
    %c4 = arith.constant 4 : index
    %c0_4 = arith.constant 0 : index
    %4 = vector.load %arg5[%c4, %c0_4] : memref<8x384xf32, #tpu.memory_space<vmem>>, vector<1x128xf32>
    %c5 = arith.constant 5 : index
    %c0_5 = arith.constant 0 : index
    %5 = vector.load %arg5[%c5, %c0_5] : memref<8x384xf32, #tpu.memory_space<vmem>>, vector<1x128xf32>
    %c6 = arith.constant 6 : index
    %c0_6 = arith.constant 0 : index
    %6 = vector.load %arg5[%c6, %c0_6] : memref<8x384xf32, #tpu.memory_space<vmem>>, vector<1x1xf32>
    %7 = tpu.iota {dimensions = array<i32: 0>} : vector<32x384xi32>
    %c16_i32 = arith.constant 16 : i32
    %8 = vector.broadcast %c16_i32 : i32 to vector<32x384xi32>
    %9 = arith.cmpi slt, %7, %8 : vector<32x384xi32>
    %10 = vector.shape_cast %0 : vector<1x384xf32> to vector<1x384xf32>
    %11 = vector.broadcast %10 : vector<1x384xf32> to vector<32x384xf32>
    %12 = vector.shape_cast %1 : vector<1x384xf32> to vector<1x384xf32>
    %13 = vector.broadcast %12 : vector<1x384xf32> to vector<32x384xf32>
    %14 = arith.select %9, %11, %13 : vector<32x384xi1>, vector<32x384xf32>
    %c16_i32_7 = arith.constant 16 : i32
    %15 = vector.broadcast %c16_i32_7 : i32 to vector<32x384xi32>
    %16 = arith.cmpi slt, %7, %15 : vector<32x384xi32>
    %17 = vector.shape_cast %2 : vector<1x384xf32> to vector<1x384xf32>
    %18 = vector.broadcast %17 : vector<1x384xf32> to vector<32x384xf32>
    %19 = vector.shape_cast %3 : vector<1x384xf32> to vector<1x384xf32>
    %20 = vector.broadcast %19 : vector<1x384xf32> to vector<32x384xf32>
    %21 = arith.select %16, %18, %20 : vector<32x384xi1>, vector<32x384xf32>
    %22 = tpu.iota {dimensions = array<i32: 0>} : vector<32x256xi32>
    %23 = tpu.iota {dimensions = array<i32: 1>} : vector<32x256xi32>
    %c16_i32_8 = arith.constant 16 : i32
    %24 = vector.broadcast %c16_i32_8 : i32 to vector<32x256xi32>
    %25 = arith.cmpi slt, %22, %24 : vector<32x256xi32>
    %c128_i32 = arith.constant 128 : i32
    %26 = vector.broadcast %c128_i32 : i32 to vector<32x256xi32>
    %27 = arith.cmpi slt, %23, %26 : vector<32x256xi32>
    %28 = arith.andi %25, %27 : vector<32x256xi1>
    %c16_i32_9 = arith.constant 16 : i32
    %29 = vector.broadcast %c16_i32_9 : i32 to vector<32x256xi32>
    %30 = arith.cmpi sge, %22, %29 : vector<32x256xi32>
    %c128_i32_10 = arith.constant 128 : i32
    %31 = vector.broadcast %c128_i32_10 : i32 to vector<32x256xi32>
    %32 = arith.cmpi sge, %23, %31 : vector<32x256xi32>
    %33 = arith.andi %30, %32 : vector<32x256xi1>
    %34 = arith.ori %28, %33 : vector<32x256xi1>
    %c0_11 = arith.constant 0 : index
    %c0_12 = arith.constant 0 : index
    %c0_13 = arith.constant 0 : index
    %35 = vector.load %arg1[%c0_11, %c0_12, %c0_13] : memref<1x256x256xbf16, #tpu.memory_space<vmem>>, vector<1x256x256xbf16>
    %36 = vector.shape_cast %35 : vector<1x256x256xbf16> to vector<256x256xbf16>
    %c0_14 = arith.constant 0 : index
    %c0_15 = arith.constant 0 : index
    %37 = vector.load %arg2[%c0_14, %c0_15] : memref<256x384xbf16, #tpu.memory_space<vmem>>, vector<256x384xbf16>
    %cst = arith.constant dense<0.000000e+00> : vector<256x384xf32>
    %38 = tpu.matmul %36, %37, %cst {dimension_numbers = #tpu.dot_dimension_numbers<[1], [0], [0], [1], [0, 0, 1, 1], [], []>} : vector<256x256xbf16>, vector<256x384xbf16>, vector<256x384xf32> -> vector<256x384xf32>
    %39 = vector.shape_cast %38 : vector<256x384xf32> to vector<8x32x384xf32>
    %40 = vector.shape_cast %14 : vector<32x384xf32> to vector<1x32x384xf32>
    %41 = vector.broadcast %40 : vector<1x32x384xf32> to vector<8x32x384xf32>
    %42 = arith.addf %39, %41 : vector<8x32x384xf32>
    %c0_16 = arith.constant 0 : index
    %c0_17 = arith.constant 0 : index
    %c0_18 = arith.constant 0 : index
    %43 = vector.load %arg8[%c0_16, %c0_17, %c0_18] : memref<8x32x384xf32, #tpu.memory_space<vmem>>, vector<8x32x384xf32>
    tpu.vector_store %arg8[%c0_16, %c0_17, %c0_18], %42 {strides = array<i32>} : memref<8x32x384xf32, #tpu.memory_space<vmem>>, vector<8x32x384xf32>,
    %cst_19 = arith.constant 0.000000e+00 : f32
    %44 = vector.broadcast %cst_19 : f32 to vector<32x128xf32>
    %45 = arith.truncf %44 : vector<32x128xf32> to vector<32x128xbf16>
    %46 = tpu.concatenate %45, %45 in 1 : vector<32x128xbf16>, vector<32x128xbf16> -> vector<32x256xbf16>
    %cst_20 = arith.constant 0.000000e+00 : f32
    %47 = arith.truncf %cst_20 : f32 to bf16
    %48 = vector.broadcast %47 : bf16 to vector<32x256xbf16>
    %49 = arith.select %34, %46, %48 : vector<32x256xi1>, vector<32x256xbf16>
    %c0_21 = arith.constant 0 : index
    %c0_22 = arith.constant 0 : index
    %50 = vector.load %arg3[%c0_21, %c0_22] : memref<256x384xbf16, #tpu.memory_space<vmem>>, vector<256x384xbf16>
    %cst_23 = arith.constant dense<0.000000e+00> : vector<32x384xf32>
    %51 = tpu.matmul %49, %50, %cst_23 {dimension_numbers = #tpu.dot_dimension_numbers<[1], [0], [0], [1], [0, 0, 1, 1], [], []>} : vector<32x256xbf16>, vector<256x384xbf16>, vector<32x384xf32> -> vector<32x384xf32>
    %52 = arith.addf %51, %21 : vector<32x384xf32>
    %c0_24 = arith.constant 0 : index
    %c0_25 = arith.constant 0 : index
    %c0_26 = arith.constant 0 : index
    %53 = vector.load %arg8[%c0_24, %c0_25, %c0_26] : memref<8x32x384xf32, #tpu.memory_space<vmem>>, vector<1x32x384xf32>
    %54 = vector.shape_cast %53 : vector<1x32x384xf32> to vector<32x384xf32>
    %55 = vector.extract_strided_slice %54 {offsets = [0, 0], sizes = [32, 256], strides = [1, 1]} : vector<32x384xf32> to vector<32x256xf32>
    %56 = vector.extract_strided_slice %52 {offsets = [0, 0], sizes = [32, 256], strides = [1, 1]} : vector<32x384xf32> to vector<32x256xf32>
    %57 = arith.addf %55, %56 : vector<32x256xf32>
    %58 = arith.negf %57 : vector<32x256xf32>
    %59 = math.exp %58 : vector<32x256xf32>
    %cst_27 = arith.constant 1.000000e+00 : f32
    %60 = vector.broadcast %cst_27 : f32 to vector<32x256xf32>
    %61 = arith.addf %60, %59 : vector<32x256xf32>
    %62 = arith.divf %60, %61 : vector<32x256xf32>
    %63 = vector.extract_strided_slice %62 {offsets = [0, 0], sizes = [32, 128], strides = [1, 1]} : vector<32x256xf32> to vector<32x128xf32>
    %64 = vector.extract_strided_slice %62 {offsets = [0, 128], sizes = [32, 128], strides = [1, 1]} : vector<32x256xf32> to vector<32x128xf32>
    %65 = vector.extract_strided_slice %54 {offsets = [0, 256], sizes = [32, 128], strides = [1, 1]} : vector<32x384xf32> to vector<32x128xf32>
    %66 = vector.extract_strided_slice %52 {offsets = [0, 256], sizes = [32, 128], strides = [1, 1]} : vector<32x384xf32> to vector<32x128xf32>
    %67 = arith.mulf %63, %66 : vector<32x128xf32>
    %68 = arith.addf %65, %67 : vector<32x128xf32>
    %69 = math.tanh %68 : vector<32x128xf32>
    %cst_28 = arith.constant 1.000000e+00 : f32
    %70 = vector.broadcast %cst_28 : f32 to vector<32x128xf32>
    %71 = arith.subf %70, %64 : vector<32x128xf32>
    %72 = arith.mulf %71, %69 : vector<32x128xf32>
    %73 = arith.mulf %64, %44 : vector<32x128xf32>
    %74 = arith.addf %72, %73 : vector<32x128xf32>
    %75 = vector.extract_strided_slice %74 {offsets = [0, 0], sizes = [16, 128], strides = [1, 1]} : vector<32x128xf32> to vector<16x128xf32>
    %c0_29 = arith.constant 0 : index
    %c0_30 = arith.constant 0 : index
    %c0_31 = arith.constant 0 : index
    %76 = vector.load %arg9[%c0_29, %c0_30, %c0_31] : memref<8x32x128xf32, #tpu.memory_space<vmem>>, vector<1x16x128xf32>
    %77 = vector.shape_cast %76 : vector<1x16x128xf32> to vector<16x128xf32>
    %78 = vector.shape_cast %75 : vector<16x128xf32> to vector<1x16x128xf32>
    tpu.vector_store %arg9[%c0_29, %c0_30, %c0_31], %78 {strides = array<i32>} : memref<8x32x128xf32, #tpu.memory_space<vmem>>, vector<1x16x128xf32>,
    %79 = vector.extract_strided_slice %74 {offsets = [16, 0], sizes = [16, 128], strides = [1, 1]} : vector<32x128xf32> to vector<16x128xf32>
    %c7 = arith.constant 7 : index
    %c16 = arith.constant 16 : index
    %c0_32 = arith.constant 0 : index
    %80 = vector.load %arg9[%c7, %c16, %c0_32] : memref<8x32x128xf32, #tpu.memory_space<vmem>>, vector<1x16x128xf32>
    %81 = vector.shape_cast %80 : vector<1x16x128xf32> to vector<16x128xf32>
    %82 = vector.shape_cast %79 : vector<16x128xf32> to vector<1x16x128xf32>
    tpu.vector_store %arg9[%c7, %c16, %c0_32], %82 {strides = array<i32>} : memref<8x32x128xf32, #tpu.memory_space<vmem>>, vector<1x16x128xf32>,
    %83 = arith.truncf %74 : vector<32x128xf32> to vector<32x128xbf16>
    %84 = tpu.concatenate %83, %83 in 1 : vector<32x128xbf16>, vector<32x128xbf16> -> vector<32x256xbf16>
    %cst_33 = arith.constant 0.000000e+00 : f32
    %85 = arith.truncf %cst_33 : f32 to bf16
    %86 = vector.broadcast %85 : bf16 to vector<32x256xbf16>
    %87 = arith.select %34, %84, %86 : vector<32x256xi1>, vector<32x256xbf16>
    %c0_34 = arith.constant 0 : index
    %c0_35 = arith.constant 0 : index
    %88 = vector.load %arg3[%c0_34, %c0_35] : memref<256x384xbf16, #tpu.memory_space<vmem>>, vector<256x384xbf16>
    %cst_36 = arith.constant dense<0.000000e+00> : vector<32x384xf32>
    %89 = tpu.matmul %87, %88, %cst_36 {dimension_numbers = #tpu.dot_dimension_numbers<[1], [0], [0], [1], [0, 0, 1, 1], [], []>} : vector<32x256xbf16>, vector<256x384xbf16>, vector<32x384xf32> -> vector<32x384xf32>
    %90 = arith.addf %89, %21 : vector<32x384xf32>
    %c1_37 = arith.constant 1 : index
    %c0_38 = arith.constant 0 : index
    %c0_39 = arith.constant 0 : index
    %91 = vector.load %arg8[%c1_37, %c0_38, %c0_39] : memref<8x32x384xf32, #tpu.memory_space<vmem>>, vector<1x32x384xf32>
    %92 = vector.shape_cast %91 : vector<1x32x384xf32> to vector<32x384xf32>
    %93 = vector.extract_strided_slice %92 {offsets = [0, 0], sizes = [32, 256], strides = [1, 1]} : vector<32x384xf32> to vector<32x256xf32>
    %94 = vector.extract_strided_slice %90 {offsets = [0, 0], sizes = [32, 256], strides = [1, 1]} : vector<32x384xf32> to vector<32x256xf32>
    %95 = arith.addf %93, %94 : vector<32x256xf32>
    %96 = arith.negf %95 : vector<32x256xf32>
    %97 = math.exp %96 : vector<32x256xf32>
    %cst_40 = arith.constant 1.000000e+00 : f32
    %98 = vector.broadcast %cst_40 : f32 to vector<32x256xf32>
    %99 = arith.addf %98, %97 : vector<32x256xf32>
    %100 = arith.divf %98, %99 : vector<32x256xf32>
    %101 = vector.extract_strided_slice %100 {offsets = [0, 0], sizes = [32, 128], strides = [1, 1]} : vector<32x256xf32> to vector<32x128xf32>
    %102 = vector.extract_strided_slice %100 {offsets = [0, 128], sizes = [32, 128], strides = [1, 1]} : vector<32x256xf32> to vector<32x128xf32>
    %103 = vector.extract_strided_slice %92 {offsets = [0, 256], sizes = [32, 128], strides = [1, 1]} : vector<32x384xf32> to vector<32x128xf32>
    %104 = vector.extract_strided_slice %90 {offsets = [0, 256], sizes = [32, 128], strides = [1, 1]} : vector<32x384xf32> to vector<32x128xf32>
    %105 = arith.mulf %101, %104 : vector<32x128xf32>
    %106 = arith.addf %103, %105 : vector<32x128xf32>
    %107 = math.tanh %106 : vector<32x128xf32>
    %cst_41 = arith.constant 1.000000e+00 : f32
    %108 = vector.broadcast %cst_41 : f32 to vector<32x128xf32>
    %109 = arith.subf %108, %102 : vector<32x128xf32>
    %110 = arith.mulf %109, %107 : vector<32x128xf32>
    %111 = arith.mulf %102, %74 : vector<32x128xf32>
    %112 = arith.addf %110, %111 : vector<32x128xf32>
    %113 = vector.extract_strided_slice %112 {offsets = [0, 0], sizes = [16, 128], strides = [1, 1]} : vector<32x128xf32> to vector<16x128xf32>
    %c1_42 = arith.constant 1 : index
    %c0_43 = arith.constant 0 : index
    %c0_44 = arith.constant 0 : index
    %114 = vector.load %arg9[%c1_42, %c0_43, %c0_44] : memref<8x32x128xf32, #tpu.memory_space<vmem>>, vector<1x16x128xf32>
    %115 = vector.shape_cast %114 : vector<1x16x128xf32> to vector<16x128xf32>
    %116 = vector.shape_cast %113 : vector<16x128xf32> to vector<1x16x128xf32>
    tpu.vector_store %arg9[%c1_42, %c0_43, %c0_44], %116 {strides = array<i32>} : memref<8x32x128xf32, #tpu.memory_space<vmem>>, vector<1x16x128xf32>,
    %117 = vector.extract_strided_slice %112 {offsets = [16, 0], sizes = [16, 128], strides = [1, 1]} : vector<32x128xf32> to vector<16x128xf32>
    %c6_45 = arith.constant 6 : index
    %c16_46 = arith.constant 16 : index
    %c0_47 = arith.constant 0 : index
    %118 = vector.load %arg9[%c6_45, %c16_46, %c0_47] : memref<8x32x128xf32, #tpu.memory_space<vmem>>, vector<1x16x128xf32>
    %119 = vector.shape_cast %118 : vector<1x16x128xf32> to vector<16x128xf32>
    %120 = vector.shape_cast %117 : vector<16x128xf32> to vector<1x16x128xf32>
    tpu.vector_store %arg9[%c6_45, %c16_46, %c0_47], %120 {strides = array<i32>} : memref<8x32x128xf32, #tpu.memory_space<vmem>>, vector<1x16x128xf32>,
    %121 = arith.truncf %112 : vector<32x128xf32> to vector<32x128xbf16>
    %122 = tpu.concatenate %121, %121 in 1 : vector<32x128xbf16>, vector<32x128xbf16> -> vector<32x256xbf16>
    %cst_48 = arith.constant 0.000000e+00 : f32
    %123 = arith.truncf %cst_48 : f32 to bf16
    %124 = vector.broadcast %123 : bf16 to vector<32x256xbf16>
    %125 = arith.select %34, %122, %124 : vector<32x256xi1>, vector<32x256xbf16>
    %c0_49 = arith.constant 0 : index
    %c0_50 = arith.constant 0 : index
    %126 = vector.load %arg3[%c0_49, %c0_50] : memref<256x384xbf16, #tpu.memory_space<vmem>>, vector<256x384xbf16>
    %cst_51 = arith.constant dense<0.000000e+00> : vector<32x384xf32>
    %127 = tpu.matmul %125, %126, %cst_51 {dimension_numbers = #tpu.dot_dimension_numbers<[1], [0], [0], [1], [0, 0, 1, 1], [], []>} : vector<32x256xbf16>, vector<256x384xbf16>, vector<32x384xf32> -> vector<32x384xf32>
    %128 = arith.addf %127, %21 : vector<32x384xf32>
    %c2_52 = arith.constant 2 : index
    %c0_53 = arith.constant 0 : index
    %c0_54 = arith.constant 0 : index
    %129 = vector.load %arg8[%c2_52, %c0_53, %c0_54] : memref<8x32x384xf32, #tpu.memory_space<vmem>>, vector<1x32x384xf32>
    %130 = vector.shape_cast %129 : vector<1x32x384xf32> to vector<32x384xf32>
    %131 = vector.extract_strided_slice %130 {offsets = [0, 0], sizes = [32, 256], strides = [1, 1]} : vector<32x384xf32> to vector<32x256xf32>
    %132 = vector.extract_strided_slice %128 {offsets = [0, 0], sizes = [32, 256], strides = [1, 1]} : vector<32x384xf32> to vector<32x256xf32>
    %133 = arith.addf %131, %132 : vector<32x256xf32>
    %134 = arith.negf %133 : vector<32x256xf32>
    %135 = math.exp %134 : vector<32x256xf32>
    %cst_55 = arith.constant 1.000000e+00 : f32
    %136 = vector.broadcast %cst_55 : f32 to vector<32x256xf32>
    %137 = arith.addf %136, %135 : vector<32x256xf32>
    %138 = arith.divf %136, %137 : vector<32x256xf32>
    %139 = vector.extract_strided_slice %138 {offsets = [0, 0], sizes = [32, 128], strides = [1, 1]} : vector<32x256xf32> to vector<32x128xf32>
    %140 = vector.extract_strided_slice %138 {offsets = [0, 128], sizes = [32, 128], strides = [1, 1]} : vector<32x256xf32> to vector<32x128xf32>
    %141 = vector.extract_strided_slice %130 {offsets = [0, 256], sizes = [32, 128], strides = [1, 1]} : vector<32x384xf32> to vector<32x128xf32>
    %142 = vector.extract_strided_slice %128 {offsets = [0, 256], sizes = [32, 128], strides = [1, 1]} : vector<32x384xf32> to vector<32x128xf32>
    %143 = arith.mulf %139, %142 : vector<32x128xf32>
    %144 = arith.addf %141, %143 : vector<32x128xf32>
    %145 = math.tanh %144 : vector<32x128xf32>
    %cst_56 = arith.constant 1.000000e+00 : f32
    %146 = vector.broadcast %cst_56 : f32 to vector<32x128xf32>
    %147 = arith.subf %146, %140 : vector<32x128xf32>
    %148 = arith.mulf %147, %145 : vector<32x128xf32>
    %149 = arith.mulf %140, %112 : vector<32x128xf32>
    %150 = arith.addf %148, %149 : vector<32x128xf32>
    %151 = vector.extract_strided_slice %150 {offsets = [0, 0], sizes = [16, 128], strides = [1, 1]} : vector<32x128xf32> to vector<16x128xf32>
    %c2_57 = arith.constant 2 : index
    %c0_58 = arith.constant 0 : index
    %c0_59 = arith.constant 0 : index
    %152 = vector.load %arg9[%c2_57, %c0_58, %c0_59] : memref<8x32x128xf32, #tpu.memory_space<vmem>>, vector<1x16x128xf32>
    %153 = vector.shape_cast %152 : vector<1x16x128xf32> to vector<16x128xf32>
    %154 = vector.shape_cast %151 : vector<16x128xf32> to vector<1x16x128xf32>
    tpu.vector_store %arg9[%c2_57, %c0_58, %c0_59], %154 {strides = array<i32>} : memref<8x32x128xf32, #tpu.memory_space<vmem>>, vector<1x16x128xf32>,
    %155 = vector.extract_strided_slice %150 {offsets = [16, 0], sizes = [16, 128], strides = [1, 1]} : vector<32x128xf32> to vector<16x128xf32>
    %c5_60 = arith.constant 5 : index
    %c16_61 = arith.constant 16 : index
    %c0_62 = arith.constant 0 : index
    %156 = vector.load %arg9[%c5_60, %c16_61, %c0_62] : memref<8x32x128xf32, #tpu.memory_space<vmem>>, vector<1x16x128xf32>
    %157 = vector.shape_cast %156 : vector<1x16x128xf32> to vector<16x128xf32>
    %158 = vector.shape_cast %155 : vector<16x128xf32> to vector<1x16x128xf32>
    tpu.vector_store %arg9[%c5_60, %c16_61, %c0_62], %158 {strides = array<i32>} : memref<8x32x128xf32, #tpu.memory_space<vmem>>, vector<1x16x128xf32>,
    %159 = arith.truncf %150 : vector<32x128xf32> to vector<32x128xbf16>
    %160 = tpu.concatenate %159, %159 in 1 : vector<32x128xbf16>, vector<32x128xbf16> -> vector<32x256xbf16>
    %cst_63 = arith.constant 0.000000e+00 : f32
    %161 = arith.truncf %cst_63 : f32 to bf16
    %162 = vector.broadcast %161 : bf16 to vector<32x256xbf16>
    %163 = arith.select %34, %160, %162 : vector<32x256xi1>, vector<32x256xbf16>
    %c0_64 = arith.constant 0 : index
    %c0_65 = arith.constant 0 : index
    %164 = vector.load %arg3[%c0_64, %c0_65] : memref<256x384xbf16, #tpu.memory_space<vmem>>, vector<256x384xbf16>
    %cst_66 = arith.constant dense<0.000000e+00> : vector<32x384xf32>
    %165 = tpu.matmul %163, %164, %cst_66 {dimension_numbers = #tpu.dot_dimension_numbers<[1], [0], [0], [1], [0, 0, 1, 1], [], []>} : vector<32x256xbf16>, vector<256x384xbf16>, vector<32x384xf32> -> vector<32x384xf32>
    %166 = arith.addf %165, %21 : vector<32x384xf32>
    %c3_67 = arith.constant 3 : index
    %c0_68 = arith.constant 0 : index
    %c0_69 = arith.constant 0 : index
    %167 = vector.load %arg8[%c3_67, %c0_68, %c0_69] : memref<8x32x384xf32, #tpu.memory_space<vmem>>, vector<1x32x384xf32>
    %168 = vector.shape_cast %167 : vector<1x32x384xf32> to vector<32x384xf32>
    %169 = vector.extract_strided_slice %168 {offsets = [0, 0], sizes = [32, 256], strides = [1, 1]} : vector<32x384xf32> to vector<32x256xf32>
    %170 = vector.extract_strided_slice %166 {offsets = [0, 0], sizes = [32, 256], strides = [1, 1]} : vector<32x384xf32> to vector<32x256xf32>
    %171 = arith.addf %169, %170 : vector<32x256xf32>
    %172 = arith.negf %171 : vector<32x256xf32>
    %173 = math.exp %172 : vector<32x256xf32>
    %cst_70 = arith.constant 1.000000e+00 : f32
    %174 = vector.broadcast %cst_70 : f32 to vector<32x256xf32>
    %175 = arith.addf %174, %173 : vector<32x256xf32>
    %176 = arith.divf %174, %175 : vector<32x256xf32>
    %177 = vector.extract_strided_slice %176 {offsets = [0, 0], sizes = [32, 128], strides = [1, 1]} : vector<32x256xf32> to vector<32x128xf32>
    %178 = vector.extract_strided_slice %176 {offsets = [0, 128], sizes = [32, 128], strides = [1, 1]} : vector<32x256xf32> to vector<32x128xf32>
    %179 = vector.extract_strided_slice %168 {offsets = [0, 256], sizes = [32, 128], strides = [1, 1]} : vector<32x384xf32> to vector<32x128xf32>
    %180 = vector.extract_strided_slice %166 {offsets = [0, 256], sizes = [32, 128], strides = [1, 1]} : vector<32x384xf32> to vector<32x128xf32>
    %181 = arith.mulf %177, %180 : vector<32x128xf32>
    %182 = arith.addf %179, %181 : vector<32x128xf32>
    %183 = math.tanh %182 : vector<32x128xf32>
    %cst_71 = arith.constant 1.000000e+00 : f32
    %184 = vector.broadcast %cst_71 : f32 to vector<32x128xf32>
    %185 = arith.subf %184, %178 : vector<32x128xf32>
    %186 = arith.mulf %185, %183 : vector<32x128xf32>
    %187 = arith.mulf %178, %150 : vector<32x128xf32>
    %188 = arith.addf %186, %187 : vector<32x128xf32>
    %189 = vector.extract_strided_slice %188 {offsets = [0, 0], sizes = [16, 128], strides = [1, 1]} : vector<32x128xf32> to vector<16x128xf32>
    %c3_72 = arith.constant 3 : index
    %c0_73 = arith.constant 0 : index
    %c0_74 = arith.constant 0 : index
    %190 = vector.load %arg9[%c3_72, %c0_73, %c0_74] : memref<8x32x128xf32, #tpu.memory_space<vmem>>, vector<1x16x128xf32>
    %191 = vector.shape_cast %190 : vector<1x16x128xf32> to vector<16x128xf32>
    %192 = vector.shape_cast %189 : vector<16x128xf32> to vector<1x16x128xf32>
    tpu.vector_store %arg9[%c3_72, %c0_73, %c0_74], %192 {strides = array<i32>} : memref<8x32x128xf32, #tpu.memory_space<vmem>>, vector<1x16x128xf32>,
    %193 = vector.extract_strided_slice %188 {offsets = [16, 0], sizes = [16, 128], strides = [1, 1]} : vector<32x128xf32> to vector<16x128xf32>
    %c4_75 = arith.constant 4 : index
    %c16_76 = arith.constant 16 : index
    %c0_77 = arith.constant 0 : index
    %194 = vector.load %arg9[%c4_75, %c16_76, %c0_77] : memref<8x32x128xf32, #tpu.memory_space<vmem>>, vector<1x16x128xf32>
    %195 = vector.shape_cast %194 : vector<1x16x128xf32> to vector<16x128xf32>
    %196 = vector.shape_cast %193 : vector<16x128xf32> to vector<1x16x128xf32>
    tpu.vector_store %arg9[%c4_75, %c16_76, %c0_77], %196 {strides = array<i32>} : memref<8x32x128xf32, #tpu.memory_space<vmem>>, vector<1x16x128xf32>,
    %197 = arith.truncf %188 : vector<32x128xf32> to vector<32x128xbf16>
    %198 = tpu.concatenate %197, %197 in 1 : vector<32x128xbf16>, vector<32x128xbf16> -> vector<32x256xbf16>
    %cst_78 = arith.constant 0.000000e+00 : f32
    %199 = arith.truncf %cst_78 : f32 to bf16
    %200 = vector.broadcast %199 : bf16 to vector<32x256xbf16>
    %201 = arith.select %34, %198, %200 : vector<32x256xi1>, vector<32x256xbf16>
    %c0_79 = arith.constant 0 : index
    %c0_80 = arith.constant 0 : index
    %202 = vector.load %arg3[%c0_79, %c0_80] : memref<256x384xbf16, #tpu.memory_space<vmem>>, vector<256x384xbf16>
    %cst_81 = arith.constant dense<0.000000e+00> : vector<32x384xf32>
    %203 = tpu.matmul %201, %202, %cst_81 {dimension_numbers = #tpu.dot_dimension_numbers<[1], [0], [0], [1], [0, 0, 1, 1], [], []>} : vector<32x256xbf16>, vector<256x384xbf16>, vector<32x384xf32> -> vector<32x384xf32>
    %204 = arith.addf %203, %21 : vector<32x384xf32>
    %c4_82 = arith.constant 4 : index
    %c0_83 = arith.constant 0 : index
    %c0_84 = arith.constant 0 : index
    %205 = vector.load %arg8[%c4_82, %c0_83, %c0_84] : memref<8x32x384xf32, #tpu.memory_space<vmem>>, vector<1x32x384xf32>
    %206 = vector.shape_cast %205 : vector<1x32x384xf32> to vector<32x384xf32>
    %207 = vector.extract_strided_slice %206 {offsets = [0, 0], sizes = [32, 256], strides = [1, 1]} : vector<32x384xf32> to vector<32x256xf32>
    %208 = vector.extract_strided_slice %204 {offsets = [0, 0], sizes = [32, 256], strides = [1, 1]} : vector<32x384xf32> to vector<32x256xf32>
    %209 = arith.addf %207, %208 : vector<32x256xf32>
    %210 = arith.negf %209 : vector<32x256xf32>
    %211 = math.exp %210 : vector<32x256xf32>
    %cst_85 = arith.constant 1.000000e+00 : f32
    %212 = vector.broadcast %cst_85 : f32 to vector<32x256xf32>
    %213 = arith.addf %212, %211 : vector<32x256xf32>
    %214 = arith.divf %212, %213 : vector<32x256xf32>
    %215 = vector.extract_strided_slice %214 {offsets = [0, 0], sizes = [32, 128], strides = [1, 1]} : vector<32x256xf32> to vector<32x128xf32>
    %216 = vector.extract_strided_slice %214 {offsets = [0, 128], sizes = [32, 128], strides = [1, 1]} : vector<32x256xf32> to vector<32x128xf32>
    %217 = vector.extract_strided_slice %206 {offsets = [0, 256], sizes = [32, 128], strides = [1, 1]} : vector<32x384xf32> to vector<32x128xf32>
    %218 = vector.extract_strided_slice %204 {offsets = [0, 256], sizes = [32, 128], strides = [1, 1]} : vector<32x384xf32> to vector<32x128xf32>
    %219 = arith.mulf %215, %218 : vector<32x128xf32>
    %220 = arith.addf %217, %219 : vector<32x128xf32>
    %221 = math.tanh %220 : vector<32x128xf32>
    %cst_86 = arith.constant 1.000000e+00 : f32
    %222 = vector.broadcast %cst_86 : f32 to vector<32x128xf32>
    %223 = arith.subf %222, %216 : vector<32x128xf32>
    %224 = arith.mulf %223, %221 : vector<32x128xf32>
    %225 = arith.mulf %216, %188 : vector<32x128xf32>
    %226 = arith.addf %224, %225 : vector<32x128xf32>
    %227 = vector.extract_strided_slice %226 {offsets = [0, 0], sizes = [16, 128], strides = [1, 1]} : vector<32x128xf32> to vector<16x128xf32>
    %c4_87 = arith.constant 4 : index
    %c0_88 = arith.constant 0 : index
    %c0_89 = arith.constant 0 : index
    %228 = vector.load %arg9[%c4_87, %c0_88, %c0_89] : memref<8x32x128xf32, #tpu.memory_space<vmem>>, vector<1x16x128xf32>
    %229 = vector.shape_cast %228 : vector<1x16x128xf32> to vector<16x128xf32>
    %230 = vector.shape_cast %227 : vector<16x128xf32> to vector<1x16x128xf32>
    tpu.vector_store %arg9[%c4_87, %c0_88, %c0_89], %230 {strides = array<i32>} : memref<8x32x128xf32, #tpu.memory_space<vmem>>, vector<1x16x128xf32>,
    %231 = vector.extract_strided_slice %226 {offsets = [16, 0], sizes = [16, 128], strides = [1, 1]} : vector<32x128xf32> to vector<16x128xf32>
    %c3_90 = arith.constant 3 : index
    %c16_91 = arith.constant 16 : index
    %c0_92 = arith.constant 0 : index
    %232 = vector.load %arg9[%c3_90, %c16_91, %c0_92] : memref<8x32x128xf32, #tpu.memory_space<vmem>>, vector<1x16x128xf32>
    %233 = vector.shape_cast %232 : vector<1x16x128xf32> to vector<16x128xf32>
    %234 = vector.shape_cast %231 : vector<16x128xf32> to vector<1x16x128xf32>
    tpu.vector_store %arg9[%c3_90, %c16_91, %c0_92], %234 {strides = array<i32>} : memref<8x32x128xf32, #tpu.memory_space<vmem>>, vector<1x16x128xf32>,
    %235 = arith.truncf %226 : vector<32x128xf32> to vector<32x128xbf16>
    %236 = tpu.concatenate %235, %235 in 1 : vector<32x128xbf16>, vector<32x128xbf16> -> vector<32x256xbf16>
    %cst_93 = arith.constant 0.000000e+00 : f32
    %237 = arith.truncf %cst_93 : f32 to bf16
    %238 = vector.broadcast %237 : bf16 to vector<32x256xbf16>
    %239 = arith.select %34, %236, %238 : vector<32x256xi1>, vector<32x256xbf16>
    %c0_94 = arith.constant 0 : index
    %c0_95 = arith.constant 0 : index
    %240 = vector.load %arg3[%c0_94, %c0_95] : memref<256x384xbf16, #tpu.memory_space<vmem>>, vector<256x384xbf16>
    %cst_96 = arith.constant dense<0.000000e+00> : vector<32x384xf32>
    %241 = tpu.matmul %239, %240, %cst_96 {dimension_numbers = #tpu.dot_dimension_numbers<[1], [0], [0], [1], [0, 0, 1, 1], [], []>} : vector<32x256xbf16>, vector<256x384xbf16>, vector<32x384xf32> -> vector<32x384xf32>
    %242 = arith.addf %241, %21 : vector<32x384xf32>
    %c5_97 = arith.constant 5 : index
    %c0_98 = arith.constant 0 : index
    %c0_99 = arith.constant 0 : index
    %243 = vector.load %arg8[%c5_97, %c0_98, %c0_99] : memref<8x32x384xf32, #tpu.memory_space<vmem>>, vector<1x32x384xf32>
    %244 = vector.shape_cast %243 : vector<1x32x384xf32> to vector<32x384xf32>
    %245 = vector.extract_strided_slice %244 {offsets = [0, 0], sizes = [32, 256], strides = [1, 1]} : vector<32x384xf32> to vector<32x256xf32>
    %246 = vector.extract_strided_slice %242 {offsets = [0, 0], sizes = [32, 256], strides = [1, 1]} : vector<32x384xf32> to vector<32x256xf32>
    %247 = arith.addf %245, %246 : vector<32x256xf32>
    %248 = arith.negf %247 : vector<32x256xf32>
    %249 = math.exp %248 : vector<32x256xf32>
    %cst_100 = arith.constant 1.000000e+00 : f32
    %250 = vector.broadcast %cst_100 : f32 to vector<32x256xf32>
    %251 = arith.addf %250, %249 : vector<32x256xf32>
    %252 = arith.divf %250, %251 : vector<32x256xf32>
    %253 = vector.extract_strided_slice %252 {offsets = [0, 0], sizes = [32, 128], strides = [1, 1]} : vector<32x256xf32> to vector<32x128xf32>
    %254 = vector.extract_strided_slice %252 {offsets = [0, 128], sizes = [32, 128], strides = [1, 1]} : vector<32x256xf32> to vector<32x128xf32>
    %255 = vector.extract_strided_slice %244 {offsets = [0, 256], sizes = [32, 128], strides = [1, 1]} : vector<32x384xf32> to vector<32x128xf32>
    %256 = vector.extract_strided_slice %242 {offsets = [0, 256], sizes = [32, 128], strides = [1, 1]} : vector<32x384xf32> to vector<32x128xf32>
    %257 = arith.mulf %253, %256 : vector<32x128xf32>
    %258 = arith.addf %255, %257 : vector<32x128xf32>
    %259 = math.tanh %258 : vector<32x128xf32>
    %cst_101 = arith.constant 1.000000e+00 : f32
    %260 = vector.broadcast %cst_101 : f32 to vector<32x128xf32>
    %261 = arith.subf %260, %254 : vector<32x128xf32>
    %262 = arith.mulf %261, %259 : vector<32x128xf32>
    %263 = arith.mulf %254, %226 : vector<32x128xf32>
    %264 = arith.addf %262, %263 : vector<32x128xf32>
    %265 = vector.extract_strided_slice %264 {offsets = [0, 0], sizes = [16, 128], strides = [1, 1]} : vector<32x128xf32> to vector<16x128xf32>
    %c5_102 = arith.constant 5 : index
    %c0_103 = arith.constant 0 : index
    %c0_104 = arith.constant 0 : index
    %266 = vector.load %arg9[%c5_102, %c0_103, %c0_104] : memref<8x32x128xf32, #tpu.memory_space<vmem>>, vector<1x16x128xf32>
    %267 = vector.shape_cast %266 : vector<1x16x128xf32> to vector<16x128xf32>
    %268 = vector.shape_cast %265 : vector<16x128xf32> to vector<1x16x128xf32>
    tpu.vector_store %arg9[%c5_102, %c0_103, %c0_104], %268 {strides = array<i32>} : memref<8x32x128xf32, #tpu.memory_space<vmem>>, vector<1x16x128xf32>,
    %269 = vector.extract_strided_slice %264 {offsets = [16, 0], sizes = [16, 128], strides = [1, 1]} : vector<32x128xf32> to vector<16x128xf32>
    %c2_105 = arith.constant 2 : index
    %c16_106 = arith.constant 16 : index
    %c0_107 = arith.constant 0 : index
    %270 = vector.load %arg9[%c2_105, %c16_106, %c0_107] : memref<8x32x128xf32, #tpu.memory_space<vmem>>, vector<1x16x128xf32>
    %271 = vector.shape_cast %270 : vector<1x16x128xf32> to vector<16x128xf32>
    %272 = vector.shape_cast %269 : vector<16x128xf32> to vector<1x16x128xf32>
    tpu.vector_store %arg9[%c2_105, %c16_106, %c0_107], %272 {strides = array<i32>} : memref<8x32x128xf32, #tpu.memory_space<vmem>>, vector<1x16x128xf32>,
    %273 = arith.truncf %264 : vector<32x128xf32> to vector<32x128xbf16>
    %274 = tpu.concatenate %273, %273 in 1 : vector<32x128xbf16>, vector<32x128xbf16> -> vector<32x256xbf16>
    %cst_108 = arith.constant 0.000000e+00 : f32
    %275 = arith.truncf %cst_108 : f32 to bf16
    %276 = vector.broadcast %275 : bf16 to vector<32x256xbf16>
    %277 = arith.select %34, %274, %276 : vector<32x256xi1>, vector<32x256xbf16>
    %c0_109 = arith.constant 0 : index
    %c0_110 = arith.constant 0 : index
    %278 = vector.load %arg3[%c0_109, %c0_110] : memref<256x384xbf16, #tpu.memory_space<vmem>>, vector<256x384xbf16>
    %cst_111 = arith.constant dense<0.000000e+00> : vector<32x384xf32>
    %279 = tpu.matmul %277, %278, %cst_111 {dimension_numbers = #tpu.dot_dimension_numbers<[1], [0], [0], [1], [0, 0, 1, 1], [], []>} : vector<32x256xbf16>, vector<256x384xbf16>, vector<32x384xf32> -> vector<32x384xf32>
    %280 = arith.addf %279, %21 : vector<32x384xf32>
    %c6_112 = arith.constant 6 : index
    %c0_113 = arith.constant 0 : index
    %c0_114 = arith.constant 0 : index
    %281 = vector.load %arg8[%c6_112, %c0_113, %c0_114] : memref<8x32x384xf32, #tpu.memory_space<vmem>>, vector<1x32x384xf32>
    %282 = vector.shape_cast %281 : vector<1x32x384xf32> to vector<32x384xf32>
    %283 = vector.extract_strided_slice %282 {offsets = [0, 0], sizes = [32, 256], strides = [1, 1]} : vector<32x384xf32> to vector<32x256xf32>
    %284 = vector.extract_strided_slice %280 {offsets = [0, 0], sizes = [32, 256], strides = [1, 1]} : vector<32x384xf32> to vector<32x256xf32>
    %285 = arith.addf %283, %284 : vector<32x256xf32>
    %286 = arith.negf %285 : vector<32x256xf32>
    %287 = math.exp %286 : vector<32x256xf32>
    %cst_115 = arith.constant 1.000000e+00 : f32
    %288 = vector.broadcast %cst_115 : f32 to vector<32x256xf32>
    %289 = arith.addf %288, %287 : vector<32x256xf32>
    %290 = arith.divf %288, %289 : vector<32x256xf32>
    %291 = vector.extract_strided_slice %290 {offsets = [0, 0], sizes = [32, 128], strides = [1, 1]} : vector<32x256xf32> to vector<32x128xf32>
    %292 = vector.extract_strided_slice %290 {offsets = [0, 128], sizes = [32, 128], strides = [1, 1]} : vector<32x256xf32> to vector<32x128xf32>
    %293 = vector.extract_strided_slice %282 {offsets = [0, 256], sizes = [32, 128], strides = [1, 1]} : vector<32x384xf32> to vector<32x128xf32>
    %294 = vector.extract_strided_slice %280 {offsets = [0, 256], sizes = [32, 128], strides = [1, 1]} : vector<32x384xf32> to vector<32x128xf32>
    %295 = arith.mulf %291, %294 : vector<32x128xf32>
    %296 = arith.addf %293, %295 : vector<32x128xf32>
    %297 = math.tanh %296 : vector<32x128xf32>
    %cst_116 = arith.constant 1.000000e+00 : f32
    %298 = vector.broadcast %cst_116 : f32 to vector<32x128xf32>
    %299 = arith.subf %298, %292 : vector<32x128xf32>
    %300 = arith.mulf %299, %297 : vector<32x128xf32>
    %301 = arith.mulf %292, %264 : vector<32x128xf32>
    %302 = arith.addf %300, %301 : vector<32x128xf32>
    %303 = vector.extract_strided_slice %302 {offsets = [0, 0], sizes = [16, 128], strides = [1, 1]} : vector<32x128xf32> to vector<16x128xf32>
    %c6_117 = arith.constant 6 : index
    %c0_118 = arith.constant 0 : index
    %c0_119 = arith.constant 0 : index
    %304 = vector.load %arg9[%c6_117, %c0_118, %c0_119] : memref<8x32x128xf32, #tpu.memory_space<vmem>>, vector<1x16x128xf32>
    %305 = vector.shape_cast %304 : vector<1x16x128xf32> to vector<16x128xf32>
    %306 = vector.shape_cast %303 : vector<16x128xf32> to vector<1x16x128xf32>
    tpu.vector_store %arg9[%c6_117, %c0_118, %c0_119], %306 {strides = array<i32>} : memref<8x32x128xf32, #tpu.memory_space<vmem>>, vector<1x16x128xf32>,
    %307 = vector.extract_strided_slice %302 {offsets = [16, 0], sizes = [16, 128], strides = [1, 1]} : vector<32x128xf32> to vector<16x128xf32>
    %c1_120 = arith.constant 1 : index
    %c16_121 = arith.constant 16 : index
    %c0_122 = arith.constant 0 : index
    %308 = vector.load %arg9[%c1_120, %c16_121, %c0_122] : memref<8x32x128xf32, #tpu.memory_space<vmem>>, vector<1x16x128xf32>
    %309 = vector.shape_cast %308 : vector<1x16x128xf32> to vector<16x128xf32>
    %310 = vector.shape_cast %307 : vector<16x128xf32> to vector<1x16x128xf32>
    tpu.vector_store %arg9[%c1_120, %c16_121, %c0_122], %310 {strides = array<i32>} : memref<8x32x128xf32, #tpu.memory_space<vmem>>, vector<1x16x128xf32>,
    %311 = arith.truncf %302 : vector<32x128xf32> to vector<32x128xbf16>
    %312 = tpu.concatenate %311, %311 in 1 : vector<32x128xbf16>, vector<32x128xbf16> -> vector<32x256xbf16>
    %cst_123 = arith.constant 0.000000e+00 : f32
    %313 = arith.truncf %cst_123 : f32 to bf16
    %314 = vector.broadcast %313 : bf16 to vector<32x256xbf16>
    %315 = arith.select %34, %312, %314 : vector<32x256xi1>, vector<32x256xbf16>
    %c0_124 = arith.constant 0 : index
    %c0_125 = arith.constant 0 : index
    %316 = vector.load %arg3[%c0_124, %c0_125] : memref<256x384xbf16, #tpu.memory_space<vmem>>, vector<256x384xbf16>
    %cst_126 = arith.constant dense<0.000000e+00> : vector<32x384xf32>
    %317 = tpu.matmul %315, %316, %cst_126 {dimension_numbers = #tpu.dot_dimension_numbers<[1], [0], [0], [1], [0, 0, 1, 1], [], []>} : vector<32x256xbf16>, vector<256x384xbf16>, vector<32x384xf32> -> vector<32x384xf32>
    %318 = arith.addf %317, %21 : vector<32x384xf32>
    %c7_127 = arith.constant 7 : index
    %c0_128 = arith.constant 0 : index
    %c0_129 = arith.constant 0 : index
    %319 = vector.load %arg8[%c7_127, %c0_128, %c0_129] : memref<8x32x384xf32, #tpu.memory_space<vmem>>, vector<1x32x384xf32>
    %320 = vector.shape_cast %319 : vector<1x32x384xf32> to vector<32x384xf32>
    %321 = vector.extract_strided_slice %320 {offsets = [0, 0], sizes = [32, 256], strides = [1, 1]} : vector<32x384xf32> to vector<32x256xf32>
    %322 = vector.extract_strided_slice %318 {offsets = [0, 0], sizes = [32, 256], strides = [1, 1]} : vector<32x384xf32> to vector<32x256xf32>
    %323 = arith.addf %321, %322 : vector<32x256xf32>
    %324 = arith.negf %323 : vector<32x256xf32>
    %325 = math.exp %324 : vector<32x256xf32>
    %cst_130 = arith.constant 1.000000e+00 : f32
    %326 = vector.broadcast %cst_130 : f32 to vector<32x256xf32>
    %327 = arith.addf %326, %325 : vector<32x256xf32>
    %328 = arith.divf %326, %327 : vector<32x256xf32>
    %329 = vector.extract_strided_slice %328 {offsets = [0, 0], sizes = [32, 128], strides = [1, 1]} : vector<32x256xf32> to vector<32x128xf32>
    %330 = vector.extract_strided_slice %328 {offsets = [0, 128], sizes = [32, 128], strides = [1, 1]} : vector<32x256xf32> to vector<32x128xf32>
    %331 = vector.extract_strided_slice %320 {offsets = [0, 256], sizes = [32, 128], strides = [1, 1]} : vector<32x384xf32> to vector<32x128xf32>
    %332 = vector.extract_strided_slice %318 {offsets = [0, 256], sizes = [32, 128], strides = [1, 1]} : vector<32x384xf32> to vector<32x128xf32>
    %333 = arith.mulf %329, %332 : vector<32x128xf32>
    %334 = arith.addf %331, %333 : vector<32x128xf32>
    %335 = math.tanh %334 : vector<32x128xf32>
    %cst_131 = arith.constant 1.000000e+00 : f32
    %336 = vector.broadcast %cst_131 : f32 to vector<32x128xf32>
    %337 = arith.subf %336, %330 : vector<32x128xf32>
    %338 = arith.mulf %337, %335 : vector<32x128xf32>
    %339 = arith.mulf %330, %302 : vector<32x128xf32>
    %340 = arith.addf %338, %339 : vector<32x128xf32>
    %341 = vector.extract_strided_slice %340 {offsets = [0, 0], sizes = [16, 128], strides = [1, 1]} : vector<32x128xf32> to vector<16x128xf32>
    %c7_132 = arith.constant 7 : index
    %c0_133 = arith.constant 0 : index
    %c0_134 = arith.constant 0 : index
    %342 = vector.load %arg9[%c7_132, %c0_133, %c0_134] : memref<8x32x128xf32, #tpu.memory_space<vmem>>, vector<1x16x128xf32>
    %343 = vector.shape_cast %342 : vector<1x16x128xf32> to vector<16x128xf32>
    %344 = vector.shape_cast %341 : vector<16x128xf32> to vector<1x16x128xf32>
    tpu.vector_store %arg9[%c7_132, %c0_133, %c0_134], %344 {strides = array<i32>} : memref<8x32x128xf32, #tpu.memory_space<vmem>>, vector<1x16x128xf32>,
    %345 = vector.extract_strided_slice %340 {offsets = [16, 0], sizes = [16, 128], strides = [1, 1]} : vector<32x128xf32> to vector<16x128xf32>
    %c0_135 = arith.constant 0 : index
    %c16_136 = arith.constant 16 : index
    %c0_137 = arith.constant 0 : index
    %346 = vector.load %arg9[%c0_135, %c16_136, %c0_137] : memref<8x32x128xf32, #tpu.memory_space<vmem>>, vector<1x16x128xf32>
    %347 = vector.shape_cast %346 : vector<1x16x128xf32> to vector<16x128xf32>
    %348 = vector.shape_cast %345 : vector<16x128xf32> to vector<1x16x128xf32>
    tpu.vector_store %arg9[%c0_135, %c16_136, %c0_137], %348 {strides = array<i32>} : memref<8x32x128xf32, #tpu.memory_space<vmem>>, vector<1x16x128xf32>,
    %c0_138 = arith.constant 0 : index
    %c0_139 = arith.constant 0 : index
    %c0_140 = arith.constant 0 : index
    %349 = vector.load %arg9[%c0_138, %c0_139, %c0_140] : memref<8x32x128xf32, #tpu.memory_space<vmem>>, vector<8x32x128xf32>
    %350 = vector.extract_strided_slice %349 {offsets = [0, 0, 0], sizes = [8, 16, 128], strides = [1, 1, 1]} : vector<8x32x128xf32> to vector<8x16x128xf32>
    %351 = vector.shape_cast %350 : vector<8x16x128xf32> to vector<128x128xf32>
    %352 = vector.extract_strided_slice %349 {offsets = [0, 16, 0], sizes = [8, 16, 128], strides = [1, 1, 1]} : vector<8x32x128xf32> to vector<8x16x128xf32>
    %353 = vector.shape_cast %352 : vector<8x16x128xf32> to vector<128x128xf32>
    %c64_i32 = arith.constant 64 : i32
    %354 = tpu.dynamic_rotate %353 by %c64_i32 dim 1 : vector<128x128xf32>, i32 -> vector<128x128xf32>
    %355 = arith.addf %351, %354 : vector<128x128xf32>
    %c0_141 = arith.constant 0 : index
    %c0_142 = arith.constant 0 : index
    %c0_143 = arith.constant 0 : index
    %356 = vector.load %arg7[%c0_141, %c0_142, %c0_143] : memref<1x128x128xf32, #tpu.memory_space<vmem>>, vector<1x128x128xf32>
    %357 = vector.shape_cast %356 : vector<1x128x128xf32> to vector<128x128xf32>
    %358 = vector.shape_cast %355 : vector<128x128xf32> to vector<1x128x128xf32>
    tpu.vector_store %arg7[%c0_141, %c0_142, %c0_143], %358 {strides = array<i32>} : memref<1x128x128xf32, #tpu.memory_space<vmem>>, vector<1x128x128xf32>,
    %359 = arith.truncf %355 : vector<128x128xf32> to vector<128x128xbf16>
    %c0_144 = arith.constant 0 : index
    %c0_145 = arith.constant 0 : index
    %360 = vector.load %arg4[%c0_144, %c0_145] : memref<128x128xbf16, #tpu.memory_space<vmem>>, vector<128x128xbf16>
    %cst_146 = arith.constant dense<0.000000e+00> : vector<128x128xf32>
    %361 = tpu.matmul %359, %360, %cst_146 {dimension_numbers = #tpu.dot_dimension_numbers<[1], [0], [0], [1], [0, 0, 1, 1], [], []>} : vector<128x128xbf16>, vector<128x128xbf16>, vector<128x128xf32> -> vector<128x128xf32>
    %362 = vector.broadcast %4 : vector<1x128xf32> to vector<128x128xf32>
    %363 = arith.addf %361, %362 : vector<128x128xf32>
    %364 = math.tanh %363 : vector<128x128xf32>
    %365 = vector.shape_cast %364 : vector<128x128xf32> to vector<32x4x128xf32>
    %366 = vector.shape_cast %355 : vector<128x128xf32> to vector<32x4x128xf32>
    %367 = vector.shape_cast %5 : vector<1x128xf32> to vector<1x1x128xf32>
    %368 = vector.broadcast %367 : vector<1x1x128xf32> to vector<32x4x128xf32>
    %369 = arith.mulf %365, %368 : vector<32x4x128xf32>
    %cst_147 = arith.constant dense<0.000000e+00> : vector<32x4xf32>
    %370 = vector.multi_reduction <add>, %369, %cst_147 [2] : vector<32x4x128xf32> to vector<32x4xf32>
    %371 = vector.broadcast %6 : vector<1x1xf32> to vector<32x4xf32>
    %372 = arith.addf %370, %371 : vector<32x4xf32>
    %cst_148 = arith.constant dense<0xFF800000> : vector<32xf32>
    %373 = vector.multi_reduction <maximumf>, %372, %cst_148 [1] : vector<32x4xf32> to vector<32xf32>
    %374 = vector.shape_cast %373 : vector<32xf32> to vector<32x1xf32>
    %375 = vector.broadcast %374 : vector<32x1xf32> to vector<32x4xf32>
    %376 = arith.subf %372, %375 : vector<32x4xf32>
    %377 = math.exp %376 : vector<32x4xf32>
    %cst_149 = arith.constant dense<0.000000e+00> : vector<32xf32>
    %378 = vector.multi_reduction <add>, %377, %cst_149 [1] : vector<32x4xf32> to vector<32xf32>
    %379 = vector.shape_cast %378 : vector<32xf32> to vector<32x1xf32>
    %380 = vector.broadcast %379 : vector<32x1xf32> to vector<32x4xf32>
    %381 = arith.divf %377, %380 : vector<32x4xf32>
    %382 = vector.shape_cast %381 : vector<32x4xf32> to vector<32x4x1xf32>
    %383 = vector.broadcast %382 : vector<32x4x1xf32> to vector<32x4x128xf32>
    %384 = arith.mulf %383, %366 : vector<32x4x128xf32>
    %cst_150 = arith.constant dense<0.000000e+00> : vector<32x128xf32>
    %385 = vector.multi_reduction <add>, %384, %cst_150 [1] : vector<32x4x128xf32> to vector<32x128xf32>
    %c0_151 = arith.constant 0 : index
    %c0_152 = arith.constant 0 : index
    %c0_153 = arith.constant 0 : index
    %386 = vector.load %arg6[%c0_151, %c0_152, %c0_153] : memref<1x32x128xf32, #tpu.memory_space<vmem>>, vector<1x32x128xf32>
    %387 = vector.shape_cast %386 : vector<1x32x128xf32> to vector<32x128xf32>
    %388 = vector.shape_cast %385 : vector<32x128xf32> to vector<1x32x128xf32>
    tpu.vector_store %arg6[%c0_151, %c0_152, %c0_153], %388 {strides = array<i32>} : memref<1x32x128xf32, #tpu.memory_space<vmem>>, vector<1x32x128xf32>,
    return
  }
  func.func @transform_0(%arg0: i32) -> (i32, i32, i32) {
    %c0_i32 = arith.constant 0 : i32
    %c0_i32_0 = arith.constant 0 : i32
    %c0_i32_1 = arith.constant 0 : i32
    return %arg0, %c0_i32, %c0_i32_0 : i32, i32, i32
  }
  func.func @transform_1(%arg0: i32) -> (i32, i32) {
    %c0_i32 = arith.constant 0 : i32
    %c0_i32_0 = arith.constant 0 : i32
    %c0_i32_1 = arith.constant 0 : i32
    return %c0_i32, %c0_i32_0 : i32, i32
  }
  func.func @transform_2(%arg0: i32) -> (i32, i32) {
    %c0_i32 = arith.constant 0 : i32
    %c0_i32_0 = arith.constant 0 : i32
    %c0_i32_1 = arith.constant 0 : i32
    return %c0_i32, %c0_i32_0 : i32, i32
  }
  func.func @transform_3(%arg0: i32) -> (i32, i32) {
    %c0_i32 = arith.constant 0 : i32
    %c0_i32_0 = arith.constant 0 : i32
    %c0_i32_1 = arith.constant 0 : i32
    return %c0_i32, %c0_i32_0 : i32, i32
  }
  func.func @transform_4(%arg0: i32) -> (i32, i32) {
    %c0_i32 = arith.constant 0 : i32
    %c0_i32_0 = arith.constant 0 : i32
    %c0_i32_1 = arith.constant 0 : i32
    return %c0_i32, %c0_i32_0 : i32, i32
  }
  func.func @transform_5(%arg0: i32) -> (i32, i32, i32) {
    %c0_i32 = arith.constant 0 : i32
    %c0_i32_0 = arith.constant 0 : i32
    %c0_i32_1 = arith.constant 0 : i32
    return %arg0, %c0_i32, %c0_i32_0 : i32, i32, i32
  }
  func.func @transform_6(%arg0: i32) -> (i32, i32, i32) {
    %c0_i32 = arith.constant 0 : i32
    %c0_i32_0 = arith.constant 0 : i32
    %c0_i32_1 = arith.constant 0 : i32
    return %arg0, %c0_i32, %c0_i32_0 : i32, i32, i32
  }
}

</mosaic_0001>

<bundles_post_ra>
// kernel: tpu_custom_call.1
= control target key start
LH: loop header
LB: loop body
LE: loop exit
PB: predicated region body
PF: predicated region fallthrough
CT: control target
= control target key end

     0   :  { %12 = vsyncpa [#allocation5], 0  ;;  %s12721_s0 = inlined_call_operand.hbm [shape: bf16[2,256,256], index: 0, kind: input, shape index: {}]   ;;  %s12722_s1 = inlined_call_operand.hbm [shape: bf16[256,384], index: 1, kind: input, shape index: {}]   ;;  %s12723_s2 = inlined_call_operand.hbm [shape: bf16[256,384], index: 2, kind: input, shape index: {}]   ;;  %s12724_s3 = inlined_call_operand.hbm [shape: bf16[128,128], index: 3, kind: input, shape index: {}]   ;;  %s12725_s4 = inlined_call_operand.hbm [shape: f32[8,384], index: 4, kind: input, shape index: {}]   ;;  %s12726_s5 = inlined_call_operand.hbm [shape: f32[2,32,128], index: 5, kind: output, shape index: {0}]   ;;  %s12727_s6 = inlined_call_operand.hbm [shape: f32[2,128,128], index: 6, kind: output, shape index: {1}]  }
   0x1   :  { %14 = vsyncpa [#allocation5 + $0x1], 0 }
   0x2   :  { %15 = vsyncpa [#allocation8], 0 }
   0x3   :  { %16 = vsyncpa [#allocation11], 0 }
   0x4   :  { %17 = vsyncpa [#allocation6], 0 }
   0x5   :  { %19 = vsyncpa [#allocation6 + $0x1], 0 }
   0x6   :  { %20 = vsyncpa [#allocation15], 0 }
   0x7   :  { %22 = vsyncpa [#allocation15 + $0x1], 0  ;;  %s10291_s21 = smov 0   ;;  %s10293_s22 = smov 0  }
   0x8   :  { %s10295_s23 = smov 0   ;;  %s10297_s24 = smov 0  }
   0x9 LB: > { %s10312_s25 = sadd.s32 4294967295, %s10235_s24   ;;  %s7979_s26 = sadd.s32 4294967294, %s10235_s24   ;;  %s10235_s24 = sphi %s10297_s24, %s13082_s24   ;;  %s10231_s23 = sphi %s10295_s23, %s13081_s23   ;;  %s10227_s22 = sphi %s10293_s22, %s13080_s22   ;;  %s10223_s21 = sphi %s10291_s21, %s13079_s21  }
   0xa   : > { %p48_p0 = scmp.ne.s32.totalorder %s10227_s22, %s10223_s21  ;;  %p12728_p1 = scmp.eq.s32.totalorder %s10312_s25, 0 }
   0xb   : > { %p162_p3 = scmp.eq.s32.totalorder %s7979_s26, 1  ;;  %p7980_p5 = scmp.ge.s32.totalorder %s10235_s24, 1 }
   0xc   : > { %p10321_p4 = por %p12728_p1, %p48_p0  ;;  %p195_p7 = scmp.lt.s32.totalorder %s10235_s24, 3 }
   0xd   : > { %p10326_p6 = por %p162_p3, %p48_p0  ;;  %s10237_s30 = smov [#allocation7]  }
   0xe   : > { %s12813_s27 = scalar_select %p10321_p4, 1, 0 }
   0xf   : > { %s12814_s28 = scalar_select %p10326_p6, 1, 0 }
  0x10   : > { %p10331_p8 = pnand %p7980_p5, %p195_p7  ;;  %s207_s7 = sshll.u32 %s10237_s30, 4  ;;  %s208_s7 = int_to_ptr.vmem [resolvable:$true] %s207_s7 }
  0x11   : > { %s10238_s9 = smov [#allocation10]   ;;  %s10012_s11 = scalar_lea.vmem %s208_s7, 6144 }
  0x12   : > { %s12815_s29 = scalar_select %p10331_p8, 1, 0 }
  0x13   : > { %p8950_p9 = pneg %p10331_p8  ;;  %s233_s10 = sshll.u32 %s10238_s9, 4  ;;  %s234_s10 = int_to_ptr.vmem [resolvable:$true] %s233_s10 }
  0x14   : > { %p10013_p13 = scmp.ne.s32.totalorder %s208_s7, %s10012_s11  ;;  %p10020_p5 = scmp.lt.s32.totalorder %s208_s7, %s208_s7 }
  0x15   : > { %p10340_p11 = pnand %p8950_p9, %p12728_p1  ;;  %p10021_p7 = scmp.lt.s32.totalorder %s10012_s11, %s10012_s11 }
  0x17   : > { %p10003_p12 = pneg %p10340_p11  ;;  %p10022_p10 = por %p10021_p7, %p10020_p5 }
  0x19   : > { %p10015_p0 = pnand %p10013_p13, %p10003_p12 }
  0x1b   : > { %p10016_p3 = pneg %p10015_p0 }
  0x1d   : > { %p10023_p9 = pnand %p10022_p10, %p10016_p3 }
  0x1f   : > { %10026 = shalt.err (!%p10023_p9)
}
  0x20   : > { %s10239_s12 = smov 192   ;;  %s10240_s13 = smov 12  }
  0x21   : > { %8953 = dma.hbm_to_vmem [thread:$0]  (!%p10340_p11), %s12722_s1, 6144, %s208_s7, [#allocation8], %s10239_s12, %s10239_s12, %s10240_s13  }
  0x22   : > { %s10038_s16 = scalar_lea.vmem %s234_s10, 1024  ;;  %p10046_p10 = scmp.lt.s32.totalorder %s234_s10, %s234_s10 }
  0x23   : > { %p10039_p13 = scmp.ne.s32.totalorder %s234_s10, %s10038_s16  ;;  %p10047_p3 = scmp.lt.s32.totalorder %s10038_s16, %s10038_s16 }
  0x25   : > { %p10041_p0 = pnand %p10039_p13, %p10003_p12  ;;  %p10048_p7 = por %p10047_p3, %p10046_p10 }
  0x27   : > { %p10042_p5 = pneg %p10041_p0 }
  0x29   : > { %p10049_p9 = pnand %p10048_p7, %p10042_p5 }
  0x2b   : > { %10052 = shalt.err (!%p10049_p9)
}
  0x2c   : > { %s10241_s17 = smov 64   ;;  %s10242_s18 = smov 4  }
  0x2d   : > { %8959 = dma.hbm_to_vmem [thread:$0]  (!%p10340_p11), %s12724_s3, 1024, %s234_s10, [#allocation11], %s10241_s17, %s10241_s17, %s10242_s18  }
  0x2e   : > { %s10243_s26 = smov [#allocation9]   ;;  %s10244_s7 = smov [#allocation12]  }
  0x2f   : > { %s220_s30 = sshll.u32 %s10243_s26, 4  ;;  %s247_s9 = sshll.u32 %s10244_s7, 4  ;;  %s221_s30 = int_to_ptr.vmem [resolvable:$true] %s220_s30  ;;  %s248_s9 = int_to_ptr.vmem [resolvable:$true] %s247_s9 }
  0x30   : > { %s10064_s11 = scalar_lea.vmem %s221_s30, 6144  ;;  %p10072_p10 = scmp.lt.s32.totalorder %s221_s30, %s221_s30 }
  0x31   : > { %p10065_p13 = scmp.ne.s32.totalorder %s221_s30, %s10064_s11  ;;  %p10073_p3 = scmp.lt.s32.totalorder %s10064_s11, %s10064_s11 }
  0x33   : > { %p10067_p0 = pnand %p10065_p13, %p10003_p12  ;;  %p10074_p7 = por %p10073_p3, %p10072_p10 }
  0x35   : > { %p10068_p5 = pneg %p10067_p0 }
  0x37   : > { %p10075_p9 = pnand %p10074_p7, %p10068_p5 }
  0x39   : > { %10078 = shalt.err (!%p10075_p9)
}
  0x3a   : > { %8956 = dma.hbm_to_vmem [thread:$0]  (!%p10340_p11), %s12723_s2, 6144, %s221_s30, [#allocation8], %s10239_s12, %s10239_s12, %s10240_s13  }
  0x3b   : > { %s10090_s15 = scalar_lea.vmem %s248_s9, 384  ;;  %p10098_p2 = scmp.lt.s32.totalorder %s248_s9, %s248_s9 }
  0x3c   : > { %p10091_p1 = scmp.ne.s32.totalorder %s248_s9, %s10090_s15  ;;  %p10099_p10 = scmp.lt.s32.totalorder %s10090_s15, %s10090_s15 }
  0x3e   : > { %p10093_p13 = pnand %p10091_p1, %p10003_p12  ;;  %p10100_p5 = por %p10099_p10, %p10098_p2 }
  0x40   : > { %p10094_p0 = pneg %p10093_p13 }
  0x42   : > { %p10101_p3 = pnand %p10100_p5, %p10094_p0 }
  0x44   : > { %10104 = shalt.err (!%p10101_p3)
}
  0x45   : > { %8962 = dma.hbm_to_vmem [thread:$0]  (!%p10340_p11), %s12725_s4, 384, %s248_s9, [#allocation11]  }
  0x46   : > { %s10385_s12 = sadd.s32 1, %s10235_s24   ;;  %s35_s8 = sadd.s32 1, %s10231_s23 }
  0x47   : > { %s32_s13 = ssub.s32 %s10235_s24, %s10385_s12  ;;  %p42_p2 = scmp.ne.s32.totalorder %s10231_s23, %s10227_s22 }
  0x48   : > { %p33_p1 = scmp.eq.s32.totalorder %s32_s13, 0  ;;  %p43_p12 = scmp.eq.s32.totalorder %s10235_s24, 0 }
  0x49   : > { %p12817_p9 = scmp.eq.s32.totalorder %s10312_s25, 1  ;;  %p8978_p0 = scmp.lt.s32.totalorder %s10235_s24, 2 }
  0x4a   : > { %s10394_s18 = scalar_select %p33_p1, %s10231_s23, %s35_s8  }
  0x4b   : > { %p44_p7 = por %p43_p12, %p42_p2  ;;  %p10398_p13 = por %p12817_p9, %p42_p2 }
  0x4c   : > { %s258_s20 = sand.u32 1, %s10231_s23   ;;  %s8541_s30 = sshll.u32 %s10235_s24, 12 }
  0x4d   : > { %s12818_s19 = scalar_select %p10398_p13, 1, 0 }
  0x4e   : > { %s7986_s26 = sshll.u32 %s258_s20, 8  ;;  %s10408_s11 = scalar_lea.hbm %s12721_s0, %s8541_s30 }
  0x4f   : > { %s262_s10 = scalar_lea.vmem [#allocation4], %s7986_s26  ;;  %p10412_p11 = pnand %p8978_p0, %p44_p7 }
  0x50   : > { %s269_s14 = sshll.u32 %s262_s10, 4  ;;  %s10416_s16 = scalar_lea.sflag [#allocation5], %s258_s20  ;;  %s10410_s14 = int_to_ptr.vmem [resolvable:$true] %s269_s14 }
  0x51   : > { %s10105_s17 = scalar_lea.hbm %s10408_s11, 4096  ;;  %p10107_p5 = pneg %p10412_p11 }
  0x52   : > { %p10106_p10 = scmp.ne.s32.totalorder %s10408_s11, %s10105_s17  ;;  %s10110_s26 = scalar_lea.hbm %s12721_s0, 8192 }
  0x53   : > { %p10111_p2 = scmp.lt.s32.totalorder %s10408_s11, %s12721_s0  ;;  %p10112_p12 = scmp.lt.s32.totalorder %s10110_s26, %s10105_s17 }
  0x54   : > { %p10108_p3 = pnand %p10107_p5, %p10106_p10 }
  0x55   : > { %p10113_p7 = por %p10112_p12, %p10111_p2 }
  0x56   : > { %p10109_p1 = pneg %p10108_p3 }
  0x58   : > { %p10114_p9 = pnand %p10113_p7, %p10109_p1 }
  0x5a   : > { %10117 = shalt.err (!%p10114_p9)
}
  0x5b   : > { %s10118_s20 = scalar_lea.vmem %s10410_s14, 4096  ;;  %s10245_s9 = smov [#allocation4]  }
  0x5c   : > { %p10119_p0 = scmp.ne.s32.totalorder %s10410_s14, %s10118_s20  ;;  %s10123_s10 = sshll.u32 %s10245_s9, 4  ;;  %s10124_s10 = int_to_ptr.vmem [resolvable:$false] %s10123_s10 }
  0x5d   : > { %s10125_s13 = scalar_lea.vmem %s10124_s10, 8192  ;;  %p10126_p3 = scmp.lt.s32.totalorder %s10410_s14, %s10124_s10 }
  0x5e   : > { %p10121_p6 = pnand %p10119_p0, %p10107_p5  ;;  %p10127_p13 = scmp.lt.s32.totalorder %s10125_s13, %s10118_s20 }
  0x60   : > { %p10122_p10 = pneg %p10121_p6  ;;  %p10128_p4 = por %p10127_p13, %p10126_p3 }
  0x62   : > { %p10129_p8 = pnand %p10128_p4, %p10122_p10 }
  0x64   : > { %10132 = shalt.err (!%p10129_p8)
}
  0x65   : > { %s10246_s17 = smov 128   ;;  %s10247_s8 = smov 8  }
  0x66   : > { %8966 = dma.hbm_to_vmem [thread:$0]  (!%p10412_p11), %s10408_s11, 4096, %s10410_s14, %s10416_s16, %s10246_s17, %s10246_s17, %s10247_s8  }
  0x67   : > { %p12820_p5 = scmp.ne.s32.totalorder %s12815_s29, 0 }
  0x69   : > { %281 = sbr.rel (%p12820_p5) target bundleno = 3606 (0xe16), region = 40 }
  0x6e   : > { %s10440_s26 = sand.u32 1, %s10227_s22   ;;  %p12821_p4 = scmp.ne.s32.totalorder %s12813_s27, 0 }
  0x6f   : > { %s7990_s30 = sshll.u32 %s10440_s26, 8  ;;  %s284_s7 = scalar_lea.sflag [#allocation5], %s10440_s26 }
  0x70   : > { %s10444_s20 = scalar_lea.vmem [#allocation4], %s7990_s30 }
  0x71   : > { %10202 = dma.done.wait (%p12821_p4), %s284_s7, 4096  }
  0x72   : > { %10204 = vsyncadd (%p12821_p4), %s284_s7, 4294963200  ;;  %p12822_p6 = scmp.eq.s32.totalorder %s10312_s25, 0 }
  0x74   : > { %10206 = dma.done.wait (%p12822_p6), [#allocation8], 12288   ;;  %p12823_p8 = pmov %p12822_p6 }
  0x75   : > { %p12824_p13 = pmov %p12822_p6 }
  0x76   : > { %10208 = vsyncadd (%p12823_p8), [#allocation8], 4294955008 }
  0x77   : > { %10210 = dma.done.wait (%p12824_p13), [#allocation11], 1408   ;;  %p12825_p11 = pmov %p12822_p6 }
  0x78   : > { %v9034_v0 = vld [vmem:[#allocation7 + $0x170] ss:$12 sps:$4 sm:$0xff]   ;;  %v9036_v2 = vld [vmem:[#allocation7 + $0x158] ss:$12 sps:$4 sm:$0xff]   ;;  %v9038_v4 = vld [vmem:[#allocation7 + $0x140] ss:$12 sps:$4 sm:$0xff]  }
  0x79   : > { %10212 = vsyncadd (%p12825_p11), [#allocation11], 4294965888  ;;  %v9035_v1 = vld [vmem:[#allocation7 + $0xb0] ss:$12 sps:$4 sm:$0xff]   ;;  %8544 = vmatprep.subr.bf16.mxu1 %v9034_v0  ;;  %v9037_v3 = vld [vmem:[#allocation7 + $0x98] ss:$12 sps:$4 sm:$0xff]  }
  0x7a   : > { %8545 = vmatpush3.bf16.msra.mxu1 %v9035_v1  ;;  %v9039_v5 = vld [vmem:[#allocation7 + $0x80] ss:$12 sps:$4 sm:$0xff]   ;;  %v9040_v6 = vld [vmem:[#allocation7 + $0x128] ss:$12 sps:$4 sm:$0xff]   ;;  %v9042_v8 = vld [vmem:[#allocation7 + $0x110] ss:$12 sps:$4 sm:$0xff]  }
  0x7b   : > { %8546 = vmatprep.subr.bf16.mxu1 %v9036_v2  ;;  %v9041_v7 = vld [vmem:[#allocation7 + $0x68] ss:$12 sps:$4 sm:$0xff]   ;;  %v9043_v9 = vld [vmem:[#allocation7 + $0x50] ss:$12 sps:$4 sm:$0xff]   ;;  %v9044_v10 = vld [vmem:[#allocation7 + $0xf8] ss:$12 sps:$4 sm:$0xff]  }
  0x7c   : > { %v9052_v11 = vld [vmem:[%s10444_s20 + $0x4] ss:$8 sps:$4 sm:$0xff]   ;;  %v9048_v15 = vld [vmem:[#allocation7 + $0xc8] ss:$12 sps:$4 sm:$0xff]   ;;  %v10248_v17 = vmov 0   ;;  %vm10249_vm0 = vmmov 0  }
  0x7d   : > { %v9045_v12 = vld [vmem:[#allocation7 + $0x38] ss:$12 sps:$4 sm:$0xff]   ;;  %1217 = vmatprep.mubr.bf16.mxu1 %v9052_v11  ;;  %v9046_v13 = vld [vmem:[#allocation7 + $0xe0] ss:$12 sps:$4 sm:$0xff]   ;;  %1024 = vmatprep.mubr.bf16.mxu0 %v9052_v11  ;;  %v9049_v16 = vld [vmem:[#allocation7 + $0x8] ss:$12 sps:$4 sm:$0xff]  }
  0x7e   : > { %8547 = vmatpush3.bf16.msra.mxu1 %v9037_v3  ;;  %v9047_v14 = vld [vmem:[#allocation7 + $0x20] ss:$12 sps:$4 sm:$0xff]   ;;  %9032 = vset.pattern.permute.xlu1 %v10248_v17  ;;  %v9053_v20 = vld [vmem:[#allocation9 + $0xa8] ss:$12 sps:$4 sm:$0xff]   ;;  %v9059_v23 = vld [vmem:[#allocation9 + $0x90] ss:$12 sps:$4 sm:$0xff]  }
  0x7f   : > { %8548 = vmatprep.subr.bf16.mxu1 %v9038_v4  ;;  %v9055_v18 = vld [vmem:[#allocation9 + $0xac] ss:$12 sps:$4 sm:$0xff]   ;;  %9033 = vset.pattern.permute.xlu0 %v10248_v17  ;;  %v10462_v19 = vld [vmem:[%s10444_s20] ss:$8 sps:$4 sm:$0xff]   ;;  %v10465_v21 = vld [vmem:[%s10444_s20 + $0x14] ss:$8 sps:$4 sm:$0xff]  }
  0x80   : > { %v9061_v22 = vld [vmem:[#allocation9 + $0x94] ss:$12 sps:$4 sm:$0xff]   ;;  %v10470_v24 = vld [vmem:[%s10444_s20 + $0x10] ss:$8 sps:$4 sm:$0xff]   ;;  %v9067_v25 = vld [vmem:[#allocation9 + $0x7c] ss:$12 sps:$4 sm:$0xff]  }
  0x81   : > { %v10473_v26 = vld [vmem:[%s10444_s20 + $0x24] ss:$8 sps:$4 sm:$0xff]   ;;  %v9100_v28 = vld [vmem:[#allocation7 + $0xa8] ss:$12 sps:$4 sm:$0xff]   ;;  %v9109_v32 = vld [vmem:[#allocation7 + $0x90] ss:$12 sps:$4 sm:$0xff]  }
  0x82   : > { %8549 = vmatpush3.bf16.msra.mxu1 %v9039_v5  ;;  %v9098_v27 = vld [vmem:[#allocation7 + $0xac] ss:$12 sps:$4 sm:$0xff]   ;;  %v9073_v30 = vld [vmem:[#allocation9 + $0x64] ss:$12 sps:$4 sm:$0xff]   ;;  %v9103_v31 = vld [vmem:[#allocation7 + $0x94] ss:$12 sps:$4 sm:$0xff]  }
  0x83   : > { %8550 = vmatprep.subr.bf16.mxu1 %v9040_v6  ;;  %v9065_v29 = vld [vmem:[#allocation9 + $0x78] ss:$12 sps:$4 sm:$0xff]   ;;  %992 = vmatprep.subr.bf16.mxu0 %v9098_v27  ;;  %v9071_v33 = vld [vmem:[#allocation9 + $0x60] ss:$12 sps:$4 sm:$0xff]   ;;  %v9110_v34 = vld [vmem:[#allocation7 + $0x7c] ss:$12 sps:$4 sm:$0xff]  }
  0x84   : > { %993 = vmatpush1.bf16.msra.mxu0 %v9100_v28  ;;  %v10478_v35 = vld [vmem:[%s10444_s20 + $0x20] ss:$8 sps:$4 sm:$0xff]   ;;  %v9079_v36 = vld [vmem:[#allocation9 + $0x4c] ss:$12 sps:$4 sm:$0xff]   ;;  %v9115_v38 = vld [vmem:[#allocation7 + $0x64] ss:$12 sps:$4 sm:$0xff]  }
  0x85   : > { %994 = vmatprep.subr.bf16.mxu0 %v9103_v31  ;;  %v9112_v37 = vld [vmem:[#allocation7 + $0x78] ss:$12 sps:$4 sm:$0xff]   ;;  %v10481_v39 = vld [vmem:[%s10444_s20 + $0x34] ss:$8 sps:$4 sm:$0xff]   ;;  %v9121_v42 = vld [vmem:[#allocation7 + $0x60] ss:$12 sps:$4 sm:$0xff]  }
  0x86   : > { %8551 = vmatpush3.bf16.msra.mxu1 %v9041_v7  ;;  %v9077_v40 = vld [vmem:[#allocation9 + $0x48] ss:$12 sps:$4 sm:$0xff]   ;;  %v9122_v43 = vld [vmem:[#allocation7 + $0x4c] ss:$12 sps:$4 sm:$0xff]   ;;  %v9083_v44 = vld [vmem:[#allocation9 + $0x30] ss:$12 sps:$4 sm:$0xff]  }
  0x87   : > { %8552 = vmatprep.subr.bf16.mxu1 %v9042_v8  ;;  %v9085_v41 = vld [vmem:[#allocation9 + $0x34] ss:$12 sps:$4 sm:$0xff]   ;;  %v10486_v45 = vld [vmem:[%s10444_s20 + $0x30] ss:$8 sps:$4 sm:$0xff]   ;;  %v9091_v46 = vld [vmem:[#allocation9 + $0x1c] ss:$12 sps:$4 sm:$0xff]  }
  0x88   : > { %995 = vmatpush1.bf16.msra.mxu0 %v9109_v32  ;;  %v9124_v47 = vld [vmem:[#allocation7 + $0x48] ss:$12 sps:$4 sm:$0xff]   ;;  %v10489_v48 = vld [vmem:[%s10444_s20 + $0x44] ss:$8 sps:$4 sm:$0xff]   ;;  %v9133_v52 = vld [vmem:[#allocation7 + $0x30] ss:$12 sps:$4 sm:$0xff]  }
  0x89   : > { %996 = vmatprep.subr.bf16.mxu0 %v9110_v34  ;;  %v9127_v49 = vld [vmem:[#allocation7 + $0x34] ss:$12 sps:$4 sm:$0xff]   ;;  %v9089_v50 = vld [vmem:[#allocation9 + $0x18] ss:$12 sps:$4 sm:$0xff]   ;;  %v9134_v53 = vld [vmem:[#allocation7 + $0x1c] ss:$12 sps:$4 sm:$0xff]  }
  0x8a   : > { %8553 = vmatpush3.bf16.msra.mxu1 %v9043_v9  ;;  %v9097_v51 = vld [vmem:[#allocation9 + $0x4] ss:$12 sps:$4 sm:$0xff]   ;;  %v9095_v54 = vld [vmem:[#allocation9] ss:$12 sps:$4 sm:$0xff]   ;;  %v10497_v59 = vld [vmem:[%s10444_s20 + $0x54] ss:$8 sps:$4 sm:$0xff]  }
  0x8b   : > { %8554 = vmatprep.subr.bf16.mxu1 %v9044_v10  ;;  %v10494_v55 = vld [vmem:[%s10444_s20 + $0x40] ss:$8 sps:$4 sm:$0xff]   ;;  %v9108_v56 = vld [vmem:[#allocation9 + $0x16c] ss:$12 sps:$4 sm:$0xff]   ;;  %v9139_v58 = vld [vmem:[#allocation7 + $0x4] ss:$12 sps:$4 sm:$0xff]  }
  0x8c   : > { %997 = vmatpush1.bf16.msra.mxu0 %v9112_v37  ;;  %v9136_v57 = vld [vmem:[#allocation7 + $0x18] ss:$12 sps:$4 sm:$0xff]   ;;  %v9106_v60 = vld [vmem:[#allocation9 + $0x168] ss:$12 sps:$4 sm:$0xff]   ;;  %v9145_v62 = vld [vmem:[#allocation7] ss:$12 sps:$4 sm:$0xff]  }
  0x8d   : > { %998 = vmatprep.subr.bf16.mxu0 %v9115_v38  ;;  %v9120_v61 = vld [vmem:[#allocation9 + $0x154] ss:$12 sps:$4 sm:$0xff]   ;;  %v9146_v63 = vld [vmem:[#allocation7 + $0x16c] ss:$12 sps:$4 sm:$0xff]   ;;  %v9118_v0 = vld [vmem:[#allocation9 + $0x150] ss:$12 sps:$4 sm:$0xff]  }
  0x8e   : > { %8555 = vmatpush3.bf16.msra.mxu1 %v9045_v12  ;;  %v10502_v1 = vld [vmem:[%s10444_s20 + $0x50] ss:$8 sps:$4 sm:$0xff]   ;;  %v9132_v2 = vld [vmem:[#allocation9 + $0x13c] ss:$12 sps:$4 sm:$0xff]   ;;  %v10505_v4 = vld [vmem:[%s10444_s20 + $0x64] ss:$8 sps:$4 sm:$0xff]  }
  0x8f   : > { %8556 = vmatprep.subr.bf16.mxu1 %v9046_v13  ;;  %v9148_v3 = vld [vmem:[#allocation7 + $0x168] ss:$12 sps:$4 sm:$0xff]   ;;  %v9130_v6 = vld [vmem:[#allocation9 + $0x138] ss:$12 sps:$4 sm:$0xff]   ;;  %v9157_v8 = vld [vmem:[#allocation7 + $0x150] ss:$12 sps:$4 sm:$0xff]  }
  0x90   : > { %999 = vmatpush1.bf16.msra.mxu0 %v9121_v42  ;;  %v9151_v5 = vld [vmem:[#allocation7 + $0x154] ss:$12 sps:$4 sm:$0xff]   ;;  %v9144_v7 = vld [vmem:[#allocation9 + $0x124] ss:$12 sps:$4 sm:$0xff]   ;;  %v9158_v9 = vld [vmem:[#allocation7 + $0x13c] ss:$12 sps:$4 sm:$0xff]  }
  0x91   : > { %1000 = vmatprep.subr.bf16.mxu0 %v9122_v43  ;;  %v9142_v10 = vld [vmem:[#allocation9 + $0x120] ss:$12 sps:$4 sm:$0xff]   ;;  %v9160_v13 = vld [vmem:[#allocation7 + $0x138] ss:$12 sps:$4 sm:$0xff]   ;;  %v9180_v27 = vld [vmem:[#allocation9 + $0xdc] ss:$12 sps:$4 sm:$0xff]  }
  0x92   : > { %8557 = vmatpush3.bf16.msra.mxu1 %v9047_v14  ;;  %v10510_v11 = vld [vmem:[%s10444_s20 + $0x60] ss:$8 sps:$4 sm:$0xff]   ;;  %v9156_v12 = vld [vmem:[#allocation9 + $0x10c] ss:$12 sps:$4 sm:$0xff]   ;;  %v9163_v14 = vld [vmem:[#allocation7 + $0x124] ss:$12 sps:$4 sm:$0xff]  }
  0x93   : > { %8558 = vmatprep.subr.bf16.mxu1 %v9048_v15  ;;  %v10513_v15 = vld [vmem:[%s10444_s20 + $0x74] ss:$8 sps:$4 sm:$0xff]   ;;  %v10521_v28 = vld [vmem:[%s10444_s20 + $0x84] ss:$8 sps:$4 sm:$0xff]   ;;  %v10526_v37 = vld [vmem:[%s10444_s20 + $0x80] ss:$8 sps:$4 sm:$0xff]  }
  0x94   : > { %1001 = vmatpush1.bf16.msra.mxu0 %v9124_v47  ;;  %v9178_v31 = vld [vmem:[#allocation9 + $0xd8] ss:$12 sps:$4 sm:$0xff]   ;;  %v9182_v34 = vld [vmem:[#allocation7 + $0xdc] ss:$12 sps:$4 sm:$0xff]   ;;  %v9193_v43 = vld [vmem:[#allocation7 + $0xc0] ss:$12 sps:$4 sm:$0xff]  }
  0x95   : > { %1002 = vmatprep.subr.bf16.mxu0 %v9127_v49  ;;  %v9192_v32 = vld [vmem:[#allocation9 + $0xc4] ss:$12 sps:$4 sm:$0xff]   ;;  %v10544_v47 = vld [vmem:[%s10444_s20 + $0xa0] ss:$8 sps:$4 sm:$0xff]   ;;  %v10547_v49 = vld [vmem:[%s10444_s20 + $0xb4] ss:$8 sps:$4 sm:$0xff]  }
  0x96   : > { %8559 = vmatpush3.bf16.msra.mxu1 %v9049_v16  ;;  %v9154_v16 = vld [vmem:[#allocation9 + $0x108] ss:$12 sps:$4 sm:$0xff]   ;;  %v9194_v38 = vld [vmem:[#allocation9 + $0x170] ss:$12 sps:$4 sm:$0xff]   ;;  %vm10901_vm1 = vmpackc.low %vm10249_vm0, %vm10249_vm0  ;;  %vm10250_vm2 = vmmov 1   ;;  %s10251_s27 = smov 64  }
  0x97   : > { %1858 = vmatprep.subr.bf16.mxu1 %v9055_v18  ;;  %v9168_v18 = vld [vmem:[#allocation9 + $0xf4] ss:$12 sps:$4 sm:$0xff]   ;;  %v9187_v42 = vld [vmem:[#allocation7 + $0xc4] ss:$12 sps:$4 sm:$0xff]   ;;  %vm10905_vm3 = vmpackc.low %vm10250_vm2, %vm10250_vm2  ;;  %s7996_s29 = sshll.u32 %s10440_s26, 7  ;;  %vm6183_vm4 = vcmask 1043456  }
  0x98   : > { %1003 = vmatpush1.bf16.msra.mxu0 %v9133_v52  ;;  %v9196_v52 = vld [vmem:[#allocation9 + $0x158] ss:$12 sps:$4 sm:$0xff]   ;;  %s11706_s11 = scalar_lea.vmem [#allocation14], %s7996_s29  ;;  %vm6477_vm5 = vcmask 1041409   ;;  %vm6479_vm6 = vcmask 1042434   ;;  %vm6481_vm7 = vcmask 1043459  }
  0x99   : > { %1218 = vmatmul.mubr.bf16.vlgmr.msra.gmra.mxu1 %v10462_v19  ;;  %1004 = vmatprep.subr.bf16.mxu0 %v9134_v53  ;;  %v9197_v53 = vld [vmem:[#allocation9 + $0x98] ss:$12 sps:$4 sm:$0xff]   ;;  %vm6483_vm8 = vcmask 1044484   ;;  %vm6485_vm9 = vcmask 1045509   ;;  %vm6487_vm10 = vcmask 1046534   ;;  %vm6489_vm11 = vcmask 1047559  }
  0x9a   : > { %1859 = vmatpush1.bf16.msra.mxu1 %v9053_v20  ;;  %1225 = vmatprep.mubr.bf16.mxu1 %v10465_v21  ;;  %v9169_v20 = vld [vmem:[#allocation7 + $0x120] ss:$12 sps:$4 sm:$0xff]   ;;  %vm6516_vm12 = vcmask 31744   ;;  %s8543_s14 = sshll.u32 %s10312_s25, 11  ;;  %s7836_s15 = sshll.u32 %s11706_s11, 4  ;;  %s12523_s15 = int_to_ptr.vmem [resolvable:$true] %s7836_s15 }
  0x9b   : > { %1860 = vmatprep.subr.bf16.mxu1 %v9061_v22  ;;  %v9170_v22 = vld [vmem:[#allocation7 + $0x10c] ss:$12 sps:$4 sm:$0xff]   ;;  %s12521_s10 = scalar_lea.hbm %s12727_s6, %s8543_s14  ;;  %s7807_s13 = scalar_lea.sflag [#allocation15], %s10440_s26 }
  0x9c   : > { %1005 = vmatpush1.bf16.msra.mxu0 %v9136_v57  ;;  %v9201_v57 = vld [vmem:[#allocation9 + $0x68] ss:$12 sps:$4 sm:$0xff]   ;;  %s10133_s17 = scalar_lea.vmem %s12523_s15, 2048  ;;  %p13061_p2 = scmp.ne.s32.totalorder %s12818_s19, 0 }
  0x9d   : > { %1006 = vmatprep.subr.bf16.mxu0 %v9139_v58  ;;  %v9202_v58 = vld [vmem:[#allocation9 + $0x110] ss:$12 sps:$4 sm:$0xff]   ;;  %p10134_p1 = scmp.ne.s32.totalorder %s12523_s15, %s10133_s17  ;;  %s10252_s8 = smov [#allocation14]  }
  0x9e   : > { %1861 = vmatpush1.bf16.msra.mxu1 %v9059_v23  ;;  %v9166_v23 = vld [vmem:[#allocation9 + $0xf0] ss:$12 sps:$4 sm:$0xff]   ;;  %s10137_s30 = sshll.u32 %s10252_s8, 4  ;;  %s10138_s30 = int_to_ptr.vmem [resolvable:$false] %s10137_s30 }
  0x9f   : > { %1862 = vmatprep.subr.bf16.mxu1 %v9067_v25  ;;  %v10518_v25 = vld [vmem:[%s10444_s20 + $0x70] ss:$8 sps:$4 sm:$0xff]   ;;  %p10135_p12 = pnand %p10134_p1, %p13061_p2  ;;  %s10139_s7 = scalar_lea.vmem %s10138_s30, 4096 }
  0xa0   : > { %1007 = vmatpush1.bf16.msra.mxu0 %v9145_v62  ;;  %v9206_v62 = vld [vmem:[#allocation9 + $0xe0] ss:$12 sps:$4 sm:$0xff]   ;;  %p10140_p9 = scmp.lt.s32.totalorder %s12523_s15, %s10138_s30  ;;  %p10141_p0 = scmp.lt.s32.totalorder %s10139_s7, %s10133_s17 }
  0xa1   : > { %1226 = vmatmul.mubr.bf16.gmra.mxu1 %v10470_v24  ;;  %1008 = vmatprep.subr.bf16.mxu0 %v9146_v63  ;;  %v9207_v63 = vld [vmem:[#allocation9 + $0x20] ss:$12 sps:$4 sm:$0xff]   ;;  %p10136_p7 = pneg %p10135_p12 }
  0xa2   : > { %1233 = vmatprep.mubr.bf16.mxu1 %v10473_v26  ;;  %1863 = vmatpush1.bf16.msra.mxu1 %v9065_v29  ;;  %v9172_v29 = vld [vmem:[#allocation7 + $0x108] ss:$12 sps:$4 sm:$0xff]   ;;  %p10142_p10 = por %p10141_p0, %p10140_p9 }
  0xa3   : > { %1864 = vmatprep.subr.bf16.mxu1 %v9073_v30  ;;  %v9175_v30 = vld [vmem:[#allocation7 + $0xf4] ss:$12 sps:$4 sm:$0xff]  }
  0xa4   : > { %1009 = vmatpush2.bf16.msra.mxu0 %v9148_v3  ;;  %v9211_v3 = vld [vmem:[#allocation9 + $0xb0] ss:$12 sps:$4 sm:$0xff]   ;;  %p10143_p3 = pnand %p10142_p10, %p10136_p7 }
  0xa5   : > { %1010 = vmatprep.subr.bf16.mxu0 %v9151_v5  ;;  %v9213_v5 = vld [vmem:[#allocation9 + $0x98] ss:$12 sps:$4 sm:$0xff]  }
  0xa6   : > { %1865 = vmatpush1.bf16.msra.mxu1 %v9071_v33  ;;  %v9181_v33 = vld [vmem:[#allocation7 + $0xf0] ss:$12 sps:$4 sm:$0xff]  }
  0xa7   : > { %1866 = vmatprep.subr.bf16.mxu1 %v9079_v36  ;;  %v9190_v36 = vld [vmem:[#allocation9 + $0xc0] ss:$12 sps:$4 sm:$0xff]  }
  0xa8   : > { %1011 = vmatpush2.bf16.msra.mxu0 %v9157_v8 }
  0xa9   : > { %1234 = vmatmul.mubr.bf16.gmra.mxu1 %v10478_v35  ;;  %1012 = vmatprep.subr.bf16.mxu0 %v9158_v9 }
  0xaa   : > { %1241 = vmatprep.mubr.bf16.mxu1 %v10481_v39  ;;  %1867 = vmatpush1.bf16.msra.mxu1 %v9077_v40  ;;  %v10529_v40 = vld [vmem:[%s10444_s20 + $0x94] ss:$8 sps:$4 sm:$0xff]  }
  0xab   : > { %1868 = vmatprep.subr.bf16.mxu1 %v9085_v41  ;;  %v9184_v41 = vld [vmem:[#allocation7 + $0xd8] ss:$12 sps:$4 sm:$0xff]  }
  0xac   : > { %1013 = vmatpush2.bf16.msra.mxu0 %v9160_v13 }
  0xad   : > { %1014 = vmatprep.subr.bf16.mxu0 %v9163_v14  ;;  %v10638_v14 = vld [vmem:[#allocation9 + $0x90] ss:$12 sps:$4 sm:$0xff]  }
  0xae   : > { %1869 = vmatpush1.bf16.msra.mxu1 %v9083_v44  ;;  %v10534_v44 = vld [vmem:[%s10444_s20 + $0x90] ss:$8 sps:$4 sm:$0xff]  }
  0xaf   : > { %1870 = vmatprep.subr.bf16.mxu1 %v9091_v46  ;;  %v10537_v46 = vld [vmem:[%s10444_s20 + $0xa4] ss:$8 sps:$4 sm:$0xff]  }
  0xb0   : > { %1015 = vmatpush2.bf16.msra.mxu0 %v9169_v20 }
  0xb1   : > { %1242 = vmatmul.mubr.bf16.gmra.mxu1 %v10486_v45  ;;  %1016 = vmatprep.subr.bf16.mxu0 %v9170_v22  ;;  %v10648_v22 = vld [vmem:[#allocation9 + $0x78] ss:$12 sps:$4 sm:$0xff]  }
  0xb2   : > { %1249 = vmatprep.mubr.bf16.mxu1 %v10489_v48  ;;  %1871 = vmatpush1.bf16.msra.mxu1 %v9089_v50  ;;  %v10587_v50 = vld [vmem:[%s10444_s20 + $0xf4] ss:$8 sps:$4 sm:$0xff]  }
  0xb3   : > { %1872 = vmatprep.subr.bf16.mxu1 %v9097_v51  ;;  %v9195_v51 = vld [vmem:[#allocation9 + $0xb0] ss:$12 sps:$4 sm:$0xff]  }
  0xb4   : > { %1017 = vmatpush2.bf16.msra.mxu0 %v9172_v29 }
  0xb5   : > { %1018 = vmatprep.subr.bf16.mxu0 %v9175_v30 }
  0xb6   : > { %1873 = vmatpush1.bf16.msra.mxu1 %v9095_v54  ;;  %v9198_v54 = vld [vmem:[#allocation9 + $0x140] ss:$12 sps:$4 sm:$0xff]  }
  0xb7   : > { %1874 = vmatprep.subr.bf16.mxu1 %v9108_v56  ;;  %v9200_v56 = vld [vmem:[#allocation9 + $0x128] ss:$12 sps:$4 sm:$0xff]  }
  0xb8   : > { %1019 = vmatpush2.bf16.msra.mxu0 %v9181_v33  ;;  %v10666_v33 = vld [vmem:[#allocation9 + $0x48] ss:$12 sps:$4 sm:$0xff]  }
  0xb9   : > { %1250 = vmatmul.mubr.bf16.gmra.mxu1 %v10494_v55  ;;  %1020 = vmatprep.subr.bf16.mxu0 %v9182_v34 }
  0xba   : > { %1257 = vmatprep.mubr.bf16.mxu1 %v10497_v59  ;;  %1875 = vmatpush2.bf16.msra.mxu1 %v9106_v60  ;;  %v9204_v60 = vld [vmem:[#allocation9 + $0xf8] ss:$12 sps:$4 sm:$0xff]  }
  0xbb   : > { %1876 = vmatprep.subr.bf16.mxu1 %v9120_v61  ;;  %v9205_v61 = vld [vmem:[#allocation9 + $0x38] ss:$12 sps:$4 sm:$0xff]  }
  0xbc   : > { %1021 = vmatpush2.bf16.msra.mxu0 %v9184_v41  ;;  %v9215_v41 = vld [vmem:[#allocation9 + $0x80] ss:$12 sps:$4 sm:$0xff]  }
  0xbd   : > { %1022 = vmatprep.subr.bf16.mxu0 %v9187_v42 }
  0xbe   : > { %1877 = vmatpush2.bf16.msra.mxu1 %v9118_v0  ;;  %v9208_v0 = vld [vmem:[#allocation9 + $0xc8] ss:$12 sps:$4 sm:$0xff]  }
  0xbf   : > { %1878 = vmatprep.subr.bf16.mxu1 %v9132_v2  ;;  %v9210_v2 = vld [vmem:[#allocation9 + $0x170] ss:$12 sps:$4 sm:$0xff]  }
  0xc0   : > { %1023 = vmatpush2.bf16.msra.mxu0 %v9193_v43 }
  0xc1   : > { %1258 = vmatmul.mubr.bf16.gmra.mxu1 %v10502_v1  ;;  %8684 = vmatprep.subr.bf16.mxu0 %v9210_v2  ;;  %v10728_v2 = vld [vmem:[#allocation9 + $0x120] ss:$12 sps:$4 sm:$0xff]  }
  0xc2   : > { %1265 = vmatprep.mubr.bf16.mxu1 %v10505_v4  ;;  %1879 = vmatpush2.bf16.msra.mxu1 %v9130_v6 }
  0xc3   : > { %1880 = vmatprep.subr.bf16.mxu1 %v9144_v7  ;;  %1025 = vmatmul.mubr.bf16.vlgmr.msra.gmra.mxu0 %v10462_v19  ;;  %v10554_v19 = vld [vmem:[%s10444_s20 + $0xb0] ss:$8 sps:$4 sm:$0xff]  }
  0xc4   : > { %1034 = vmatprep.mubr.bf16.mxu0 %v10465_v21  ;;  %v10557_v21 = vld [vmem:[%s10444_s20 + $0xc4] ss:$8 sps:$4 sm:$0xff]   ;;  %8685 = vmatpush3.bf16.msra.mxu0 %v9211_v3 }
  0xc6   : > { %1881 = vmatpush2.bf16.msra.mxu1 %v9142_v10  ;;  %v10630_v10 = vld [vmem:[#allocation9 + $0xa8] ss:$12 sps:$4 sm:$0xff]  }
  0xc7   : > { %1882 = vmatprep.subr.bf16.mxu1 %v9156_v12  ;;  %v10636_v12 = vld [vmem:[#allocation9 + $0x94] ss:$12 sps:$4 sm:$0xff]  }
  0xc9   : > { %1266 = vmatmul.mubr.bf16.gmra.mxu1 %v10510_v11 }
  0xca   : > { %1273 = vmatprep.mubr.bf16.mxu1 %v10513_v15  ;;  %1883 = vmatpush2.bf16.msra.mxu1 %v9154_v16 }
  0xcb   : > { %1884 = vmatprep.subr.bf16.mxu1 %v9168_v18  ;;  %1035 = vmatmul.mubr.bf16.gmra.mxu0 %v10470_v24  ;;  %v10564_v24 = vld [vmem:[%s10444_s20 + $0xc0] ss:$8 sps:$4 sm:$0xff]  }
  0xcc   : > { %1044 = vmatprep.mubr.bf16.mxu0 %v10473_v26  ;;  %v10567_v26 = vld [vmem:[%s10444_s20 + $0xd4] ss:$8 sps:$4 sm:$0xff]  }
  0xcd   : > { %v10644_v18 = vld [vmem:[#allocation9 + $0x7c] ss:$12 sps:$4 sm:$0xff]  }
  0xce   : > { %1885 = vmatpush2.bf16.msra.mxu1 %v9166_v23 }
  0xcf   : > { %1886 = vmatprep.subr.bf16.mxu1 %v9180_v27 }
  0xd1   : > { %1274 = vmatmul.mubr.bf16.gmra.mxu1 %v10518_v25 }
  0xd2   : > { %1281 = vmatprep.mubr.bf16.mxu1 %v10521_v28  ;;  %1887 = vmatpush2.bf16.msra.mxu1 %v9178_v31  ;;  %v10662_v31 = vld [vmem:[#allocation9 + $0x4c] ss:$12 sps:$4 sm:$0xff]  }
  0xd3   : > { %1888 = vmatprep.subr.bf16.mxu1 %v9192_v32  ;;  %1045 = vmatmul.mubr.bf16.gmra.mxu0 %v10478_v35  ;;  %v10574_v35 = vld [vmem:[%s10444_s20 + $0xd0] ss:$8 sps:$4 sm:$0xff]  }
  0xd4   : > { %1054 = vmatprep.mubr.bf16.mxu0 %v10481_v39  ;;  %v10577_v39 = vld [vmem:[%s10444_s20 + $0xe4] ss:$8 sps:$4 sm:$0xff]  }
  0xd6   : > { %1889 = vmatpush2.bf16.msra.mxu1 %v9190_v36  ;;  %v10672_v36 = vld [vmem:[#allocation9 + $0x34] ss:$12 sps:$4 sm:$0xff]  }
  0xd7   : > { %8656 = vmatprep.subr.bf16.mxu1 %v9194_v38  ;;  %v10674_v38 = vld [vmem:[#allocation9 + $0x30] ss:$12 sps:$4 sm:$0xff]  }
  0xd9   : > { %1282 = vmatmul.mubr.bf16.gmra.mxu1 %v10526_v37 }
  0xda   : > { %1289 = vmatprep.mubr.bf16.mxu1 %v10529_v40 }
  0xdb   : > { %1055 = vmatmul.mubr.bf16.gmra.mxu0 %v10486_v45  ;;  %v10584_v45 = vld [vmem:[%s10444_s20 + $0xe0] ss:$8 sps:$4 sm:$0xff]  }
  0xdc   : > { %1064 = vmatprep.mubr.bf16.mxu0 %v10489_v48  ;;  %v10594_v48 = vld [vmem:[%s10444_s20 + $0xf0] ss:$8 sps:$4 sm:$0xff]  }
  0xe1   : > { %1290 = vmatmul.mubr.bf16.gmra.mxu1 %v10534_v44 }
  0xe2   : > { %1297 = vmatprep.mubr.bf16.mxu1 %v10537_v46 }
  0xe3   : > { %1065 = vmatmul.mubr.bf16.gmra.mxu0 %v10494_v55  ;;  %v9199_v55 = vld [vmem:[#allocation9 + $0x80] ss:$12 sps:$4 sm:$0xff]  }
  0xe4   : > { %1074 = vmatprep.mubr.bf16.mxu0 %v10497_v59  ;;  %v9203_v59 = vld [vmem:[#allocation9 + $0x50] ss:$12 sps:$4 sm:$0xff]  }
  0xe9   : > { %1298 = vmatmul.mubr.bf16.gmra.mxu1 %v10544_v47 }
  0xea   : > { %1305 = vmatprep.mubr.bf16.mxu1 %v10547_v49 }
  0xeb   : > { %1075 = vmatmul.mubr.bf16.gmra.mxu0 %v10502_v1  ;;  %v9209_v1 = vld [vmem:[#allocation9 + $0x8] ss:$12 sps:$4 sm:$0xff]  }
  0xec   : > { %1084 = vmatprep.mubr.bf16.mxu0 %v10505_v4  ;;  %v9212_v4 = vld [vmem:[#allocation9 + $0x158] ss:$12 sps:$4 sm:$0xff]  }
  0xed   : > { %8686 = vmatprep.subr.bf16.mxu0 %v9212_v4 }
  0xee   : > { %8687 = vmatpush3.bf16.msra.mxu0 %v9213_v5  ;;  %v10734_v5 = vld [vmem:[#allocation9 + $0x10c] ss:$12 sps:$4 sm:$0xff]  }
  0xf1   : > { %1306 = vmatmul.mubr.bf16.gmra.mxu1 %v10554_v19 }
  0xf2   : > { %1313 = vmatprep.mubr.bf16.mxu1 %v10557_v21 }
  0xf3   : > { %1085 = vmatmul.mubr.bf16.gmra.mxu0 %v10510_v11 }
  0xf4   : > { %1094 = vmatprep.mubr.bf16.mxu0 %v10513_v15 }
  0xf9   : > { %1314 = vmatmul.mubr.bf16.gmra.mxu1 %v10564_v24 }
  0xfa   : > { %1321 = vmatprep.mubr.bf16.mxu1 %v10567_v26 }
  0xfb   : > { %1095 = vmatmul.mubr.bf16.gmra.mxu0 %v10518_v25  ;;  %v10654_v25 = vld [vmem:[#allocation9 + $0x64] ss:$12 sps:$4 sm:$0xff]  }
  0xfc   : > { %1104 = vmatprep.mubr.bf16.mxu0 %v10521_v28  ;;  %v10656_v28 = vld [vmem:[#allocation9 + $0x60] ss:$12 sps:$4 sm:$0xff]  }
 0x101   : > { %1322 = vmatmul.mubr.bf16.gmra.mxu1 %v10574_v35 }
 0x102   : > { %1329 = vmatprep.mubr.bf16.mxu1 %v10577_v39 }
 0x103   : > { %1105 = vmatmul.mubr.bf16.gmra.mxu0 %v10526_v37 }
 0x104   : > { %1114 = vmatprep.mubr.bf16.mxu0 %v10529_v40  ;;  %v9214_v40 = vld [vmem:[#allocation9 + $0x140] ss:$12 sps:$4 sm:$0xff]  }
 0x105   : > { %8688 = vmatprep.subr.bf16.mxu0 %v9214_v40 }
 0x106   : > { %8689 = vmatpush3.bf16.msra.mxu0 %v9215_v41  ;;  %v10744_v41 = vld [vmem:[#allocation9 + $0xf4] ss:$12 sps:$4 sm:$0xff]  }
 0x109   : > { %1330 = vmatmul.mubr.bf16.gmra.mxu1 %v10584_v45 }
 0x10a   : > { %1337 = vmatprep.mubr.bf16.mxu1 %v10587_v50 }
 0x10b   : > { %1115 = vmatmul.mubr.bf16.gmra.mxu0 %v10534_v44  ;;  %v10680_v44 = vld [vmem:[#allocation9 + $0x1c] ss:$12 sps:$4 sm:$0xff]  }
 0x10c   : > { %1124 = vmatprep.mubr.bf16.mxu0 %v10537_v46 }
 0x111   : > { %1338 = vmatmul.mubr.bf16.gmra.mxu1 %v10594_v48 }
 0x112   : > { %1890 = vmatprep.mubr.bf16.mxu1 %v10248_v17 }
 0x113   : > { %1125 = vmatmul.mubr.bf16.gmra.mxu0 %v10544_v47  ;;  %v10684_v47 = vld [vmem:[#allocation9 + $0x18] ss:$12 sps:$4 sm:$0xff]  }
 0x114   : > { %1134 = vmatprep.mubr.bf16.mxu0 %v10547_v49 }
 0x119   : > { %1891 = vmatmul.mubr.bf16.vlgmr.msra.gmra.mxu1 %v10248_v17 }
 0x11a   : > { %8657 = vmatpush3.bf16.msra.mxu1 %v9195_v51  ;;  %1900 = vmatprep.mubr.bf16.mxu1 %v10248_v17  ;;  %v9229_v51 = vld [vmem:[#allocation9 + $0x68] ss:$12 sps:$4 sm:$0xff]  }
 0x11b   : > { %8658 = vmatprep.subr.bf16.mxu1 %v9196_v52  ;;  %1135 = vmatmul.mubr.bf16.gmra.mxu0 %v10554_v19  ;;  %v10690_v19 = vld [vmem:[#allocation9 + $0x4] ss:$12 sps:$4 sm:$0xff]  }
 0x11c   : > { %1144 = vmatprep.mubr.bf16.mxu0 %v10557_v21 }
 0x11e   : > { %8659 = vmatpush3.bf16.msra.mxu1 %v9197_v53  ;;  %v10708_v53 = vld [vmem:[#allocation9 + $0x154] ss:$12 sps:$4 sm:$0xff]  }
 0x11f   : > { %8660 = vmatprep.subr.bf16.mxu1 %v9198_v54 }
 0x121   : > { %1901 = vmatmul.mubr.bf16.gmra.mxu1 %v10248_v17 }
 0x122   : > { %8661 = vmatpush3.bf16.msra.mxu1 %v9199_v55  ;;  %1943 = vmatprep.mubr.bf16.mxu1 %v10248_v17  ;;  %v10710_v55 = vld [vmem:[#allocation9 + $0x150] ss:$12 sps:$4 sm:$0xff]  }
 0x123   : > { %8662 = vmatprep.subr.bf16.mxu1 %v9200_v56  ;;  %1145 = vmatmul.mubr.bf16.gmra.mxu0 %v10564_v24  ;;  %v10692_v24 = vld [vmem:[#allocation9] ss:$12 sps:$4 sm:$0xff]  }
 0x124   : > { %1154 = vmatprep.mubr.bf16.mxu0 %v10567_v26 }
 0x126   : > { %8663 = vmatpush3.bf16.msra.mxu1 %v9201_v57 }
 0x127   : > { %8664 = vmatprep.subr.bf16.mxu1 %v9202_v58  ;;  %v9242_v58 = vld [vmem:[#allocation9 + $0x110] ss:$12 sps:$4 sm:$0xff]  }
 0x12a   : > { %8665 = vmatpush3.bf16.msra.mxu1 %v9203_v59  ;;  %v9243_v59 = vld [vmem:[#allocation9 + $0x50] ss:$12 sps:$4 sm:$0xff]  }
 0x12b   : > { %8666 = vmatprep.subr.bf16.mxu1 %v9204_v60  ;;  %1155 = vmatmul.mubr.bf16.gmra.mxu0 %v10574_v35  ;;  %v10716_v60 = vld [vmem:[#allocation9 + $0x13c] ss:$12 sps:$4 sm:$0xff]  }
 0x12c   : > { %1164 = vmatprep.mubr.bf16.mxu0 %v10577_v39  ;;  %v10698_v39 = vld [vmem:[#allocation9 + $0x16c] ss:$12 sps:$4 sm:$0xff]  }
 0x12e   : > { %8667 = vmatpush3.bf16.msra.mxu1 %v9205_v61 }
 0x12f   : > { %8668 = vmatprep.subr.bf16.mxu1 %v9206_v62  ;;  %v10720_v62 = vld [vmem:[#allocation9 + $0x138] ss:$12 sps:$4 sm:$0xff]  }
 0x132   : > { %8669 = vmatpush3.bf16.msra.mxu1 %v9207_v63 }
 0x133   : > { %8670 = vmatprep.subr.bf16.mxu1 %v9208_v0  ;;  %1165 = vmatmul.mubr.bf16.gmra.mxu0 %v10584_v45  ;;  %v10726_v0 = vld [vmem:[#allocation9 + $0x124] ss:$12 sps:$4 sm:$0xff]  }
 0x134   : > { %1174 = vmatprep.mubr.bf16.mxu0 %v10587_v50  ;;  %v10702_v50 = vld [vmem:[#allocation9 + $0x168] ss:$12 sps:$4 sm:$0xff]  }
 0x136   : > { %8671 = vmatpush3.bf16.msra.mxu1 %v9209_v1 }
 0x139   : > { %1944 = vmatmul.mubr.bf16.vlgmr.msra.gmra.mxu1 %v10248_v17 }
 0x13a   : > { %1951 = vmatprep.mubr.bf16.mxu1 %v10248_v17 }
 0x13b   : > { %1175 = vmatmul.mubr.bf16.gmra.mxu0 %v10594_v48  ;;  %v9228_v48 = vld [vmem:[#allocation9 + $0x128] ss:$12 sps:$4 sm:$0xff]  }
 0x13c   : > { %8690 = vmatprep.subr.bf16.mxu0 %v9228_v48  ;;  %v9268_v48 = vld [vmem:[#allocation9 + $0x20] ss:$12 sps:$4 sm:$0xff]  }
 0x13d   : > { %8691 = vmatpush3.bf16.msra.mxu0 %v9229_v51 }
 0x13e   : > { %8692 = vmatprep.subr.bf16.mxu0 %v9242_v58 }
 0x141   : > { %1952 = vmatmul.mubr.bf16.gmra.mxu1 %v10248_v17  ;;  %v10626_v17 = vld [vmem:[#allocation9 + $0xac] ss:$12 sps:$4 sm:$0xff]   ;;  %8693 = vmatpush3.bf16.msra.mxu0 %v9243_v59 }
 0x142   : > { %2391 = vmatprep.subr.bf16.mxu1 %v10626_v17 }
 0x143   : > { %2392 = vmatpush1.bf16.msra.mxu1 %v10630_v10 }
 0x144   : > { %2393 = vmatprep.subr.bf16.mxu1 %v10636_v12 }
 0x147   : > { %2394 = vmatpush1.bf16.msra.mxu1 %v10638_v14 }
 0x148   : > { %2395 = vmatprep.subr.bf16.mxu1 %v10644_v18 }
 0x14b   : > { %2396 = vmatpush1.bf16.msra.mxu1 %v10648_v22 }
 0x14c   : > { %2397 = vmatprep.subr.bf16.mxu1 %v10654_v25 }
 0x14f   : > { %2398 = vmatpush1.bf16.msra.mxu1 %v10656_v28 }
 0x150   : > { %2399 = vmatprep.subr.bf16.mxu1 %v10662_v31 }
 0x153   : > { %2400 = vmatpush1.bf16.msra.mxu1 %v10666_v33 }
 0x154   : > { %2401 = vmatprep.subr.bf16.mxu1 %v10672_v36 }
 0x157   : > { %2402 = vmatpush1.bf16.msra.mxu1 %v10674_v38 }
 0x158   : > { %2403 = vmatprep.subr.bf16.mxu1 %v10680_v44 }
 0x159   : > { %v8560_v6 = vpop.f32.mrf.mxu1 }
 0x15b   : > { %v8561_v7 = vpop.f32.mrf.mxu1  ;;  %2404 = vmatpush1.bf16.msra.mxu1 %v10684_v47 }
 0x15c   : > { %v10624_v8 = vadd.f32 %v8561_v7, %v8560_v6  ;;  %2405 = vmatprep.subr.bf16.mxu1 %v10690_v19  ;;  %v10736_v7 = vld [vmem:[#allocation9 + $0x108] ss:$12 sps:$4 sm:$0xff]  }
 0x15d   : > { %v10628_v9 = vpop.f32.mrf.mxu1 }
 0x15f   : > { %v10633_v11 = vpop.f32.mrf.mxu1  ;;  %2406 = vmatpush1.bf16.msra.mxu1 %v10692_v24 }
 0x160   : > { %2407 = vmatprep.subr.bf16.mxu1 %v10698_v39 }
 0x161   : > { %v8566_v13 = vpop.f32.mrf.mxu1 }
 0x163   : > { %v8567_v15 = vpop.f32.mrf.mxu1  ;;  %2408 = vmatpush2.bf16.msra.mxu1 %v10702_v50 }
 0x164   : > { %v10642_v16 = vadd.f32 %v8567_v15, %v8566_v13  ;;  %2409 = vmatprep.subr.bf16.mxu1 %v10708_v53 }
 0x165   : > { %v10646_v20 = vpop.f32.mrf.mxu1 }
 0x167   : > { %v10651_v23 = vpop.f32.mrf.mxu1  ;;  %2410 = vmatpush2.bf16.msra.mxu1 %v10710_v55 }
 0x168   : > { %2411 = vmatprep.subr.bf16.mxu1 %v10716_v60 }
 0x169   : > { %v8572_v27 = vpop.f32.mrf.mxu1 }
 0x16b   : > { %v8573_v29 = vpop.f32.mrf.mxu1  ;;  %2412 = vmatpush2.bf16.msra.mxu1 %v10720_v62 }
 0x16c   : > { %v10660_v30 = vadd.f32 %v8573_v29, %v8572_v27  ;;  %2413 = vmatprep.subr.bf16.mxu1 %v10726_v0  ;;  %v9256_v27 = vld [vmem:[#allocation9 + $0xf8] ss:$12 sps:$4 sm:$0xff]  }
 0x16d   : > { %v10664_v32 = vpop.f32.mrf.mxu1  ;;  %v9257_v29 = vld [vmem:[#allocation9 + $0x38] ss:$12 sps:$4 sm:$0xff]   ;;  %8694 = vmatprep.subr.bf16.mxu0 %v9256_v27 }
 0x16e   : > { %12826 = vst [vmem:[#allocation21_spill] sm:$0xff] %v10660_v30  ;;  %12827 = vst [vmem:[#allocation22_spill] sm:$0xff] %v10664_v32  ;;  %8695 = vmatpush3.bf16.msra.mxu0 %v9257_v29 }
 0x16f   : > { %v10669_v34 = vpop.f32.mrf.mxu1  ;;  %2414 = vmatpush2.bf16.msra.mxu1 %v10728_v2 }
 0x170   : > { %12828 = vst [vmem:[#allocation23_spill] sm:$0xff] %v10669_v34  ;;  %2415 = vmatprep.subr.bf16.mxu1 %v10734_v5 }
 0x171   : > { %v8578_v37 = vpop.f32.mrf.mxu1 }
 0x173   : > { %v8579_v42 = vpop.f32.mrf.mxu1  ;;  %2416 = vmatpush2.bf16.msra.mxu1 %v10736_v7 }
 0x174   : > { %v10678_v43 = vadd.f32 %v8579_v42, %v8578_v37  ;;  %v10742_v37 = vld [vmem:[#allocation9 + $0xf0] ss:$12 sps:$4 sm:$0xff]   ;;  %2417 = vmatprep.subr.bf16.mxu1 %v10744_v41 }
 0x175   : > { %v10682_v46 = vpop.f32.mrf.mxu1  ;;  %12840 = vst [vmem:[#allocation35_spill] sm:$0xff] %v10742_v37  ;;  %v10746_v42 = vld [vmem:[#allocation9 + $0xdc] ss:$12 sps:$4 sm:$0xff]  }
 0x176   : > { %12829 = vst [vmem:[#allocation24_spill] sm:$0xff] %v10678_v43  ;;  %12830 = vst [vmem:[#allocation25_spill] sm:$0xff] %v10682_v46 }
 0x177   : > { %v10687_v49 = vpop.f32.mrf.mxu1  ;;  %12841 = vst [vmem:[#allocation36_spill] sm:$0xff] %v10746_v42  ;;  %2418 = vmatpush2.bf16.msra.mxu1 %v10742_v37 }
 0x178   : > { %12831 = vst [vmem:[#allocation26_spill] sm:$0xff] %v10687_v49  ;;  %2419 = vmatprep.subr.bf16.mxu1 %v10746_v42 }
 0x179   : > { %v8584_v21 = vpop.f32.mrf.mxu1 }
 0x17b   : > { %v8585_v26 = vpop.f32.mrf.mxu1 }
 0x17c   : > { %v10696_v35 = vadd.f32 %v8585_v26, %v8584_v21  ;;  %v9267_v21 = vld [vmem:[#allocation9 + $0xe0] ss:$12 sps:$4 sm:$0xff]  }
 0x17d   : > { %v10700_v45 = vpop.f32.mrf.mxu1  ;;  %8696 = vmatprep.subr.bf16.mxu0 %v9267_v21 }
 0x17e   : > { %12832 = vst [vmem:[#allocation27_spill] sm:$0xff] %v10696_v35  ;;  %12833 = vst [vmem:[#allocation28_spill] sm:$0xff] %v10700_v45  ;;  %8697 = vmatpush3.bf16.msra.mxu0 %v9268_v48 }
 0x17f   : > { %v10705_v52 = vpop.f32.mrf.mxu1 }
 0x180   : > { %12834 = vst [vmem:[#allocation29_spill] sm:$0xff] %v10705_v52 }
 0x181   : > { %v8590_v54 = vpop.f32.mrf.mxu1 }
 0x183   : > { %v8591_v56 = vpop.f32.mrf.mxu1 }
 0x184   : > { %v10714_v57 = vadd.f32 %v8591_v56, %v8590_v54  ;;  %v10752_v54 = vld [vmem:[#allocation9 + $0xd8] ss:$12 sps:$4 sm:$0xff]   ;;  %v9269_v56 = vld [vmem:[#allocation9 + $0xc8] ss:$12 sps:$4 sm:$0xff]  }
 0x185   : > { %v10718_v61 = vpop.f32.mrf.mxu1  ;;  %12843 = vst [vmem:[#allocation38_spill] sm:$0xff] %v10752_v54  ;;  %2420 = vmatpush2.bf16.msra.mxu1 %v10752_v54  ;;  %8698 = vmatprep.subr.bf16.mxu0 %v9269_v56 }
 0x186   : > { %12835 = vst [vmem:[#allocation30_spill] sm:$0xff] %v10714_v57  ;;  %12836 = vst [vmem:[#allocation31_spill] sm:$0xff] %v10718_v61  ;;  %v10816_v57 = vld [vmem:[#allocation12 + $0x3] ss:$8 sm:$0x7] }
 0x187   : > { %v10723_v63 = vpop.f32.mrf.mxu1 }
 0x188   : > { %12837 = vst [vmem:[#allocation32_spill] sm:$0xff] %v10723_v63  ;;  %v10814_v63 = vld [vmem:[#allocation12 + $0x1] ss:$8 sm:$0x7] }
 0x189   : > { %v8596_v1 = vpop.f32.mrf.mxu1 }
 0x18b   : > { %v8597_v3 = vpop.f32.mrf.mxu1 }
 0x18c   : > { %v10732_v4 = vadd.f32 %v8597_v3, %v8596_v1  ;;  %v9270_v1 = vld [vmem:[#allocation9 + $0x8] ss:$12 sps:$4 sm:$0xff]  }
 0x18d   : > { %v8599_v6 = vpop.f32.mrf.mxu1  ;;  %8699 = vmatpush3.bf16.msra.mxu0 %v9270_v1 }
 0x18e   : > { %12838 = vst [vmem:[#allocation33_spill] sm:$0xff] %v10732_v4  ;;  %2922 = vmatprep.subr.bf16.mxu0 %v10626_v17 }
 0x18f   : > { %v8600_v13 = vpop.f32.mrf.mxu1 }
 0x190   : > { %v10740_v15 = vadd.f32 %v8600_v13, %v8599_v6  ;;  %v9999_v13 = vld [vmem:[#allocation9 + $0xc4] ss:$12 sps:$4 sm:$0xff]  }
 0x191   : > { %v8602_v40 = vpop.f32.mrf.mxu1  ;;  %2421 = vmatprep.subr.bf16.mxu1 %v9999_v13 }
 0x192   : > { %12839 = vst [vmem:[#allocation34_spill] sm:$0xff] %v10740_v15 }
 0x193   : > { %v8603_v26 = vpop.f32.mrf.mxu1 }
 0x194   : > { %v10749_v51 = vadd.f32 %v8603_v26, %v8602_v40  ;;  %v10000_v40 = vld [vmem:[#allocation9 + $0xc0] ss:$12 sps:$4 sm:$0xff]  }
 0x195   : > { %v8605_v58 = vpop.f32.mrf.mxu1  ;;  %2422 = vmatpush2.bf16.msra.mxu1 %v10000_v40 }
 0x196   : > { %12842 = vst [vmem:[#allocation37_spill] sm:$0xff] %v10749_v51 }
 0x197   : > { %v8606_v59 = vpop.f32.mrf.mxu1 }
 0x198   : > { %v10755_v3 = vadd.f32 %v8606_v59, %v8605_v58 }
 0x199   : > { %v8608_v6 = vpop.f32.mrf.mxu1 }
 0x19a   : > { %12844 = vst [vmem:[#allocation39_spill] sm:$0xff] %v10755_v3 }
 0x19b   : > { %v8609_v27 = vpop.f32.mrf.mxu1 }
 0x19c   : > { %v10758_v29 = vadd.f32 %v8609_v27, %v8608_v6 }
 0x19d   : > { %v8611_v21 = vpop.f32.mrf.mxu1 }
 0x19e   : > { %12845 = vst [vmem:[#allocation40_spill] sm:$0xff] %v10758_v29 }
 0x19f   : > { %v8612_v26 = vpop.f32.mrf.mxu1 }
 0x1a0   : > { %v10761_v48 = vadd.f32 %v8612_v26, %v8611_v21 }
 0x1a1   : > { %v8614_v58 = vpop.f32.mrf.mxu1 }
 0x1a2   : > { %12846 = vst [vmem:[#allocation41_spill] sm:$0xff] %v10761_v48 }
 0x1a3   : > { %v8615_v59 = vpop.f32.mrf.mxu1 }
 0x1a4   : > { %v10763_v3 = vadd.f32 %v8615_v59, %v8614_v58 }
 0x1a5   : > { %v8617_v56 = vpop.f32.mrf.mxu1 }
 0x1a6   : > { %12847 = vst [vmem:[#allocation42_spill] sm:$0xff] %v10763_v3 }
 0x1a7   : > { %v8618_v51 = vpop.f32.mrf.mxu1 }
 0x1a8   : > { %v10765_v15 = vadd.f32 %v8618_v51, %v8617_v56 }
 0x1a9   : > { %v8620_v13 = vpop.f32.mrf.mxu1 }
 0x1aa   : > { %12848 = vst [vmem:[#allocation43_spill] sm:$0xff] %v10765_v15 }
 0x1ab   : > { %v8621_v1 = vpop.f32.mrf.mxu1 }
 0x1ac   : > { %v10767_v6 = vadd.f32 %v8621_v1, %v8620_v13 }
 0x1ad   : > { %v8623_v27 = vpop.f32.mrf.mxu1 }
 0x1ae   : > { %12849 = vst [vmem:[#allocation44_spill] sm:$0xff] %v10767_v6 }
 0x1af   : > { %v8624_v40 = vpop.f32.mrf.mxu1 }
 0x1b0   : > { %v10769_v29 = vadd.f32 %v8624_v40, %v8623_v27 }
 0x1b1   : > { %v8626_v17 = vpop.f32.mrf.mxu1 }
 0x1b2   : > { %12850 = vst [vmem:[#allocation45_spill] sm:$0xff] %v10769_v29 }
 0x1b3   : > { %v8627_v4 = vpop.f32.mrf.mxu1 }
 0x1b4   : > { %v10771_v21 = vadd.f32 %v8627_v4, %v8626_v17 }
 0x1b5   : > { %v8629_v26 = vpop.f32.mrf.mxu1 }
 0x1b6   : > { %12851 = vst [vmem:[#allocation46_spill] sm:$0xff] %v10771_v21  ;;  %v12732_v21 = vlaneseq }
 0x1b7   : > { %v8630_v48 = vpop.f32.mrf.mxu1 }
 0x1b8   : > { %v10773_v58 = vadd.f32 %v8630_v48, %v8629_v26 }
 0x1b9   : > { %v8632_v59 = vpop.f32.mrf.mxu1 }
 0x1ba   : > { %12852 = vst [vmem:[#allocation47_spill] sm:$0xff] %v10773_v58 }
 0x1bb   : > { %v8633_v3 = vpop.f32.mrf.mxu1 }
 0x1bc   : > { %v10775_v51 = vadd.f32 %v8633_v3, %v8632_v59  ;;  %v1026_v3 = vpop.f32.mrf.mxu0  ;;  %v10786_v59 = vshrl.u32 %v12732_v21, 7 }
 0x1bd   : > { %v8635_v56 = vpop.f32.mrf.mxu1 }
 0x1be   : > { %12853 = vst [vmem:[#allocation48_spill] sm:$0xff] %v10775_v51  ;;  %12858 = vst [vmem:[#allocation53_spill] sm:$0xff] %v10786_v59  ;;  %v10811_v51 = vsub.s32 1, %v10786_v59 }
 0x1bf   : > { %v8636_v15 = vpop.f32.mrf.mxu1 }
 0x1c0   : > { %v10777_v13 = vadd.f32 %v8636_v15, %v8635_v56  ;;  %12865 = vst [vmem:[#allocation60_spill] sm:$0xff] %v10811_v51 }
 0x1c1   : > { %v8638_v1 = vpop.f32.mrf.mxu1 }
 0x1c2   : > { %12854 = vst [vmem:[#allocation49_spill] sm:$0xff] %v10777_v13 }
 0x1c3   : > { %v8639_v6 = vpop.f32.mrf.mxu1 }
 0x1c4   : > { %v10779_v27 = vadd.f32 %v8639_v6, %v8638_v1  ;;  %v10791_v6 = vsub.s32 0, %v10786_v59 }
 0x1c5   : > { %v8641_v40 = vpop.f32.mrf.mxu1 }
 0x1c6   : > { %12855 = vst [vmem:[#allocation50_spill] sm:$0xff] %v10779_v27  ;;  %12860 = vst [vmem:[#allocation55_spill] sm:$0xff] %v10791_v6  ;;  %v1028_v27 = vpop.f32.mrf.mxu0  ;;  %v10820_v45 = vrot.slane %v10814_v63, %v10791_v6 }
 0x1c7   : > { %v8642_v29 = vpop.f32.mrf.mxu1 }
 0x1c8   : > { %v10781_v4 = vadd.f32 %v8642_v29, %v8641_v40  ;;  %v10793_v29 = vld [vmem:[#allocation12] ss:$8 sm:$0x7] }
 0x1c9   : > { %v8644_v17 = vpop.f32.mrf.mxu1 }
 0x1ca   : > { %12856 = vst [vmem:[#allocation51_spill] sm:$0xff] %v10781_v4  ;;  %v10795_v4 = vld [vmem:[#allocation12 + $0x2] ss:$8 sm:$0x7] }
 0x1cb   : > { %v8645_v48 = vpop.f32.mrf.mxu1 }
 0x1cc   : > { %v10783_v26 = vadd.f32 %v8645_v48, %v8644_v17  ;;  %v10801_v48 = vrot.slane %v10793_v29, %v10791_v6 }
 0x1cd   : > { %v8647_v58 = vpop.f32.mrf.mxu1 }
 0x1ce   : > { %12857 = vst [vmem:[#allocation52_spill] sm:$0xff] %v10783_v26  ;;  %12862 = vst [vmem:[#allocation57_spill] sm:$0xff] %v10801_v48  ;;  %v1030_v26 = vpop.f32.mrf.mxu0 }
 0x1cf   : > { %v8648_v15 = vpop.f32.mrf.mxu1 }
 0x1d0   : > { %v10788_v56 = vadd.f32 %v8648_v15, %v8647_v58  ;;  %v10805_v58 = vrot.slane %v10795_v4, %v10791_v6 }
 0x1d1   : > { %v8650_v1 = vpop.f32.mrf.mxu1 }
 0x1d2   : > { %12859 = vst [vmem:[#allocation54_spill] sm:$0xff] %v10788_v56  ;;  %12863 = vst [vmem:[#allocation58_spill] sm:$0xff] %v10805_v58  ;;  %v1346_v56 = vadd.f32 %v1026_v3, %v10801_v48  ;;  %v10828_v3 = vrot.slane %v10795_v4, %v10811_v51 }
 0x1d3   : > { %v8651_v40 = vpop.f32.mrf.mxu1 }
 0x1d4   : > { %v10797_v17 = vadd.f32 %v8651_v40, %v8650_v1  ;;  %v1032_v40 = vpop.f32.mrf.mxu0  ;;  %12867 = vst [vmem:[#allocation62_spill] sm:$0xff] %v10828_v3 }
 0x1d5   : > { %v8653_v21 = vpop.f32.mrf.mxu1 }
 0x1d6   : > { %12861 = vst [vmem:[#allocation56_spill] sm:$0xff] %v10797_v17 }
 0x1d7   : > { %v8654_v15 = vpop.f32.mrf.mxu1 }
 0x1d8   : > { %v10808_v13 = vadd.f32 %v8654_v15, %v8653_v21  ;;  %v10824_v21 = vrot.slane %v10793_v29, %v10811_v51  ;;  %v1036_v15 = vpop.f32.mrf.mxu0 }
 0x1d9   : > { %v1892_v1 = vpop.f32.mrf.mxu1  ;;  %v1352_v46 = vadd.f32 %v1036_v15, %v10820_v45 }
 0x1da   : > { %12864 = vst [vmem:[#allocation59_spill] sm:$0xff] %v10808_v13  ;;  %v1893_v17 = vadd.f32 %v1892_v1, %v10805_v58  ;;  %12866 = vst [vmem:[#allocation61_spill] sm:$0xff] %v10824_v21  ;;  %v1349_v13 = vadd.f32 %v1030_v26, %v10801_v48  ;;  %v1038_v34 = vpop.f32.mrf.mxu0  ;;  %v1347_v30 = vadd.f32 %v1028_v27, %v10824_v21 }
 0x1db   : > { %v1894_v61 = vpop.f32.mrf.mxu1 }
 0x1dc   : > { %v1972_v52 = vadd.f32 %v1893_v17, %v1346_v56  ;;  %v10834_v56 = vrot.slane %v10816_v57, %v10791_v6  ;;  %v1895_v54 = vadd.f32 %v1894_v61, %v10828_v3 }
 0x1dd   : > { %v1896_v1 = vpop.f32.mrf.mxu1 }
 0x1de   : > { %v8125_v35 = vmul.f32 -1.442695, %v1972_v52  ;;  %v1897_v49 = vadd.f32 %v1896_v1, %v10805_v58  ;;  %12868 = vst [vmem:[#allocation63_spill] sm:$0xff] %v10834_v56  ;;  %v1350_v58 = vadd.f32 %v1032_v40, %v10824_v21 }
 0x1df   : > { %v1898_v17 = vpop.f32.mrf.mxu1 }
 0x1e0   : > { %9519 = vpow2.f32 %v8125_v35  ;;  %v1974_v43 = vadd.f32 %v1897_v49, %v1349_v13  ;;  %v1899_v26 = vadd.f32 %v1898_v17, %v10828_v3  ;;  %v10844_v35 = vrot.slane %v10814_v63, %v10811_v51  ;;  %v1040_v49 = vpop.f32.mrf.mxu0 }
 0x1e1   : > { %v1902_v32 = vpop.f32.mrf.mxu1  ;;  %v10848_v13 = vrot.slane %v10816_v57, %v10811_v51 }
 0x1e2   : > { %v8127_v42 = vmul.f32 -1.442695, %v1974_v43  ;;  %v1903_v52 = vadd.f32 %v1902_v32, %v10834_v56  ;;  %12869 = vst [vmem:[#allocation64_spill] sm:$0xff] %v10844_v35  ;;  %v1973_v43 = vadd.f32 %v1895_v54, %v1347_v30  ;;  %v1355_v32 = vadd.f32 %v1040_v49, %v10820_v45  ;;  %v1042_v21 = vpop.f32.mrf.mxu0 }
 0x1e3   : > { %v1904_v1 = vpop.f32.mrf.mxu1  ;;  %12870 = vst [vmem:[#allocation65_spill] sm:$0xff] %v10848_v13  ;;  %v1356_v54 = vadd.f32 %v1042_v21, %v10844_v35 }
 0x1e4   : > { %9521 = vpow2.f32 %v8127_v42  ;;  %v1976_v6 = vadd.f32 %v1903_v52, %v1352_v46  ;;  %v1975_v42 = vadd.f32 %v1899_v26, %v1350_v58  ;;  %v8126_v17 = vmul.f32 -1.442695, %v1973_v43 }
 0x1e5   : > { %v1906_v61 = vpop.f32.mrf.mxu1  ;;  %v1353_v52 = vadd.f32 %v1038_v34, %v10844_v35  ;;  %v1905_v3 = vadd.f32 %v1904_v1, %v10848_v13 }
 0x1e6   : > { %v8129_v27 = vmul.f32 -1.442695, %v1976_v6  ;;  %v1907_v15 = vadd.f32 %v1906_v61, %v10834_v56  ;;  %v8128_v51 = vmul.f32 -1.442695, %v1975_v42 }
 0x1e7   : > { %v1908_v40 = vpop.f32.mrf.mxu1  ;;  %v1977_v58 = vadd.f32 %v1905_v3, %v1353_v52 }
 0x1e8   : > { %9523 = vpow2.f32 %v8129_v27  ;;  %v1978_v46 = vadd.f32 %v1907_v15, %v1355_v32  ;;  %v1909_v37 = vadd.f32 %v1908_v40, %v10848_v13 }
 0x1e9   : > { %v8130_v34 = vmul.f32 -1.442695, %v1977_v58 }
 0x1ea   : > { %v8131_v48 = vmul.f32 -1.442695, %v1978_v46  ;;  %v1979_v26 = vadd.f32 %v1909_v37, %v1356_v54 }
 0x1ec   : > { %9525 = vpow2.f32 %v8131_v48  ;;  %v8132_v43 = vmul.f32 -1.442695, %v1979_v26  ;;  %v10857_v48 = vsub.s32 2, %v10786_v59  ;;  %v8565_v26 = vadd.f32 %v10633_v11, %v10628_v9 }
 0x1ed   : > { %v9520_v30 = vpop.eup %9519  ;;  %9527 = vpow2.f32 %v8126_v17 }
 0x1ee   : > { %v2004_v6 = vadd.f32 1.0, %v9520_v30  ;;  %9529 = vpow2.f32 %v8128_v51  ;;  %12871 = vst [vmem:[#allocation66_spill] sm:$0xff] %v10857_v48  ;;  %v10861_v37 = vrot.slane %v10795_v4, %v10857_v48  ;;  %v10865_v46 = vrot.slane %v10793_v29, %v10857_v48 }
 0x1f0   : > { %9531 = vrcp.f32 %v2004_v6  ;;  %v1348_v4 = vadd.f32 %v10624_v8, %v10865_v46  ;;  %v1351_v11 = vadd.f32 %v8565_v26, %v10865_v46 }
 0x1f1   : > { %v9522_v49 = vpop.eup %9521 }
 0x1f2   : > { %v2006_v61 = vadd.f32 1.0, %v9522_v49 }
 0x1f4   : > { %9533 = vrcp.f32 %v2006_v61 }
 0x1f5   : > { %v9524_v1 = vpop.eup %9523  ;;  %9535 = vpow2.f32 %v8130_v34 }
 0x1f6   : > { %v2008_v32 = vadd.f32 1.0, %v9524_v1  ;;  %9537 = vpow2.f32 %v8132_v43 }
 0x1f8   : > { %9539 = vrcp.f32 %v2008_v32  ;;  %v10875_v32 = vrot.slane %v10816_v57, %v10857_v48 }
 0x1f9   : > { %v9526_v21 = vpop.eup %9525  ;;  %v8672_v27 = vpop.f32.mrf.mxu1 }
 0x1fa   : > { %v2010_v15 = vadd.f32 1.0, %v9526_v21  ;;  %v9528_v51 = vpop.eup %9527 }
 0x1fb   : > { %v8673_v3 = vpop.f32.mrf.mxu1  ;;  %v9530_v42 = vpop.eup %9529  ;;  %v2005_v30 = vadd.f32 1.0, %v9528_v51 }
 0x1fc   : > { %9541 = vrcp.f32 %v2010_v15  ;;  %v8674_v40 = vadd.f32 %v8673_v3, %v8672_v27  ;;  %v2007_v6 = vadd.f32 1.0, %v9530_v42  ;;  %v10879_v27 = vrot.slane %v10814_v63, %v10857_v48 }
 0x1fd   : > { %v9532_v17 = vpop.eup %9531  ;;  %v8675_v52 = vpop.f32.mrf.mxu1  ;;  %9543 = vrcp.f32 %v2005_v30 }
 0x1fe   : > { %v1946_v54 = vadd.f32 %v8674_v40, %v10861_v37  ;;  %9545 = vrcp.f32 %v2007_v6 }
 0x1ff   : > { %v8676_v58 = vpop.f32.mrf.mxu1 }
 0x200   : > { %v2028_v49 = vmul.f32 %v9532_v17, %v1946_v54  ;;  %v8677_v61 = vadd.f32 %v8676_v58, %v8675_v52  ;;  %v1354_v52 = vadd.f32 %v10642_v16, %v10879_v27  ;;  %v8571_v54 = vadd.f32 %v10651_v23, %v10646_v20 }
 0x201   : > { %v9534_v34 = vpop.eup %9533  ;;  %v8678_v29 = vpop.f32.mrf.mxu1 }
 0x202   : > { %v2032_v43 = vadd.f32 %v2028_v49, %v1348_v4  ;;  %v1949_v1 = vadd.f32 %v8677_v61, %v10861_v37  ;;  %v9536_v21 = vpop.eup %9535  ;;  %v10888_v61 = vpop.f32.mrf.mxu0 }
 0x203   : > { %v8679_v8 = vpop.f32.mrf.mxu1  ;;  %v9538_v9 = vpop.eup %9537  ;;  %v2009_v40 = vadd.f32 1.0, %v9536_v21 }
 0x204   : > { %9547 = vtanh.f32 %v2032_v43  ;;  %v2029_v15 = vmul.f32 %v9534_v34, %v1949_v1  ;;  %v8680_v51 = vadd.f32 %v8679_v8, %v8678_v29  ;;  %v2011_v30 = vadd.f32 1.0, %v9538_v9  ;;  %v10891_v43 = vpop.f32.mrf.mxu0 }
 0x205   : > { %v9540_v3 = vpop.eup %9539  ;;  %v8681_v42 = vpop.f32.mrf.mxu1  ;;  %v1357_v34 = vadd.f32 %v8571_v54, %v10879_v27 }
 0x206   : > { %v2033_v17 = vadd.f32 %v2029_v15, %v1351_v11  ;;  %v1954_v57 = vadd.f32 %v8680_v51, %v10875_v32  ;;  %v10893_v8 = vpop.f32.mrf.mxu0 }
 0x207   : > { %v8682_v63 = vpop.f32.mrf.mxu1 }
 0x208   : > { %9549 = vtanh.f32 %v2033_v17  ;;  %v2030_v6 = vmul.f32 %v9540_v3, %v1954_v57  ;;  %v8683_v58 = vadd.f32 %v8682_v63, %v8681_v42 }
 0x209   : > { %v9542_v4 = vpop.eup %9541  ;;  %9551 = vrcp.f32 %v2009_v40  ;;  %v10895_v40 = vpop.f32.mrf.mxu0 }
 0x20a   : > { %v2034_v26 = vadd.f32 %v2030_v6, %v1354_v52  ;;  %v1957_v49 = vadd.f32 %v8683_v58, %v10875_v32  ;;  %9553 = vrcp.f32 %v2011_v30  ;;  %v9544_v1 = vpop.eup %9543 }
 0x20b   : > { %v9546_v20 = vpop.eup %9545  ;;  %v2040_v21 = vsub.f32 1.0, %v9544_v1  ;;  %v2048_v3 = vmul.f32 0.0, %v9544_v1 }
 0x20c   : > { %9555 = vtanh.f32 %v2034_v26  ;;  %v2031_v16 = vmul.f32 %v9542_v4, %v1957_v49  ;;  %v2041_v9 = vsub.f32 1.0, %v9546_v20  ;;  %v2049_v42 = vmul.f32 0.0, %v9546_v20  ;;  %v10911_v26 = vpop.f32.mrf.mxu0 }
 0x20e   : > { %v2035_v29 = vadd.f32 %v2031_v16, %v1357_v34 }
 0x210   : > { %9557 = vtanh.f32 %v2035_v29 }
 0x211   : > { %v9548_v23 = vpop.eup %9547 }
 0x212   : > { %v2044_v11 = vmul.f32 %v9548_v23, %v2040_v21 }
 0x214   : > { %v10897_v52 = vadd.f32 %v2048_v3, %v2044_v11 }
 0x215   : > { %v9550_v15 = vpop.eup %9549 }
 0x216   : > { %v2045_v51 = vmul.f32 %v9550_v15, %v2041_v9  ;;  %v9552_v17 = vpop.eup %9551  ;;  %12872 = vst [vmem:[#allocation67_spill] sm:$0xff] %v10897_v52  ;;  %v10917_v9 = vpop.f32.mrf.mxu0 }
 0x217   : > { %v9554_v57 = vpop.eup %9553  ;;  %v2042_v4 = vsub.f32 1.0, %v9552_v17  ;;  %v2050_v23 = vmul.f32 0.0, %v9552_v17 }
 0x218   : > { %v10899_v30 = vadd.f32 %v2049_v42, %v2045_v51  ;;  %v2043_v16 = vsub.f32 1.0, %v9554_v57  ;;  %v2051_v21 = vmul.f32 0.0, %v9554_v57  ;;  %v10927_v3 = vpop.f32.mrf.mxu0  ;;  %v9271_v57 = vld [vmem:[#allocation9 + $0x170] ss:$12 sps:$4 sm:$0xff]  }
 0x219   : > { %v9556_v54 = vpop.eup %9555  ;;  %8712 = vmatprep.subr.bf16.mxu1 %v9271_v57  ;;  %v11016_v57 = vld [vmem:[#allocation9 + $0xc0] ss:$12 sps:$4 sm:$0xff]  }
 0x21a   : > { %12873 = vst [vmem:[#allocation68_spill] sm:$0xff] %v10899_v30  ;;  %v2061_v58 = vpack.c.bf16 %v10899_v30, %v10897_v52  ;;  %v2046_v29 = vmul.f32 %v9556_v54, %v2042_v4  ;;  %v9272_v54 = vld [vmem:[#allocation9 + $0xb0] ss:$12 sps:$4 sm:$0xff]   ;;  %v9273_v4 = vld [vmem:[#allocation9 + $0x158] ss:$12 sps:$4 sm:$0xff]  }
 0x21c   : > { %v2068_v49 = vsel %vm10901_vm1, %v2061_v58, 0  ;;  %v2067_v34 = vsel %vm10905_vm3, %v2061_v58, 0  ;;  %v10920_v11 = vadd.f32 %v2050_v23, %v2046_v29  ;;  %v9276_v29 = vld [vmem:[#allocation9 + $0x80] ss:$12 sps:$4 sm:$0xff]   ;;  %v9278_v23 = vld [vmem:[#allocation9 + $0x68] ss:$12 sps:$4 sm:$0xff]  }
 0x21d   : > { %v9558_v1 = vpop.eup %9557  ;;  %2423 = vmatprep.mubr.bf16.mxu1 %v2068_v49  ;;  %2476 = vmatprep.mubr.bf16.mxu0 %v2068_v49  ;;  %v9274_v49 = vld [vmem:[#allocation9 + $0x98] ss:$12 sps:$4 sm:$0xff]  }
 0x21e   : > { %2424 = vmatmul.mubr.bf16.vlgmr.msra.gmra.mxu1 %v2067_v34  ;;  %2477 = vmatmul.mubr.bf16.vlgmr.msra.gmra.mxu0 %v2067_v34  ;;  %v2047_v20 = vmul.f32 %v9558_v1, %v2043_v16  ;;  %12878 = vst [vmem:[#allocation69_spill] sm:$0xff] %v10920_v11  ;;  %v9275_v16 = vld [vmem:[#allocation9 + $0x140] ss:$12 sps:$4 sm:$0xff]  }
 0x21f   : > { %2923 = vmatpush1.bf16.msra.mxu0 %v10630_v10  ;;  %v10935_v10 = vpop.f32.mrf.mxu0  ;;  %8713 = vmatpush3.bf16.msra.mxu1 %v9272_v54  ;;  %v11018_v54 = vld [vmem:[#allocation9 + $0xc4] ss:$12 sps:$4 sm:$0xff]  }
 0x220   : > { %v10922_v15 = vadd.f32 %v2051_v21, %v2047_v20  ;;  %2924 = vmatprep.subr.bf16.mxu0 %v10636_v12  ;;  %8714 = vmatprep.subr.bf16.mxu1 %v9273_v4  ;;  %v9277_v20 = vld [vmem:[#allocation9 + $0x128] ss:$12 sps:$4 sm:$0xff]  }
 0x221   : > { %v10939_v12 = vpop.f32.mrf.mxu0 }
 0x222   : > { %12879 = vst [vmem:[#allocation70_spill] sm:$0xff] %v10922_v15  ;;  %v2062_v51 = vpack.c.bf16 %v10922_v15, %v10920_v11 }
 0x223   : > { %2925 = vmatpush1.bf16.msra.mxu0 %v10638_v14  ;;  %v10943_v14 = vpop.f32.mrf.mxu0  ;;  %8715 = vmatpush3.bf16.msra.mxu1 %v9274_v49  ;;  %v9284_v49 = vld [vmem:[#allocation9 + $0x20] ss:$12 sps:$4 sm:$0xff]  }
 0x224   : > { %v2070_v42 = vsel %vm10905_vm3, %v2062_v51, 0  ;;  %v2069_v17 = vsel %vm10901_vm1, %v2062_v51, 0  ;;  %2926 = vmatprep.subr.bf16.mxu0 %v10644_v18  ;;  %8716 = vmatprep.subr.bf16.mxu1 %v9275_v16  ;;  %v9279_v51 = vld [vmem:[#allocation9 + $0x110] ss:$12 sps:$4 sm:$0xff]   ;;  %v9288_v16 = vld [vmem:[#allocation9 + $0xc8] ss:$12 sps:$4 sm:$0xff]  }
 0x225   : > { %2433 = vmatprep.mubr.bf16.mxu1 %v2070_v42  ;;  %2484 = vmatprep.mubr.bf16.mxu0 %v2070_v42  ;;  %v10947_v18 = vpop.f32.mrf.mxu0  ;;  %v9280_v42 = vld [vmem:[#allocation9 + $0x50] ss:$12 sps:$4 sm:$0xff]  }
 0x226   : > { %2434 = vmatmul.mubr.bf16.gmra.mxu1 %v2069_v17  ;;  %2485 = vmatmul.mubr.bf16.gmra.mxu0 %v2069_v17 }
 0x227   : > { %2927 = vmatpush1.bf16.msra.mxu0 %v10648_v22  ;;  %v10951_v22 = vpop.f32.mrf.mxu0  ;;  %8717 = vmatpush3.bf16.msra.mxu1 %v9276_v29 }
 0x228   : > { %2928 = vmatprep.subr.bf16.mxu0 %v10654_v25  ;;  %8718 = vmatprep.subr.bf16.mxu1 %v9277_v20  ;;  %v9289_v20 = vld [vmem:[#allocation9 + $0x8] ss:$12 sps:$4 sm:$0xff]  }
 0x229   : > { %v10955_v25 = vpop.f32.mrf.mxu0  ;;  %v13019_v63 = vld [vmem:[#allocation70_spill] sm:$0xff] }
 0x22b   : > { %2929 = vmatpush1.bf16.msra.mxu0 %v10656_v28  ;;  %v10959_v28 = vpop.f32.mrf.mxu0  ;;  %8719 = vmatpush3.bf16.msra.mxu1 %v9278_v23 }
 0x22c   : > { %2930 = vmatprep.subr.bf16.mxu0 %v10662_v31  ;;  %8720 = vmatprep.subr.bf16.mxu1 %v9279_v51 }
 0x22d   : > { %v10963_v31 = vpop.f32.mrf.mxu0 }
 0x22f   : > { %2931 = vmatpush1.bf16.msra.mxu0 %v10666_v33  ;;  %v10967_v33 = vpop.f32.mrf.mxu0  ;;  %8721 = vmatpush3.bf16.msra.mxu1 %v9280_v42 }
 0x230   : > { %2932 = vmatprep.subr.bf16.mxu0 %v10672_v36 }
 0x231   : > { %v10971_v36 = vpop.f32.mrf.mxu0 }
 0x232   : > { %12880 = vst [vmem:[#allocation71_spill] sm:$0xff] %v10971_v36  ;;  %v9350_v36 = vld [vmem:[#allocation9 + $0x8] ss:$12 sps:$4 sm:$0xff]  }
 0x233   : > { %2933 = vmatpush1.bf16.msra.mxu0 %v10674_v38  ;;  %v10975_v38 = vpop.f32.mrf.mxu0 }
 0x234   : > { %2934 = vmatprep.subr.bf16.mxu0 %v10680_v44  ;;  %12881 = vst [vmem:[#allocation72_spill] sm:$0xff] %v10975_v38  ;;  %v11208_v38 = vld [vmem:[#allocation9 + $0xdc] ss:$12 sps:$4 sm:$0xff]  }
 0x235   : > { %v10979_v44 = vpop.f32.mrf.mxu0  ;;  %12940 = vst [vmem:[#allocation108_spill] sm:$0xff] %v11208_v38 }
 0x236   : > { %12882 = vst [vmem:[#allocation73_spill] sm:$0xff] %v10979_v44  ;;  %v11212_v44 = vld [vmem:[#allocation9 + $0xd8] ss:$12 sps:$4 sm:$0xff]  }
 0x237   : > { %2935 = vmatpush1.bf16.msra.mxu0 %v10684_v47  ;;  %v12883_v47 = vld [vmem:[#allocation35_spill] sm:$0xff]  ;;  %12941 = vst [vmem:[#allocation109_spill] sm:$0xff] %v11212_v44 }
 0x238   : > { %2936 = vmatprep.subr.bf16.mxu0 %v10690_v19  ;;  %v12884_v19 = vld [vmem:[#allocation36_spill] sm:$0xff] }
 0x23b   : > { %2937 = vmatpush1.bf16.msra.mxu0 %v10692_v24  ;;  %v10983_v24 = vpop.f32.mrf.mxu0 }
 0x23c   : > { %2938 = vmatprep.subr.bf16.mxu0 %v10698_v39  ;;  %12885 = vst [vmem:[#allocation35_spill] sm:$0xff] %v10983_v24  ;;  %v12886_v39 = vld [vmem:[#allocation38_spill] sm:$0xff] }
 0x23d   : > { %v11206_v24 = vld [vmem:[#allocation9 + $0xf4] ss:$12 sps:$4 sm:$0xff]  }
 0x23e   : > { %12939 = vst [vmem:[#allocation107_spill] sm:$0xff] %v11206_v24 }
 0x23f   : > { %2939 = vmatpush2.bf16.msra.mxu0 %v10702_v50  ;;  %v10986_v50 = vpop.f32.mrf.mxu0 }
 0x240   : > { %2940 = vmatprep.subr.bf16.mxu0 %v10708_v53  ;;  %12887 = vst [vmem:[#allocation36_spill] sm:$0xff] %v10986_v50  ;;  %v9343_v50 = vld [vmem:[#allocation9 + $0x38] ss:$12 sps:$4 sm:$0xff]  }
 0x241   : > { %v10988_v53 = vpop.f32.mrf.mxu0 }
 0x242   : > { %12888 = vst [vmem:[#allocation38_spill] sm:$0xff] %v10988_v53  ;;  %v9337_v53 = vld [vmem:[#allocation9 + $0x110] ss:$12 sps:$4 sm:$0xff]  }
 0x243   : > { %2941 = vmatpush2.bf16.msra.mxu0 %v10710_v55  ;;  %v10990_v55 = vpop.f32.mrf.mxu0 }
 0x244   : > { %2942 = vmatprep.subr.bf16.mxu0 %v10716_v60  ;;  %12889 = vst [vmem:[#allocation74_spill] sm:$0xff] %v10990_v55  ;;  %v11200_v55 = vld [vmem:[#allocation9 + $0x108] ss:$12 sps:$4 sm:$0xff]  }
 0x245   : > { %v10992_v60 = vpop.f32.mrf.mxu0 }
 0x246   : > { %12890 = vst [vmem:[#allocation75_spill] sm:$0xff] %v10992_v60  ;;  %v11194_v60 = vld [vmem:[#allocation9 + $0x120] ss:$12 sps:$4 sm:$0xff]  }
 0x247   : > { %2943 = vmatpush2.bf16.msra.mxu0 %v10720_v62  ;;  %v10994_v62 = vpop.f32.mrf.mxu0 }
 0x248   : > { %2944 = vmatprep.subr.bf16.mxu0 %v10726_v0  ;;  %12891 = vst [vmem:[#allocation76_spill] sm:$0xff] %v10994_v62  ;;  %v9332_v62 = vld [vmem:[#allocation9 + $0x128] ss:$12 sps:$4 sm:$0xff]  }
 0x249   : > { %v10996_v0 = vpop.f32.mrf.mxu0 }
 0x24a   : > { %12892 = vst [vmem:[#allocation77_spill] sm:$0xff] %v10996_v0 }
 0x24b   : > { %2945 = vmatpush2.bf16.msra.mxu0 %v10728_v2  ;;  %v10998_v2 = vpop.f32.mrf.mxu0 }
 0x24c   : > { %2946 = vmatprep.subr.bf16.mxu0 %v10734_v5  ;;  %12893 = vst [vmem:[#allocation78_spill] sm:$0xff] %v10998_v2  ;;  %v11188_v2 = vld [vmem:[#allocation9 + $0x138] ss:$12 sps:$4 sm:$0xff]  }
 0x24d   : > { %v11000_v5 = vpop.f32.mrf.mxu0 }
 0x24e   : > { %12894 = vst [vmem:[#allocation79_spill] sm:$0xff] %v11000_v5 }
 0x24f   : > { %2947 = vmatpush2.bf16.msra.mxu0 %v10736_v7  ;;  %v11002_v7 = vpop.f32.mrf.mxu0 }
 0x250   : > { %2948 = vmatprep.subr.bf16.mxu0 %v10744_v41  ;;  %12895 = vst [vmem:[#allocation80_spill] sm:$0xff] %v11002_v7 }
 0x251   : > { %v11004_v41 = vpop.f32.mrf.mxu0 }
 0x252   : > { %12896 = vst [vmem:[#allocation81_spill] sm:$0xff] %v11004_v41 }
 0x253   : > { %2949 = vmatpush2.bf16.msra.mxu0 %v12883_v47  ;;  %v11006_v58 = vpop.f32.mrf.mxu0  ;;  %v9281_v47 = vld [vmem:[#allocation9 + $0xf8] ss:$12 sps:$4 sm:$0xff]  }
 0x254   : > { %2950 = vmatprep.subr.bf16.mxu0 %v12884_v19  ;;  %12897 = vst [vmem:[#allocation82_spill] sm:$0xff] %v11006_v58  ;;  %v9282_v19 = vld [vmem:[#allocation9 + $0x38] ss:$12 sps:$4 sm:$0xff]   ;;  %8722 = vmatprep.subr.bf16.mxu1 %v9281_v47 }
 0x255   : > { %v11008_v34 = vpop.f32.mrf.mxu0  ;;  %8723 = vmatpush3.bf16.msra.mxu1 %v9282_v19 }
 0x256   : > { %12898 = vst [vmem:[#allocation83_spill] sm:$0xff] %v11008_v34 }
 0x257   : > { %2951 = vmatpush2.bf16.msra.mxu0 %v12886_v39  ;;  %v11010_v1 = vpop.f32.mrf.mxu0  ;;  %v9283_v39 = vld [vmem:[#allocation9 + $0xe0] ss:$12 sps:$4 sm:$0xff]  }
 0x258   : > { %12899 = vst [vmem:[#allocation84_spill] sm:$0xff] %v11010_v1  ;;  %2952 = vmatprep.subr.bf16.mxu0 %v11018_v54  ;;  %8724 = vmatprep.subr.bf16.mxu1 %v9283_v39  ;;  %v12925_v1 = vld [vmem:[#allocation61_spill] sm:$0xff] }
 0x259   : > { %v11012_v21 = vpop.f32.mrf.mxu0  ;;  %8725 = vmatpush3.bf16.msra.mxu1 %v9284_v49  ;;  %v1359_v34 = vadd.f32 %v10891_v43, %v12925_v1 }
 0x25a   : > { %12900 = vst [vmem:[#allocation85_spill] sm:$0xff] %v11012_v21  ;;  %8726 = vmatprep.subr.bf16.mxu1 %v9288_v16 }
 0x25b   : > { %v11014_v17 = vpop.f32.mrf.mxu0  ;;  %2953 = vmatpush2.bf16.msra.mxu0 %v11016_v57 }
 0x25c   : > { %12901 = vst [vmem:[#allocation86_spill] sm:$0xff] %v11014_v17 }
 0x25d   : > { %v11020_v4 = vpop.f32.mrf.mxu0  ;;  %8727 = vmatpush3.bf16.msra.mxu1 %v9289_v20 }
 0x25e   : > { %12902 = vst [vmem:[#allocation87_spill] sm:$0xff] %v11020_v4  ;;  %v12922_v4 = vld [vmem:[#allocation58_spill] sm:$0xff] }
 0x25f   : > { %v11024_v29 = vpop.f32.mrf.mxu0 }
 0x260   : > { %12903 = vst [vmem:[#allocation88_spill] sm:$0xff] %v11024_v29 }
 0x261   : > { %v11026_v23 = vpop.f32.mrf.mxu0 }
 0x262   : > { %12904 = vst [vmem:[#allocation89_spill] sm:$0xff] %v11026_v23 }
 0x263   : > { %v11028_v51 = vpop.f32.mrf.mxu0 }
 0x264   : > { %12905 = vst [vmem:[#allocation90_spill] sm:$0xff] %v11028_v51 }
 0x265   : > { %v11030_v42 = vpop.f32.mrf.mxu0 }
 0x266   : > { %12906 = vst [vmem:[#allocation91_spill] sm:$0xff] %v11030_v42 }
 0x267   : > { %v11032_v47 = vpop.f32.mrf.mxu0 }
 0x268   : > { %12907 = vst [vmem:[#allocation92_spill] sm:$0xff] %v11032_v47 }
 0x269   : > { %v11034_v19 = vpop.f32.mrf.mxu0 }
 0x26a   : > { %12908 = vst [vmem:[#allocation93_spill] sm:$0xff] %v11034_v19 }
 0x26b   : > { %v11036_v48 = vpop.f32.mrf.mxu0 }
 0x26c   : > { %12909 = vst [vmem:[#allocation94_spill] sm:$0xff] %v11036_v48 }
 0x26d   : > { %v11038_v39 = vpop.f32.mrf.mxu0 }
 0x26e   : > { %12910 = vst [vmem:[#allocation95_spill] sm:$0xff] %v11038_v39 }
 0x26f   : > { %v11040_v59 = vpop.f32.mrf.mxu0 }
 0x270   : > { %12911 = vst [vmem:[#allocation96_spill] sm:$0xff] %v11040_v59  ;;  %v12921_v59 = vld [vmem:[#allocation57_spill] sm:$0xff] }
 0x271   : > { %v11042_v49 = vpop.f32.mrf.mxu0 }
 0x272   : > { %12912 = vst [vmem:[#allocation97_spill] sm:$0xff] %v11042_v49  ;;  %v1358_v49 = vadd.f32 %v10888_v61, %v12921_v59 }
 0x273   : > { %v11044_v16 = vpop.f32.mrf.mxu0 }
 0x274   : > { %12913 = vst [vmem:[#allocation98_spill] sm:$0xff] %v11044_v16 }
 0x275   : > { %v11046_v23 = vpop.f32.mrf.mxu0 }
 0x276   : > { %12914 = vst [vmem:[#allocation99_spill] sm:$0xff] %v11046_v23 }
 0x277   : > { %v11048_v20 = vpop.f32.mrf.mxu0 }
 0x278   : > { %12915 = vst [vmem:[#allocation100_spill] sm:$0xff] %v11048_v20 }
 0x279   : > { %v11050_v51 = vpop.f32.mrf.mxu0 }
 0x27a   : > { %12916 = vst [vmem:[#allocation101_spill] sm:$0xff] %v11050_v51 }
 0x27b   : > { %v11052_v42 = vpop.f32.mrf.mxu0 }
 0x27c   : > { %12917 = vst [vmem:[#allocation102_spill] sm:$0xff] %v11052_v42  ;;  %v1361_v42 = vadd.f32 %v10893_v8, %v12921_v59 }
 0x27d   : > { %v11054_v47 = vpop.f32.mrf.mxu0 }
 0x27e   : > { %12918 = vst [vmem:[#allocation103_spill] sm:$0xff] %v11054_v47  ;;  %v12924_v47 = vld [vmem:[#allocation62_spill] sm:$0xff] }
 0x27f   : > { %v11056_v19 = vpop.f32.mrf.mxu0 }
 0x280   : > { %12919 = vst [vmem:[#allocation104_spill] sm:$0xff] %v11056_v19 }
 0x281   : > { %v11058_v48 = vpop.f32.mrf.mxu0 }
 0x282   : > { %12920 = vst [vmem:[#allocation105_spill] sm:$0xff] %v11058_v48 }
 0x283   : > { %v11063_v21 = vpop.f32.mrf.mxu0 }
 0x284   : > { %12923 = vst [vmem:[#allocation106_spill] sm:$0xff] %v11063_v21  ;;  %v1364_v21 = vadd.f32 %v10911_v26, %v10820_v45 }
 0x2de   : > { %v2425_v39 = vpop.f32.mrf.mxu1 }
 0x2df   : > { %v2426_v16 = vadd.f32 %v2425_v39, %v12922_v4  ;;  %v11071_v39 = vpop.f32.mrf.mxu0 }
 0x2e0   : > { %v2427_v29 = vpop.f32.mrf.mxu1  ;;  %12926 = vst [vmem:[#allocation61_spill] sm:$0xff] %v11071_v39 }
 0x2e1   : > { %v2506_v23 = vadd.f32 %v2426_v16, %v1358_v49  ;;  %v2428_v17 = vadd.f32 %v2427_v29, %v12924_v47 }
 0x2e2   : > { %v2429_v20 = vpop.f32.mrf.mxu1 }
 0x2e3   : > { %v8181_v51 = vmul.f32 -1.442695, %v2506_v23  ;;  %v2430_v19 = vadd.f32 %v2429_v20, %v12922_v4  ;;  %v2507_v8 = vadd.f32 %v2428_v17, %v1359_v34  ;;  %v1362_v20 = vadd.f32 %v10895_v40, %v12925_v1 }
 0x2e4   : > { %v2431_v48 = vpop.f32.mrf.mxu1  ;;  %v1365_v17 = vadd.f32 %v10917_v9, %v10844_v35 }
 0x2e5   : > { %9559 = vpow2.f32 %v8181_v51  ;;  %v2508_v61 = vadd.f32 %v2430_v19, %v1361_v42  ;;  %v2432_v49 = vadd.f32 %v2431_v48, %v12924_v47  ;;  %v8700_v51 = vpop.f32.mrf.mxu0  ;;  %v1367_v48 = vadd.f32 %v10927_v3, %v10820_v45 }
 0x2e6   : > { %v2435_v16 = vpop.f32.mrf.mxu1  ;;  %v8182_v58 = vmul.f32 -1.442695, %v2507_v8  ;;  %v1368_v3 = vadd.f32 %v10935_v10, %v10844_v35 }
 0x2e7   : > { %v8183_v23 = vmul.f32 -1.442695, %v2508_v61  ;;  %v2436_v29 = vadd.f32 %v2435_v16, %v10834_v56  ;;  %v2509_v42 = vadd.f32 %v2432_v49, %v1362_v20  ;;  %v8701_v16 = vpop.f32.mrf.mxu0 }
 0x2e8   : > { %v2437_v41 = vpop.f32.mrf.mxu1  ;;  %v8702_v10 = vadd.f32 %v8701_v16, %v8700_v51 }
 0x2e9   : > { %9561 = vpow2.f32 %v8183_v23  ;;  %v2510_v43 = vadd.f32 %v2436_v29, %v1364_v21  ;;  %v2438_v19 = vadd.f32 %v2437_v41, %v10848_v13  ;;  %v8184_v21 = vmul.f32 -1.442695, %v2509_v42  ;;  %v8703_v29 = vpop.f32.mrf.mxu0 }
 0x2ea   : > { %v2439_v39 = vpop.f32.mrf.mxu1 }
 0x2eb   : > { %v8185_v26 = vmul.f32 -1.442695, %v2510_v43  ;;  %v2440_v34 = vadd.f32 %v2439_v39, %v10834_v56  ;;  %v2511_v23 = vadd.f32 %v2438_v19, %v1365_v17 }
 0x2ec   : > { %v2441_v61 = vpop.f32.mrf.mxu1 }
 0x2ed   : > { %9563 = vpow2.f32 %v8185_v26  ;;  %v2512_v40 = vadd.f32 %v2440_v34, %v1367_v48  ;;  %v2442_v49 = vadd.f32 %v2441_v61, %v10848_v13  ;;  %v8186_v39 = vmul.f32 -1.442695, %v2511_v23  ;;  %v8704_v48 = vpop.f32.mrf.mxu0 }
 0x2ee   : > { %9565 = vpow2.f32 %v8182_v58 }
 0x2ef   : > { %v8187_v41 = vmul.f32 -1.442695, %v2512_v40  ;;  %v2513_v20 = vadd.f32 %v2442_v49, %v1368_v3  ;;  %v8706_v58 = vpop.f32.mrf.mxu0  ;;  %v8705_v3 = vadd.f32 %v8704_v48, %v8703_v29 }
 0x2f1   : > { %9567 = vpow2.f32 %v8187_v41  ;;  %v8188_v42 = vmul.f32 -1.442695, %v2513_v20  ;;  %v8707_v40 = vpop.f32.mrf.mxu0  ;;  %v2479_v41 = vadd.f32 %v8702_v10, %v10861_v37 }
 0x2f2   : > { %v9560_v8 = vpop.eup %9559  ;;  %9569 = vpow2.f32 %v8184_v21 }
 0x2f3   : > { %v2538_v9 = vadd.f32 1.0, %v9560_v8  ;;  %v8709_v20 = vpop.f32.mrf.mxu0 }
 0x2f5   : > { %9571 = vrcp.f32 %v2538_v9  ;;  %v8710_v48 = vpop.f32.mrf.mxu0 }
 0x2f6   : > { %v9562_v43 = vpop.eup %9561  ;;  %9573 = vpow2.f32 %v8186_v39  ;;  %v8711_v0 = vadd.f32 %v8710_v48, %v8709_v20 }
 0x2f7   : > { %v2540_v19 = vadd.f32 1.0, %v9562_v43  ;;  %v12927_v43 = vld [vmem:[#allocation21_spill] sm:$0xff] }
 0x2f9   : > { %9575 = vrcp.f32 %v2540_v19  ;;  %v12928_v19 = vld [vmem:[#allocation22_spill] sm:$0xff] }
 0x2fa   : > { %v9564_v26 = vpop.eup %9563  ;;  %9577 = vpow2.f32 %v8188_v42  ;;  %v1360_v42 = vadd.f32 %v12927_v43, %v10865_v46 }
 0x2fb   : > { %v2542_v34 = vadd.f32 1.0, %v9564_v26  ;;  %v9566_v17 = vpop.eup %9565  ;;  %v12929_v26 = vld [vmem:[#allocation23_spill] sm:$0xff] }
 0x2fc   : > { %v2539_v23 = vadd.f32 1.0, %v9566_v17  ;;  %v8577_v51 = vadd.f32 %v12929_v26, %v12928_v19  ;;  %v2482_v17 = vadd.f32 %v8705_v3, %v10861_v37 }
 0x2fd   : > { %9579 = vrcp.f32 %v2542_v34 }
 0x2fe   : > { %v9568_v61 = vpop.eup %9567 }
 0x2ff   : > { %v9570_v21 = vpop.eup %9569  ;;  %v2544_v49 = vadd.f32 1.0, %v9568_v61  ;;  %v8708_v61 = vadd.f32 %v8707_v40, %v8706_v58  ;;  %v12931_v58 = vld [vmem:[#allocation25_spill] sm:$0xff]  ;;  %v12932_v40 = vld [vmem:[#allocation26_spill] sm:$0xff] }
 0x300   : > { %v2541_v39 = vadd.f32 1.0, %v9570_v21  ;;  %v1363_v21 = vadd.f32 %v8577_v51, %v10865_v46  ;;  %12937 = vst [vmem:[#allocation25_spill] sm:$0xff] %v11200_v55 }
 0x301   : > { %9581 = vrcp.f32 %v2544_v49  ;;  %v2487_v43 = vadd.f32 %v8708_v61, %v10875_v32 }
 0x302   : > { %v9572_v8 = vpop.eup %9571  ;;  %9583 = vrcp.f32 %v2539_v23 }
 0x303   : > { %v9574_v9 = vpop.eup %9573  ;;  %v2562_v16 = vmul.f32 %v9572_v8, %v2479_v41  ;;  %9585 = vrcp.f32 %v2541_v39  ;;  %v12930_v41 = vld [vmem:[#allocation24_spill] sm:$0xff]  ;;  %v8583_v8 = vadd.f32 %v12932_v40, %v12931_v58 }
 0x304   : > { %v2543_v29 = vadd.f32 1.0, %v9574_v9  ;;  %v1366_v3 = vadd.f32 %v12930_v41, %v10879_v27 }
 0x305   : > { %v2566_v34 = vadd.f32 %v2562_v16, %v1360_v42  ;;  %v2490_v42 = vadd.f32 %v8711_v0, %v10875_v32 }
 0x306   : > { %v9576_v5 = vpop.eup %9575 }
 0x307   : > { %v9578_v10 = vpop.eup %9577  ;;  %9587 = vtanh.f32 %v2566_v34  ;;  %v2563_v49 = vmul.f32 %v9576_v5, %v2482_v17  ;;  %v1369_v5 = vadd.f32 %v8583_v8, %v10879_v27 }
 0x308   : > { %9589 = vrcp.f32 %v2543_v29  ;;  %v2545_v23 = vadd.f32 1.0, %v9578_v10 }
 0x309   : > { %v2567_v7 = vadd.f32 %v2563_v49, %v1363_v21 }
 0x30a   : > { %v9580_v19 = vpop.eup %9579 }
 0x30b   : > { %9591 = vtanh.f32 %v2567_v7  ;;  %v2564_v39 = vmul.f32 %v9580_v19, %v2487_v43 }
 0x30c   : > { %9593 = vrcp.f32 %v2545_v23 }
 0x30d   : > { %v2568_v9 = vadd.f32 %v2564_v39, %v1366_v3 }
 0x30e   : > { %v9582_v26 = vpop.eup %9581 }
 0x30f   : > { %9595 = vtanh.f32 %v2568_v9  ;;  %v2565_v20 = vmul.f32 %v9582_v26, %v2490_v42  ;;  %v9584_v51 = vpop.eup %9583 }
 0x310   : > { %v9586_v34 = vpop.eup %9585  ;;  %v2574_v17 = vsub.f32 1.0, %v9584_v51  ;;  %v2582_v48 = vmul.f32 %v9584_v51, %v10897_v52  ;;  %v9323_v52 = vld [vmem:[#allocation9 + $0x98] ss:$12 sps:$4 sm:$0xff]  }
 0x311   : > { %v2569_v16 = vadd.f32 %v2565_v20, %v1369_v5  ;;  %v2575_v10 = vsub.f32 1.0, %v9586_v34  ;;  %v2583_v43 = vmul.f32 %v9586_v34, %v10899_v30  ;;  %v11182_v30 = vld [vmem:[#allocation9 + $0x150] ss:$12 sps:$4 sm:$0xff]  }
 0x313   : > { %9597 = vtanh.f32 %v2569_v16 }
 0x314   : > { %v9588_v61 = vpop.eup %9587 }
 0x315   : > { %v2578_v29 = vmul.f32 %v9588_v61, %v2574_v17  ;;  %v9590_v7 = vpop.eup %9589 }
 0x316   : > { %v2576_v41 = vsub.f32 1.0, %v9590_v7  ;;  %v2584_v8 = vmul.f32 %v9590_v7, %v10920_v11  ;;  %v11132_v7 = vld [vmem:[#allocation9 + $0x94] ss:$12 sps:$4 sm:$0xff]   ;;  %v11186_v11 = vld [vmem:[#allocation9 + $0x13c] ss:$12 sps:$4 sm:$0xff]  }
 0x317   : > { %v11103_v21 = vadd.f32 %v2582_v48, %v2578_v29  ;;  %v11126_v29 = vld [vmem:[#allocation9 + $0xac] ss:$12 sps:$4 sm:$0xff]   ;;  %v11128_v48 = vld [vmem:[#allocation9 + $0xa8] ss:$12 sps:$4 sm:$0xff]  }
 0x318   : > { %v9592_v0 = vpop.eup %9591  ;;  %3453 = vmatprep.subr.bf16.mxu1 %v11126_v29 }
 0x319   : > { %12933 = vst [vmem:[#allocation21_spill] sm:$0xff] %v11103_v21  ;;  %v2579_v49 = vmul.f32 %v9592_v0, %v2575_v10  ;;  %v9594_v19 = vpop.eup %9593  ;;  %v11134_v10 = vld [vmem:[#allocation9 + $0x90] ss:$12 sps:$4 sm:$0xff]  }
 0x31a   : > { %v2577_v42 = vsub.f32 1.0, %v9594_v19  ;;  %v2585_v51 = vmul.f32 %v9594_v19, %v10922_v15  ;;  %v11138_v0 = vld [vmem:[#allocation9 + $0x7c] ss:$12 sps:$4 sm:$0xff]   ;;  %v11146_v19 = vld [vmem:[#allocation9 + $0x60] ss:$12 sps:$4 sm:$0xff]  }
 0x31b   : > { %v11106_v23 = vadd.f32 %v2583_v43, %v2579_v49  ;;  %v11140_v49 = vld [vmem:[#allocation9 + $0x78] ss:$12 sps:$4 sm:$0xff]   ;;  %v9327_v15 = vld [vmem:[#allocation9 + $0x140] ss:$12 sps:$4 sm:$0xff]  }
 0x31c   : > { %v9596_v3 = vpop.eup %9595  ;;  %v11144_v43 = vld [vmem:[#allocation9 + $0x64] ss:$12 sps:$4 sm:$0xff]  }
 0x31d   : > { %12934 = vst [vmem:[#allocation22_spill] sm:$0xff] %v11106_v23  ;;  %v2596_v58 = vpack.c.bf16 %v11106_v23, %v11103_v21  ;;  %v2580_v40 = vmul.f32 %v9596_v3, %v2576_v41  ;;  %v11150_v41 = vld [vmem:[#allocation9 + $0x4c] ss:$12 sps:$4 sm:$0xff]   ;;  %v11152_v3 = vld [vmem:[#allocation9 + $0x48] ss:$12 sps:$4 sm:$0xff]  }
 0x31f   : > { %v2599_v39 = vsel %vm10901_vm1, %v2596_v58, 0  ;;  %v2598_v9 = vsel %vm10905_vm3, %v2596_v58, 0  ;;  %v11115_v26 = vadd.f32 %v2584_v8, %v2580_v40  ;;  %v11156_v58 = vld [vmem:[#allocation9 + $0x34] ss:$12 sps:$4 sm:$0xff]   ;;  %v11158_v40 = vld [vmem:[#allocation9 + $0x30] ss:$12 sps:$4 sm:$0xff]  }
 0x320   : > { %v9598_v5 = vpop.eup %9597  ;;  %2954 = vmatprep.mubr.bf16.mxu0 %v2599_v39  ;;  %3007 = vmatprep.mubr.bf16.mxu1 %v2599_v39  ;;  %v11162_v8 = vld [vmem:[#allocation9 + $0x1c] ss:$12 sps:$4 sm:$0xff]   ;;  %v11164_v39 = vld [vmem:[#allocation9 + $0x18] ss:$12 sps:$4 sm:$0xff]  }
 0x321   : > { %12935 = vst [vmem:[#allocation23_spill] sm:$0xff] %v11115_v26  ;;  %2955 = vmatmul.mubr.bf16.vlgmr.msra.gmra.mxu0 %v2598_v9  ;;  %3008 = vmatmul.mubr.bf16.vlgmr.msra.gmra.mxu1 %v2598_v9  ;;  %v2581_v20 = vmul.f32 %v9598_v5, %v2577_v42  ;;  %v11168_v9 = vld [vmem:[#allocation9 + $0x4] ss:$12 sps:$4 sm:$0xff]   ;;  %v11170_v42 = vld [vmem:[#allocation9] ss:$12 sps:$4 sm:$0xff]  }
 0x322   : > { %3454 = vmatpush1.bf16.msra.mxu1 %v11128_v48  ;;  %v11174_v5 = vld [vmem:[#allocation9 + $0x16c] ss:$12 sps:$4 sm:$0xff]  }
 0x323   : > { %v11118_v16 = vadd.f32 %v2585_v51, %v2581_v20  ;;  %3455 = vmatprep.subr.bf16.mxu1 %v11132_v7  ;;  %v9317_v20 = vld [vmem:[#allocation9 + $0x170] ss:$12 sps:$4 sm:$0xff]   ;;  %v11176_v51 = vld [vmem:[#allocation9 + $0x168] ss:$12 sps:$4 sm:$0xff]  }
 0x324   : > { %8740 = vmatprep.subr.bf16.mxu0 %v9317_v20  ;;  %v9328_v20 = vld [vmem:[#allocation9 + $0x80] ss:$12 sps:$4 sm:$0xff]  }
 0x325   : > { %12936 = vst [vmem:[#allocation24_spill] sm:$0xff] %v11118_v16  ;;  %v2597_v34 = vpack.c.bf16 %v11118_v16, %v11115_v26 }
 0x326   : > { %3456 = vmatpush1.bf16.msra.mxu1 %v11134_v10 }
 0x327   : > { %v2601_v17 = vsel %vm10905_vm3, %v2597_v34, 0  ;;  %v2600_v61 = vsel %vm10901_vm1, %v2597_v34, 0  ;;  %3457 = vmatprep.subr.bf16.mxu1 %v11138_v0  ;;  %v9318_v34 = vld [vmem:[#allocation9 + $0xb0] ss:$12 sps:$4 sm:$0xff]  }
 0x328   : > { %2964 = vmatprep.mubr.bf16.mxu0 %v2601_v17  ;;  %3015 = vmatprep.mubr.bf16.mxu1 %v2601_v17  ;;  %v11180_v17 = vld [vmem:[#allocation9 + $0x154] ss:$12 sps:$4 sm:$0xff]  }
 0x329   : > { %2965 = vmatmul.mubr.bf16.gmra.mxu0 %v2600_v61  ;;  %3016 = vmatmul.mubr.bf16.gmra.mxu1 %v2600_v61  ;;  %v9322_v61 = vld [vmem:[#allocation9 + $0x158] ss:$12 sps:$4 sm:$0xff]  }
 0x32a   : > { %3458 = vmatpush1.bf16.msra.mxu1 %v11140_v49  ;;  %8741 = vmatpush3.bf16.msra.mxu0 %v9318_v34  ;;  %v11192_v34 = vld [vmem:[#allocation9 + $0x124] ss:$12 sps:$4 sm:$0xff]  }
 0x32b   : > { %3459 = vmatprep.subr.bf16.mxu1 %v11144_v43  ;;  %8742 = vmatprep.subr.bf16.mxu0 %v9322_v61  ;;  %v9333_v61 = vld [vmem:[#allocation9 + $0x68] ss:$12 sps:$4 sm:$0xff]  }
 0x32c   : > { %v13018_v6 = vld [vmem:[#allocation24_spill] sm:$0xff] }
 0x32e   : > { %3460 = vmatpush1.bf16.msra.mxu1 %v11146_v19  ;;  %8743 = vmatpush3.bf16.msra.mxu0 %v9323_v52  ;;  %v11198_v52 = vld [vmem:[#allocation9 + $0x10c] ss:$12 sps:$4 sm:$0xff]  }
 0x32f   : > { %3461 = vmatprep.subr.bf16.mxu1 %v11150_v41  ;;  %8744 = vmatprep.subr.bf16.mxu0 %v9327_v15  ;;  %v9338_v15 = vld [vmem:[#allocation9 + $0x50] ss:$12 sps:$4 sm:$0xff]  }
 0x332   : > { %3462 = vmatpush1.bf16.msra.mxu1 %v11152_v3  ;;  %8745 = vmatpush3.bf16.msra.mxu0 %v9328_v20  ;;  %v11204_v20 = vld [vmem:[#allocation9 + $0xf0] ss:$12 sps:$4 sm:$0xff]  }
 0x333   : > { %3463 = vmatprep.subr.bf16.mxu1 %v11156_v58  ;;  %8746 = vmatprep.subr.bf16.mxu0 %v9332_v62  ;;  %12938 = vst [vmem:[#allocation26_spill] sm:$0xff] %v11204_v20  ;;  %v9342_v62 = vld [vmem:[#allocation9 + $0xf8] ss:$12 sps:$4 sm:$0xff]  }
 0x336   : > { %3464 = vmatpush1.bf16.msra.mxu1 %v11158_v40  ;;  %8747 = vmatpush3.bf16.msra.mxu0 %v9333_v61  ;;  %v9347_v61 = vld [vmem:[#allocation9 + $0xe0] ss:$12 sps:$4 sm:$0xff]  }
 0x337   : > { %3465 = vmatprep.subr.bf16.mxu1 %v11162_v8  ;;  %8748 = vmatprep.subr.bf16.mxu0 %v9337_v53  ;;  %v9348_v53 = vld [vmem:[#allocation9 + $0x20] ss:$12 sps:$4 sm:$0xff]  }
 0x33a   : > { %3466 = vmatpush1.bf16.msra.mxu1 %v11164_v39  ;;  %8749 = vmatpush3.bf16.msra.mxu0 %v9338_v15  ;;  %v9349_v15 = vld [vmem:[#allocation9 + $0xc8] ss:$12 sps:$4 sm:$0xff]  }
 0x33b   : > { %3467 = vmatprep.subr.bf16.mxu1 %v11168_v9  ;;  %8750 = vmatprep.subr.bf16.mxu0 %v9342_v62  ;;  %v1370_v62 = vadd.f32 %v10939_v12, %v12921_v59 }
 0x33e   : > { %3468 = vmatpush1.bf16.msra.mxu1 %v11170_v42  ;;  %8751 = vmatpush3.bf16.msra.mxu0 %v9343_v50 }
 0x33f   : > { %3469 = vmatprep.subr.bf16.mxu1 %v11174_v5  ;;  %8752 = vmatprep.subr.bf16.mxu0 %v9347_v61 }
 0x342   : > { %3470 = vmatpush2.bf16.msra.mxu1 %v11176_v51  ;;  %8753 = vmatpush3.bf16.msra.mxu0 %v9348_v53  ;;  %v1373_v53 = vadd.f32 %v10947_v18, %v12921_v59 }
 0x343   : > { %3471 = vmatprep.subr.bf16.mxu1 %v11180_v17  ;;  %8754 = vmatprep.subr.bf16.mxu0 %v9349_v15 }
 0x346   : > { %3472 = vmatpush2.bf16.msra.mxu1 %v11182_v30  ;;  %8755 = vmatpush3.bf16.msra.mxu0 %v9350_v36 }
 0x347   : > { %3473 = vmatprep.subr.bf16.mxu1 %v11186_v11  ;;  %3984 = vmatprep.subr.bf16.mxu0 %v11126_v29  ;;  %v1371_v29 = vadd.f32 %v10943_v14, %v12925_v1 }
 0x34a   : > { %3474 = vmatpush2.bf16.msra.mxu1 %v11188_v2 }
 0x34b   : > { %3475 = vmatprep.subr.bf16.mxu1 %v11192_v34 }
 0x34e   : > { %3476 = vmatpush2.bf16.msra.mxu1 %v11194_v60 }
 0x34f   : > { %3477 = vmatprep.subr.bf16.mxu1 %v11198_v52 }
 0x352   : > { %3478 = vmatpush2.bf16.msra.mxu1 %v11200_v55 }
 0x353   : > { %3479 = vmatprep.subr.bf16.mxu1 %v11206_v24 }
 0x356   : > { %3480 = vmatpush2.bf16.msra.mxu1 %v11204_v20 }
 0x357   : > { %3481 = vmatprep.subr.bf16.mxu1 %v11208_v38 }
 0x35a   : > { %3482 = vmatpush2.bf16.msra.mxu1 %v11212_v44 }
 0x35b   : > { %3483 = vmatprep.subr.bf16.mxu1 %v11018_v54 }
 0x35e   : > { %3484 = vmatpush2.bf16.msra.mxu1 %v11016_v57 }
 0x3e1   : > { %v2956_v50 = vpop.f32.mrf.mxu0 }
 0x3e2   : > { %v2957_v38 = vadd.f32 %v2956_v50, %v12922_v4 }
 0x3e3   : > { %v2958_v61 = vpop.f32.mrf.mxu0 }
 0x3e4   : > { %v3037_v20 = vadd.f32 %v2957_v38, %v1370_v62  ;;  %v2959_v54 = vadd.f32 %v2958_v61, %v12924_v47  ;;  %v1376_v38 = vadd.f32 %v10955_v25, %v10820_v45 }
 0x3e5   : > { %v2960_v24 = vpop.f32.mrf.mxu0 }
 0x3e6   : > { %v8237_v44 = vmul.f32 -1.442695, %v3037_v20  ;;  %v2961_v57 = vadd.f32 %v2960_v24, %v12922_v4  ;;  %v3038_v62 = vadd.f32 %v2959_v54, %v1371_v29  ;;  %v1374_v20 = vadd.f32 %v10951_v22, %v12925_v1  ;;  %v8728_v4 = vpop.f32.mrf.mxu1 }
 0x3e7   : > { %v2962_v36 = vpop.f32.mrf.mxu0  ;;  %v1377_v29 = vadd.f32 %v10959_v28, %v10844_v35 }
 0x3e8   : > { %9599 = vpow2.f32 %v8237_v44  ;;  %v3039_v15 = vadd.f32 %v2961_v57, %v1373_v53  ;;  %v2963_v12 = vadd.f32 %v2962_v36, %v12924_v47  ;;  %v1379_v57 = vadd.f32 %v10963_v31, %v10820_v45 }
 0x3e9   : > { %v2966_v50 = vpop.f32.mrf.mxu0  ;;  %v8238_v36 = vmul.f32 -1.442695, %v3038_v62  ;;  %v1380_v31 = vadd.f32 %v10967_v33, %v10844_v35 }
 0x3ea   : > { %v8239_v55 = vmul.f32 -1.442695, %v3039_v15  ;;  %v2967_v18 = vadd.f32 %v2966_v50, %v10834_v56  ;;  %v3040_v14 = vadd.f32 %v2963_v12, %v1374_v20 }
 0x3eb   : > { %v2968_v24 = vpop.f32.mrf.mxu0 }
 0x3ec   : > { %9601 = vpow2.f32 %v8239_v55  ;;  %v3041_v61 = vadd.f32 %v2967_v18, %v1376_v38  ;;  %v2969_v44 = vadd.f32 %v2968_v24, %v10848_v13  ;;  %v8729_v55 = vpop.f32.mrf.mxu1  ;;  %v8240_v50 = vmul.f32 -1.442695, %v3040_v14 }
 0x3ed   : > { %v2970_v53 = vpop.f32.mrf.mxu0  ;;  %v8730_v33 = vadd.f32 %v8729_v55, %v8728_v4 }
 0x3ee   : > { %v8241_v25 = vmul.f32 -1.442695, %v3041_v61  ;;  %v2971_v54 = vadd.f32 %v2970_v53, %v10834_v56  ;;  %v3042_v38 = vadd.f32 %v2969_v44, %v1377_v29  ;;  %v8731_v20 = vpop.f32.mrf.mxu1 }
 0x3ef   : > { %v2972_v15 = vpop.f32.mrf.mxu0 }
 0x3f0   : > { %9603 = vpow2.f32 %v8241_v25  ;;  %v3043_v22 = vadd.f32 %v2971_v54, %v1379_v57  ;;  %v2973_v12 = vadd.f32 %v2972_v15, %v10848_v13  ;;  %v8242_v24 = vmul.f32 -1.442695, %v3042_v38  ;;  %v8732_v57 = vpop.f32.mrf.mxu1 }
 0x3f1   : > { %9605 = vpow2.f32 %v8238_v36 }
 0x3f2   : > { %v8243_v18 = vmul.f32 -1.442695, %v3043_v22  ;;  %v3044_v61 = vadd.f32 %v2973_v12, %v1380_v31  ;;  %v8734_v36 = vpop.f32.mrf.mxu1  ;;  %v8733_v31 = vadd.f32 %v8732_v57, %v8731_v20 }
 0x3f4   : > { %9607 = vpow2.f32 %v8243_v18  ;;  %v8244_v14 = vmul.f32 -1.442695, %v3044_v61  ;;  %v8735_v22 = vpop.f32.mrf.mxu1  ;;  %v3010_v18 = vadd.f32 %v8730_v33, %v10861_v37 }
 0x3f5   : > { %v9600_v62 = vpop.eup %9599  ;;  %9609 = vpow2.f32 %v8240_v50 }
 0x3f6   : > { %v3069_v28 = vadd.f32 1.0, %v9600_v62  ;;  %v8737_v61 = vpop.f32.mrf.mxu1 }
 0x3f8   : > { %9611 = vrcp.f32 %v3069_v28  ;;  %v8738_v57 = vpop.f32.mrf.mxu1 }
 0x3f9   : > { %v9602_v53 = vpop.eup %9601  ;;  %9613 = vpow2.f32 %v8242_v24  ;;  %v8739_v56 = vadd.f32 %v8738_v57, %v8737_v61 }
 0x3fa   : > { %v3071_v44 = vadd.f32 1.0, %v9602_v53  ;;  %v12942_v53 = vld [vmem:[#allocation27_spill] sm:$0xff] }
 0x3fc   : > { %9615 = vrcp.f32 %v3071_v44  ;;  %v12943_v44 = vld [vmem:[#allocation28_spill] sm:$0xff] }
 0x3fd   : > { %v9604_v25 = vpop.eup %9603  ;;  %9617 = vpow2.f32 %v8244_v14  ;;  %v1372_v14 = vadd.f32 %v12942_v53, %v10865_v46 }
 0x3fe   : > { %v3073_v54 = vadd.f32 1.0, %v9604_v25  ;;  %v9606_v29 = vpop.eup %9605  ;;  %v12944_v25 = vld [vmem:[#allocation29_spill] sm:$0xff] }
 0x3ff   : > { %v3070_v38 = vadd.f32 1.0, %v9606_v29  ;;  %v8589_v4 = vadd.f32 %v12944_v25, %v12943_v44  ;;  %v3013_v29 = vadd.f32 %v8733_v31, %v10861_v37 }
 0x400   : > { %9619 = vrcp.f32 %v3073_v54 }
 0x401   : > { %v9608_v15 = vpop.eup %9607 }
 0x402   : > { %v9610_v50 = vpop.eup %9609  ;;  %v3075_v12 = vadd.f32 1.0, %v9608_v15  ;;  %v8736_v15 = vadd.f32 %v8735_v22, %v8734_v36  ;;  %v12946_v36 = vld [vmem:[#allocation31_spill] sm:$0xff]  ;;  %v12947_v22 = vld [vmem:[#allocation32_spill] sm:$0xff] }
 0x403   : > { %v3072_v24 = vadd.f32 1.0, %v9610_v50  ;;  %v1375_v50 = vadd.f32 %v8589_v4, %v10865_v46 }
 0x404   : > { %9621 = vrcp.f32 %v3075_v12  ;;  %v3018_v53 = vadd.f32 %v8736_v15, %v10875_v32 }
 0x405   : > { %v9612_v62 = vpop.eup %9611  ;;  %9623 = vrcp.f32 %v3070_v38 }
 0x406   : > { %v9614_v28 = vpop.eup %9613  ;;  %v3093_v55 = vmul.f32 %v9612_v62, %v3010_v18  ;;  %9625 = vrcp.f32 %v3072_v24  ;;  %v12945_v18 = vld [vmem:[#allocation30_spill] sm:$0xff]  ;;  %v8595_v62 = vadd.f32 %v12947_v22, %v12946_v36 }
 0x407   : > { %v3074_v20 = vadd.f32 1.0, %v9614_v28  ;;  %v1378_v31 = vadd.f32 %v12945_v18, %v10879_v27 }
 0x408   : > { %v3097_v54 = vadd.f32 %v3093_v55, %v1372_v14  ;;  %v3021_v14 = vadd.f32 %v8739_v56, %v10875_v32 }
 0x409   : > { %v9616_v35 = vpop.eup %9615 }
 0x40a   : > { %v9618_v33 = vpop.eup %9617  ;;  %9627 = vtanh.f32 %v3097_v54  ;;  %v3094_v12 = vmul.f32 %v9616_v35, %v3013_v29  ;;  %v1381_v35 = vadd.f32 %v8595_v62, %v10879_v27 }
 0x40b   : > { %9629 = vrcp.f32 %v3074_v20  ;;  %v3076_v38 = vadd.f32 1.0, %v9618_v33 }
 0x40c   : > { %v3098_v13 = vadd.f32 %v3094_v12, %v1375_v50 }
 0x40d   : > { %v9620_v44 = vpop.eup %9619 }
 0x40e   : > { %9631 = vtanh.f32 %v3098_v13  ;;  %v3095_v24 = vmul.f32 %v9620_v44, %v3018_v53 }
 0x40f   : > { %9633 = vrcp.f32 %v3076_v38 }
 0x410   : > { %v3099_v28 = vadd.f32 %v3095_v24, %v1378_v31 }
 0x411   : > { %v9622_v25 = vpop.eup %9621 }
 0x412   : > { %9635 = vtanh.f32 %v3099_v28  ;;  %v3096_v61 = vmul.f32 %v9622_v25, %v3021_v14  ;;  %v9624_v4 = vpop.eup %9623 }
 0x413   : > { %v9626_v54 = vpop.eup %9625  ;;  %v3105_v29 = vsub.f32 1.0, %v9624_v4  ;;  %v3113_v57 = vmul.f32 %v9624_v4, %v11103_v21 }
 0x414   : > { %v3100_v55 = vadd.f32 %v3096_v61, %v1381_v35  ;;  %v3106_v33 = vsub.f32 1.0, %v9626_v54  ;;  %v3114_v53 = vmul.f32 %v9626_v54, %v11106_v23 }
 0x416   : > { %9637 = vtanh.f32 %v3100_v55 }
 0x417   : > { %v9628_v15 = vpop.eup %9627 }
 0x418   : > { %v3109_v20 = vmul.f32 %v9628_v15, %v3105_v29  ;;  %v9630_v13 = vpop.eup %9629 }
 0x419   : > { %v3107_v18 = vsub.f32 1.0, %v9630_v13  ;;  %v3115_v62 = vmul.f32 %v9630_v13, %v11115_v26  ;;  %v12958_v13 = vld [vmem:[#allocation58_spill] sm:$0xff] }
 0x41a   : > { %v11258_v50 = vadd.f32 %v3113_v57, %v3109_v20  ;;  %v12957_v20 = vld [vmem:[#allocation71_spill] sm:$0xff] }
 0x41b   : > { %v9632_v56 = vpop.eup %9631  ;;  %v1382_v57 = vadd.f32 %v12957_v20, %v12921_v59 }
 0x41c   : > { %12948 = vst [vmem:[#allocation27_spill] sm:$0xff] %v11258_v50  ;;  %v3110_v12 = vmul.f32 %v9632_v56, %v3106_v33  ;;  %v9634_v44 = vpop.eup %9633 }
 0x41d   : > { %v3108_v14 = vsub.f32 1.0, %v9634_v44  ;;  %v3116_v4 = vmul.f32 %v9634_v44, %v11118_v16  ;;  %v12959_v44 = vld [vmem:[#allocation73_spill] sm:$0xff] }
 0x41e   : > { %v11261_v38 = vadd.f32 %v3114_v53, %v3110_v12 }
 0x41f   : > { %v9636_v31 = vpop.eup %9635 }
 0x420   : > { %12949 = vst [vmem:[#allocation28_spill] sm:$0xff] %v11261_v38  ;;  %v3127_v36 = vpack.c.bf16 %v11261_v38, %v11258_v50  ;;  %v3111_v22 = vmul.f32 %v9636_v31, %v3107_v18  ;;  %v1385_v18 = vadd.f32 %v12959_v44, %v12921_v59 }
 0x422   : > { %v3130_v24 = vsel %vm10901_vm1, %v3127_v36, 0  ;;  %v3129_v28 = vsel %vm10905_vm3, %v3127_v36, 0  ;;  %v11270_v25 = vadd.f32 %v3115_v62, %v3111_v22 }
 0x423   : > { %v9638_v35 = vpop.eup %9637  ;;  %3485 = vmatprep.mubr.bf16.mxu1 %v3130_v24  ;;  %3538 = vmatprep.mubr.bf16.mxu0 %v3130_v24  ;;  %v12960_v24 = vld [vmem:[#allocation72_spill] sm:$0xff] }
 0x424   : > { %12950 = vst [vmem:[#allocation29_spill] sm:$0xff] %v11270_v25  ;;  %3486 = vmatmul.mubr.bf16.vlgmr.msra.gmra.mxu1 %v3129_v28  ;;  %3539 = vmatmul.mubr.bf16.vlgmr.msra.gmra.mxu0 %v3129_v28  ;;  %v3112_v61 = vmul.f32 %v9638_v35, %v3108_v14  ;;  %v1383_v28 = vadd.f32 %v12960_v24, %v12925_v1 }
 0x425   : > { %3985 = vmatpush1.bf16.msra.mxu0 %v11128_v48  ;;  %v12952_v48 = vld [vmem:[#allocation25_spill] sm:$0xff] }
 0x426   : > { %v11274_v55 = vadd.f32 %v3116_v4, %v3112_v61  ;;  %3986 = vmatprep.subr.bf16.mxu0 %v11132_v7  ;;  %v12953_v7 = vld [vmem:[#allocation107_spill] sm:$0xff]  ;;  %v12961_v4 = vld [vmem:[#allocation36_spill] sm:$0xff] }
 0x428   : > { %12951 = vst [vmem:[#allocation30_spill] sm:$0xff] %v11274_v55  ;;  %v3128_v54 = vpack.c.bf16 %v11274_v55, %v11270_v25 }
 0x429   : > { %3987 = vmatpush1.bf16.msra.mxu0 %v11134_v10  ;;  %v12954_v10 = vld [vmem:[#allocation26_spill] sm:$0xff] }
 0x42a   : > { %v3132_v29 = vsel %vm10905_vm3, %v3128_v54, 0  ;;  %v3131_v15 = vsel %vm10901_vm1, %v3128_v54, 0  ;;  %3988 = vmatprep.subr.bf16.mxu0 %v11138_v0  ;;  %v12955_v0 = vld [vmem:[#allocation108_spill] sm:$0xff]  ;;  %v1388_v54 = vadd.f32 %v12961_v4, %v10820_v45 }
 0x42b   : > { %3495 = vmatprep.mubr.bf16.mxu1 %v3132_v29  ;;  %3546 = vmatprep.mubr.bf16.mxu0 %v3132_v29 }
 0x42c   : > { %3496 = vmatmul.mubr.bf16.gmra.mxu1 %v3131_v15  ;;  %3547 = vmatmul.mubr.bf16.gmra.mxu0 %v3131_v15 }
 0x42d   : > { %3989 = vmatpush1.bf16.msra.mxu0 %v11140_v49  ;;  %v12956_v49 = vld [vmem:[#allocation109_spill] sm:$0xff] }
 0x42e   : > { %3990 = vmatprep.subr.bf16.mxu0 %v11144_v43  ;;  %v9354_v43 = vld [vmem:[#allocation9 + $0x98] ss:$12 sps:$4 sm:$0xff]  }
 0x431   : > { %3991 = vmatpush1.bf16.msra.mxu0 %v11146_v19  ;;  %v9356_v19 = vld [vmem:[#allocation9 + $0x80] ss:$12 sps:$4 sm:$0xff]  }
 0x432   : > { %3992 = vmatprep.subr.bf16.mxu0 %v11150_v41  ;;  %v9357_v41 = vld [vmem:[#allocation9 + $0x128] ss:$12 sps:$4 sm:$0xff]  }
 0x435   : > { %3993 = vmatpush1.bf16.msra.mxu0 %v11152_v3  ;;  %v9358_v3 = vld [vmem:[#allocation9 + $0x68] ss:$12 sps:$4 sm:$0xff]  }
 0x436   : > { %3994 = vmatprep.subr.bf16.mxu0 %v11156_v58  ;;  %v9359_v58 = vld [vmem:[#allocation9 + $0x110] ss:$12 sps:$4 sm:$0xff]  }
 0x439   : > { %3995 = vmatpush1.bf16.msra.mxu0 %v11158_v40  ;;  %v9360_v40 = vld [vmem:[#allocation9 + $0x50] ss:$12 sps:$4 sm:$0xff]  }
 0x43a   : > { %3996 = vmatprep.subr.bf16.mxu0 %v11162_v8  ;;  %v9361_v8 = vld [vmem:[#allocation9 + $0xf8] ss:$12 sps:$4 sm:$0xff]  }
 0x43d   : > { %3997 = vmatpush1.bf16.msra.mxu0 %v11164_v39  ;;  %v9362_v39 = vld [vmem:[#allocation9 + $0x38] ss:$12 sps:$4 sm:$0xff]  }
 0x43e   : > { %3998 = vmatprep.subr.bf16.mxu0 %v11168_v9  ;;  %v9363_v9 = vld [vmem:[#allocation9 + $0xe0] ss:$12 sps:$4 sm:$0xff]  }
 0x441   : > { %3999 = vmatpush1.bf16.msra.mxu0 %v11170_v42  ;;  %v11310_v42 = vld [vmem:[#allocation9 + $0xc0] ss:$12 sps:$4 sm:$0xff]  }
 0x442   : > { %4000 = vmatprep.subr.bf16.mxu0 %v11174_v5  ;;  %v11312_v5 = vld [vmem:[#allocation9 + $0xc4] ss:$12 sps:$4 sm:$0xff]  }
 0x445   : > { %4001 = vmatpush2.bf16.msra.mxu0 %v11176_v51  ;;  %v9364_v51 = vld [vmem:[#allocation9 + $0x20] ss:$12 sps:$4 sm:$0xff]  }
 0x446   : > { %4002 = vmatprep.subr.bf16.mxu0 %v11180_v17  ;;  %v9368_v17 = vld [vmem:[#allocation9 + $0xc8] ss:$12 sps:$4 sm:$0xff]  }
 0x449   : > { %4003 = vmatpush2.bf16.msra.mxu0 %v11182_v30  ;;  %v9351_v30 = vld [vmem:[#allocation9 + $0x170] ss:$12 sps:$4 sm:$0xff]  }
 0x44a   : > { %4004 = vmatprep.subr.bf16.mxu0 %v11186_v11  ;;  %v9352_v11 = vld [vmem:[#allocation9 + $0xb0] ss:$12 sps:$4 sm:$0xff]   ;;  %8768 = vmatprep.subr.bf16.mxu1 %v9351_v30 }
 0x44b   : > { %8769 = vmatpush3.bf16.msra.mxu1 %v9352_v11 }
 0x44d   : > { %4005 = vmatpush2.bf16.msra.mxu0 %v11188_v2  ;;  %v9353_v2 = vld [vmem:[#allocation9 + $0x158] ss:$12 sps:$4 sm:$0xff]  }
 0x44e   : > { %4006 = vmatprep.subr.bf16.mxu0 %v11192_v34  ;;  %8770 = vmatprep.subr.bf16.mxu1 %v9353_v2  ;;  %v9369_v34 = vld [vmem:[#allocation9 + $0x8] ss:$12 sps:$4 sm:$0xff]  }
 0x44f   : > { %8771 = vmatpush3.bf16.msra.mxu1 %v9354_v43  ;;  %v12964_v43 = vld [vmem:[#allocation65_spill] sm:$0xff] }
 0x451   : > { %4007 = vmatpush2.bf16.msra.mxu0 %v11194_v60  ;;  %v9355_v60 = vld [vmem:[#allocation9 + $0x140] ss:$12 sps:$4 sm:$0xff]  }
 0x452   : > { %4008 = vmatprep.subr.bf16.mxu0 %v11198_v52  ;;  %8772 = vmatprep.subr.bf16.mxu1 %v9355_v60 }
 0x453   : > { %8773 = vmatpush3.bf16.msra.mxu1 %v9356_v19 }
 0x454   : > { %8774 = vmatprep.subr.bf16.mxu1 %v9357_v41  ;;  %v12965_v41 = vld [vmem:[#allocation74_spill] sm:$0xff] }
 0x455   : > { %4009 = vmatpush2.bf16.msra.mxu0 %v12952_v48  ;;  %v12962_v48 = vld [vmem:[#allocation63_spill] sm:$0xff] }
 0x456   : > { %4010 = vmatprep.subr.bf16.mxu0 %v12953_v7 }
 0x457   : > { %8775 = vmatpush3.bf16.msra.mxu1 %v9358_v3  ;;  %v1391_v3 = vadd.f32 %v12965_v41, %v10820_v45 }
 0x458   : > { %8776 = vmatprep.subr.bf16.mxu1 %v9359_v58 }
 0x459   : > { %4011 = vmatpush2.bf16.msra.mxu0 %v12954_v10  ;;  %v12963_v10 = vld [vmem:[#allocation35_spill] sm:$0xff] }
 0x45a   : > { %4012 = vmatprep.subr.bf16.mxu0 %v12955_v0  ;;  %v1386_v0 = vadd.f32 %v12963_v10, %v12925_v1 }
 0x45b   : > { %8777 = vmatpush3.bf16.msra.mxu1 %v9360_v40 }
 0x45c   : > { %8778 = vmatprep.subr.bf16.mxu1 %v9361_v8 }
 0x45d   : > { %4013 = vmatpush2.bf16.msra.mxu0 %v12956_v49 }
 0x45e   : > { %4014 = vmatprep.subr.bf16.mxu0 %v11312_v5 }
 0x45f   : > { %8779 = vmatpush3.bf16.msra.mxu1 %v9362_v39  ;;  %v12966_v39 = vld [vmem:[#allocation64_spill] sm:$0xff] }
 0x460   : > { %8780 = vmatprep.subr.bf16.mxu1 %v9363_v9  ;;  %v12967_v9 = vld [vmem:[#allocation38_spill] sm:$0xff] }
 0x461   : > { %4015 = vmatpush2.bf16.msra.mxu0 %v11310_v42 }
 0x463   : > { %8781 = vmatpush3.bf16.msra.mxu1 %v9364_v51  ;;  %v1389_v51 = vadd.f32 %v12967_v9, %v12966_v39 }
 0x464   : > { %8782 = vmatprep.subr.bf16.mxu1 %v9368_v17 }
 0x467   : > { %8783 = vmatpush3.bf16.msra.mxu1 %v9369_v34 }
 0x4e4   : > { %v3487_v52 = vpop.f32.mrf.mxu1  ;;  %v8756_v11 = vpop.f32.mrf.mxu0 }
 0x4e5   : > { %v3488_v33 = vadd.f32 %v3487_v52, %v12958_v13 }
 0x4e6   : > { %v3489_v56 = vpop.f32.mrf.mxu1  ;;  %v8757_v52 = vpop.f32.mrf.mxu0 }
 0x4e7   : > { %v3568_v12 = vadd.f32 %v3488_v33, %v1382_v57  ;;  %v3490_v36 = vadd.f32 %v3489_v56, %v12924_v47 }
 0x4e8   : > { %v3491_v53 = vpop.f32.mrf.mxu1 }
 0x4e9   : > { %v8293_v31 = vmul.f32 -1.442695, %v3568_v12  ;;  %v3492_v22 = vadd.f32 %v3491_v53, %v12958_v13  ;;  %v3569_v29 = vadd.f32 %v3490_v36, %v1383_v28  ;;  %v12968_v12 = vld [vmem:[#allocation75_spill] sm:$0xff] }
 0x4ea   : > { %v3493_v62 = vpop.f32.mrf.mxu1  ;;  %v1392_v53 = vadd.f32 %v12968_v12, %v12966_v39 }
 0x4eb   : > { %9639 = vpow2.f32 %v8293_v31  ;;  %v3570_v14 = vadd.f32 %v3492_v22, %v1385_v18  ;;  %v3494_v35 = vadd.f32 %v3493_v62, %v12924_v47  ;;  %v8294_v58 = vmul.f32 -1.442695, %v3569_v29  ;;  %v8759_v18 = vpop.f32.mrf.mxu0 }
 0x4ec   : > { %v3497_v61 = vpop.f32.mrf.mxu1  ;;  %v8758_v29 = vadd.f32 %v8757_v52, %v8756_v11 }
 0x4ed   : > { %v8295_v15 = vmul.f32 -1.442695, %v3570_v14  ;;  %v3498_v7 = vadd.f32 %v3497_v61, %v12962_v48  ;;  %v3571_v2 = vadd.f32 %v3494_v35, %v1386_v0  ;;  %v8760_v24 = vpop.f32.mrf.mxu0 }
 0x4ee   : > { %v3499_v49 = vpop.f32.mrf.mxu1 }
 0x4ef   : > { %9641 = vpow2.f32 %v8295_v15  ;;  %v3572_v30 = vadd.f32 %v3498_v7, %v1388_v54  ;;  %v3500_v60 = vadd.f32 %v3499_v49, %v12964_v43  ;;  %v8296_v20 = vmul.f32 -1.442695, %v3571_v2  ;;  %v8762_v61 = vpop.f32.mrf.mxu0 }
 0x4f0   : > { %v3501_v19 = vpop.f32.mrf.mxu1  ;;  %v8761_v2 = vadd.f32 %v8760_v24, %v8759_v18 }
 0x4f1   : > { %v8297_v40 = vmul.f32 -1.442695, %v3572_v30  ;;  %v3502_v8 = vadd.f32 %v3501_v19, %v12962_v48  ;;  %v3573_v57 = vadd.f32 %v3500_v60, %v1389_v51  ;;  %v8763_v7 = vpop.f32.mrf.mxu0  ;;  %v3541_v30 = vadd.f32 %v8758_v29, %v10861_v37 }
 0x4f2   : > { %v3503_v17 = vpop.f32.mrf.mxu1  ;;  %v3544_v9 = vadd.f32 %v8761_v2, %v10861_v37  ;;  %v8764_v51 = vadd.f32 %v8763_v7, %v8762_v61 }
 0x4f3   : > { %9643 = vpow2.f32 %v8297_v40  ;;  %v3574_v34 = vadd.f32 %v3502_v8, %v1391_v3  ;;  %v3504_v33 = vadd.f32 %v3503_v17, %v12964_v43  ;;  %v8298_v31 = vmul.f32 -1.442695, %v3573_v57  ;;  %v8765_v41 = vpop.f32.mrf.mxu0  ;;  %v12970_v57 = vld [vmem:[#allocation34_spill] sm:$0xff] }
 0x4f4   : > { %9645 = vpow2.f32 %v8294_v58  ;;  %v12969_v58 = vld [vmem:[#allocation33_spill] sm:$0xff] }
 0x4f5   : > { %v8299_v56 = vmul.f32 -1.442695, %v3574_v34  ;;  %v3575_v36 = vadd.f32 %v3504_v33, %v1392_v53  ;;  %v1384_v40 = vadd.f32 %v12969_v58, %v10865_v46  ;;  %v8766_v52 = vpop.f32.mrf.mxu0  ;;  %v1387_v33 = vadd.f32 %v12970_v57, %v10865_v46 }
 0x4f6   : > { %v3549_v53 = vadd.f32 %v8764_v51, %v10875_v32 }
 0x4f7   : > { %9647 = vpow2.f32 %v8299_v56  ;;  %v8300_v28 = vmul.f32 -1.442695, %v3575_v36  ;;  %v12971_v36 = vld [vmem:[#allocation37_spill] sm:$0xff] }
 0x4f8   : > { %v9640_v44 = vpop.eup %9639  ;;  %9649 = vpow2.f32 %v8296_v20 }
 0x4f9   : > { %v3600_v22 = vadd.f32 1.0, %v9640_v44  ;;  %v8767_v44 = vadd.f32 %v8766_v52, %v8765_v41 }
 0x4fb   : > { %9651 = vrcp.f32 %v3600_v22  ;;  %v1390_v22 = vadd.f32 %v12971_v36, %v10879_v27  ;;  %v11376_v36 = vld [vmem:[#allocation9 + $0xac] ss:$12 sps:$4 sm:$0xff]  }
 0x4fc   : > { %v9642_v62 = vpop.eup %9641  ;;  %9653 = vpow2.f32 %v8298_v31  ;;  %4513 = vmatprep.subr.bf16.mxu1 %v11376_v36 }
 0x4fd   : > { %v3602_v14 = vadd.f32 1.0, %v9642_v62 }
 0x4ff   : > { %9655 = vrcp.f32 %v3602_v14 }
 0x500   : > { %v9644_v35 = vpop.eup %9643  ;;  %9657 = vpow2.f32 %v8300_v28  ;;  %v3552_v28 = vadd.f32 %v8767_v44, %v10875_v32 }
 0x501   : > { %v3604_v4 = vadd.f32 1.0, %v9644_v35  ;;  %v9646_v54 = vpop.eup %9645  ;;  %v12972_v35 = vld [vmem:[#allocation39_spill] sm:$0xff] }
 0x502   : > { %v3601_v0 = vadd.f32 1.0, %v9646_v54  ;;  %v1393_v61 = vadd.f32 %v12972_v35, %v10879_v27  ;;  %v11394_v35 = vld [vmem:[#allocation9 + $0x64] ss:$12 sps:$4 sm:$0xff]  }
 0x503   : > { %9659 = vrcp.f32 %v3604_v4 }
 0x504   : > { %v9648_v15 = vpop.eup %9647 }
 0x505   : > { %v9650_v10 = vpop.eup %9649  ;;  %v3606_v49 = vadd.f32 1.0, %v9648_v15 }
 0x506   : > { %v3603_v19 = vadd.f32 1.0, %v9650_v10 }
 0x507   : > { %9661 = vrcp.f32 %v3606_v49 }
 0x508   : > { %v9652_v60 = vpop.eup %9651  ;;  %9663 = vrcp.f32 %v3601_v0 }
 0x509   : > { %v9654_v3 = vpop.eup %9653  ;;  %v3624_v8 = vmul.f32 %v9652_v60, %v3541_v30  ;;  %9665 = vrcp.f32 %v3603_v19 }
 0x50a   : > { %v3605_v34 = vadd.f32 1.0, %v9654_v3 }
 0x50b   : > { %v3628_v11 = vadd.f32 %v3624_v8, %v1384_v40 }
 0x50c   : > { %v9656_v17 = vpop.eup %9655 }
 0x50d   : > { %v9658_v20 = vpop.eup %9657  ;;  %9667 = vtanh.f32 %v3628_v11  ;;  %v3625_v56 = vmul.f32 %v9656_v17, %v3544_v9 }
 0x50e   : > { %9669 = vrcp.f32 %v3605_v34  ;;  %v3607_v31 = vadd.f32 1.0, %v9658_v20 }
 0x50f   : > { %v3629_v12 = vadd.f32 %v3625_v56, %v1387_v33 }
 0x510   : > { %v9660_v18 = vpop.eup %9659 }
 0x511   : > { %9671 = vtanh.f32 %v3629_v12  ;;  %v3626_v62 = vmul.f32 %v9660_v18, %v3549_v53 }
 0x512   : > { %9673 = vrcp.f32 %v3607_v31 }
 0x513   : > { %v3630_v24 = vadd.f32 %v3626_v62, %v1390_v22  ;;  %v11378_v22 = vld [vmem:[#allocation9 + $0xa8] ss:$12 sps:$4 sm:$0xff]  }
 0x514   : > { %v9662_v14 = vpop.eup %9661  ;;  %v11382_v62 = vld [vmem:[#allocation9 + $0x94] ss:$12 sps:$4 sm:$0xff]  }
 0x515   : > { %9675 = vtanh.f32 %v3630_v24  ;;  %v3627_v4 = vmul.f32 %v9662_v14, %v3552_v28  ;;  %v9664_v54 = vpop.eup %9663  ;;  %v11384_v24 = vld [vmem:[#allocation9 + $0x90] ss:$12 sps:$4 sm:$0xff]   ;;  %v11390_v14 = vld [vmem:[#allocation9 + $0x78] ss:$12 sps:$4 sm:$0xff]  }
 0x516   : > { %v9666_v15 = vpop.eup %9665  ;;  %v3636_v7 = vsub.f32 1.0, %v9664_v54  ;;  %v3644_v49 = vmul.f32 %v9664_v54, %v11258_v50  ;;  %v11388_v28 = vld [vmem:[#allocation9 + $0x7c] ss:$12 sps:$4 sm:$0xff]  }
 0x517   : > { %v3631_v29 = vadd.f32 %v3627_v4, %v1393_v61  ;;  %v3637_v2 = vsub.f32 1.0, %v9666_v15  ;;  %v3645_v3 = vmul.f32 %v9666_v15, %v11261_v38  ;;  %v11396_v61 = vld [vmem:[#allocation9 + $0x60] ss:$12 sps:$4 sm:$0xff]   ;;  %v11402_v54 = vld [vmem:[#allocation9 + $0x48] ss:$12 sps:$4 sm:$0xff]  }
 0x518   : > { %v11400_v4 = vld [vmem:[#allocation9 + $0x4c] ss:$12 sps:$4 sm:$0xff]   ;;  %v11408_v15 = vld [vmem:[#allocation9 + $0x30] ss:$12 sps:$4 sm:$0xff]  }
 0x519   : > { %9677 = vtanh.f32 %v3631_v29  ;;  %v11406_v29 = vld [vmem:[#allocation9 + $0x34] ss:$12 sps:$4 sm:$0xff]  }
 0x51a   : > { %v9668_v10 = vpop.eup %9667 }
 0x51b   : > { %v3640_v0 = vmul.f32 %v9668_v10, %v3636_v7  ;;  %v9670_v30 = vpop.eup %9669  ;;  %v11412_v7 = vld [vmem:[#allocation9 + $0x1c] ss:$12 sps:$4 sm:$0xff]   ;;  %v11414_v10 = vld [vmem:[#allocation9 + $0x18] ss:$12 sps:$4 sm:$0xff]  }
 0x51c   : > { %v3638_v8 = vsub.f32 1.0, %v9670_v30  ;;  %v3646_v17 = vmul.f32 %v9670_v30, %v11270_v25  ;;  %v11424_v30 = vld [vmem:[#allocation9 + $0x16c] ss:$12 sps:$4 sm:$0xff]  }
 0x51d   : > { %v11353_v60 = vadd.f32 %v3644_v49, %v3640_v0  ;;  %v11418_v0 = vld [vmem:[#allocation9 + $0x4] ss:$12 sps:$4 sm:$0xff]   ;;  %v11420_v49 = vld [vmem:[#allocation9] ss:$12 sps:$4 sm:$0xff]  }
 0x51e   : > { %v9672_v19 = vpop.eup %9671 }
 0x51f   : > { %v3641_v41 = vmul.f32 %v9672_v19, %v3637_v2  ;;  %v9674_v58 = vpop.eup %9673  ;;  %v9397_v2 = vld [vmem:[#allocation9 + $0x170] ss:$12 sps:$4 sm:$0xff]   ;;  %v11426_v19 = vld [vmem:[#allocation9 + $0x168] ss:$12 sps:$4 sm:$0xff]  }
 0x520   : > { %v3639_v20 = vsub.f32 1.0, %v9674_v58  ;;  %v3647_v12 = vmul.f32 %v9674_v58, %v11274_v55  ;;  %8796 = vmatprep.subr.bf16.mxu0 %v9397_v2  ;;  %v9402_v58 = vld [vmem:[#allocation9 + $0x158] ss:$12 sps:$4 sm:$0xff]   ;;  %v11454_v2 = vld [vmem:[#allocation9 + $0xf0] ss:$12 sps:$4 sm:$0xff]  }
 0x521   : > { %v11356_v40 = vadd.f32 %v3645_v3, %v3641_v41  ;;  %v9398_v41 = vld [vmem:[#allocation9 + $0xb0] ss:$12 sps:$4 sm:$0xff]   ;;  %v11430_v3 = vld [vmem:[#allocation9 + $0x154] ss:$12 sps:$4 sm:$0xff]  }
 0x522   : > { %v9676_v11 = vpop.eup %9675 }
 0x523   : > { %v3658_v9 = vpack.c.bf16 %v11356_v40, %v11353_v60  ;;  %v3642_v51 = vmul.f32 %v9676_v11, %v3638_v8  ;;  %v11432_v8 = vld [vmem:[#allocation9 + $0x150] ss:$12 sps:$4 sm:$0xff]   ;;  %v9403_v11 = vld [vmem:[#allocation9 + $0x98] ss:$12 sps:$4 sm:$0xff]  }
 0x525   : > { %v3661_v34 = vsel %vm10901_vm1, %v3658_v9, 0  ;;  %v3660_v52 = vsel %vm10905_vm3, %v3658_v9, 0  ;;  %v11365_v57 = vadd.f32 %v3646_v17, %v3642_v51  ;;  %v11436_v9 = vld [vmem:[#allocation9 + $0x13c] ss:$12 sps:$4 sm:$0xff]   ;;  %v9407_v51 = vld [vmem:[#allocation9 + $0x140] ss:$12 sps:$4 sm:$0xff]  }
 0x526   : > { %v9678_v33 = vpop.eup %9677  ;;  %4016 = vmatprep.mubr.bf16.mxu0 %v3661_v34  ;;  %4069 = vmatprep.mubr.bf16.mxu1 %v3661_v34  ;;  %v11438_v17 = vld [vmem:[#allocation9 + $0x138] ss:$12 sps:$4 sm:$0xff]   ;;  %v9408_v34 = vld [vmem:[#allocation9 + $0x80] ss:$12 sps:$4 sm:$0xff]  }
 0x527   : > { %4017 = vmatmul.mubr.bf16.vlgmr.msra.gmra.mxu0 %v3660_v52  ;;  %4070 = vmatmul.mubr.bf16.vlgmr.msra.gmra.mxu1 %v3660_v52  ;;  %v3643_v56 = vmul.f32 %v9678_v33, %v3639_v20  ;;  %v11442_v52 = vld [vmem:[#allocation9 + $0x124] ss:$12 sps:$4 sm:$0xff]   ;;  %v9412_v20 = vld [vmem:[#allocation9 + $0x128] ss:$12 sps:$4 sm:$0xff]   ;;  %v11444_v33 = vld [vmem:[#allocation9 + $0x120] ss:$12 sps:$4 sm:$0xff]  }
 0x528   : > { %4514 = vmatpush1.bf16.msra.mxu1 %v11378_v22  ;;  %8797 = vmatpush3.bf16.msra.mxu0 %v9398_v41  ;;  %v11456_v41 = vld [vmem:[#allocation9 + $0xf4] ss:$12 sps:$4 sm:$0xff]  }
 0x529   : > { %v11368_v53 = vadd.f32 %v3647_v12, %v3643_v56  ;;  %4515 = vmatprep.subr.bf16.mxu1 %v11382_v62  ;;  %8798 = vmatprep.subr.bf16.mxu0 %v9402_v58  ;;  %v9413_v56 = vld [vmem:[#allocation9 + $0x68] ss:$12 sps:$4 sm:$0xff]   ;;  %v11448_v12 = vld [vmem:[#allocation9 + $0x10c] ss:$12 sps:$4 sm:$0xff]  }
 0x52a   : > { %v9422_v58 = vld [vmem:[#allocation9 + $0xf8] ss:$12 sps:$4 sm:$0xff]  }
 0x52b   : > { %v3659_v44 = vpack.c.bf16 %v11368_v53, %v11365_v57 }
 0x52c   : > { %4516 = vmatpush1.bf16.msra.mxu1 %v11384_v24  ;;  %8799 = vmatpush3.bf16.msra.mxu0 %v9403_v11  ;;  %v9423_v11 = vld [vmem:[#allocation9 + $0x38] ss:$12 sps:$4 sm:$0xff]  }
 0x52d   : > { %v3663_v18 = vsel %vm10905_vm3, %v3659_v44, 0  ;;  %v3662_v31 = vsel %vm10901_vm1, %v3659_v44, 0  ;;  %4517 = vmatprep.subr.bf16.mxu1 %v11388_v28  ;;  %8800 = vmatprep.subr.bf16.mxu0 %v9407_v51  ;;  %v9417_v44 = vld [vmem:[#allocation9 + $0x110] ss:$12 sps:$4 sm:$0xff]  }
 0x52e   : > { %4026 = vmatprep.mubr.bf16.mxu0 %v3663_v18  ;;  %4077 = vmatprep.mubr.bf16.mxu1 %v3663_v18  ;;  %v11450_v18 = vld [vmem:[#allocation9 + $0x108] ss:$12 sps:$4 sm:$0xff]  }
 0x52f   : > { %4027 = vmatmul.mubr.bf16.gmra.mxu0 %v3662_v31  ;;  %4078 = vmatmul.mubr.bf16.gmra.mxu1 %v3662_v31  ;;  %v9418_v31 = vld [vmem:[#allocation9 + $0x50] ss:$12 sps:$4 sm:$0xff]  }
 0x530   : > { %4518 = vmatpush1.bf16.msra.mxu1 %v11390_v14  ;;  %8801 = vmatpush3.bf16.msra.mxu0 %v9408_v34  ;;  %v11458_v51 = vld [vmem:[#allocation9 + $0xdc] ss:$12 sps:$4 sm:$0xff]   ;;  %v9427_v34 = vld [vmem:[#allocation9 + $0xe0] ss:$12 sps:$4 sm:$0xff]  }
 0x531   : > { %4519 = vmatprep.subr.bf16.mxu1 %v11394_v35  ;;  %8802 = vmatprep.subr.bf16.mxu0 %v9412_v20  ;;  %v11462_v20 = vld [vmem:[#allocation9 + $0xd8] ss:$12 sps:$4 sm:$0xff]  }
 0x532   : > { %12973 = vst [vmem:[#allocation31_spill] sm:$0xff] %v11462_v20 }
 0x534   : > { %4520 = vmatpush1.bf16.msra.mxu1 %v11396_v61  ;;  %8803 = vmatpush3.bf16.msra.mxu0 %v9413_v56  ;;  %v9428_v56 = vld [vmem:[#allocation9 + $0x20] ss:$12 sps:$4 sm:$0xff]  }
 0x535   : > { %4521 = vmatprep.subr.bf16.mxu1 %v11400_v4  ;;  %8804 = vmatprep.subr.bf16.mxu0 %v9417_v44  ;;  %v9429_v44 = vld [vmem:[#allocation9 + $0xc8] ss:$12 sps:$4 sm:$0xff]  }
 0x538   : > { %4522 = vmatpush1.bf16.msra.mxu1 %v11402_v54  ;;  %8805 = vmatpush3.bf16.msra.mxu0 %v9418_v31  ;;  %v9430_v31 = vld [vmem:[#allocation9 + $0x8] ss:$12 sps:$4 sm:$0xff]  }
 0x539   : > { %4523 = vmatprep.subr.bf16.mxu1 %v11406_v29  ;;  %8806 = vmatprep.subr.bf16.mxu0 %v9422_v58 }
 0x53c   : > { %4524 = vmatpush1.bf16.msra.mxu1 %v11408_v15  ;;  %8807 = vmatpush3.bf16.msra.mxu0 %v9423_v11  ;;  %v12974_v11 = vld [vmem:[#allocation76_spill] sm:$0xff] }
 0x53d   : > { %4525 = vmatprep.subr.bf16.mxu1 %v11412_v7  ;;  %8808 = vmatprep.subr.bf16.mxu0 %v9427_v34  ;;  %v1394_v50 = vadd.f32 %v12974_v11, %v12921_v59 }
 0x540   : > { %4526 = vmatpush1.bf16.msra.mxu1 %v11414_v10  ;;  %8809 = vmatpush3.bf16.msra.mxu0 %v9428_v56  ;;  %v12975_v56 = vld [vmem:[#allocation78_spill] sm:$0xff] }
 0x541   : > { %4527 = vmatprep.subr.bf16.mxu1 %v11418_v0  ;;  %8810 = vmatprep.subr.bf16.mxu0 %v9429_v44  ;;  %v1397_v23 = vadd.f32 %v12975_v56, %v12921_v59 }
 0x544   : > { %4528 = vmatpush1.bf16.msra.mxu1 %v11420_v49  ;;  %8811 = vmatpush3.bf16.msra.mxu0 %v9430_v31 }
 0x545   : > { %4529 = vmatprep.subr.bf16.mxu1 %v11424_v30  ;;  %5042 = vmatprep.subr.bf16.mxu0 %v11376_v36  ;;  %v12976_v36 = vld [vmem:[#allocation77_spill] sm:$0xff] }
 0x546   : > { %v1395_v31 = vadd.f32 %v12976_v36, %v12925_v1 }
 0x548   : > { %4530 = vmatpush2.bf16.msra.mxu1 %v11426_v19 }
 0x549   : > { %4531 = vmatprep.subr.bf16.mxu1 %v11430_v3 }
 0x54c   : > { %4532 = vmatpush2.bf16.msra.mxu1 %v11432_v8 }
 0x54d   : > { %4533 = vmatprep.subr.bf16.mxu1 %v11436_v9 }
 0x550   : > { %4534 = vmatpush2.bf16.msra.mxu1 %v11438_v17 }
 0x551   : > { %4535 = vmatprep.subr.bf16.mxu1 %v11442_v52 }
 0x554   : > { %4536 = vmatpush2.bf16.msra.mxu1 %v11444_v33 }
 0x555   : > { %4537 = vmatprep.subr.bf16.mxu1 %v11448_v12 }
 0x558   : > { %4538 = vmatpush2.bf16.msra.mxu1 %v11450_v18 }
 0x559   : > { %4539 = vmatprep.subr.bf16.mxu1 %v11456_v41 }
 0x55c   : > { %4540 = vmatpush2.bf16.msra.mxu1 %v11454_v2 }
 0x55d   : > { %4541 = vmatprep.subr.bf16.mxu1 %v11458_v51 }
 0x560   : > { %4542 = vmatpush2.bf16.msra.mxu1 %v11462_v20 }
 0x561   : > { %4543 = vmatprep.subr.bf16.mxu1 %v11312_v5 }
 0x564   : > { %4544 = vmatpush2.bf16.msra.mxu1 %v11310_v42 }
 0x5e7   : > { %v4018_v58 = vpop.f32.mrf.mxu0  ;;  %v8784_v59 = vpop.f32.mrf.mxu1 }
 0x5e8   : > { %v4019_v26 = vadd.f32 %v4018_v58, %v12958_v13 }
 0x5e9   : > { %v4020_v34 = vpop.f32.mrf.mxu0 }
 0x5ea   : > { %v4099_v25 = vadd.f32 %v4019_v26, %v1394_v50  ;;  %v4021_v5 = vadd.f32 %v4020_v34, %v12924_v47  ;;  %v12977_v26 = vld [vmem:[#allocation80_spill] sm:$0xff]  ;;  %v12978_v34 = vld [vmem:[#allocation79_spill] sm:$0xff] }
 0x5eb   : > { %v4022_v38 = vpop.f32.mrf.mxu0  ;;  %v1400_v50 = vadd.f32 %v12977_v26, %v10820_v45  ;;  %v1398_v56 = vadd.f32 %v12978_v34, %v12925_v1 }
 0x5ec   : > { %v8349_v21 = vmul.f32 -1.442695, %v4099_v25  ;;  %v4023_v42 = vadd.f32 %v4022_v38, %v12958_v13  ;;  %v4100_v55 = vadd.f32 %v4021_v5, %v1395_v31  ;;  %v12980_v5 = vld [vmem:[#allocation81_spill] sm:$0xff] }
 0x5ed   : > { %v4024_v44 = vpop.f32.mrf.mxu0  ;;  %v1401_v31 = vadd.f32 %v12980_v5, %v12966_v39 }
 0x5ee   : > { %9679 = vpow2.f32 %v8349_v21  ;;  %v4101_v16 = vadd.f32 %v4023_v42, %v1397_v23  ;;  %v4025_v11 = vadd.f32 %v4024_v44, %v12924_v47  ;;  %v12979_v42 = vld [vmem:[#allocation82_spill] sm:$0xff]  ;;  %v8350_v47 = vmul.f32 -1.442695, %v4100_v55 }
 0x5ef   : > { %v4028_v58 = vpop.f32.mrf.mxu0  ;;  %v1403_v44 = vadd.f32 %v12979_v42, %v10820_v45 }
 0x5f0   : > { %v8351_v20 = vmul.f32 -1.442695, %v4101_v16  ;;  %v4029_v25 = vadd.f32 %v4028_v58, %v12962_v48  ;;  %v4102_v36 = vadd.f32 %v4025_v11, %v1398_v56 }
 0x5f1   : > { %v4030_v38 = vpop.f32.mrf.mxu0 }
 0x5f2   : > { %9681 = vpow2.f32 %v8351_v20  ;;  %v4103_v13 = vadd.f32 %v4029_v25, %v1400_v50  ;;  %v4031_v21 = vadd.f32 %v4030_v38, %v12964_v43  ;;  %v8785_v20 = vpop.f32.mrf.mxu1  ;;  %v8352_v50 = vmul.f32 -1.442695, %v4102_v36  ;;  %v12981_v38 = vld [vmem:[#allocation83_spill] sm:$0xff] }
 0x5f3   : > { %v4032_v23 = vpop.f32.mrf.mxu0  ;;  %v1404_v42 = vadd.f32 %v12981_v38, %v12966_v39 }
 0x5f4   : > { %v8353_v26 = vmul.f32 -1.442695, %v4103_v13  ;;  %v4033_v16 = vadd.f32 %v4032_v23, %v12962_v48  ;;  %v4104_v25 = vadd.f32 %v4031_v21, %v1401_v31  ;;  %v8787_v13 = vpop.f32.mrf.mxu1 }
 0x5f5   : > { %v4034_v58 = vpop.f32.mrf.mxu0 }
 0x5f6   : > { %9683 = vpow2.f32 %v8353_v26  ;;  %v4105_v34 = vadd.f32 %v4033_v16, %v1403_v44  ;;  %v4035_v11 = vadd.f32 %v4034_v58, %v12964_v43  ;;  %v8354_v23 = vmul.f32 -1.442695, %v4104_v25  ;;  %v8788_v44 = vpop.f32.mrf.mxu1 }
 0x5f7   : > { %9685 = vpow2.f32 %v8350_v47 }
 0x5f8   : > { %v8355_v56 = vmul.f32 -1.442695, %v4105_v34  ;;  %v4106_v48 = vadd.f32 %v4035_v11, %v1404_v42  ;;  %v8790_v47 = vpop.f32.mrf.mxu1  ;;  %v8786_v34 = vadd.f32 %v8785_v20, %v8784_v59 }
 0x5fa   : > { %9687 = vpow2.f32 %v8355_v56  ;;  %v8356_v36 = vmul.f32 -1.442695, %v4106_v48  ;;  %v8791_v38 = vpop.f32.mrf.mxu1  ;;  %v4072_v42 = vadd.f32 %v8786_v34, %v10861_v37 }
 0x5fb   : > { %v9680_v55 = vpop.eup %9679  ;;  %9689 = vpow2.f32 %v8352_v50 }
 0x5fc   : > { %v4131_v5 = vadd.f32 1.0, %v9680_v55  ;;  %v8789_v55 = vadd.f32 %v8788_v44, %v8787_v13  ;;  %v12983_v13 = vld [vmem:[#allocation41_spill] sm:$0xff] }
 0x5fd   : > { %v1399_v44 = vadd.f32 %v12983_v13, %v10865_v46 }
 0x5fe   : > { %9691 = vrcp.f32 %v4131_v5  ;;  %v8793_v5 = vpop.f32.mrf.mxu1  ;;  %v4075_v20 = vadd.f32 %v8789_v55, %v10861_v37  ;;  %v12984_v55 = vld [vmem:[#allocation42_spill] sm:$0xff] }
 0x5ff   : > { %v9682_v26 = vpop.eup %9681  ;;  %9693 = vpow2.f32 %v8354_v23 }
 0x600   : > { %v4133_v21 = vadd.f32 1.0, %v9682_v26 }
 0x602   : > { %9695 = vrcp.f32 %v4133_v21  ;;  %v12982_v21 = vld [vmem:[#allocation40_spill] sm:$0xff] }
 0x603   : > { %v9684_v16 = vpop.eup %9683  ;;  %9697 = vpow2.f32 %v8356_v36  ;;  %v1396_v36 = vadd.f32 %v12982_v21, %v10865_v46 }
 0x604   : > { %v4135_v31 = vadd.f32 1.0, %v9684_v16  ;;  %v9686_v58 = vpop.eup %9685 }
 0x605   : > { %v4132_v25 = vadd.f32 1.0, %v9686_v58 }
 0x606   : > { %9699 = vrcp.f32 %v4135_v31  ;;  %v8792_v31 = vadd.f32 %v8791_v38, %v8790_v47  ;;  %v1402_v47 = vadd.f32 %v12984_v55, %v10879_v27 }
 0x607   : > { %v9688_v56 = vpop.eup %9687 }
 0x608   : > { %v9690_v50 = vpop.eup %9689  ;;  %v4137_v11 = vadd.f32 1.0, %v9688_v56  ;;  %v8794_v56 = vpop.f32.mrf.mxu1  ;;  %v4080_v43 = vadd.f32 %v8792_v31, %v10875_v32 }
 0x609   : > { %v4134_v48 = vadd.f32 1.0, %v9690_v50  ;;  %v8795_v21 = vadd.f32 %v8794_v56, %v8793_v5 }
 0x60a   : > { %9701 = vrcp.f32 %v4137_v11 }
 0x60b   : > { %v9692_v23 = vpop.eup %9691  ;;  %9703 = vrcp.f32 %v4132_v25 }
 0x60c   : > { %v9694_v26 = vpop.eup %9693  ;;  %v4155_v16 = vmul.f32 %v9692_v23, %v4072_v42  ;;  %9705 = vrcp.f32 %v4134_v48  ;;  %v4083_v48 = vadd.f32 %v8795_v21, %v10875_v32 }
 0x60d   : > { %v4136_v58 = vadd.f32 1.0, %v9694_v26 }
 0x60e   : > { %v4159_v59 = vadd.f32 %v4155_v16, %v1396_v36  ;;  %v12985_v36 = vld [vmem:[#allocation43_spill] sm:$0xff] }
 0x60f   : > { %v9696_v39 = vpop.eup %9695 }
 0x610   : > { %v9698_v34 = vpop.eup %9697  ;;  %9707 = vtanh.f32 %v4159_v59  ;;  %v4156_v50 = vmul.f32 %v9696_v39, %v4075_v20  ;;  %v1405_v39 = vadd.f32 %v12985_v36, %v10879_v27 }
 0x611   : > { %9709 = vrcp.f32 %v4136_v58  ;;  %v4138_v42 = vadd.f32 1.0, %v9698_v34 }
 0x612   : > { %v4160_v11 = vadd.f32 %v4156_v50, %v1399_v44 }
 0x613   : > { %v9700_v25 = vpop.eup %9699 }
 0x614   : > { %9711 = vtanh.f32 %v4160_v11  ;;  %v4157_v38 = vmul.f32 %v9700_v25, %v4080_v43 }
 0x615   : > { %9713 = vrcp.f32 %v4138_v42 }
 0x616   : > { %v4161_v23 = vadd.f32 %v4157_v38, %v1402_v47 }
 0x617   : > { %v9702_v26 = vpop.eup %9701 }
 0x618   : > { %9715 = vtanh.f32 %v4161_v23  ;;  %v4158_v16 = vmul.f32 %v9702_v26, %v4083_v48  ;;  %v9704_v59 = vpop.eup %9703 }
 0x619   : > { %v9706_v20 = vpop.eup %9705  ;;  %v4167_v31 = vsub.f32 1.0, %v9704_v59  ;;  %v4175_v34 = vmul.f32 %v9704_v59, %v11353_v60 }
 0x61a   : > { %v4162_v5 = vadd.f32 %v4158_v16, %v1405_v39  ;;  %v4168_v13 = vsub.f32 1.0, %v9706_v20  ;;  %v4176_v21 = vmul.f32 %v9706_v20, %v11356_v40 }
 0x61c   : > { %9717 = vtanh.f32 %v4162_v5 }
 0x61d   : > { %v9708_v58 = vpop.eup %9707 }
 0x61e   : > { %v4171_v56 = vmul.f32 %v9708_v58, %v4167_v31  ;;  %v9710_v43 = vpop.eup %9709 }
 0x61f   : > { %v4169_v55 = vsub.f32 1.0, %v9710_v43  ;;  %v4177_v48 = vmul.f32 %v9710_v43, %v11365_v57  ;;  %v12990_v43 = vld [vmem:[#allocation86_spill] sm:$0xff] }
 0x620   : > { %v11506_v44 = vadd.f32 %v4175_v34, %v4171_v56 }
 0x621   : > { %v9712_v50 = vpop.eup %9711 }
 0x622   : > { %v4172_v11 = vmul.f32 %v9712_v50, %v4168_v13  ;;  %v9714_v25 = vpop.eup %9713 }
 0x623   : > { %v4170_v39 = vsub.f32 1.0, %v9714_v25  ;;  %v4178_v20 = vmul.f32 %v9714_v25, %v11368_v53 }
 0x624   : > { %v11509_v42 = vadd.f32 %v4176_v21, %v4172_v11  ;;  %v12991_v11 = vld [vmem:[#allocation62_spill] sm:$0xff] }
 0x625   : > { %v9716_v47 = vpop.eup %9715 }
 0x626   : > { %v4187_v38 = vpack.c.bf16 %v11509_v42, %v11506_v44  ;;  %v4173_v23 = vmul.f32 %v9716_v47, %v4169_v55  ;;  %v12992_v47 = vld [vmem:[#allocation85_spill] sm:$0xff] }
 0x628   : > { %v4189_v26 = vsel %vm10905_vm3, %v4187_v38, 0  ;;  %v4190_v36 = vsel %vm10901_vm1, %v4187_v38, 0  ;;  %v11518_v16 = vadd.f32 %v4177_v48, %v4173_v23  ;;  %v1407_v38 = vadd.f32 %v12992_v47, %v12925_v1 }
 0x629   : > { %v9718_v59 = vpop.eup %9717  ;;  %4545 = vmatprep.mubr.bf16.mxu1 %v4190_v36  ;;  %4598 = vmatprep.mubr.bf16.mxu0 %v4190_v36  ;;  %v12993_v36 = vld [vmem:[#allocation88_spill] sm:$0xff] }
 0x62a   : > { %4546 = vmatmul.mubr.bf16.vlgmr.msra.gmra.mxu1 %v4189_v26  ;;  %4599 = vmatmul.mubr.bf16.vlgmr.msra.gmra.mxu0 %v4189_v26  ;;  %v4174_v5 = vmul.f32 %v9718_v59, %v4170_v39  ;;  %v1412_v39 = vadd.f32 %v12993_v36, %v10820_v45 }
 0x62b   : > { %5043 = vmatpush1.bf16.msra.mxu0 %v11378_v22  ;;  %v12986_v22 = vld [vmem:[#allocation31_spill] sm:$0xff] }
 0x62c   : > { %v11522_v31 = vadd.f32 %v4178_v20, %v4174_v5  ;;  %5044 = vmatprep.subr.bf16.mxu0 %v11382_v62  ;;  %v9431_v62 = vld [vmem:[#allocation9 + $0x170] ss:$12 sps:$4 sm:$0xff]   ;;  %v12994_v20 = vld [vmem:[#allocation63_spill] sm:$0xff] }
 0x62d   : > { %8824 = vmatprep.subr.bf16.mxu1 %v9431_v62 }
 0x62e   : > { %v4188_v58 = vpack.c.bf16 %v11522_v31, %v11518_v16 }
 0x62f   : > { %5045 = vmatpush1.bf16.msra.mxu0 %v11384_v24  ;;  %v9432_v24 = vld [vmem:[#allocation9 + $0xb0] ss:$12 sps:$4 sm:$0xff]  }
 0x630   : > { %v4192_v56 = vsel %vm10905_vm3, %v4188_v58, 0  ;;  %v4191_v34 = vsel %vm10901_vm1, %v4188_v58, 0  ;;  %5046 = vmatprep.subr.bf16.mxu0 %v11388_v28  ;;  %8825 = vmatpush3.bf16.msra.mxu1 %v9432_v24  ;;  %v9433_v28 = vld [vmem:[#allocation9 + $0x158] ss:$12 sps:$4 sm:$0xff]  }
 0x631   : > { %4555 = vmatprep.mubr.bf16.mxu1 %v4192_v56  ;;  %4606 = vmatprep.mubr.bf16.mxu0 %v4192_v56  ;;  %v12995_v56 = vld [vmem:[#allocation87_spill] sm:$0xff] }
 0x632   : > { %4556 = vmatmul.mubr.bf16.gmra.mxu1 %v4191_v34  ;;  %4607 = vmatmul.mubr.bf16.gmra.mxu0 %v4191_v34  ;;  %v1410_v34 = vadd.f32 %v12995_v56, %v12925_v1 }
 0x633   : > { %5047 = vmatpush1.bf16.msra.mxu0 %v11390_v14  ;;  %v9434_v14 = vld [vmem:[#allocation9 + $0x98] ss:$12 sps:$4 sm:$0xff]   ;;  %8826 = vmatprep.subr.bf16.mxu1 %v9433_v28 }
 0x634   : > { %5048 = vmatprep.subr.bf16.mxu0 %v11394_v35  ;;  %8827 = vmatpush3.bf16.msra.mxu1 %v9434_v14  ;;  %v9435_v35 = vld [vmem:[#allocation9 + $0x140] ss:$12 sps:$4 sm:$0xff]   ;;  %v12996_v14 = vld [vmem:[#allocation65_spill] sm:$0xff] }
 0x635   : > { %8828 = vmatprep.subr.bf16.mxu1 %v9435_v35 }
 0x637   : > { %5049 = vmatpush1.bf16.msra.mxu0 %v11396_v61  ;;  %v9436_v61 = vld [vmem:[#allocation9 + $0x80] ss:$12 sps:$4 sm:$0xff]  }
 0x638   : > { %5050 = vmatprep.subr.bf16.mxu0 %v11400_v4  ;;  %8829 = vmatpush3.bf16.msra.mxu1 %v9436_v61  ;;  %v9437_v4 = vld [vmem:[#allocation9 + $0x128] ss:$12 sps:$4 sm:$0xff]  }
 0x639   : > { %8830 = vmatprep.subr.bf16.mxu1 %v9437_v4  ;;  %v12997_v4 = vld [vmem:[#allocation90_spill] sm:$0xff] }
 0x63b   : > { %5051 = vmatpush1.bf16.msra.mxu0 %v11402_v54  ;;  %v9438_v54 = vld [vmem:[#allocation9 + $0x68] ss:$12 sps:$4 sm:$0xff]  }
 0x63c   : > { %5052 = vmatprep.subr.bf16.mxu0 %v11406_v29  ;;  %8831 = vmatpush3.bf16.msra.mxu1 %v9438_v54  ;;  %v9439_v29 = vld [vmem:[#allocation9 + $0x110] ss:$12 sps:$4 sm:$0xff]   ;;  %v1415_v54 = vadd.f32 %v12997_v4, %v10820_v45 }
 0x63d   : > { %8832 = vmatprep.subr.bf16.mxu1 %v9439_v29 }
 0x63f   : > { %5053 = vmatpush1.bf16.msra.mxu0 %v11408_v15  ;;  %v9440_v15 = vld [vmem:[#allocation9 + $0x50] ss:$12 sps:$4 sm:$0xff]  }
 0x640   : > { %5054 = vmatprep.subr.bf16.mxu0 %v11412_v7  ;;  %8833 = vmatpush3.bf16.msra.mxu1 %v9440_v15  ;;  %v9441_v7 = vld [vmem:[#allocation9 + $0xf8] ss:$12 sps:$4 sm:$0xff]  }
 0x641   : > { %8834 = vmatprep.subr.bf16.mxu1 %v9441_v7 }
 0x643   : > { %5055 = vmatpush1.bf16.msra.mxu0 %v11414_v10  ;;  %v9442_v10 = vld [vmem:[#allocation9 + $0x38] ss:$12 sps:$4 sm:$0xff]  }
 0x644   : > { %5056 = vmatprep.subr.bf16.mxu0 %v11418_v0  ;;  %v9443_v0 = vld [vmem:[#allocation9 + $0xe0] ss:$12 sps:$4 sm:$0xff]   ;;  %8835 = vmatpush3.bf16.msra.mxu1 %v9442_v10  ;;  %v12998_v10 = vld [vmem:[#allocation64_spill] sm:$0xff] }
 0x645   : > { %8836 = vmatprep.subr.bf16.mxu1 %v9443_v0  ;;  %v12999_v0 = vld [vmem:[#allocation89_spill] sm:$0xff] }
 0x647   : > { %5057 = vmatpush1.bf16.msra.mxu0 %v11420_v49  ;;  %v11558_v49 = vld [vmem:[#allocation9 + $0xc0] ss:$12 sps:$4 sm:$0xff]  }
 0x648   : > { %5058 = vmatprep.subr.bf16.mxu0 %v11424_v30  ;;  %v11560_v30 = vld [vmem:[#allocation9 + $0xc4] ss:$12 sps:$4 sm:$0xff]  }
 0x64b   : > { %5059 = vmatpush2.bf16.msra.mxu0 %v11426_v19  ;;  %v9444_v19 = vld [vmem:[#allocation9 + $0x20] ss:$12 sps:$4 sm:$0xff]  }
 0x64c   : > { %5060 = vmatprep.subr.bf16.mxu0 %v11430_v3  ;;  %v9448_v3 = vld [vmem:[#allocation9 + $0xc8] ss:$12 sps:$4 sm:$0xff]   ;;  %8837 = vmatpush3.bf16.msra.mxu1 %v9444_v19  ;;  %v1413_v19 = vadd.f32 %v12999_v0, %v12998_v10 }
 0x64d   : > { %8838 = vmatprep.subr.bf16.mxu1 %v9448_v3 }
 0x64f   : > { %5061 = vmatpush2.bf16.msra.mxu0 %v11432_v8  ;;  %v9449_v8 = vld [vmem:[#allocation9 + $0x8] ss:$12 sps:$4 sm:$0xff]  }
 0x650   : > { %5062 = vmatprep.subr.bf16.mxu0 %v11436_v9  ;;  %8839 = vmatpush3.bf16.msra.mxu1 %v9449_v8 }
 0x653   : > { %5063 = vmatpush2.bf16.msra.mxu0 %v11438_v17  ;;  %v12987_v17 = vld [vmem:[#allocation57_spill] sm:$0xff] }
 0x654   : > { %5064 = vmatprep.subr.bf16.mxu0 %v11442_v52  ;;  %v12988_v52 = vld [vmem:[#allocation84_spill] sm:$0xff]  ;;  %v1409_v13 = vadd.f32 %v12990_v43, %v12987_v17 }
 0x657   : > { %5065 = vmatpush2.bf16.msra.mxu0 %v11444_v33  ;;  %v1406_v33 = vadd.f32 %v12988_v52, %v12987_v17 }
 0x658   : > { %5066 = vmatprep.subr.bf16.mxu0 %v11448_v12  ;;  %v12989_v12 = vld [vmem:[#allocation58_spill] sm:$0xff] }
 0x65b   : > { %5067 = vmatpush2.bf16.msra.mxu0 %v11450_v18 }
 0x65c   : > { %5068 = vmatprep.subr.bf16.mxu0 %v11456_v41 }
 0x65f   : > { %5069 = vmatpush2.bf16.msra.mxu0 %v11454_v2 }
 0x660   : > { %5070 = vmatprep.subr.bf16.mxu0 %v11458_v51 }
 0x663   : > { %5071 = vmatpush2.bf16.msra.mxu0 %v12986_v22 }
 0x664   : > { %5072 = vmatprep.subr.bf16.mxu0 %v11560_v30 }
 0x667   : > { %5073 = vmatpush2.bf16.msra.mxu0 %v11558_v49 }
 0x6ea   : > { %v4547_v9 = vpop.f32.mrf.mxu1  ;;  %v8812_v24 = vpop.f32.mrf.mxu0 }
 0x6eb   : > { %v4548_v18 = vadd.f32 %v4547_v9, %v12989_v12 }
 0x6ec   : > { %v4549_v2 = vpop.f32.mrf.mxu1  ;;  %v8813_v9 = vpop.f32.mrf.mxu0 }
 0x6ed   : > { %v4628_v41 = vadd.f32 %v4548_v18, %v1406_v33  ;;  %v4550_v21 = vadd.f32 %v4549_v2, %v12991_v11 }
 0x6ee   : > { %v4551_v51 = vpop.f32.mrf.mxu1 }
 0x6ef   : > { %v8405_v50 = vmul.f32 -1.442695, %v4628_v41  ;;  %v4552_v25 = vadd.f32 %v4551_v51, %v12989_v12  ;;  %v4629_v59 = vadd.f32 %v4550_v21, %v1407_v38  ;;  %v13000_v41 = vld [vmem:[#allocation91_spill] sm:$0xff] }
 0x6f0   : > { %v4553_v55 = vpop.f32.mrf.mxu1  ;;  %v1416_v51 = vadd.f32 %v13000_v41, %v12998_v10 }
 0x6f1   : > { %9719 = vpow2.f32 %v8405_v50  ;;  %v4630_v23 = vadd.f32 %v4552_v25, %v1409_v13  ;;  %v4554_v48 = vadd.f32 %v4553_v55, %v12991_v11  ;;  %v8406_v29 = vmul.f32 -1.442695, %v4629_v59  ;;  %v8815_v13 = vpop.f32.mrf.mxu0 }
 0x6f2   : > { %v4557_v26 = vpop.f32.mrf.mxu1  ;;  %v8814_v59 = vadd.f32 %v8813_v9, %v8812_v24 }
 0x6f3   : > { %v8407_v5 = vmul.f32 -1.442695, %v4630_v23  ;;  %v4558_v58 = vadd.f32 %v4557_v26, %v12994_v20  ;;  %v4631_v28 = vadd.f32 %v4554_v48, %v1410_v34  ;;  %v8816_v47 = vpop.f32.mrf.mxu0 }
 0x6f4   : > { %v4559_v22 = vpop.f32.mrf.mxu1 }
 0x6f5   : > { %9721 = vpow2.f32 %v8407_v5  ;;  %v4632_v62 = vadd.f32 %v4558_v58, %v1412_v39  ;;  %v4560_v35 = vadd.f32 %v4559_v22, %v12996_v14  ;;  %v8408_v52 = vmul.f32 -1.442695, %v4631_v28  ;;  %v8818_v26 = vpop.f32.mrf.mxu0 }
 0x6f6   : > { %v4561_v61 = vpop.f32.mrf.mxu1  ;;  %v8817_v28 = vadd.f32 %v8816_v47, %v8815_v13 }
 0x6f7   : > { %v8409_v15 = vmul.f32 -1.442695, %v4632_v62  ;;  %v4562_v7 = vadd.f32 %v4561_v61, %v12994_v20  ;;  %v4633_v33 = vadd.f32 %v4560_v35, %v1413_v19  ;;  %v8819_v58 = vpop.f32.mrf.mxu0  ;;  %v4601_v62 = vadd.f32 %v8814_v59, %v10861_v37 }
 0x6f8   : > { %v4563_v3 = vpop.f32.mrf.mxu1  ;;  %v4604_v0 = vadd.f32 %v8817_v28, %v10861_v37  ;;  %v8820_v19 = vadd.f32 %v8819_v58, %v8818_v26 }
 0x6f9   : > { %9723 = vpow2.f32 %v8409_v15  ;;  %v4634_v8 = vadd.f32 %v4562_v7, %v1415_v54  ;;  %v4564_v18 = vadd.f32 %v4563_v3, %v12996_v14  ;;  %v8410_v50 = vmul.f32 -1.442695, %v4633_v33  ;;  %v8821_v4 = vpop.f32.mrf.mxu0  ;;  %v13002_v33 = vld [vmem:[#allocation45_spill] sm:$0xff] }
 0x6fa   : > { %9725 = vpow2.f32 %v8406_v29  ;;  %v13001_v29 = vld [vmem:[#allocation44_spill] sm:$0xff] }
 0x6fb   : > { %v8411_v2 = vmul.f32 -1.442695, %v4634_v8  ;;  %v4635_v21 = vadd.f32 %v4564_v18, %v1416_v51  ;;  %v1408_v15 = vadd.f32 %v13001_v29, %v10865_v46  ;;  %v8822_v9 = vpop.f32.mrf.mxu0  ;;  %v1411_v18 = vadd.f32 %v13002_v33, %v10865_v46 }
 0x6fc   : > { %v4609_v51 = vadd.f32 %v8820_v19, %v10875_v32 }
 0x6fd   : > { %9727 = vpow2.f32 %v8411_v2  ;;  %v8412_v38 = vmul.f32 -1.442695, %v4635_v21  ;;  %v13003_v21 = vld [vmem:[#allocation46_spill] sm:$0xff] }
 0x6fe   : > { %v9720_v43 = vpop.eup %9719  ;;  %9729 = vpow2.f32 %v8408_v52 }
 0x6ff   : > { %v4660_v25 = vadd.f32 1.0, %v9720_v43  ;;  %v8823_v43 = vadd.f32 %v8822_v9, %v8821_v4 }
 0x701   : > { %9731 = vrcp.f32 %v4660_v25  ;;  %v1414_v25 = vadd.f32 %v13003_v21, %v10879_v27  ;;  %v9452_v21 = vld [vmem:[#allocation9 + $0xac] ss:$12 sps:$4 sm:$0xff]  }
 0x702   : > { %v9722_v55 = vpop.eup %9721  ;;  %9733 = vpow2.f32 %v8410_v50  ;;  %5571 = vmatprep.subr.bf16.mxu1 %v9452_v21  ;;  %v9499_v21 = vld [vmem:[#allocation9 + $0xf0] ss:$12 sps:$4 sm:$0xff]  }
 0x703   : > { %v4662_v23 = vadd.f32 1.0, %v9722_v55 }
 0x705   : > { %9735 = vrcp.f32 %v4662_v23 }
 0x706   : > { %v9724_v48 = vpop.eup %9723  ;;  %9737 = vpow2.f32 %v8412_v38  ;;  %v4612_v38 = vadd.f32 %v8823_v43, %v10875_v32 }
 0x707   : > { %v4664_v36 = vadd.f32 1.0, %v9724_v48  ;;  %v9726_v39 = vpop.eup %9725  ;;  %v13004_v48 = vld [vmem:[#allocation47_spill] sm:$0xff] }
 0x708   : > { %v4661_v34 = vadd.f32 1.0, %v9726_v39  ;;  %v1417_v26 = vadd.f32 %v13004_v48, %v10879_v27  ;;  %v9461_v48 = vld [vmem:[#allocation9 + $0x64] ss:$12 sps:$4 sm:$0xff]  }
 0x709   : > { %9739 = vrcp.f32 %v4664_v36 }
 0x70a   : > { %v9728_v5 = vpop.eup %9727 }
 0x70b   : > { %v9730_v56 = vpop.eup %9729  ;;  %v4666_v22 = vadd.f32 1.0, %v9728_v5 }
 0x70c   : > { %v4663_v61 = vadd.f32 1.0, %v9730_v56 }
 0x70d   : > { %9741 = vrcp.f32 %v4666_v22 }
 0x70e   : > { %v9732_v35 = vpop.eup %9731  ;;  %9743 = vrcp.f32 %v4661_v34 }
 0x70f   : > { %v9734_v54 = vpop.eup %9733  ;;  %v4684_v7 = vmul.f32 %v9732_v35, %v4601_v62  ;;  %9745 = vrcp.f32 %v4663_v61 }
 0x710   : > { %v4665_v8 = vadd.f32 1.0, %v9734_v54 }
 0x711   : > { %v4688_v24 = vadd.f32 %v4684_v7, %v1408_v15 }
 0x712   : > { %v9736_v3 = vpop.eup %9735 }
 0x713   : > { %v9738_v52 = vpop.eup %9737  ;;  %9747 = vtanh.f32 %v4688_v24  ;;  %v4685_v2 = vmul.f32 %v9736_v3, %v4604_v0 }
 0x714   : > { %9749 = vrcp.f32 %v4665_v8  ;;  %v4667_v50 = vadd.f32 1.0, %v9738_v52 }
 0x715   : > { %v4689_v41 = vadd.f32 %v4685_v2, %v1411_v18 }
 0x716   : > { %v9740_v13 = vpop.eup %9739 }
 0x717   : > { %9751 = vtanh.f32 %v4689_v41  ;;  %v4686_v55 = vmul.f32 %v9740_v13, %v4609_v51 }
 0x718   : > { %9753 = vrcp.f32 %v4667_v50 }
 0x719   : > { %v4690_v47 = vadd.f32 %v4686_v55, %v1414_v25  ;;  %v9450_v25 = vld [vmem:[#allocation9 + $0xa8] ss:$12 sps:$4 sm:$0xff]  }
 0x71a   : > { %v9742_v23 = vpop.eup %9741  ;;  %v9455_v55 = vld [vmem:[#allocation9 + $0x94] ss:$12 sps:$4 sm:$0xff]  }
 0x71b   : > { %9755 = vtanh.f32 %v4690_v47  ;;  %v4687_v36 = vmul.f32 %v9742_v23, %v4612_v38  ;;  %v9744_v39 = vpop.eup %9743  ;;  %v9453_v47 = vld [vmem:[#allocation9 + $0x90] ss:$12 sps:$4 sm:$0xff]   ;;  %v9456_v23 = vld [vmem:[#allocation9 + $0x78] ss:$12 sps:$4 sm:$0xff]  }
 0x71c   : > { %v9746_v5 = vpop.eup %9745  ;;  %v4696_v58 = vsub.f32 1.0, %v9744_v39  ;;  %v4704_v22 = vmul.f32 %v9744_v39, %v11506_v44  ;;  %v9458_v38 = vld [vmem:[#allocation9 + $0x7c] ss:$12 sps:$4 sm:$0xff]  }
 0x71d   : > { %v4691_v59 = vadd.f32 %v4687_v36, %v1417_v26  ;;  %v4697_v28 = vsub.f32 1.0, %v9746_v5  ;;  %v4705_v54 = vmul.f32 %v9746_v5, %v11509_v42  ;;  %v9459_v26 = vld [vmem:[#allocation9 + $0x60] ss:$12 sps:$4 sm:$0xff]   ;;  %v9462_v39 = vld [vmem:[#allocation9 + $0x48] ss:$12 sps:$4 sm:$0xff]  }
 0x71e   : > { %v9464_v36 = vld [vmem:[#allocation9 + $0x4c] ss:$12 sps:$4 sm:$0xff]   ;;  %v9465_v5 = vld [vmem:[#allocation9 + $0x30] ss:$12 sps:$4 sm:$0xff]  }
 0x71f   : > { %9757 = vtanh.f32 %v4691_v59  ;;  %v9467_v59 = vld [vmem:[#allocation9 + $0x34] ss:$12 sps:$4 sm:$0xff]  }
 0x720   : > { %v9748_v56 = vpop.eup %9747 }
 0x721   : > { %v4700_v34 = vmul.f32 %v9748_v56, %v4696_v58  ;;  %v9750_v62 = vpop.eup %9749  ;;  %v9470_v58 = vld [vmem:[#allocation9 + $0x1c] ss:$12 sps:$4 sm:$0xff]   ;;  %v9468_v56 = vld [vmem:[#allocation9 + $0x18] ss:$12 sps:$4 sm:$0xff]  }
 0x722   : > { %v4698_v7 = vsub.f32 1.0, %v9750_v62  ;;  %v4706_v3 = vmul.f32 %v9750_v62, %v11518_v16  ;;  %v9476_v62 = vld [vmem:[#allocation9 + $0x16c] ss:$12 sps:$4 sm:$0xff]  }
 0x723   : > { %v11601_v35 = vadd.f32 %v4704_v22, %v4700_v34  ;;  %v9473_v34 = vld [vmem:[#allocation9 + $0x4] ss:$12 sps:$4 sm:$0xff]   ;;  %v9471_v22 = vld [vmem:[#allocation9] ss:$12 sps:$4 sm:$0xff]  }
 0x724   : > { %v9752_v61 = vpop.eup %9751 }
 0x725   : > { %v4701_v4 = vmul.f32 %v9752_v61, %v4697_v28  ;;  %v9754_v29 = vpop.eup %9753  ;;  %v9477_v28 = vld [vmem:[#allocation9 + $0x170] ss:$12 sps:$4 sm:$0xff]   ;;  %v9474_v61 = vld [vmem:[#allocation9 + $0x168] ss:$12 sps:$4 sm:$0xff]  }
 0x726   : > { %v4699_v52 = vsub.f32 1.0, %v9754_v29  ;;  %v4707_v41 = vmul.f32 %v9754_v29, %v11522_v31  ;;  %8852 = vmatprep.subr.bf16.mxu0 %v9477_v28  ;;  %v9482_v29 = vld [vmem:[#allocation9 + $0x158] ss:$12 sps:$4 sm:$0xff]  }
 0x727   : > { %v11604_v15 = vadd.f32 %v4705_v54, %v4701_v4  ;;  %v9478_v4 = vld [vmem:[#allocation9 + $0xb0] ss:$12 sps:$4 sm:$0xff]   ;;  %v9481_v54 = vld [vmem:[#allocation9 + $0x154] ss:$12 sps:$4 sm:$0xff]  }
 0x728   : > { %v9756_v24 = vpop.eup %9755  ;;  %v13006_v28 = vld [vmem:[#allocation94_spill] sm:$0xff] }
 0x729   : > { %v4716_v0 = vpack.c.bf16 %v11604_v15, %v11601_v35  ;;  %v4702_v19 = vmul.f32 %v9756_v24, %v4698_v7  ;;  %v9479_v7 = vld [vmem:[#allocation9 + $0x150] ss:$12 sps:$4 sm:$0xff]   ;;  %v9483_v24 = vld [vmem:[#allocation9 + $0x98] ss:$12 sps:$4 sm:$0xff]  }
 0x72b   : > { %v4719_v8 = vsel %vm10901_vm1, %v4716_v0, 0  ;;  %v4718_v9 = vsel %vm10905_vm3, %v4716_v0, 0  ;;  %v11613_v33 = vadd.f32 %v4706_v3, %v4702_v19  ;;  %v9486_v0 = vld [vmem:[#allocation9 + $0x13c] ss:$12 sps:$4 sm:$0xff]   ;;  %v9487_v19 = vld [vmem:[#allocation9 + $0x140] ss:$12 sps:$4 sm:$0xff]  }
 0x72c   : > { %v9758_v18 = vpop.eup %9757  ;;  %5074 = vmatprep.mubr.bf16.mxu0 %v4719_v8  ;;  %5127 = vmatprep.mubr.bf16.mxu1 %v4719_v8  ;;  %v9484_v3 = vld [vmem:[#allocation9 + $0x138] ss:$12 sps:$4 sm:$0xff]   ;;  %v9488_v8 = vld [vmem:[#allocation9 + $0x80] ss:$12 sps:$4 sm:$0xff]  }
 0x72d   : > { %5075 = vmatmul.mubr.bf16.vlgmr.msra.gmra.mxu0 %v4718_v9  ;;  %5128 = vmatmul.mubr.bf16.vlgmr.msra.gmra.mxu1 %v4718_v9  ;;  %v4703_v2 = vmul.f32 %v9758_v18, %v4699_v52  ;;  %v9491_v9 = vld [vmem:[#allocation9 + $0x124] ss:$12 sps:$4 sm:$0xff]   ;;  %v9492_v52 = vld [vmem:[#allocation9 + $0x128] ss:$12 sps:$4 sm:$0xff]   ;;  %v9489_v18 = vld [vmem:[#allocation9 + $0x120] ss:$12 sps:$4 sm:$0xff]  }
 0x72e   : > { %5572 = vmatpush1.bf16.msra.mxu1 %v9450_v25  ;;  %8853 = vmatpush3.bf16.msra.mxu0 %v9478_v4  ;;  %v9501_v25 = vld [vmem:[#allocation9 + $0xf4] ss:$12 sps:$4 sm:$0xff]  }
 0x72f   : > { %v11616_v51 = vadd.f32 %v4707_v41, %v4703_v2  ;;  %5573 = vmatprep.subr.bf16.mxu1 %v9455_v55  ;;  %8854 = vmatprep.subr.bf16.mxu0 %v9482_v29  ;;  %v9493_v2 = vld [vmem:[#allocation9 + $0x68] ss:$12 sps:$4 sm:$0xff]   ;;  %v9496_v41 = vld [vmem:[#allocation9 + $0x10c] ss:$12 sps:$4 sm:$0xff]  }
 0x730   : > { %v9502_v55 = vld [vmem:[#allocation9 + $0xf8] ss:$12 sps:$4 sm:$0xff]  }
 0x731   : > { %v4717_v43 = vpack.c.bf16 %v11616_v51, %v11613_v33 }
 0x732   : > { %5574 = vmatpush1.bf16.msra.mxu1 %v9453_v47  ;;  %8855 = vmatpush3.bf16.msra.mxu0 %v9483_v24  ;;  %v9503_v47 = vld [vmem:[#allocation9 + $0x38] ss:$12 sps:$4 sm:$0xff]  }
 0x733   : > { %v4721_v13 = vsel %vm10905_vm3, %v4717_v43, 0  ;;  %v4720_v50 = vsel %vm10901_vm1, %v4717_v43, 0  ;;  %5575 = vmatprep.subr.bf16.mxu1 %v9458_v38  ;;  %8856 = vmatprep.subr.bf16.mxu0 %v9487_v19  ;;  %v9497_v43 = vld [vmem:[#allocation9 + $0x110] ss:$12 sps:$4 sm:$0xff]  }
 0x734   : > { %5084 = vmatprep.mubr.bf16.mxu0 %v4721_v13  ;;  %5135 = vmatprep.mubr.bf16.mxu1 %v4721_v13  ;;  %v9494_v13 = vld [vmem:[#allocation9 + $0x108] ss:$12 sps:$4 sm:$0xff]  }
 0x735   : > { %5085 = vmatmul.mubr.bf16.gmra.mxu0 %v4720_v50  ;;  %5136 = vmatmul.mubr.bf16.gmra.mxu1 %v4720_v50  ;;  %v9498_v50 = vld [vmem:[#allocation9 + $0x50] ss:$12 sps:$4 sm:$0xff]  }
 0x736   : > { %5576 = vmatpush1.bf16.msra.mxu1 %v9456_v23  ;;  %8857 = vmatpush3.bf16.msra.mxu0 %v9488_v8  ;;  %v9506_v38 = vld [vmem:[#allocation9 + $0xdc] ss:$12 sps:$4 sm:$0xff]   ;;  %v9507_v23 = vld [vmem:[#allocation9 + $0xe0] ss:$12 sps:$4 sm:$0xff]  }
 0x737   : > { %5577 = vmatprep.subr.bf16.mxu1 %v9461_v48  ;;  %8858 = vmatprep.subr.bf16.mxu0 %v9492_v52  ;;  %v9504_v48 = vld [vmem:[#allocation9 + $0xd8] ss:$12 sps:$4 sm:$0xff]  }
 0x73a   : > { %5578 = vmatpush1.bf16.msra.mxu1 %v9459_v26  ;;  %8859 = vmatpush3.bf16.msra.mxu0 %v9493_v2  ;;  %v9508_v26 = vld [vmem:[#allocation9 + $0x20] ss:$12 sps:$4 sm:$0xff]  }
 0x73b   : > { %5579 = vmatprep.subr.bf16.mxu1 %v9464_v36  ;;  %8860 = vmatprep.subr.bf16.mxu0 %v9497_v43  ;;  %v9509_v36 = vld [vmem:[#allocation9 + $0xc8] ss:$12 sps:$4 sm:$0xff]  }
 0x73c   : > { %v13009_v2 = vld [vmem:[#allocation95_spill] sm:$0xff] }
 0x73e   : > { %5580 = vmatpush1.bf16.msra.mxu1 %v9462_v39  ;;  %8861 = vmatpush3.bf16.msra.mxu0 %v9498_v50  ;;  %v9510_v39 = vld [vmem:[#allocation9 + $0x8] ss:$12 sps:$4 sm:$0xff]  }
 0x73f   : > { %5581 = vmatprep.subr.bf16.mxu1 %v9467_v59  ;;  %8862 = vmatprep.subr.bf16.mxu0 %v9502_v55 }
 0x742   : > { %5582 = vmatpush1.bf16.msra.mxu1 %v9465_v5  ;;  %8863 = vmatpush3.bf16.msra.mxu0 %v9503_v47  ;;  %v13005_v5 = vld [vmem:[#allocation92_spill] sm:$0xff]  ;;  %v13010_v47 = vld [vmem:[#allocation98_spill] sm:$0xff] }
 0x743   : > { %5583 = vmatprep.subr.bf16.mxu1 %v9470_v58  ;;  %8864 = vmatprep.subr.bf16.mxu0 %v9507_v23  ;;  %v1418_v58 = vadd.f32 %v13005_v5, %v12987_v17 }
 0x746   : > { %5584 = vmatpush1.bf16.msra.mxu1 %v9468_v56  ;;  %8865 = vmatpush3.bf16.msra.mxu0 %v9508_v26 }
 0x747   : > { %5585 = vmatprep.subr.bf16.mxu1 %v9473_v34  ;;  %8866 = vmatprep.subr.bf16.mxu0 %v9509_v36  ;;  %v13011_v36 = vld [vmem:[#allocation97_spill] sm:$0xff] }
 0x74a   : > { %5586 = vmatpush1.bf16.msra.mxu1 %v9471_v22  ;;  %8867 = vmatpush3.bf16.msra.mxu0 %v9510_v39  ;;  %v1425_v39 = vadd.f32 %v13011_v36, %v12998_v10 }
 0x74b   : > { %5587 = vmatprep.subr.bf16.mxu1 %v9476_v62 }
 0x74e   : > { %5588 = vmatpush2.bf16.msra.mxu1 %v9474_v61  ;;  %v1421_v61 = vadd.f32 %v13006_v28, %v12987_v17  ;;  %v13012_v28 = vld [vmem:[#allocation99_spill] sm:$0xff] }
 0x74f   : > { %5589 = vmatprep.subr.bf16.mxu1 %v9481_v54 }
 0x752   : > { %5590 = vmatpush2.bf16.msra.mxu1 %v9479_v7 }
 0x753   : > { %5591 = vmatprep.subr.bf16.mxu1 %v9486_v0 }
 0x756   : > { %5592 = vmatpush2.bf16.msra.mxu1 %v9484_v3  ;;  %v13008_v3 = vld [vmem:[#allocation96_spill] sm:$0xff] }
 0x757   : > { %5593 = vmatprep.subr.bf16.mxu1 %v9491_v9  ;;  %v1424_v8 = vadd.f32 %v13008_v3, %v10820_v45 }
 0x75a   : > { %5594 = vmatpush2.bf16.msra.mxu1 %v9489_v18 }
 0x75b   : > { %5595 = vmatprep.subr.bf16.mxu1 %v9496_v41  ;;  %v1422_v41 = vadd.f32 %v13009_v2, %v12925_v1 }
 0x75e   : > { %5596 = vmatpush2.bf16.msra.mxu1 %v9494_v13 }
 0x75f   : > { %5597 = vmatprep.subr.bf16.mxu1 %v9501_v25 }
 0x762   : > { %5598 = vmatpush2.bf16.msra.mxu1 %v9499_v21 }
 0x763   : > { %5599 = vmatprep.subr.bf16.mxu1 %v9506_v38  ;;  %v1427_v38 = vadd.f32 %v13010_v47, %v10820_v45 }
 0x766   : > { %5600 = vmatpush2.bf16.msra.mxu1 %v9504_v48 }
 0x767   : > { %5601 = vmatprep.subr.bf16.mxu1 %v11560_v30 }
 0x76a   : > { %5602 = vmatpush2.bf16.msra.mxu1 %v11558_v49  ;;  %v13007_v49 = vld [vmem:[#allocation93_spill] sm:$0xff] }
 0x76b   : > { %v1419_v7 = vadd.f32 %v13007_v49, %v12925_v1 }
 0x7ed   : > { %v5076_v59 = vpop.f32.mrf.mxu0  ;;  %v8840_v50 = vpop.f32.mrf.mxu1 }
 0x7ee   : > { %v5077_v56 = vadd.f32 %v5076_v59, %v12989_v12 }
 0x7ef   : > { %v5078_v34 = vpop.f32.mrf.mxu0 }
 0x7f0   : > { %v5157_v22 = vadd.f32 %v5077_v56, %v1418_v58  ;;  %v5079_v54 = vadd.f32 %v5078_v34, %v12991_v11  ;;  %v8841_v58 = vpop.f32.mrf.mxu1 }
 0x7f1   : > { %v5080_v62 = vpop.f32.mrf.mxu0 }
 0x7f2   : > { %v8461_v4 = vmul.f32 -1.442695, %v5157_v22  ;;  %v5081_v30 = vadd.f32 %v5080_v62, %v12989_v12  ;;  %v5158_v9 = vadd.f32 %v5079_v54, %v1419_v7  ;;  %v8843_v54 = vpop.f32.mrf.mxu1 }
 0x7f3   : > { %v5082_v29 = vpop.f32.mrf.mxu0 }
 0x7f4   : > { %9759 = vpow2.f32 %v8461_v4  ;;  %v5159_v24 = vadd.f32 %v5081_v30, %v1421_v61  ;;  %v5083_v0 = vadd.f32 %v5082_v29, %v12991_v11  ;;  %v8462_v23 = vmul.f32 -1.442695, %v5158_v9 }
 0x7f5   : > { %v5086_v19 = vpop.f32.mrf.mxu0  ;;  %v1428_v61 = vadd.f32 %v13012_v28, %v12998_v10 }
 0x7f6   : > { %v8463_v52 = vmul.f32 -1.442695, %v5159_v24  ;;  %v5087_v18 = vadd.f32 %v5086_v19, %v12994_v20  ;;  %v5160_v21 = vadd.f32 %v5083_v0, %v1422_v41  ;;  %v8844_v24 = vpop.f32.mrf.mxu1 }
 0x7f7   : > { %v5088_v43 = vpop.f32.mrf.mxu0 }
 0x7f8   : > { %9761 = vpow2.f32 %v8463_v52  ;;  %v5161_v13 = vadd.f32 %v5087_v18, %v1424_v8  ;;  %v5089_v25 = vadd.f32 %v5088_v43, %v12996_v14  ;;  %v8464_v56 = vmul.f32 -1.442695, %v5160_v21  ;;  %v8846_v8 = vpop.f32.mrf.mxu1 }
 0x7f9   : > { %v5090_v55 = vpop.f32.mrf.mxu0  ;;  %v8842_v18 = vadd.f32 %v8841_v58, %v8840_v50 }
 0x7fa   : > { %v8465_v48 = vmul.f32 -1.442695, %v5161_v13  ;;  %v5091_v26 = vadd.f32 %v5090_v55, %v12994_v20  ;;  %v5162_v34 = vadd.f32 %v5089_v25, %v1425_v39  ;;  %v8847_v41 = vpop.f32.mrf.mxu1  ;;  %v8845_v55 = vadd.f32 %v8844_v24, %v8843_v54 }
 0x7fb   : > { %v5092_v59 = vpop.f32.mrf.mxu0  ;;  %v5130_v25 = vadd.f32 %v8842_v18, %v10861_v37 }
 0x7fc   : > { %9763 = vpow2.f32 %v8465_v48  ;;  %v5163_v5 = vadd.f32 %v5091_v26, %v1427_v38  ;;  %v5093_v22 = vadd.f32 %v5092_v59, %v12996_v14  ;;  %v8466_v30 = vmul.f32 -1.442695, %v5162_v34  ;;  %v13013_v26 = vld [vmem:[#allocation48_spill] sm:$0xff] }
 0x7fd   : > { %9765 = vpow2.f32 %v8462_v23  ;;  %v8849_v23 = vpop.f32.mrf.mxu1  ;;  %v1420_v36 = vadd.f32 %v13013_v26, %v10865_v46  ;;  %v5133_v59 = vadd.f32 %v8845_v55, %v10861_v37 }
 0x7fe   : > { %v8467_v62 = vmul.f32 -1.442695, %v5163_v5  ;;  %v5164_v29 = vadd.f32 %v5093_v22, %v1428_v61  ;;  %v8848_v5 = vadd.f32 %v8847_v41, %v8846_v8 }
 0x7ff   : > { %v8850_v34 = vpop.f32.mrf.mxu1 }
 0x800   : > { %9767 = vpow2.f32 %v8467_v62  ;;  %v8468_v0 = vmul.f32 -1.442695, %v5164_v29  ;;  %v13014_v62 = vld [vmem:[#allocation49_spill] sm:$0xff]  ;;  %v5138_v54 = vadd.f32 %v8848_v5, %v10875_v32 }
 0x801   : > { %v9760_v4 = vpop.eup %9759  ;;  %9769 = vpow2.f32 %v8464_v56  ;;  %v1423_v28 = vadd.f32 %v13014_v62, %v10865_v46 }
 0x802   : > { %v5189_v49 = vadd.f32 1.0, %v9760_v4 }
 0x804   : > { %9771 = vrcp.f32 %v5189_v49 }
 0x805   : > { %v9762_v7 = vpop.eup %9761  ;;  %9773 = vpow2.f32 %v8466_v30  ;;  %v8851_v30 = vadd.f32 %v8850_v34, %v8849_v23 }
 0x806   : > { %v5191_v19 = vadd.f32 1.0, %v9762_v7  ;;  %v13015_v7 = vld [vmem:[#allocation50_spill] sm:$0xff] }
 0x807   : > { %v1426_v24 = vadd.f32 %v13015_v7, %v10879_v27 }
 0x808   : > { %9775 = vrcp.f32 %v5191_v19 }
 0x809   : > { %v9764_v3 = vpop.eup %9763  ;;  %9777 = vpow2.f32 %v8468_v0 }
 0x80a   : > { %v5193_v9 = vadd.f32 1.0, %v9764_v3  ;;  %v9766_v52 = vpop.eup %9765  ;;  %v5141_v3 = vadd.f32 %v8851_v30, %v10875_v32 }
 0x80b   : > { %v5190_v13 = vadd.f32 1.0, %v9766_v52 }
 0x80c   : > { %9779 = vrcp.f32 %v5193_v9  ;;  %v13016_v9 = vld [vmem:[#allocation51_spill] sm:$0xff] }
 0x80d   : > { %v9768_v2 = vpop.eup %9767  ;;  %v1429_v52 = vadd.f32 %v13016_v9, %v10879_v27 }
 0x80e   : > { %v9770_v43 = vpop.eup %9769  ;;  %v5195_v21 = vadd.f32 1.0, %v9768_v2 }
 0x80f   : > { %v5192_v38 = vadd.f32 1.0, %v9770_v43 }
 0x810   : > { %9781 = vrcp.f32 %v5195_v21 }
 0x811   : > { %v9772_v47 = vpop.eup %9771  ;;  %9783 = vrcp.f32 %v5190_v13 }
 0x812   : > { %v9774_v48 = vpop.eup %9773  ;;  %v5213_v39 = vmul.f32 %v9772_v47, %v5130_v25  ;;  %9785 = vrcp.f32 %v5192_v38 }
 0x813   : > { %v5194_v56 = vadd.f32 1.0, %v9774_v48 }
 0x814   : > { %v5217_v50 = vadd.f32 %v5213_v39, %v1420_v36 }
 0x815   : > { %v9776_v58 = vpop.eup %9775 }
 0x816   : > { %v9778_v22 = vpop.eup %9777  ;;  %9787 = vtanh.f32 %v5217_v50  ;;  %v5214_v61 = vmul.f32 %v9776_v58, %v5133_v59 }
 0x817   : > { %9789 = vrcp.f32 %v5194_v56  ;;  %v5196_v49 = vadd.f32 1.0, %v9778_v22 }
 0x818   : > { %v5218_v4 = vadd.f32 %v5214_v61, %v1423_v28 }
 0x819   : > { %v9780_v29 = vpop.eup %9779 }
 0x81a   : > { %9791 = vtanh.f32 %v5218_v4  ;;  %v5215_v0 = vmul.f32 %v9780_v29, %v5138_v54 }
 0x81b   : > { %9793 = vrcp.f32 %v5196_v49 }
 0x81c   : > { %v5219_v19 = vadd.f32 %v5215_v0, %v1426_v24  ;;  %v13017_v0 = vld [vmem:[#allocation30_spill] sm:$0xff] }
 0x81d   : > { %v9782_v8 = vpop.eup %9781 }
 0x81e   : > { %9795 = vtanh.f32 %v5219_v19  ;;  %v5216_v18 = vmul.f32 %v9782_v8, %v5141_v3  ;;  %v9784_v2 = vpop.eup %9783 }
 0x81f   : > { %v9786_v43 = vpop.eup %9785  ;;  %v5225_v13 = vsub.f32 1.0, %v9784_v2  ;;  %v5233_v55 = vmul.f32 %v9784_v2, %v11601_v35 }
 0x820   : > { %v5220_v41 = vadd.f32 %v5216_v18, %v1429_v52  ;;  %v5226_v38 = vsub.f32 1.0, %v9786_v43  ;;  %v5234_v36 = vmul.f32 %v9786_v43, %v11604_v15  ;;  %v13024_v52 = vld [vmem:[#allocation28_spill] sm:$0xff] }
 0x822   : > { %9797 = vtanh.f32 %v5220_v41 }
 0x823   : > { %v9788_v21 = vpop.eup %9787 }
 0x824   : > { %v5229_v25 = vmul.f32 %v9788_v21, %v5225_v13  ;;  %v9790_v47 = vpop.eup %9789 }
 0x825   : > { %v5227_v59 = vsub.f32 1.0, %v9790_v47  ;;  %v5235_v34 = vmul.f32 %v9790_v47, %v11613_v33 }
 0x826   : > { %v11663_v23 = vadd.f32 %v5233_v55, %v5229_v25 }
 0x827   : > { %v9792_v48 = vpop.eup %9791 }
 0x828   : > { %v5230_v26 = vmul.f32 %v9792_v48, %v5226_v38  ;;  %v9794_v39 = vpop.eup %9793  ;;  %v9512_v38 = vld [vmem:[#allocation10 + $0x30] sm:$0xff]   ;;  %v9514_v48 = vld [vmem:[#allocation10 + $0x20] sm:$0xff]  }
 0x829   : > { %v5228_v61 = vsub.f32 1.0, %v9794_v39  ;;  %v5236_v30 = vmul.f32 %v9794_v39, %v11616_v51  ;;  %v13030_v39 = vld [vmem:[#allocation100_spill] sm:$0xff] }
 0x82a   : > { %v11666_v50 = vadd.f32 %v5234_v36, %v5230_v26  ;;  %v9516_v26 = vld [vmem:[#allocation10 + $0x10] sm:$0xff]  }
 0x82b   : > { %v9796_v5 = vpop.eup %9795 }
 0x82c   : > { %v5245_v58 = vpack.c.bf16 %v11666_v50, %v11663_v23  ;;  %v5231_v56 = vmul.f32 %v9796_v5, %v5227_v59  ;;  %v1430_v59 = vadd.f32 %v13030_v39, %v12987_v17 }
 0x82e   : > { %v5247_v22 = vsel %vm10905_vm3, %v5245_v58, 0  ;;  %v5248_v62 = vsel %vm10901_vm1, %v5245_v58, 0  ;;  %v11675_v28 = vadd.f32 %v5235_v34, %v5231_v56  ;;  %v13031_v34 = vld [vmem:[#allocation101_spill] sm:$0xff] }
 0x82f   : > { %v9798_v4 = vpop.eup %9797  ;;  %5603 = vmatprep.mubr.bf16.mxu1 %v5248_v62  ;;  %5656 = vmatprep.mubr.bf16.mxu0 %v5248_v62 }
 0x830   : > { %5810 = vrot.lane.b32.xlu1 %v11675_v28, %s10251_s27  ;;  %5604 = vmatmul.mubr.bf16.vlgmr.msra.gmra.mxu1 %v5247_v22  ;;  %v5232_v54 = vmul.f32 %v9798_v4, %v5228_v61 }
 0x831   : > { %5657 = vmatmul.mubr.bf16.vlgmr.msra.gmra.mxu0 %v5247_v22  ;;  %v1431_v22 = vadd.f32 %v13031_v34, %v12925_v1 }
 0x832   : > { %v11680_v29 = vadd.f32 %v5236_v30, %v5232_v54 }
 0x834   : > { %5812 = vrot.lane.b32.xlu1 %v11680_v29, %s10251_s27  ;;  %v5246_v49 = vpack.c.bf16 %v11680_v29, %v11675_v28 }
 0x836   : > { %v5250_v7 = vsel %vm10905_vm3, %v5246_v49, 0  ;;  %v5249_v24 = vsel %vm10901_vm1, %v5246_v49, 0  ;;  %v13032_v49 = vld [vmem:[#allocation102_spill] sm:$0xff] }
 0x837   : > { %5613 = vmatprep.mubr.bf16.mxu1 %v5250_v7  ;;  %5664 = vmatprep.mubr.bf16.mxu0 %v5250_v7  ;;  %v1433_v7 = vadd.f32 %v13032_v49, %v12987_v17 }
 0x838   : > { %5816 = vrot.lane.b32.xlu1 %v11616_v51, %s10251_s27  ;;  %5614 = vmatmul.mubr.bf16.gmra.mxu1 %v5249_v24  ;;  %v13020_v51 = vld [vmem:[#allocation21_spill] sm:$0xff] }
 0x839   : > { %5665 = vmatmul.mubr.bf16.gmra.mxu0 %v5249_v24 }
 0x83c   : > { %5820 = vrot.lane.b32.xlu1 %v11522_v31, %s10251_s27  ;;  %v13022_v31 = vld [vmem:[#allocation22_spill] sm:$0xff] }
 0x840   : > { %5824 = vrot.lane.b32.xlu1 %v11368_v53, %s10251_s27 }
 0x844   : > { %5828 = vrot.lane.b32.xlu1 %v13017_v0, %s10251_s27 }
 0x848   : > { %5832 = vrot.lane.b32.xlu1 %v13018_v6, %s10251_s27 }
 0x84c   : > { %5836 = vrot.lane.b32.xlu1 %v13019_v63, %s10251_s27 }
 0x8a2   : > { %v5811_v19 = vpop.permute.xlu1 %5810 }
 0x8a3   : > { %v11704_v3 = vadd.f32 %v5811_v19, %v13020_v51 }
 0x8a5   : > { %13021 = vst [vmem:[#allocation32_spill] sm:$0xff] %v11704_v3  ;;  %5856 = vst [vmem:[%s11706_s11 + $0x10] sm:$0xff] %v11704_v3 }
 0x8a6   : > { %v5813_v53 = vpop.permute.xlu1 %5812 }
 0x8a7   : > { %v11711_v8 = vadd.f32 %v5813_v53, %v13022_v31  ;;  %v13033_v31 = vld [vmem:[#allocation104_spill] sm:$0xff] }
 0x8a9   : > { %13023 = vst [vmem:[#allocation25_spill] sm:$0xff] %v11711_v8  ;;  %5857 = vst [vmem:[%s11706_s11 + $0x18] sm:$0xff] %v11711_v8 }
 0x8aa   : > { %v5817_v9 = vpop.permute.xlu1 %5816 }
 0x8ab   : > { %v11716_v18 = vadd.f32 %v5817_v9, %v13024_v52  ;;  %v1436_v9 = vadd.f32 %v13033_v31, %v10820_v45 }
 0x8ad   : > { %13025 = vst [vmem:[#allocation107_spill] sm:$0xff] %v11716_v18  ;;  %5859 = vst [vmem:[%s11706_s11 + $0x28] sm:$0xff] %v11716_v18 }
 0x8ae   : > { %v5821_v2 = vpop.permute.xlu1 %5820 }
 0x8af   : > { %v11721_v41 = vadd.f32 %v5821_v2, %v11356_v40  ;;  %v9511_v40 = vld [vmem:[#allocation10 + $0x38] sm:$0xff]  }
 0x8b0   : > { %8896 = vmatprep.subr.bf16.mxu0 %v9511_v40 }
 0x8b1   : > { %13026 = vst [vmem:[#allocation26_spill] sm:$0xff] %v11721_v41  ;;  %5861 = vst [vmem:[%s11706_s11 + $0x38] sm:$0xff] %v11721_v41  ;;  %8897 = vmatpush3.bf16.msra.mxu0 %v9511_v40 }
 0x8b2   : > { %v5825_v43 = vpop.permute.xlu1 %5824  ;;  %8898 = vmatprep.subr.bf16.mxu0 %v9512_v38 }
 0x8b3   : > { %v11726_v13 = vadd.f32 %v5825_v43, %v11509_v42  ;;  %v9513_v42 = vld [vmem:[#allocation10 + $0x28] sm:$0xff]  }
 0x8b4   : > { %v13034_v43 = vld [vmem:[#allocation103_spill] sm:$0xff] }
 0x8b5   : > { %13027 = vst [vmem:[#allocation108_spill] sm:$0xff] %v11726_v13  ;;  %5863 = vst [vmem:[%s11706_s11 + $0x48] sm:$0xff] %v11726_v13  ;;  %8899 = vmatpush3.bf16.msra.mxu0 %v9512_v38 }
 0x8b6   : > { %v5829_v21 = vpop.permute.xlu1 %5828  ;;  %8900 = vmatprep.subr.bf16.mxu0 %v9513_v42 }
 0x8b7   : > { %v11731_v25 = vadd.f32 %v5829_v21, %v11604_v15  ;;  %v9515_v15 = vld [vmem:[#allocation10 + $0x18] sm:$0xff]   ;;  %v1434_v21 = vadd.f32 %v13034_v43, %v12925_v1 }
 0x8b9   : > { %13028 = vst [vmem:[#allocation109_spill] sm:$0xff] %v11731_v25  ;;  %5865 = vst [vmem:[%s11706_s11 + $0x58] sm:$0xff] %v11731_v25  ;;  %8901 = vmatpush3.bf16.msra.mxu0 %v9513_v42  ;;  %v13035_v42 = vld [vmem:[#allocation106_spill] sm:$0xff] }
 0x8ba   : > { %v5833_v55 = vpop.permute.xlu1 %5832  ;;  %8902 = vmatprep.subr.bf16.mxu0 %v9514_v48 }
 0x8bb   : > { %v11736_v47 = vadd.f32 %v5833_v55, %v11666_v50 }
 0x8bd   : > { %13029 = vst [vmem:[#allocation71_spill] sm:$0xff] %v11736_v47  ;;  %5867 = vst [vmem:[%s11706_s11 + $0x68] sm:$0xff] %v11736_v47  ;;  %8903 = vmatpush3.bf16.msra.mxu0 %v9514_v48 }
 0x8be   : > { %8904 = vmatprep.subr.bf16.mxu0 %v9515_v15 }
 0x8c1   : > { %8905 = vmatpush3.bf16.msra.mxu0 %v9515_v15 }
 0x8c2   : > { %8906 = vmatprep.subr.bf16.mxu0 %v9516_v26 }
 0x8c5   : > { %8907 = vmatpush3.bf16.msra.mxu0 %v9516_v26 }
 0x8f0   : > { %v5605_v36 = vpop.f32.mrf.mxu1 }
 0x8f1   : > { %v5606_v5 = vadd.f32 %v5605_v36, %v12989_v12  ;;  %v8868_v58 = vpop.f32.mrf.mxu0  ;;  %v13036_v36 = vld [vmem:[#allocation105_spill] sm:$0xff] }
 0x8f2   : > { %v5607_v56 = vpop.f32.mrf.mxu1  ;;  %v1437_v39 = vadd.f32 %v13036_v36, %v12998_v10 }
 0x8f3   : > { %v5686_v62 = vadd.f32 %v5606_v5, %v1430_v59  ;;  %v5608_v61 = vadd.f32 %v5607_v56, %v12991_v11  ;;  %v8869_v4 = vpop.f32.mrf.mxu0 }
 0x8f4   : > { %v8870_v54 = vadd.f32 %v8869_v4, %v8868_v58  ;;  %v5609_v30 = vpop.f32.mrf.mxu1 }
 0x8f5   : > { %v8517_v24 = vmul.f32 -1.442695, %v5686_v62  ;;  %v5687_v0 = vadd.f32 %v5608_v61, %v1431_v22  ;;  %v5610_v6 = vadd.f32 %v5609_v30, %v12989_v12  ;;  %v13037_v22 = vld [vmem:[#allocation61_spill] sm:$0xff]  ;;  %v8871_v61 = vpop.f32.mrf.mxu0 }
 0x8f6   : > { %v5611_v63 = vpop.f32.mrf.mxu1  ;;  %v1440_v62 = vadd.f32 %v13037_v22, %v12998_v10 }
 0x8f7   : > { %9799 = vpow2.f32 %v8517_v24  ;;  %v5688_v19 = vadd.f32 %v5610_v6, %v1433_v7  ;;  %v5612_v51 = vadd.f32 %v5611_v63, %v12991_v11  ;;  %v1439_v11 = vadd.f32 %v13035_v42, %v10820_v45  ;;  %v8872_v7 = vpop.f32.mrf.mxu0 }
 0x8f8   : > { %v5615_v53 = vpop.f32.mrf.mxu1  ;;  %v8518_v48 = vmul.f32 -1.442695, %v5687_v0 }
 0x8f9   : > { %v8519_v52 = vmul.f32 -1.442695, %v5688_v19  ;;  %v5616_v2 = vadd.f32 %v5615_v53, %v12994_v20  ;;  %v5689_v40 = vadd.f32 %v5612_v51, %v1434_v21  ;;  %v8874_v6 = vpop.f32.mrf.mxu0 }
 0x8fa   : > { %v5617_v17 = vpop.f32.mrf.mxu1 }
 0x8fb   : > { %9801 = vpow2.f32 %v8519_v52  ;;  %v5690_v55 = vadd.f32 %v5616_v2, %v1436_v9  ;;  %v5618_v12 = vadd.f32 %v5617_v17, %v12996_v14  ;;  %v8520_v5 = vmul.f32 -1.442695, %v5689_v40  ;;  %v8875_v51 = vpop.f32.mrf.mxu0  ;;  %v13038_v40 = vld [vmem:[#allocation52_spill] sm:$0xff] }
 0x8fc   : > { %v5619_v38 = vpop.f32.mrf.mxu1  ;;  %v5659_v52 = vadd.f32 %v8870_v54, %v10861_v37  ;;  %v8873_v2 = vadd.f32 %v8872_v7, %v8871_v61 }
 0x8fd   : > { %v8521_v15 = vmul.f32 -1.442695, %v5690_v55  ;;  %v5620_v26 = vadd.f32 %v5619_v38, %v12994_v20  ;;  %v5691_v58 = vadd.f32 %v5618_v12, %v1437_v39  ;;  %v8877_v17 = vpop.f32.mrf.mxu0  ;;  %v1432_v12 = vadd.f32 %v13038_v40, %v10865_v46  ;;  %v13039_v39 = vld [vmem:[#allocation54_spill] sm:$0xff] }
 0x8fe   : > { %v5621_v59 = vpop.f32.mrf.mxu1 }
 0x8ff   : > { %9803 = vpow2.f32 %v8521_v15  ;;  %v5692_v1 = vadd.f32 %v5620_v26, %v1439_v11  ;;  %v5622_v56 = vadd.f32 %v5621_v59, %v12996_v14  ;;  %v8522_v20 = vmul.f32 -1.442695, %v5691_v58  ;;  %v8878_v36 = vpop.f32.mrf.mxu0 }
 0x900   : > { %9805 = vpow2.f32 %v8518_v48  ;;  %v5662_v11 = vadd.f32 %v8873_v2, %v10861_v37  ;;  %v8876_v48 = vadd.f32 %v8875_v51, %v8874_v6  ;;  %v1435_v59 = vadd.f32 %v13039_v39, %v10865_v46  ;;  %v13040_v37 = vld [vmem:[#allocation56_spill] sm:$0xff]  ;;  %v13041_v46 = vld [vmem:[#allocation59_spill] sm:$0xff] }
 0x901   : > { %v8523_v34 = vmul.f32 -1.442695, %v5692_v1  ;;  %v5693_v4 = vadd.f32 %v5622_v56, %v1440_v62  ;;  %v8879_v56 = vadd.f32 %v8878_v36, %v8877_v17  ;;  %v1438_v62 = vadd.f32 %v13040_v37, %v10879_v27  ;;  %v13044_v36 = vld [vmem:[#allocation23_spill] sm:$0xff] }
 0x902   : > { %v5667_v58 = vadd.f32 %v8876_v48, %v10875_v32  ;;  %v13046_v39 = vld [vmem:[#allocation67_spill] sm:$0xff] }
 0x903   : > { %9807 = vpow2.f32 %v8523_v34  ;;  %v8524_v24 = vmul.f32 -1.442695, %v5693_v4 }
 0x904   : > { %v9800_v45 = vpop.eup %9799  ;;  %9809 = vpow2.f32 %v8520_v5 }
 0x905   : > { %v5718_v30 = vadd.f32 1.0, %v9800_v45 }
 0x907   : > { %9811 = vrcp.f32 %v5718_v30  ;;  %v1441_v30 = vadd.f32 %v13041_v46, %v10879_v27  ;;  %v9518_v27 = vld [vmem:[#allocation10] sm:$0xff]  }
 0x908   : > { %v9802_v49 = vpop.eup %9801  ;;  %9813 = vpow2.f32 %v8522_v20  ;;  %v5670_v20 = vadd.f32 %v8879_v56, %v10875_v32  ;;  %v13049_v56 = vld [vmem:[#allocation27_spill] sm:$0xff] }
 0x909   : > { %v5720_v0 = vadd.f32 1.0, %v9802_v49 }
 0x90b   : > { %9815 = vrcp.f32 %v5720_v0 }
 0x90c   : > { %v9804_v14 = vpop.eup %9803  ;;  %9817 = vpow2.f32 %v8524_v24 }
 0x90d   : > { %v5722_v63 = vadd.f32 1.0, %v9804_v14  ;;  %v9806_v19 = vpop.eup %9805 }
 0x90e   : > { %v5719_v31 = vadd.f32 1.0, %v9806_v19 }
 0x90f   : > { %9819 = vrcp.f32 %v5722_v63  ;;  %v9517_v63 = vld [vmem:[#allocation10 + $0x8] sm:$0xff]  }
 0x910   : > { %v9808_v10 = vpop.eup %9807  ;;  %8908 = vmatprep.subr.bf16.mxu0 %v9517_v63 }
 0x911   : > { %v9810_v53 = vpop.eup %9809  ;;  %v5724_v9 = vadd.f32 1.0, %v9808_v10  ;;  %8909 = vmatpush3.bf16.msra.mxu0 %v9517_v63 }
 0x912   : > { %v5721_v21 = vadd.f32 1.0, %v9810_v53  ;;  %8910 = vmatprep.subr.bf16.mxu0 %v9518_v27 }
 0x913   : > { %9821 = vrcp.f32 %v5724_v9 }
 0x914   : > { %v9812_v43 = vpop.eup %9811  ;;  %9823 = vrcp.f32 %v5719_v31 }
 0x915   : > { %v9814_v55 = vpop.eup %9813  ;;  %v5742_v38 = vmul.f32 %v9812_v43, %v5659_v52  ;;  %9825 = vrcp.f32 %v5721_v21  ;;  %8911 = vmatpush3.bf16.msra.mxu0 %v9518_v27 }
 0x916   : > { %v5723_v26 = vadd.f32 1.0, %v9814_v55  ;;  %v5837_v55 = vpop.permute.xlu1 %5836 }
 0x917   : > { %v5746_v42 = vadd.f32 %v5742_v38, %v1432_v12 }
 0x918   : > { %v9816_v15 = vpop.eup %9815 }
 0x919   : > { %v9818_v54 = vpop.eup %9817  ;;  %9827 = vtanh.f32 %v5746_v42  ;;  %v5743_v1 = vmul.f32 %v9816_v15, %v5662_v11 }
 0x91a   : > { %9829 = vrcp.f32 %v5723_v26  ;;  %v5725_v22 = vadd.f32 1.0, %v9818_v54 }
 0x91b   : > { %v5747_v5 = vadd.f32 %v5743_v1, %v1435_v59 }
 0x91c   : > { %v9820_v34 = vpop.eup %9819 }
 0x91d   : > { %9831 = vtanh.f32 %v5747_v5  ;;  %v5744_v45 = vmul.f32 %v9820_v34, %v5667_v58  ;;  %v5871_v5 = vpack.c.bf16 %v11711_v8, %v11704_v3 }
 0x91e   : > { %9833 = vrcp.f32 %v5725_v22 }
 0x91f   : > { %v5748_v61 = vadd.f32 %v5744_v45, %v1438_v62 }
 0x920   : > { %v9822_v4 = vpop.eup %9821 }
 0x921   : > { %9835 = vtanh.f32 %v5748_v61  ;;  %v5745_v49 = vmul.f32 %v9822_v4, %v5670_v20  ;;  %v9824_v7 = vpop.eup %9823 }
 0x922   : > { %v9826_v0 = vpop.eup %9825  ;;  %v5754_v14 = vsub.f32 1.0, %v9824_v7  ;;  %v5762_v10 = vmul.f32 %v9824_v7, %v11663_v23 }
 0x923   : > { %v5749_v24 = vadd.f32 %v5745_v49, %v1441_v30  ;;  %v5755_v53 = vsub.f32 1.0, %v9826_v0  ;;  %v5763_v52 = vmul.f32 %v9826_v0, %v11666_v50 }
 0x925   : > { %9837 = vtanh.f32 %v5749_v24 }
 0x926   : > { %v9828_v6 = vpop.eup %9827 }
 0x927   : > { %v5758_v19 = vmul.f32 %v9828_v6, %v5754_v14  ;;  %v9830_v51 = vpop.eup %9829  ;;  %v11856_v14 = vld [vmem:[#allocation12 + $0x4] ss:$0 sm:$0xff] }
 0x928   : > { %v5756_v43 = vsub.f32 1.0, %v9830_v51  ;;  %v5764_v12 = vmul.f32 %v9830_v51, %v11675_v28  ;;  %v13043_v28 = vld [vmem:[#allocation29_spill] sm:$0xff] }
 0x929   : > { %v11777_v32 = vadd.f32 %v5762_v10, %v5758_v19 }
 0x92a   : > { %v9832_v31 = vpop.eup %9831 }
 0x92b   : > { %v5759_v9 = vmul.f32 %v9832_v31, %v5755_v53  ;;  %v9834_v2 = vpop.eup %9833 }
 0x92c   : > { %v5757_v11 = vsub.f32 1.0, %v9834_v2  ;;  %v5765_v15 = vmul.f32 %v9834_v2, %v11680_v29  ;;  %v13045_v29 = vld [vmem:[#allocation69_spill] sm:$0xff] }
 0x92d   : > { %v5767_v21 = vadd.f32 %v5763_v52, %v5759_v9 }
 0x92e   : > { %v9836_v17 = vpop.eup %9835 }
 0x92f   : > { %v5760_v40 = vmul.f32 %v9836_v17, %v5756_v43  ;;  %v11781_v38 = vadd.f32 %v5837_v55, %v5767_v21  ;;  %v11864_v43 = vld [vmem:[#allocation12 + $0x5] ss:$0 sm:$0xff] }
 0x931   : > { %13042 = vst [vmem:[#allocation73_spill] sm:$0xff] %v11781_v38  ;;  %v5768_v42 = vadd.f32 %v5764_v12, %v5760_v40  ;;  %5869 = vst [vmem:[%s11706_s11 + $0x78] sm:$0xff] %v11781_v38 }
 0x932   : > { %v9838_v48 = vpop.eup %9837 }
 0x933   : > { %5806 = vrot.lane.b32.xlu0 %v5768_v42, %s10251_s27  ;;  %v5761_v50 = vmul.f32 %v9838_v48, %v5757_v11 }
 0x935   : > { %v5769_v26 = vadd.f32 %v5765_v15, %v5761_v50 }
 0x937   : > { %5808 = vrot.lane.b32.xlu0 %v5769_v26, %s10251_s27 }
 0x93b   : > { %5814 = vrot.lane.b32.xlu0 %v11613_v33, %s10251_s27  ;;  %v13047_v33 = vld [vmem:[#allocation68_spill] sm:$0xff] }
 0x93f   : > { %5818 = vrot.lane.b32.xlu0 %v11518_v16, %s10251_s27 }
 0x943   : > { %5822 = vrot.lane.b32.xlu0 %v11365_v57, %s10251_s27 }
 0x947   : > { %5826 = vrot.lane.b32.xlu0 %v13043_v28, %s10251_s27 }
 0x94b   : > { %5830 = vrot.lane.b32.xlu0 %v13044_v36, %s10251_s27 }
 0x94f   : > { %5834 = vrot.lane.b32.xlu0 %v13045_v29, %s10251_s27 }
 0x9a5   : > { %v5807_v54 = vpop.permute.xlu0 %5806 }
 0x9a6   : > { %v11801_v59 = vadd.f32 %v5807_v54, %v13046_v39 }
 0x9a8   : > { %5854 = vst [vmem:[%s11706_s11] sm:$0xff] %v11801_v59 }
 0x9a9   : > { %v5809_v16 = vpop.permute.xlu0 %5808 }
 0x9aa   : > { %v11806_v57 = vadd.f32 %v5809_v16, %v13047_v33 }
 0x9ac   : > { %13048 = vst [vmem:[#allocation72_spill] sm:$0xff] %v11806_v57  ;;  %5855 = vst [vmem:[%s11706_s11 + $0x8] sm:$0xff] %v11806_v57  ;;  %v5870_v1 = vpack.c.bf16 %v11806_v57, %v11801_v59 }
 0x9ad   : > { %v5815_v58 = vpop.permute.xlu0 %5814 }
 0x9ae   : > { %v11815_v34 = vadd.f32 %v5815_v58, %v13049_v56  ;;  %8912 = vmatprep.mubr.bf16.mxu0 %v5870_v1 }
 0x9af   : > { %8913 = vmatmul.mubr.bf16.vlgmr.msra.gmra.mxu0 %v5871_v5 }
 0x9b0   : > { %13050 = vst [vmem:[#allocation36_spill] sm:$0xff] %v11815_v34  ;;  %5858 = vst [vmem:[%s11706_s11 + $0x20] sm:$0xff] %v11815_v34  ;;  %v5872_v22 = vpack.c.bf16 %v11716_v18, %v11815_v34 }
 0x9b1   : > { %v5819_v37 = vpop.permute.xlu0 %5818 }
 0x9b2   : > { %v11822_v62 = vadd.f32 %v5819_v37, %v11353_v60  ;;  %8916 = vmatprep.mubr.bf16.mxu0 %v5872_v22 }
 0x9b4   : > { %13051 = vst [vmem:[#allocation35_spill] sm:$0xff] %v11822_v62  ;;  %5860 = vst [vmem:[%s11706_s11 + $0x30] sm:$0xff] %v11822_v62  ;;  %v5873_v45 = vpack.c.bf16 %v11721_v41, %v11822_v62 }
 0x9b5   : > { %v5823_v61 = vpop.permute.xlu0 %5822 }
 0x9b6   : > { %v11829_v20 = vadd.f32 %v5823_v61, %v11506_v44 }
 0x9b7   : > { %8917 = vmatmul.mubr.bf16.gmra.mxu0 %v5873_v45 }
 0x9b8   : > { %13052 = vst [vmem:[#allocation74_spill] sm:$0xff] %v11829_v20  ;;  %5862 = vst [vmem:[%s11706_s11 + $0x40] sm:$0xff] %v11829_v20  ;;  %v5874_v4 = vpack.c.bf16 %v11726_v13, %v11829_v20 }
 0x9b9   : > { %v5827_v60 = vpop.permute.xlu0 %5826 }
 0x9ba   : > { %v11836_v46 = vadd.f32 %v5827_v60, %v11601_v35  ;;  %8920 = vmatprep.mubr.bf16.mxu0 %v5874_v4 }
 0x9bc   : > { %13053 = vst [vmem:[#allocation38_spill] sm:$0xff] %v11836_v46  ;;  %5864 = vst [vmem:[%s11706_s11 + $0x50] sm:$0xff] %v11836_v46  ;;  %v5875_v30 = vpack.c.bf16 %v11731_v25, %v11836_v46 }
 0x9bd   : > { %v5831_v49 = vpop.permute.xlu0 %5830 }
 0x9be   : > { %v11843_v44 = vadd.f32 %v5831_v49, %v11663_v23 }
 0x9bf   : > { %8921 = vmatmul.mubr.bf16.gmra.mxu0 %v5875_v30 }
 0x9c0   : > { %13054 = vst [vmem:[#allocation75_spill] sm:$0xff] %v11843_v44  ;;  %5866 = vst [vmem:[%s11706_s11 + $0x60] sm:$0xff] %v11843_v44  ;;  %v5876_v7 = vpack.c.bf16 %v11736_v47, %v11843_v44 }
 0x9c1   : > { %v5835_v24 = vpop.permute.xlu0 %5834 }
 0x9c2   : > { %v11850_v35 = vadd.f32 %v5835_v24, %v11777_v32  ;;  %8924 = vmatprep.mubr.bf16.mxu0 %v5876_v7 }
 0x9c4   : > { %13055 = vst [vmem:[#allocation33_spill] sm:$0xff] %v11850_v35  ;;  %5868 = vst [vmem:[%s11706_s11 + $0x70] sm:$0xff] %v11850_v35  ;;  %v5877_v0 = vpack.c.bf16 %v11781_v38, %v11850_v35 }
 0x9c7   : > { %8925 = vmatmul.mubr.bf16.gmra.mxu0 %v5877_v0 }
 0xa6f   : > { %v8914_v23 = vpop.f32.mrf.mxu0 }
 0xa70   : > { %v5985_v6 = vadd.f32 %v8914_v23, %v11856_v14 }
 0xa71   : > { %v5976_v63 = vpop.f32.mrf.mxu0 }
 0xa72   : > { %9839 = vtanh.f32 %v5985_v6  ;;  %v5977_v19 = vadd.f32 %v5976_v63, %v11856_v14 }
 0xa73   : > { %v8915_v10 = vpop.f32.mrf.mxu0 }
 0xa74   : > { %9841 = vtanh.f32 %v5977_v19  ;;  %v5988_v51 = vadd.f32 %v8915_v10, %v11856_v14 }
 0xa75   : > { %v5979_v32 = vpop.f32.mrf.mxu0 }
 0xa76   : > { %9843 = vtanh.f32 %v5988_v51  ;;  %v5980_v9 = vadd.f32 %v5979_v32, %v11856_v14 }
 0xa77   : > { %v8918_v53 = vpop.f32.mrf.mxu0 }
 0xa78   : > { %v6001_v31 = vadd.f32 %v8918_v53, %v11856_v14 }
 0xa79   : > { %v5992_v27 = vpop.f32.mrf.mxu0 }
 0xa7a   : > { %9845 = vtanh.f32 %v6001_v31  ;;  %v5993_v52 = vadd.f32 %v5992_v27, %v11856_v14 }
 0xa7b   : > { %v8919_v2 = vpop.f32.mrf.mxu0 }
 0xa7c   : > { %9847 = vtanh.f32 %v5993_v52  ;;  %v6004_v42 = vadd.f32 %v8919_v2, %v11856_v14 }
 0xa7d   : > { %9849 = vtanh.f32 %v5980_v9  ;;  %v5995_v21 = vpop.f32.mrf.mxu0 }
 0xa7e   : > { %v5996_v28 = vadd.f32 %v5995_v21, %v11856_v14  ;;  %9851 = vtanh.f32 %v6004_v42 }
 0xa7f   : > { %v9840_v17 = vpop.eup %9839  ;;  %v8922_v11 = vpop.f32.mrf.mxu0 }
 0xa80   : > { %v6155_v55 = vmul.f32 %v9840_v17, %v11864_v43  ;;  %v6073_v40 = vcombine.high %v9840_v17, %v9840_v17  ;;  %v6017_v29 = vadd.f32 %v8922_v11, %v11856_v14  ;;  %9853 = vtanh.f32 %v5996_v28 }
 0xa81   : > { %v9842_v12 = vpop.eup %9841  ;;  %v6008_v39 = vpop.f32.mrf.mxu0 }
 0xa82   : > { %v6196_v48 = vsel %vm6183_vm4, %v6155_v55, 0.0  ;;  %v6151_v50 = vmul.f32 %v9842_v12, %v11864_v43  ;;  %v6156_v15 = vmul.f32 %v6073_v40, %v11864_v43  ;;  %v6071_v26 = vcombine.high %v9842_v12, %v9842_v12 }
 0xa83   : > { %6197 = vadd.xlane.f32.xlu1 %v6196_v48  ;;  %v9844_v54 = vpop.eup %9843  ;;  %9855 = vtanh.f32 %v6017_v29  ;;  %v6009_v56 = vadd.f32 %v6008_v39, %v11856_v14  ;;  %v8923_v37 = vpop.f32.mrf.mxu0 }
 0xa84   : > { %v6184_v36 = vsel %vm6183_vm4, %v6151_v50, 0.0  ;;  %v6199_v16 = vsel %vm6183_vm4, %v6156_v15, 0.0  ;;  %v6152_v33 = vmul.f32 %v6071_v26, %v11864_v43  ;;  %v6157_v22 = vmul.f32 %v9844_v54, %v11864_v43 }
 0xa85   : > { %6185 = vadd.xlane.f32.xlu0 %v6184_v36  ;;  %9857 = vtanh.f32 %v6009_v56  ;;  %v6074_v7 = vcombine.high %v9844_v54, %v9844_v54  ;;  %v6011_v24 = vpop.f32.mrf.mxu0  ;;  %v6020_v19 = vadd.f32 %v8923_v37, %v11856_v14 }
 0xa86   : > { %v6187_v45 = vsel %vm6183_vm4, %v6152_v33, 0.0  ;;  %v6202_v49 = vsel %vm6183_vm4, %v6157_v22, 0.0  ;;  %v6012_v52 = vadd.f32 %v6011_v24, %v11856_v14 }
 0xa87   : > { %v9846_v1 = vpop.eup %9845  ;;  %6200 = vadd.xlane.f32.xlu1 %v6199_v16  ;;  %v6158_v10 = vmul.f32 %v6074_v7, %v11864_v43  ;;  %v8926_v51 = vpop.f32.mrf.mxu0  ;;  %9859 = vtanh.f32 %v6020_v19 }
 0xa88   : > { %v6163_v5 = vmul.f32 %v9846_v1, %v11864_v43  ;;  %v6077_v60 = vcombine.high %v9846_v1, %v9846_v1  ;;  %v6033_v21 = vadd.f32 %v8926_v51, %v11856_v14  ;;  %9861 = vtanh.f32 %v6012_v52 }
 0xa89   : > { %v9848_v58 = vpop.eup %9847  ;;  %v6024_v55 = vpop.f32.mrf.mxu0  ;;  %v6205_v40 = vsel %vm6183_vm4, %v6158_v10, 0.0 }
 0xa8a   : > { %v6220_v61 = vsel %vm6183_vm4, %v6163_v5, 0.0  ;;  %v6159_v4 = vmul.f32 %v9848_v58, %v11864_v43  ;;  %v9850_v30 = vpop.eup %9849  ;;  %v6164_v6 = vmul.f32 %v6077_v60, %v11864_v43  ;;  %v6075_v63 = vcombine.high %v9848_v58, %v9848_v58 }
 0xa8b   : > { %6188 = vadd.xlane.f32.xlu1 %v6187_v45  ;;  %6221 = vadd.xlane.f32.xlu0 %v6220_v61  ;;  %v6153_v23 = vmul.f32 %v9850_v30, %v11864_v43  ;;  %v6072_v27 = vcombine.high %v9850_v30, %v9850_v30  ;;  %v9852_v9 = vpop.eup %9851  ;;  %9863 = vtanh.f32 %v6033_v21  ;;  %v6025_v48 = vadd.f32 %v6024_v55, %v11856_v14  ;;  %v8927_v16 = vpop.f32.mrf.mxu0 }
 0xa8c   : > { %v6208_v0 = vsel %vm6183_vm4, %v6159_v4, 0.0  ;;  %v6223_v53 = vsel %vm6183_vm4, %v6164_v6, 0.0  ;;  %v6160_v31 = vmul.f32 %v6075_v63, %v11864_v43  ;;  %v6165_v11 = vmul.f32 %v9852_v9, %v11864_v43 }
 0xa8d   : > { %v6190_v32 = vsel %vm6183_vm4, %v6153_v23, 0.0  ;;  %v9854_v2 = vpop.eup %9853  ;;  %v6154_v42 = vmul.f32 %v6072_v27, %v11864_v43  ;;  %v6078_v50 = vcombine.high %v9852_v9, %v9852_v9  ;;  %9865 = vtanh.f32 %v6025_v48  ;;  %v6027_v45 = vpop.f32.mrf.mxu0 }
 0xa8e   : > { %v6211_v12 = vsel %vm6183_vm4, %v6160_v31, 0.0  ;;  %v6226_v28 = vsel %vm6183_vm4, %v6165_v11, 0.0  ;;  %v6161_v36 = vmul.f32 %v9854_v2, %v11864_v43  ;;  %v6076_v39 = vcombine.high %v9854_v2, %v9854_v2 }
 0xa8f   : > { %6203 = vadd.xlane.f32.xlu1 %v6202_v49  ;;  %6209 = vadd.xlane.f32.xlu0 %v6208_v0  ;;  %v6193_v26 = vsel %vm6183_vm4, %v6154_v42, 0.0  ;;  %v6166_v54 = vmul.f32 %v6078_v50, %v11864_v43  ;;  %v6036_v56 = vadd.f32 %v8927_v16, %v11856_v14  ;;  %v6028_v7 = vadd.f32 %v6027_v45, %v11856_v14 }
 0xa90   : > { %v9856_v17 = vpop.eup %9855  ;;  %v6214_v33 = vsel %vm6183_vm4, %v6161_v36, 0.0  ;;  %v6162_v4 = vmul.f32 %v6076_v39, %v11864_v43 }
 0xa91   : > { %v6171_v29 = vmul.f32 %v9856_v17, %v11864_v43  ;;  %v6081_v58 = vcombine.high %v9856_v17, %v9856_v17  ;;  %v6229_v22 = vsel %vm6183_vm4, %v6166_v54, 0.0  ;;  %9867 = vtanh.f32 %v6036_v56 }
 0xa92   : > { %v9858_v15 = vpop.eup %9857  ;;  %v6217_v23 = vsel %vm6183_vm4, %v6162_v4, 0.0  ;;  %9869 = vtanh.f32 %v6028_v7 }
 0xa93   : > { %6191 = vadd.xlane.f32.xlu1 %v6190_v32  ;;  %6224 = vadd.xlane.f32.xlu0 %v6223_v53  ;;  %v6244_v1 = vsel %vm6183_vm4, %v6171_v29, 0.0  ;;  %v6167_v5 = vmul.f32 %v9858_v15, %v11864_v43  ;;  %v6172_v60 = vmul.f32 %v6081_v58, %v11864_v43  ;;  %v6079_v30 = vcombine.high %v9858_v15, %v9858_v15 }
 0xa94   : > { %v9860_v37 = vpop.eup %9859 }
 0xa95   : > { %v6232_v61 = vsel %vm6183_vm4, %v6167_v5, 0.0  ;;  %v9862_v49 = vpop.eup %9861  ;;  %v6173_v24 = vmul.f32 %v9860_v37, %v11864_v43  ;;  %v6247_v6 = vsel %vm6183_vm4, %v6172_v60, 0.0  ;;  %v6168_v63 = vmul.f32 %v6079_v30, %v11864_v43 }
 0xa96   : > { %v6082_v10 = vcombine.high %v9860_v37, %v9860_v37  ;;  %v6169_v14 = vmul.f32 %v9862_v49, %v11864_v43  ;;  %v6080_v9 = vcombine.high %v9862_v49, %v9862_v49 }
 0xa97   : > { %6206 = vadd.xlane.f32.xlu1 %v6205_v40  ;;  %6212 = vadd.xlane.f32.xlu0 %v6211_v12  ;;  %v6250_v19 = vsel %vm6183_vm4, %v6173_v24, 0.0  ;;  %v6235_v32 = vsel %vm6183_vm4, %v6168_v63, 0.0 }
 0xa98   : > { %v9864_v0 = vpop.eup %9863  ;;  %v6174_v27 = vmul.f32 %v6082_v10, %v11864_v43  ;;  %v6238_v52 = vsel %vm6183_vm4, %v6169_v14, 0.0  ;;  %v6170_v12 = vmul.f32 %v6080_v9, %v11864_v43 }
 0xa99   : > { %v6179_v53 = vmul.f32 %v9864_v0, %v11864_v43  ;;  %v6085_v31 = vcombine.high %v9864_v0, %v9864_v0 }
 0xa9a   : > { %v9866_v51 = vpop.eup %9865  ;;  %v6253_v55 = vsel %vm6183_vm4, %v6174_v27, 0.0  ;;  %v6241_v50 = vsel %vm6183_vm4, %v6170_v12, 0.0 }
 0xa9b   : > { %6194 = vadd.xlane.f32.xlu1 %v6193_v26  ;;  %6227 = vadd.xlane.f32.xlu0 %v6226_v28  ;;  %v6268_v2 = vsel %vm6183_vm4, %v6179_v53, 0.0  ;;  %v6180_v21 = vmul.f32 %v6085_v31, %v11864_v43  ;;  %v6083_v17 = vcombine.high %v9866_v51, %v9866_v51  ;;  %v6175_v26 = vmul.f32 %v9866_v51, %v11864_v43 }
 0xa9d   : > { %v6271_v40 = vsel %vm6183_vm4, %v6180_v21, 0.0  ;;  %v6176_v42 = vmul.f32 %v6083_v17, %v11864_v43  ;;  %v6256_v36 = vsel %vm6183_vm4, %v6175_v26, 0.0 }
 0xa9e   : > { %v9868_v11 = vpop.eup %9867 }
 0xa9f   : > { %6215 = vadd.xlane.f32.xlu0 %v6214_v33  ;;  %6245 = vadd.xlane.f32.xlu1 %v6244_v1  ;;  %v9870_v48 = vpop.eup %9869  ;;  %v6259_v15 = vsel %vm6183_vm4, %v6176_v42, 0.0  ;;  %v6181_v28 = vmul.f32 %v9868_v11, %v11864_v43  ;;  %v6086_v1 = vcombine.high %v9868_v11, %v9868_v11  ;;  %v13057_v11 = vld [vmem:[#allocation53_spill] sm:$0xff] }
 0xaa0   : > { %v6177_v54 = vmul.f32 %v9870_v48, %v11864_v43  ;;  %v6084_v39 = vcombine.high %v9870_v48, %v9870_v48 }
 0xaa1   : > { %v6274_v29 = vsel %vm6183_vm4, %v6181_v28, 0.0  ;;  %v6182_v58 = vmul.f32 %v6086_v1, %v11864_v43 }
 0xaa2   : > { %v6262_v16 = vsel %vm6183_vm4, %v6177_v54, 0.0  ;;  %v6178_v33 = vmul.f32 %v6084_v39, %v11864_v43 }
 0xaa3   : > { %6230 = vadd.xlane.f32.xlu0 %v6229_v22  ;;  %6233 = vadd.xlane.f32.xlu1 %v6232_v61  ;;  %v6277_v56 = vsel %vm6183_vm4, %v6182_v58, 0.0  ;;  %v347_v22 = vld [vmem:[#allocation12 + $0x6] ss:$0 sm:$0xff] }
 0xaa4   : > { %v6265_v5 = vsel %vm6183_vm4, %v6178_v33, 0.0 }
 0xaa7   : > { %6218 = vadd.xlane.f32.xlu0 %v6217_v23  ;;  %6248 = vadd.xlane.f32.xlu1 %v6247_v6 }
 0xaab   : > { %6251 = vadd.xlane.f32.xlu1 %v6250_v19  ;;  %6236 = vadd.xlane.f32.xlu0 %v6235_v32 }
 0xaaf   : > { %6239 = vadd.xlane.f32.xlu1 %v6238_v52  ;;  %6269 = vadd.xlane.f32.xlu0 %v6268_v2 }
 0xab3   : > { %6254 = vadd.xlane.f32.xlu1 %v6253_v55  ;;  %6272 = vadd.xlane.f32.xlu0 %v6271_v40  ;;  %v13056_v55 = vlaneseq }
 0xab5   : > { %v446_v40 = vand.u32 127, %v13056_v55 }
 0xab7   : > { %6242 = vadd.xlane.f32.xlu1 %v6241_v50  ;;  %6260 = vadd.xlane.f32.xlu0 %v6259_v15  ;;  %v11972_v48 = vsub.s32 %v446_v40, %v13057_v11 }
 0xabb   : > { %6257 = vadd.xlane.f32.xlu1 %v6256_v36  ;;  %6275 = vadd.xlane.f32.xlu0 %v6274_v29 }
 0xabf   : > { %6263 = vadd.xlane.f32.xlu0 %v6262_v16 }
 0xac3   : > { %6266 = vadd.xlane.f32.xlu0 %v6265_v5 }
 0xac7   : > { %6278 = vadd.xlane.f32.xlu0 %v6277_v56 }
 0xacc   : > { %6282 = vperm.xlu1 %9032, %v347_v22  }
 0xb0c   : > { %v6198_v37 = vpop.xlane.xlu1 %6197 }
 0xb0e   : > { %v6186_v45 = vpop.xlane.xlu0 %6185 }
 0xb10   : > { %v6201_v61 = vpop.xlane.xlu1 %6200 }
 0xb14   : > { %v6189_v4 = vpop.xlane.xlu1 %6188  ;;  %v11940_v60 = vpop.xlane.xlu0 %6221 }
 0xb18   : > { %v6204_v30 = vpop.xlane.xlu1 %6203  ;;  %v6210_v49 = vpop.xlane.xlu0 %6209 }
 0xb1c   : > { %v6192_v7 = vpop.xlane.xlu1 %6191  ;;  %v11942_v24 = vpop.xlane.xlu0 %6224 }
 0xb20   : > { %v6207_v0 = vpop.xlane.xlu1 %6206  ;;  %v6213_v23 = vpop.xlane.xlu0 %6212 }
 0xb24   : > { %v6195_v43 = vpop.xlane.xlu1 %6194  ;;  %v11944_v6 = vpop.xlane.xlu0 %6227 }
 0xb28   : > { %v11946_v63 = vpop.xlane.xlu1 %6245  ;;  %v6216_v19 = vpop.xlane.xlu0 %6215 }
 0xb2c   : > { %v11948_v10 = vpop.xlane.xlu1 %6233  ;;  %v11950_v51 = vpop.xlane.xlu0 %6230 }
 0xb30   : > { %v11952_v32 = vpop.xlane.xlu1 %6248  ;;  %v6219_v14 = vpop.xlane.xlu0 %6218 }
 0xb34   : > { %v11954_v53 = vpop.xlane.xlu1 %6251  ;;  %v11956_v31 = vpop.xlane.xlu0 %6236 }
 0xb38   : > { %v11958_v27 = vpop.xlane.xlu1 %6239  ;;  %v11960_v9 = vpop.xlane.xlu0 %6269 }
 0xb3c   : > { %v11962_v52 = vpop.xlane.xlu1 %6254  ;;  %v11964_v2 = vpop.xlane.xlu0 %6272 }
 0xb40   : > { %v11966_v21 = vpop.xlane.xlu1 %6242  ;;  %v6261_v17 = vpop.xlane.xlu0 %6260 }
 0xb44   : > { %v6258_v12 = vpop.xlane.xlu1 %6257  ;;  %v11969_v42 = vpop.xlane.xlu0 %6275 }
 0xb48   : > { %v11974_v50 = vpop.permute.xlu1 %6282  ;;  %v6264_v15 = vpop.xlane.xlu0 %6263 }
 0xb49   : > { %v11977_v26 = vadd.f32 %v11974_v50, %v6258_v12  ;;  %v11980_v28 = vadd.f32 %v11974_v50, %v6261_v17  ;;  %v11983_v36 = vadd.f32 %v11974_v50, %v6264_v15  ;;  %v11986_v29 = vadd.f32 %v11974_v50, %v6186_v45 }
 0xb4a   : > { %v11989_v54 = vadd.f32 %v11974_v50, %v6189_v4  ;;  %v11992_v39 = vadd.f32 %v11974_v50, %v6192_v7  ;;  %v11995_v16 = vadd.f32 %v11974_v50, %v6195_v43  ;;  %v12004_v56 = vadd.f32 %v11974_v50, %v6198_v37 }
 0xb4b   : > { %v6448_v33 = vrot.slane %v11977_v26, %v11972_v48  ;;  %v6452_v1 = vrot.slane %v11980_v28, %v11972_v48  ;;  %v6456_v5 = vrot.slane %v11983_v36, %v11972_v48  ;;  %v6352_v22 = vrot.slane %v11986_v29, %v11972_v48 }
 0xb4c   : > { %v6267_v58 = vpop.xlane.xlu0 %6266  ;;  %v6356_v45 = vrot.slane %v11989_v54, %v11972_v48  ;;  %v12015_v43 = vadd.f32 %v11974_v50, %v6201_v61  ;;  %v6360_v17 = vrot.slane %v11992_v39, %v11972_v48  ;;  %v12020_v37 = vadd.f32 %v11974_v50, %v6204_v30 }
 0xb4d   : > { %v6505_v4 = vsel %vm6477_vm5, %v6452_v1, %v6448_v33  ;;  %v12012_v7 = vadd.f32 %v11974_v50, %v6267_v58  ;;  %v12023_v55 = vadd.f32 %v11974_v50, %v6207_v0  ;;  %v6364_v40 = vrot.slane %v11995_v16, %v11972_v48 }
 0xb4e   : > { %v6506_v12 = vsel %vm6479_vm6, %v6456_v5, %v6505_v4  ;;  %v6478_v61 = vsel %vm6477_vm5, %v6356_v45, %v6352_v22  ;;  %v12032_v33 = vadd.f32 %v11974_v50, %v6210_v49  ;;  %v6368_v30 = vrot.slane %v12004_v56, %v11972_v48 }
 0xb4f   : > { %v6460_v15 = vrot.slane %v12012_v7, %v11972_v48  ;;  %v6480_v0 = vsel %vm6479_vm6, %v6360_v17, %v6478_v61  ;;  %v12038_v58 = vadd.f32 %v11974_v50, %v6213_v23  ;;  %v12041_v35 = vadd.f32 %v11974_v50, %v6216_v19 }
 0xb50   : > { %v6279_v1 = vpop.xlane.xlu0 %6278  ;;  %v6372_v5 = vrot.slane %v12015_v43, %v11972_v48  ;;  %v6482_v22 = vsel %vm6481_vm7, %v6364_v40, %v6480_v0  ;;  %v12047_v49 = vadd.f32 %v11974_v50, %v6219_v14  ;;  %v12051_v45 = vadd.f32 %v11974_v50, %v11940_v60 }
 0xb51   : > { %v6507_v4 = vsel %vm6481_vm7, %v6460_v15, %v6506_v12  ;;  %v6376_v23 = vrot.slane %v12020_v37, %v11972_v48  ;;  %v6380_v19 = vrot.slane %v12023_v55, %v11972_v48  ;;  %v6484_v17 = vsel %vm6483_vm8, %v6368_v30, %v6482_v22 }
 0xb52   : > { %v12060_v61 = vadd.f32 %v11974_v50, %v6279_v1  ;;  %v6486_v14 = vsel %vm6485_vm9, %v6372_v5, %v6484_v17  ;;  %v6384_v40 = vrot.slane %v12032_v33, %v11972_v48  ;;  %v6388_v60 = vrot.slane %v12038_v58, %v11972_v48 }
 0xb53   : > { %v6488_v12 = vsel %vm6487_vm10, %v6376_v23, %v6486_v14  ;;  %v12070_v15 = vadd.f32 %v11974_v50, %v11942_v24  ;;  %v12074_v30 = vadd.f32 %v11974_v50, %v11944_v6  ;;  %v6392_v1 = vrot.slane %v12041_v35, %v11972_v48 }
 0xb54   : > { %v6490_v0 = vsel %vm6489_vm11, %v6380_v19, %v6488_v12  ;;  %v12081_v5 = vadd.f32 %v11974_v50, %v11950_v51  ;;  %v6396_v22 = vrot.slane %v12047_v49, %v11972_v48  ;;  %v6400_v24 = vrot.slane %v12051_v45, %v11972_v48 }
 0xb55   : > { %v6517_v23 = vsel %vm6516_vm12, %v6490_v0, -inf  ;;  %v6491_v6 = vsel %vm6477_vm5, %v6388_v60, %v6384_v40  ;;  %v12091_v17 = vadd.f32 %v11974_v50, %v11948_v10  ;;  %v12095_v19 = vadd.f32 %v11974_v50, %v11956_v31 }
 0xb56   : > { %6518 = vmax.xlane.f32.xlu0 %v6517_v23  ;;  %v6492_v51 = vsel %vm6479_vm6, %v6392_v1, %v6491_v6  ;;  %v12100_v14 = vadd.f32 %v11974_v50, %v11958_v27  ;;  %v12104_v12 = vadd.f32 %v11974_v50, %v11966_v21  ;;  %v12108_v40 = vadd.f32 %v11974_v50, %v11946_v63 }
 0xb57   : > { %v6404_v10 = vrot.slane %v12070_v15, %v11972_v48  ;;  %v6408_v31 = vrot.slane %v12074_v30, %v11972_v48  ;;  %v6493_v60 = vsel %vm6481_vm7, %v6396_v22, %v6492_v51  ;;  %v12117_v27 = vadd.f32 %v11974_v50, %v11952_v32 }
 0xb58   : > { %v6494_v1 = vsel %vm6483_vm8, %v6400_v24, %v6493_v60  ;;  %v6416_v21 = vrot.slane %v12091_v17, %v11972_v48  ;;  %v6420_v63 = vrot.slane %v12095_v19, %v11972_v48  ;;  %v6424_v0 = vrot.slane %v12100_v14, %v11972_v48 }
 0xb59   : > { %v6412_v23 = vrot.slane %v12081_v5, %v11972_v48  ;;  %v6495_v22 = vsel %vm6485_vm9, %v6404_v10, %v6494_v1  ;;  %v12131_v32 = vadd.f32 %v11974_v50, %v11954_v53  ;;  %v12135_v24 = vadd.f32 %v11974_v50, %v11962_v52 }
 0xb5a   : > { %v6496_v6 = vsel %vm6487_vm10, %v6408_v31, %v6495_v22  ;;  %v6428_v51 = vrot.slane %v12104_v12, %v11972_v48  ;;  %v6432_v60 = vrot.slane %v12108_v40, %v11972_v48  ;;  %v6498_v38 = vsel %vm6477_vm5, %v6420_v63, %v6416_v21 }
 0xb5b   : > { %v6497_v10 = vsel %vm6489_vm11, %v6412_v23, %v6496_v6  ;;  %v6499_v1 = vsel %vm6479_vm6, %v6424_v0, %v6498_v38  ;;  %v12147_v53 = vadd.f32 %v11974_v50, %v11960_v9  ;;  %v12151_v52 = vadd.f32 %v11974_v50, %v11964_v2 }
 0xb5c   : > { %v6520_v31 = vsel %vm6516_vm12, %v6497_v10, -inf  ;;  %v6436_v22 = vrot.slane %v12117_v27, %v11972_v48  ;;  %v6500_v47 = vsel %vm6481_vm7, %v6428_v51, %v6499_v1  ;;  %v12159_v21 = vadd.f32 %v11974_v50, %v11969_v42 }
 0xb5d   : > { %6521 = vmax.xlane.f32.xlu0 %v6520_v31  ;;  %v6440_v38 = vrot.slane %v12131_v32, %v11972_v48  ;;  %v6501_v9 = vsel %vm6483_vm8, %v6432_v60, %v6500_v47  ;;  %v6464_v2 = vrot.slane %v12147_v53, %v11972_v48  ;;  %v6476_v63 = vrot.slane %v12060_v61, %v11972_v48 }
 0xb5e   : > { %v6444_v0 = vrot.slane %v12135_v24, %v11972_v48  ;;  %v6502_v23 = vsel %vm6485_vm9, %v6436_v22, %v6501_v9  ;;  %v6468_v42 = vrot.slane %v12151_v52, %v11972_v48  ;;  %v6472_v6 = vrot.slane %v12159_v21, %v11972_v48 }
 0xb5f   : > { %v6503_v50 = vsel %vm6487_vm10, %v6440_v38, %v6502_v23  ;;  %v6508_v47 = vsel %vm6483_vm8, %v6464_v2, %v6507_v4  ;;  %v12184_v38 = vsub.s32 3, %v13057_v11  ;;  %v13058_v23 = vld [vmem:[#allocation55_spill] sm:$0xff]  ;;  %v13059_v2 = vld [vmem:[#allocation60_spill] sm:$0xff] }
 0xb60   : > { %v6504_v51 = vsel %vm6489_vm11, %v6444_v0, %v6503_v50  ;;  %v6509_v60 = vsel %vm6485_vm9, %v6468_v42, %v6508_v47  ;;  %v13060_v50 = vld [vmem:[#allocation66_spill] sm:$0xff]  ;;  %v12190_v47 = vsub.s32 4, %v13057_v11 }
 0xb61   : > { %v6523_v10 = vsel %vm6516_vm12, %v6504_v51, -inf  ;;  %v6510_v1 = vsel %vm6487_vm10, %v6472_v6, %v6509_v60 }
 0xb62   : > { %6524 = vmax.xlane.f32.xlu0 %v6523_v10  ;;  %v6511_v31 = vsel %vm6489_vm11, %v6476_v63, %v6510_v1 }
 0xb63   : > { %v6526_v22 = vsel %vm6516_vm12, %v6511_v31, -inf  ;;  %v12197_v31 = vsub.s32 5, %v13057_v11 }
 0xb66   : > { %6527 = vmax.xlane.f32.xlu0 %v6526_v22 }
 0xbdf   : > { %v6519_v9 = vpop.xlane.xlu0 %6518 }
 0xbe0   : > { %v6536_v4 = vrot.slane %v6519_v9, %v13058_v23  ;;  %v6540_v0 = vrot.slane %v6519_v9, %v13059_v2  ;;  %v6544_v42 = vrot.slane %v6519_v9, %v13060_v50  ;;  %v6548_v6 = vrot.slane %v6519_v9, %v12184_v38 }
 0xbe1   : > { %v6552_v22 = vrot.slane %v6519_v9, %v12190_v47 }
 0xbe2   : > { %v6693_v63 = vsub.f32 %v11986_v29, %v6536_v4  ;;  %v6694_v51 = vsub.f32 %v11989_v54, %v6540_v0  ;;  %v6695_v60 = vsub.f32 %v11992_v39, %v6544_v42  ;;  %v6696_v25 = vsub.f32 %v11995_v16, %v6548_v6 }
 0xbe3   : > { %v12206_v54 = vsub.s32 6, %v13057_v11  ;;  %v12209_v39 = vsub.s32 7, %v13057_v11  ;;  %v6556_v4 = vrot.slane %v6519_v9, %v12197_v31  ;;  %v6697_v0 = vsub.f32 %v12004_v56, %v6552_v22 }
 0xbe4   : > { %v6725_v10 = vmul.f32 1.442695, %v6693_v63  ;;  %v6727_v1 = vmul.f32 1.442695, %v6694_v51  ;;  %v6729_v44 = vmul.f32 1.442695, %v6695_v60 }
 0xbe5   : > { %v6731_v16 = vmul.f32 1.442695, %v6696_v25  ;;  %v6560_v51 = vrot.slane %v6519_v9, %v12206_v54  ;;  %v6698_v60 = vsub.f32 %v12015_v43, %v6556_v4  ;;  %v6733_v11 = vmul.f32 1.442695, %v6697_v0 }
 0xbe6   : > { %9871 = vpow2.f32 %v6725_v10  ;;  %v12201_v46 = vpop.xlane.xlu0 %6521  ;;  %v6564_v25 = vrot.slane %v6519_v9, %v12209_v39 }
 0xbe7   : > { %9873 = vpow2.f32 %v6727_v1  ;;  %v6588_v29 = vrot.slane %v12201_v46, %v12197_v31  ;;  %v6596_v42 = vrot.slane %v12201_v46, %v12209_v39  ;;  %v6699_v56 = vsub.f32 %v12020_v37, %v6560_v51 }
 0xbe8   : > { %9875 = vpow2.f32 %v6729_v44  ;;  %v6700_v9 = vsub.f32 %v12023_v55, %v6564_v25  ;;  %v6568_v0 = vrot.slane %v12201_v46, %v13058_v23  ;;  %v6572_v55 = vrot.slane %v12201_v46, %v13059_v2 }
 0xbe9   : > { %v6706_v6 = vsub.f32 %v12070_v15, %v6588_v29  ;;  %9877 = vpow2.f32 %v6731_v16  ;;  %v6708_v10 = vsub.f32 %v12081_v5, %v6596_v42  ;;  %v6735_v15 = vmul.f32 1.442695, %v6698_v60 }
 0xbea   : > { %9879 = vpow2.f32 %v6733_v11  ;;  %v6737_v37 = vmul.f32 1.442695, %v6699_v56  ;;  %v6739_v51 = vmul.f32 1.442695, %v6700_v9  ;;  %v6701_v60 = vsub.f32 %v12032_v33, %v6568_v0 }
 0xbeb   : > { %v12216_v63 = vpop.xlane.xlu0 %6524  ;;  %v6751_v1 = vmul.f32 1.442695, %v6706_v6  ;;  %v6755_v29 = vmul.f32 1.442695, %v6708_v10  ;;  %v6702_v25 = vsub.f32 %v12038_v58, %v6572_v55  ;;  %v6580_v58 = vrot.slane %v12201_v46, %v12184_v38 }
 0xbec   : > { %v6600_v44 = vrot.slane %v12216_v63, %v13058_v23  ;;  %v6608_v43 = vrot.slane %v12216_v63, %v13060_v50  ;;  %v6612_v42 = vrot.slane %v12216_v63, %v12184_v38  ;;  %v6616_v10 = vrot.slane %v12216_v63, %v12190_v47 }
 0xbed   : > { %9881 = vpow2.f32 %v6751_v1  ;;  %v6741_v56 = vmul.f32 1.442695, %v6701_v60  ;;  %v6624_v33 = vrot.slane %v12216_v63, %v12206_v54 }
 0xbee   : > { %v6709_v4 = vsub.f32 %v12091_v17, %v6600_v44  ;;  %9883 = vpow2.f32 %v6735_v15  ;;  %v6711_v17 = vsub.f32 %v12100_v14, %v6608_v43  ;;  %v6712_v1 = vsub.f32 %v12104_v12, %v6612_v42 }
 0xbef   : > { %9885 = vpow2.f32 %v6755_v29  ;;  %v6576_v14 = vrot.slane %v12201_v46, %v13060_v50  ;;  %v6713_v29 = vsub.f32 %v12108_v40, %v6616_v10  ;;  %v6715_v40 = vsub.f32 %v12131_v32, %v6624_v33 }
 0xbf0   : > { %v6757_v6 = vmul.f32 1.442695, %v6709_v4  ;;  %9887 = vpow2.f32 %v6737_v37  ;;  %v6761_v44 = vmul.f32 1.442695, %v6711_v17  ;;  %v6763_v12 = vmul.f32 1.442695, %v6712_v1  ;;  %v12262_v4 = vpop.xlane.xlu0 %6527 }
 0xbf1   : > { %v6703_v9 = vsub.f32 %v12041_v35, %v6576_v14  ;;  %v6743_v37 = vmul.f32 1.442695, %v6702_v25  ;;  %v6765_v42 = vmul.f32 1.442695, %v6713_v29  ;;  %v6632_v17 = vrot.slane %v12262_v4, %v13058_v23 }
 0xbf2   : > { %9889 = vpow2.f32 %v6757_v6  ;;  %v6584_v35 = vrot.slane %v12201_v46, %v12190_v47  ;;  %v6769_v32 = vmul.f32 1.442695, %v6715_v40  ;;  %v6652_v10 = vrot.slane %v12262_v4, %v12197_v31 }
 0xbf3   : > { %v12225_v22 = vpop.eup %9871  ;;  %9891 = vpow2.f32 %v6739_v51  ;;  %v6704_v51 = vsub.f32 %v12047_v49, %v6580_v58  ;;  %v6745_v55 = vmul.f32 1.442695, %v6703_v9  ;;  %v6717_v1 = vsub.f32 %v11977_v26, %v6632_v17 }
 0xbf4   : > { %v12230_v5 = vpop.eup %9873  ;;  %6822 = vperm.xlu1 %9032, %v12225_v22   ;;  %9893 = vpow2.f32 %v6761_v44  ;;  %v6592_v49 = vrot.slane %v12201_v46, %v12206_v54  ;;  %v6705_v14 = vsub.f32 %v12051_v45, %v6584_v35  ;;  %v6660_v33 = vrot.slane %v12262_v4, %v12209_v39 }
 0xbf5   : > { %6825 = vperm.xlu0 %9033, %v12230_v5   ;;  %v12237_v16 = vpop.eup %9875  ;;  %9895 = vpow2.f32 %v6741_v56  ;;  %v6747_v25 = vmul.f32 1.442695, %v6704_v51  ;;  %v6722_v26 = vsub.f32 %v12151_v52, %v6652_v10  ;;  %v6773_v29 = vmul.f32 1.442695, %v6717_v1 }
 0xbf6   : > { %v12246_v11 = vpop.eup %9877  ;;  %9897 = vpow2.f32 %v6763_v12  ;;  %v6707_v46 = vsub.f32 %v12074_v30, %v6592_v49  ;;  %v6749_v45 = vmul.f32 1.442695, %v6705_v14  ;;  %v6604_v58 = vrot.slane %v12216_v63, %v13059_v2 }
 0xbf7   : > { %v12255_v15 = vpop.eup %9879  ;;  %9899 = vpow2.f32 %v6743_v37  ;;  %v6724_v37 = vsub.f32 %v12060_v61, %v6660_v33  ;;  %v6783_v52 = vmul.f32 1.442695, %v6722_v26  ;;  %v6620_v30 = vrot.slane %v12216_v63, %v12197_v31 }
 0xbf8   : > { %6828 = vperm.xlu1 %9032, %v12237_v16   ;;  %9901 = vpow2.f32 %v6765_v42  ;;  %v6753_v42 = vmul.f32 1.442695, %v6707_v46  ;;  %v6710_v17 = vsub.f32 %v12095_v19, %v6604_v58  ;;  %v6636_v10 = vrot.slane %v12262_v4, %v13059_v2 }
 0xbf9   : > { %9903 = vpow2.f32 %v6745_v55  ;;  %v6787_v51 = vmul.f32 1.442695, %v6724_v37  ;;  %v6714_v55 = vsub.f32 %v12117_v27, %v6620_v30  ;;  %v6640_v14 = vrot.slane %v12262_v4, %v13060_v50 }
 0xbfa   : > { %v12260_v43 = vpop.eup %9881  ;;  %9905 = vpow2.f32 %v6769_v32  ;;  %v6759_v32 = vmul.f32 1.442695, %v6710_v17  ;;  %v6718_v27 = vsub.f32 %v11980_v28, %v6636_v10  ;;  %v6644_v26 = vrot.slane %v12262_v4, %v12184_v38 }
 0xbfb   : > { %6861 = vperm.xlu0 %9033, %v12260_v43   ;;  %v12269_v0 = vpop.eup %9883  ;;  %9907 = vpow2.f32 %v6747_v25  ;;  %v6767_v49 = vmul.f32 1.442695, %v6714_v55  ;;  %v6648_v28 = vrot.slane %v12262_v4, %v12190_v47 }
 0xbfc   : > { %6831 = vperm.xlu1 %9032, %v12246_v11   ;;  %v12274_v6 = vpop.eup %9885  ;;  %9909 = vpow2.f32 %v6773_v29  ;;  %v6719_v29 = vsub.f32 %v11983_v36, %v6640_v14  ;;  %v6775_v46 = vmul.f32 1.442695, %v6718_v27  ;;  %v6720_v37 = vsub.f32 %v12012_v7, %v6644_v26 }
 0xbfd   : > { %v12281_v60 = vpop.eup %9887  ;;  %9911 = vpow2.f32 %v6749_v45  ;;  %v6656_v36 = vrot.slane %v12262_v4, %v12206_v54  ;;  %v6721_v17 = vsub.f32 %v12147_v53, %v6648_v28  ;;  %v6628_v7 = vrot.slane %v12216_v63, %v12209_v39 }
 0xbfe   : > { %9913 = vpow2.f32 %v6783_v52  ;;  %v6777_v52 = vmul.f32 1.442695, %v6719_v29 }
 0xbff   : > { %6867 = vperm.xlu0 %9033, %v12274_v6   ;;  %v12286_v44 = vpop.eup %9889  ;;  %9915 = vpow2.f32 %v6753_v42  ;;  %v6781_v10 = vmul.f32 1.442695, %v6721_v17  ;;  %v6716_v4 = vsub.f32 %v12135_v24, %v6628_v7 }
 0xc00   : > { %6834 = vperm.xlu1 %9032, %v12255_v15   ;;  %v12293_v56 = vpop.eup %9891  ;;  %9917 = vpow2.f32 %v6787_v51  ;;  %v6779_v51 = vmul.f32 1.442695, %v6720_v37 }
 0xc01   : > { %v12298_v12 = vpop.eup %9893  ;;  %9919 = vpow2.f32 %v6759_v32  ;;  %v6723_v32 = vsub.f32 %v12159_v21, %v6656_v36  ;;  %v6771_v27 = vmul.f32 1.442695, %v6716_v4 }
 0xc02   : > { %v12305_v9 = vpop.eup %9895  ;;  %9921 = vpow2.f32 %v6767_v49 }
 0xc03   : > { %6870 = vperm.xlu0 %9033, %v12286_v44   ;;  %v12308_v40 = vpop.eup %9897  ;;  %9923 = vpow2.f32 %v6775_v46  ;;  %v6785_v53 = vmul.f32 1.442695, %v6723_v32 }
 0xc04   : > { %6837 = vperm.xlu1 %9032, %v12269_v0   ;;  %v12315_v35 = vpop.eup %9899  ;;  %9925 = vpow2.f32 %v6777_v52 }
 0xc05   : > { %v12317_v61 = vpop.eup %9901  ;;  %9927 = vpow2.f32 %v6779_v51 }
 0xc06   : > { %v12324_v1 = vpop.eup %9903  ;;  %9929 = vpow2.f32 %v6781_v10 }
 0xc07   : > { %6876 = vperm.xlu0 %9033, %v12298_v12   ;;  %v12326_v19 = vpop.eup %9905  ;;  %9931 = vpow2.f32 %v6785_v53 }
 0xc08   : > { %6840 = vperm.xlu1 %9032, %v12281_v60   ;;  %v12333_v25 = vpop.eup %9907  ;;  %9933 = vpow2.f32 %v6771_v27 }
 0xc09   : > { %v12335_v33 = vpop.eup %9909 }
 0xc0a   : > { %v12342_v45 = vpop.eup %9911 }
 0xc0b   : > { %6879 = vperm.xlu0 %9033, %v12308_v40   ;;  %v12344_v58 = vpop.eup %9913 }
 0xc0c   : > { %6843 = vperm.xlu1 %9032, %v12293_v56   ;;  %v12351_v42 = vpop.eup %9915 }
 0xc0d   : > { %v12353_v30 = vpop.eup %9917 }
 0xc0e   : > { %v12360_v55 = vpop.eup %9919 }
 0xc0f   : > { %6882 = vperm.xlu0 %9033, %v12317_v61   ;;  %v12366_v49 = vpop.eup %9921 }
 0xc10   : > { %6846 = vperm.xlu1 %9032, %v12305_v9   ;;  %v12370_v14 = vpop.eup %9923 }
 0xc11   : > { %v12373_v26 = vpop.eup %9925 }
 0xc12   : > { %v12376_v21 = vpop.eup %9927 }
 0xc13   : > { %6888 = vperm.xlu0 %9033, %v12326_v19   ;;  %v12379_v63 = vpop.eup %9929 }
 0xc14   : > { %6849 = vperm.xlu1 %9032, %v12315_v35   ;;  %v12382_v24 = vpop.eup %9931 }
 0xc15   : > { %v12385_v29 = vpop.eup %9933 }
 0xc17   : > { %6894 = vperm.xlu0 %9033, %v12335_v33  }
 0xc18   : > { %6852 = vperm.xlu1 %9032, %v12324_v1  }
 0xc1b   : > { %6909 = vperm.xlu0 %9033, %v12344_v58  }
 0xc1c   : > { %6855 = vperm.xlu1 %9032, %v12333_v25  }
 0xc1f   : > { %6915 = vperm.xlu0 %9033, %v12353_v30  }
 0xc20   : > { %6858 = vperm.xlu1 %9032, %v12342_v45  }
 0xc24   : > { %6864 = vperm.xlu1 %9032, %v12351_v42  }
 0xc28   : > { %6873 = vperm.xlu1 %9032, %v12360_v55  }
 0xc2c   : > { %6885 = vperm.xlu1 %9032, %v12366_v49  }
 0xc30   : > { %6897 = vperm.xlu1 %9032, %v12370_v14  }
 0xc34   : > { %6900 = vperm.xlu1 %9032, %v12373_v26  }
 0xc38   : > { %6903 = vperm.xlu1 %9032, %v12376_v21  }
 0xc3c   : > { %6906 = vperm.xlu1 %9032, %v12379_v63  }
 0xc40   : > { %6912 = vperm.xlu1 %9032, %v12382_v24  }
 0xc44   : > { %6891 = vperm.xlu1 %9032, %v12385_v29  }
 0xc6f   : > { %v6823_v46 = vpop.permute.xlu1 %6822 }
 0xc70   : > { %v6826_v36 = vpop.permute.xlu0 %6825  ;;  %v6920_v51 = vrot.slane %v6823_v46, %v11972_v48 }
 0xc71   : > { %v6924_v7 = vrot.slane %v6826_v36, %v11972_v48 }
 0xc73   : > { %v6829_v28 = vpop.permute.xlu1 %6828  ;;  %v7045_v27 = vsel %vm6477_vm5, %v6924_v7, %v6920_v51 }
 0xc74   : > { %v6928_v32 = vrot.slane %v6829_v28, %v11972_v48 }
 0xc76   : > { %v6862_v13 = vpop.permute.xlu0 %6861  ;;  %v7046_v41 = vsel %vm6479_vm6, %v6928_v32, %v7045_v27 }
 0xc77   : > { %v6832_v37 = vpop.permute.xlu1 %6831 }
 0xc78   : > { %v6932_v10 = vrot.slane %v6832_v37, %v11972_v48 }
 0xc7a   : > { %v7047_v46 = vsel %vm6481_vm7, %v6932_v10, %v7046_v41  ;;  %v6868_v34 = vpop.permute.xlu0 %6867 }
 0xc7b   : > { %v6835_v52 = vpop.permute.xlu1 %6834 }
 0xc7c   : > { %v6936_v4 = vrot.slane %v6835_v52, %v11972_v48 }
 0xc7e   : > { %v7048_v36 = vsel %vm6483_vm8, %v6936_v4, %v7047_v46 }
 0xc7f   : > { %v6838_v17 = vpop.permute.xlu1 %6837 }
 0xc80   : > { %v6940_v20 = vrot.slane %v6838_v17, %v11972_v48 }
 0xc82   : > { %v7049_v28 = vsel %vm6485_vm9, %v6940_v20, %v7048_v36 }
 0xc83   : > { %v6841_v53 = vpop.permute.xlu1 %6840 }
 0xc84   : > { %v6944_v62 = vrot.slane %v6841_v53, %v11972_v48  ;;  %v6871_v53 = vpop.permute.xlu0 %6870 }
 0xc86   : > { %v7050_v52 = vsel %vm6487_vm10, %v6944_v62, %v7049_v28 }
 0xc87   : > { %v6844_v18 = vpop.permute.xlu1 %6843 }
 0xc88   : > { %v6948_v37 = vrot.slane %v6844_v18, %v11972_v48  ;;  %v6877_v41 = vpop.permute.xlu0 %6876 }
 0xc8a   : > { %v7051_v51 = vsel %vm6489_vm11, %v6948_v37, %v7050_v52 }
 0xc8b   : > { %v6847_v7 = vpop.permute.xlu1 %6846  ;;  %v7077_v17 = vsel %vm6516_vm12, %v7051_v51, 0.0 }
 0xc8c   : > { %7078 = vadd.xlane.f32.xlu1 %v7077_v17  ;;  %v6952_v18 = vrot.slane %v6847_v7, %v11972_v48  ;;  %v6880_v28 = vpop.permute.xlu0 %6879  ;;  %v6980_v7 = vrot.slane %v6868_v34, %v11972_v48  ;;  %v6984_v34 = vrot.slane %v6871_v53, %v11972_v48 }
 0xc8f   : > { %v6850_v32 = vpop.permute.xlu1 %6849 }
 0xc90   : > { %v6956_v10 = vrot.slane %v6850_v32, %v11972_v48  ;;  %v6972_v32 = vrot.slane %v6862_v13, %v11972_v48 }
 0xc92   : > { %v7052_v46 = vsel %vm6477_vm5, %v6956_v10, %v6952_v18  ;;  %v6883_v10 = vpop.permute.xlu0 %6882 }
 0xc93   : > { %v6853_v27 = vpop.permute.xlu1 %6852 }
 0xc94   : > { %v6960_v20 = vrot.slane %v6853_v27, %v11972_v48 }
 0xc96   : > { %v7053_v37 = vsel %vm6479_vm6, %v6960_v20, %v7052_v46 }
 0xc97   : > { %v6856_v4 = vpop.permute.xlu1 %6855 }
 0xc98   : > { %v6964_v62 = vrot.slane %v6856_v4, %v11972_v48 }
 0xc9a   : > { %v7054_v51 = vsel %vm6481_vm7, %v6964_v62, %v7053_v37 }
 0xc9b   : > { %v6859_v36 = vpop.permute.xlu1 %6858 }
 0xc9c   : > { %v6968_v52 = vrot.slane %v6859_v36, %v11972_v48  ;;  %v6889_v36 = vpop.permute.xlu0 %6888 }
 0xc9e   : > { %v7055_v17 = vsel %vm6483_vm8, %v6968_v52, %v7054_v51 }
 0xc9f   : > { %v6865_v8 = vpop.permute.xlu1 %6864  ;;  %v7056_v4 = vsel %vm6485_vm9, %v6972_v32, %v7055_v17  ;;  %v6992_v17 = vrot.slane %v6877_v41, %v11972_v48 }
 0xca0   : > { %v6976_v27 = vrot.slane %v6865_v8, %v11972_v48  ;;  %v6895_v13 = vpop.permute.xlu0 %6894 }
 0xca2   : > { %v7057_v18 = vsel %vm6487_vm10, %v6976_v27, %v7056_v4 }
 0xca3   : > { %v6874_v3 = vpop.permute.xlu1 %6873  ;;  %v7058_v20 = vsel %vm6489_vm11, %v6980_v7, %v7057_v18  ;;  %v7016_v18 = vrot.slane %v6895_v13, %v11972_v48 }
 0xca4   : > { %v7080_v46 = vsel %vm6516_vm12, %v7058_v20, 0.0  ;;  %v6988_v52 = vrot.slane %v6874_v3, %v11972_v48  ;;  %v6910_v7 = vpop.permute.xlu0 %6909  ;;  %v6996_v3 = vrot.slane %v6880_v28, %v11972_v48 }
 0xca5   : > { %7081 = vadd.xlane.f32.xlu0 %v7080_v46  ;;  %v7036_v28 = vrot.slane %v6910_v7, %v11972_v48 }
 0xca6   : > { %v7059_v51 = vsel %vm6477_vm5, %v6988_v52, %v6984_v34  ;;  %v7000_v34 = vrot.slane %v6883_v10, %v11972_v48 }
 0xca7   : > { %v6886_v62 = vpop.permute.xlu1 %6885  ;;  %v7060_v20 = vsel %vm6479_vm6, %v6992_v17, %v7059_v51 }
 0xca8   : > { %v7061_v52 = vsel %vm6481_vm7, %v6996_v3, %v7060_v20  ;;  %v6916_v13 = vpop.permute.xlu0 %6915  ;;  %v7004_v51 = vrot.slane %v6886_v62, %v11972_v48 }
 0xcab   : > { %v6898_v37 = vpop.permute.xlu1 %6897 }
 0xcac   : > { %v7020_v32 = vrot.slane %v6898_v37, %v11972_v48 }
 0xcae   : > { %v7066_v53 = vsel %vm6477_vm5, %v7020_v32, %v7016_v18  ;;  %v7062_v32 = vsel %vm6483_vm8, %v7000_v34, %v7061_v52 }
 0xcaf   : > { %v6901_v8 = vpop.permute.xlu1 %6900  ;;  %v7063_v10 = vsel %vm6485_vm9, %v7004_v51, %v7062_v32 }
 0xcb0   : > { %v7024_v4 = vrot.slane %v6901_v8, %v11972_v48 }
 0xcb2   : > { %v7067_v41 = vsel %vm6479_vm6, %v7024_v4, %v7066_v53  ;;  %v7044_v4 = vrot.slane %v6916_v13, %v11972_v48 }
 0xcb3   : > { %v6904_v27 = vpop.permute.xlu1 %6903 }
 0xcb4   : > { %v7028_v46 = vrot.slane %v6904_v27, %v11972_v48 }
 0xcb6   : > { %v7068_v8 = vsel %vm6481_vm7, %v7028_v46, %v7067_v41  ;;  %v7008_v46 = vrot.slane %v6889_v36, %v11972_v48 }
 0xcb7   : > { %v6907_v57 = vpop.permute.xlu1 %6906 }
 0xcb8   : > { %v7032_v37 = vrot.slane %v6907_v57, %v11972_v48  ;;  %v7064_v52 = vsel %vm6487_vm10, %v7008_v46, %v7063_v10 }
 0xcba   : > { %v7069_v17 = vsel %vm6483_vm8, %v7032_v37, %v7068_v8 }
 0xcbb   : > { %v6913_v27 = vpop.permute.xlu1 %6912  ;;  %v7070_v57 = vsel %vm6485_vm9, %v7036_v28, %v7069_v17 }
 0xcbc   : > { %v7040_v18 = vrot.slane %v6913_v27, %v11972_v48 }
 0xcbe   : > { %v7071_v20 = vsel %vm6487_vm10, %v7040_v18, %v7070_v57 }
 0xcbf   : > { %v6892_v62 = vpop.permute.xlu1 %6891  ;;  %v7072_v3 = vsel %vm6489_vm11, %v7044_v4, %v7071_v20 }
 0xcc0   : > { %v7012_v7 = vrot.slane %v6892_v62, %v11972_v48  ;;  %v7086_v53 = vsel %vm6516_vm12, %v7072_v3, 0.0 }
 0xcc1   : > { %7087 = vadd.xlane.f32.xlu1 %v7086_v53 }
 0xcc2   : > { %v7065_v41 = vsel %vm6489_vm11, %v7012_v7, %v7064_v52 }
 0xcc3   : > { %v7083_v37 = vsel %vm6516_vm12, %v7065_v41, 0.0 }
 0xcc4   : > { %7084 = vadd.xlane.f32.xlu0 %v7083_v37 }
 0xd15   : > { %v7079_v34 = vpop.xlane.xlu1 %7078 }
 0xd16   : > { %v7096_v8 = vrot.slane %v7079_v34, %v13058_v23  ;;  %v7100_v36 = vrot.slane %v7079_v34, %v13059_v2  ;;  %v7108_v13 = vrot.slane %v7079_v34, %v12184_v38  ;;  %v7104_v51 = vrot.slane %v7079_v34, %v13060_v50 }
 0xd17   : > { %v7116_v48 = vrot.slane %v7079_v34, %v12197_v31  ;;  %v7112_v17 = vrot.slane %v7079_v34, %v12190_v47  ;;  %v7124_v28 = vrot.slane %v7079_v34, %v12209_v39  ;;  %v7120_v32 = vrot.slane %v7079_v34, %v12206_v54 }
 0xd18   : > { %9935 = vrcp.f32 %v7096_v8 }
 0xd19   : > { %9937 = vrcp.f32 %v7100_v36 }
 0xd1a   : > { %9939 = vrcp.f32 %v7108_v13 }
 0xd1b   : > { %9941 = vrcp.f32 %v7104_v51 }
 0xd1c   : > { %9943 = vrcp.f32 %v7116_v48 }
 0xd1d   : > { %9945 = vrcp.f32 %v7112_v17 }
 0xd1e   : > { %9947 = vrcp.f32 %v7124_v28 }
 0xd1f   : > { %9949 = vrcp.f32 %v7120_v32 }
 0xd25   : > { %v9936_v27 = vpop.eup %9935 }
 0xd26   : > { %v9938_v18 = vpop.eup %9937  ;;  %v7254_v4 = vmul.f32 %v9936_v27, %v12225_v22 }
 0xd27   : > { %v9940_v57 = vpop.eup %9939  ;;  %v7256_v10 = vmul.f32 %v9938_v18, %v12230_v5 }
 0xd28   : > { %v9942_v20 = vpop.eup %9941  ;;  %7319 = vperm.xlu0 %9033, %v7254_v4   ;;  %v7260_v46 = vmul.f32 %v9940_v57, %v12246_v11 }
 0xd29   : > { %7324 = vperm.xlu1 %9032, %v7256_v10   ;;  %v9944_v62 = vpop.eup %9943  ;;  %v7258_v3 = vmul.f32 %v9942_v20, %v12237_v16 }
 0xd2a   : > { %v9946_v7 = vpop.eup %9945  ;;  %v7264_v22 = vmul.f32 %v9944_v62, %v12269_v0 }
 0xd2b   : > { %v9948_v37 = vpop.eup %9947  ;;  %v7262_v5 = vmul.f32 %v9946_v7, %v12255_v15 }
 0xd2c   : > { %7334 = vperm.xlu0 %9033, %v7260_v46   ;;  %v9950_v34 = vpop.eup %9949  ;;  %v7268_v8 = vmul.f32 %v9948_v37, %v12293_v56 }
 0xd2d   : > { %7329 = vperm.xlu1 %9032, %v7258_v3   ;;  %v7266_v13 = vmul.f32 %v9950_v34, %v12281_v60 }
 0xd2e   : > { %v7082_v53 = vpop.xlane.xlu0 %7081 }
 0xd2f   : > { %v7128_v52 = vrot.slane %v7082_v53, %v13058_v23  ;;  %v7136_v41 = vrot.slane %v7082_v53, %v13060_v50  ;;  %v7132_v11 = vrot.slane %v7082_v53, %v13059_v2  ;;  %v7144_v16 = vrot.slane %v7082_v53, %v12190_v47 }
 0xd30   : > { %7344 = vperm.xlu0 %9033, %v7264_v22   ;;  %v7140_v36 = vrot.slane %v7082_v53, %v12184_v38  ;;  %v7152_v0 = vrot.slane %v7082_v53, %v12206_v54  ;;  %v7148_v15 = vrot.slane %v7082_v53, %v12197_v31  ;;  %v7156_v51 = vrot.slane %v7082_v53, %v12209_v39 }
 0xd31   : > { %9951 = vrcp.f32 %v7128_v52  ;;  %7339 = vperm.xlu1 %9032, %v7262_v5  }
 0xd32   : > { %9953 = vrcp.f32 %v7136_v41 }
 0xd33   : > { %9955 = vrcp.f32 %v7132_v11 }
 0xd34   : > { %7354 = vperm.xlu0 %9033, %v7268_v8   ;;  %9957 = vrcp.f32 %v7144_v16 }
 0xd35   : > { %7349 = vperm.xlu1 %9032, %v7266_v13   ;;  %9959 = vrcp.f32 %v7140_v36 }
 0xd36   : > { %9961 = vrcp.f32 %v7152_v0 }
 0xd37   : > { %9963 = vrcp.f32 %v7148_v15 }
 0xd38   : > { %9965 = vrcp.f32 %v7156_v51 }
 0xd3e   : > { %v9952_v48 = vpop.eup %9951 }
 0xd3f   : > { %v7270_v56 = vmul.f32 %v9952_v48, %v12305_v9  ;;  %v9954_v17 = vpop.eup %9953 }
 0xd40   : > { %v9956_v60 = vpop.eup %9955  ;;  %v7274_v28 = vmul.f32 %v9954_v17, %v12324_v1 }
 0xd41   : > { %7359 = vperm.xlu1 %9032, %v7270_v56   ;;  %v9958_v32 = vpop.eup %9957  ;;  %v7272_v27 = vmul.f32 %v9956_v60, %v12315_v35 }
 0xd42   : > { %v9960_v18 = vpop.eup %9959  ;;  %v7278_v4 = vmul.f32 %v9958_v32, %v12342_v45 }
 0xd43   : > { %7364 = vperm.xlu0 %9033, %v7272_v27   ;;  %v9962_v57 = vpop.eup %9961  ;;  %v7276_v10 = vmul.f32 %v9960_v18, %v12333_v25 }
 0xd44   : > { %v9964_v20 = vpop.eup %9963  ;;  %v7282_v9 = vmul.f32 %v9962_v57, %v12351_v42 }
 0xd45   : > { %7369 = vperm.xlu1 %9032, %v7274_v28   ;;  %v7280_v46 = vmul.f32 %v9964_v20, %v12260_v43  ;;  %v9966_v62 = vpop.eup %9965 }
 0xd46   : > { %v7284_v35 = vmul.f32 %v9966_v62, %v12274_v6 }
 0xd47   : > { %7374 = vperm.xlu0 %9033, %v7276_v10  }
 0xd49   : > { %7379 = vperm.xlu1 %9032, %v7278_v4  }
 0xd4a   : > { %v7088_v53 = vpop.xlane.xlu1 %7087 }
 0xd4b   : > { %7384 = vperm.xlu0 %9033, %v7280_v46   ;;  %v7196_v52 = vrot.slane %v7088_v53, %v13059_v2  ;;  %v7192_v41 = vrot.slane %v7088_v53, %v13058_v23  ;;  %v7200_v22 = vrot.slane %v7088_v53, %v13060_v50  ;;  %v7204_v34 = vrot.slane %v7088_v53, %v12184_v38 }
 0xd4c   : > { %v7208_v8 = vrot.slane %v7088_v53, %v12190_v47 }
 0xd4d   : > { %7389 = vperm.xlu1 %9032, %v7282_v9   ;;  %v7085_v1 = vpop.xlane.xlu0 %7084 }
 0xd4e   : > { %v7160_v3 = vrot.slane %v7085_v1, %v13058_v23  ;;  %v7164_v45 = vrot.slane %v7085_v1, %v13059_v2  ;;  %v7168_v25 = vrot.slane %v7085_v1, %v13060_v50  ;;  %v7172_v7 = vrot.slane %v7085_v1, %v12184_v38 }
 0xd4f   : > { %7394 = vperm.xlu0 %9033, %v7284_v35   ;;  %v7176_v42 = vrot.slane %v7085_v1, %v12190_v47  ;;  %v7180_v43 = vrot.slane %v7085_v1, %v12197_v31  ;;  %v7184_v6 = vrot.slane %v7085_v1, %v12206_v54  ;;  %v7212_v23 = vrot.slane %v7088_v53, %v12197_v31 }
 0xd50   : > { %9967 = vrcp.f32 %v7160_v3  ;;  %v7216_v38 = vrot.slane %v7088_v53, %v12206_v54  ;;  %v7220_v47 = vrot.slane %v7088_v53, %v12209_v39  ;;  %v7188_v31 = vrot.slane %v7085_v1, %v12209_v39 }
 0xd51   : > { %9969 = vrcp.f32 %v7164_v45 }
 0xd52   : > { %9971 = vrcp.f32 %v7168_v25 }
 0xd53   : > { %9973 = vrcp.f32 %v7172_v7 }
 0xd54   : > { %9975 = vrcp.f32 %v7176_v42 }
 0xd55   : > { %9977 = vrcp.f32 %v7180_v43 }
 0xd56   : > { %9979 = vrcp.f32 %v7184_v6 }
 0xd57   : > { %9981 = vrcp.f32 %v7196_v52 }
 0xd58   : > { %9983 = vrcp.f32 %v7192_v41 }
 0xd59   : > { %9985 = vrcp.f32 %v7200_v22 }
 0xd5a   : > { %9987 = vrcp.f32 %v7204_v34 }
 0xd5b   : > { %9989 = vrcp.f32 %v7208_v8 }
 0xd5c   : > { %9991 = vrcp.f32 %v7212_v23 }
 0xd5d   : > { %v9968_v37 = vpop.eup %9967  ;;  %9993 = vrcp.f32 %v7216_v38 }
 0xd5e   : > { %v9970_v5 = vpop.eup %9969  ;;  %v7286_v11 = vmul.f32 %v9968_v37, %v12286_v44  ;;  %9995 = vrcp.f32 %v7220_v47 }
 0xd5f   : > { %v9972_v16 = vpop.eup %9971  ;;  %v7288_v2 = vmul.f32 %v9970_v5, %v12360_v55  ;;  %9997 = vrcp.f32 %v7188_v31 }
 0xd60   : > { %v9974_v36 = vpop.eup %9973  ;;  %7399 = vperm.xlu0 %9033, %v7286_v11   ;;  %v7290_v50 = vmul.f32 %v9972_v16, %v12298_v12 }
 0xd61   : > { %7404 = vperm.xlu1 %9032, %v7288_v2   ;;  %v9976_v13 = vpop.eup %9975  ;;  %v7292_v44 = vmul.f32 %v9974_v36, %v12308_v40 }
 0xd62   : > { %v9978_v0 = vpop.eup %9977  ;;  %v7294_v55 = vmul.f32 %v9976_v13, %v12317_v61 }
 0xd63   : > { %v9980_v15 = vpop.eup %9979  ;;  %v7296_v12 = vmul.f32 %v9978_v0, %v12366_v49 }
 0xd64   : > { %7409 = vperm.xlu0 %9033, %v7290_v50   ;;  %v9982_v51 = vpop.eup %9981  ;;  %v7298_v54 = vmul.f32 %v9980_v15, %v12326_v19 }
 0xd65   : > { %7414 = vperm.xlu1 %9032, %v7292_v44   ;;  %v9984_v40 = vpop.eup %9983  ;;  %v7304_v48 = vmul.f32 %v9982_v51, %v12370_v14 }
 0xd66   : > { %v9986_v56 = vpop.eup %9985  ;;  %v7302_v61 = vmul.f32 %v9984_v40, %v12335_v33 }
 0xd67   : > { %v9988_v17 = vpop.eup %9987  ;;  %v7306_v39 = vmul.f32 %v9986_v56, %v12373_v26 }
 0xd68   : > { %7419 = vperm.xlu0 %9033, %v7294_v55   ;;  %v9990_v60 = vpop.eup %9989  ;;  %v7308_v49 = vmul.f32 %v9988_v17, %v12376_v21 }
 0xd69   : > { %7424 = vperm.xlu1 %9032, %v7296_v12   ;;  %v9992_v28 = vpop.eup %9991  ;;  %v7310_v19 = vmul.f32 %v9990_v60, %v12379_v63 }
 0xd6a   : > { %v9994_v32 = vpop.eup %9993  ;;  %v7312_v14 = vmul.f32 %v9992_v28, %v12344_v58 }
 0xd6b   : > { %v9996_v33 = vpop.eup %9995  ;;  %v7314_v26 = vmul.f32 %v9994_v32, %v12382_v24 }
 0xd6c   : > { %7429 = vperm.xlu0 %9033, %v7298_v54   ;;  %v9998_v27 = vpop.eup %9997  ;;  %v7316_v21 = vmul.f32 %v9996_v33, %v12353_v30 }
 0xd6d   : > { %7444 = vperm.xlu1 %9032, %v7304_v48   ;;  %v7300_v18 = vmul.f32 %v9998_v27, %v12385_v29 }
 0xd70   : > { %7439 = vperm.xlu0 %9033, %v7302_v61  }
 0xd71   : > { %7449 = vperm.xlu1 %9032, %v7306_v39  }
 0xd74   : > { %7454 = vperm.xlu0 %9033, %v7308_v49  }
 0xd75   : > { %7459 = vperm.xlu1 %9032, %v7310_v19  }
 0xd78   : > { %7464 = vperm.xlu0 %9033, %v7312_v14  }
 0xd79   : > { %7469 = vperm.xlu1 %9032, %v7314_v26  }
 0xd7c   : > { %7474 = vperm.xlu0 %9033, %v7316_v21  }
 0xd7d   : > { %7434 = vperm.xlu1 %9032, %v7300_v18  }
 0xd7e   : > { %10146 = shalt.err (!%p10143_p3)
}
 0xd7f   : > { %s10147_s20 = scalar_lea.hbm %s12521_s10, 2048  ;;  %s10151_s11 = scalar_lea.hbm %s12727_s6, 4096 }
 0xd80   : > { %p10148_p5 = scmp.ne.s32.totalorder %s12521_s10, %s10147_s20  ;;  %p10152_p8 = scmp.lt.s32.totalorder %s12521_s10, %s12727_s6 }
 0xd81   : > { %p10153_p13 = scmp.lt.s32.totalorder %s10151_s11, %s10147_s20 }
 0xd82   : > { %p10149_p4 = pnand %p10148_p5, %p13061_p2 }
 0xd83   : > { %p10154_p11 = por %p10153_p13, %p10152_p8 }
 0xd84   : > { %p10150_p6 = pneg %p10149_p4 }
 0xd86   : > { %p10155_p1 = pnand %p10154_p11, %p10150_p6 }
 0xd88   : > { %10158 = shalt.err (!%p10155_p1)
}
 0xd89   : > { %s10253_s9 = smov 128   ;;  %s10254_s17 = smov 8   ;;  %v6119_v58 = vcombine.high %v11801_v59, %v11801_v59  ;;  %v13062_v57 = vld [vmem:[#allocation72_spill] sm:$0xff]  ;;  %v13064_v23 = vld [vmem:[#allocation25_spill] sm:$0xff] }
 0xd8a   : > { %8947 = dma.vmem_to_hbm [thread:$0]  (%p13061_p2), %s12523_s15, 2048, %s12521_s10, %s7807_s13, %s10253_s9, %s10253_s9, %s10254_s17   ;;  %v6120_v10 = vcombine.high %v13062_v57, %v13062_v57  ;;  %v6122_v50 = vcombine.high %v13064_v23, %v13064_v23 }
 0xd8b   : > { %s7995_s15 = sshll.u32 %s10440_s26, 5  ;;  %s8542_s13 = sshll.u32 %s10312_s25, 9 }
 0xd8c   : > { %s12585_s10 = scalar_lea.vmem [#allocation13], %s7995_s15  ;;  %s12672_s25 = scalar_lea.hbm %s12726_s5, %s8542_s13 }
 0xd8d   : > { %s7820_s8 = sshll.u32 %s12585_s10, 4  ;;  %s7802_s20 = scalar_lea.sflag [#allocation6], %s10440_s26  ;;  %s12674_s8 = int_to_ptr.vmem [resolvable:$true] %s7820_s8 }
 0xd8e   : > { %s10159_s27 = scalar_lea.vmem %s12674_s8, 512  ;;  %s10255_s29 = smov [#allocation13]  }
 0xd8f   : > { %p10160_p12 = scmp.ne.s32.totalorder %s12674_s8, %s10159_s27  ;;  %s10163_s11 = sshll.u32 %s10255_s29, 4  ;;  %s10164_s11 = int_to_ptr.vmem [resolvable:$false] %s10163_s11 }
 0xd90   : > { %s10165_s14 = scalar_lea.vmem %s10164_s11, 1024  ;;  %p10166_p0 = scmp.lt.s32.totalorder %s12674_s8, %s10164_s11 }
 0xd91   : > { %p10161_p7 = pnand %p10160_p12, %p13061_p2  ;;  %p10167_p10 = scmp.lt.s32.totalorder %s10165_s14, %s10159_s27 }
 0xd93   : > { %p10162_p9 = pneg %p10161_p7  ;;  %p10168_p3 = por %p10167_p10, %p10166_p0 }
 0xd95   : > { %p10169_p5 = pnand %p10168_p3, %p10162_p9 }
 0xda3   : > { %v7320_v30 = vpop.permute.xlu0 %7319 }
 0xda4   : > { %v7325_v63 = vpop.permute.xlu1 %7324  ;;  %v7477_v24 = vmul.f32 %v7320_v30, %v11801_v59  ;;  %v13063_v59 = vld [vmem:[#allocation32_spill] sm:$0xff] }
 0xda5   : > { %v7478_v29 = vmul.f32 %v7325_v63, %v6119_v58  ;;  %v6121_v42 = vcombine.high %v13063_v59, %v13063_v59 }
 0xda6   : > { %v7509_v4 = vsel %vm6183_vm4, %v7477_v24, 0.0 }
 0xda7   : > { %v7516_v20 = vsel %vm6183_vm4, %v7478_v29, 0.0  ;;  %v7510_v9 = vrot.slane %v7509_v4, 4  ;;  %v7335_v46 = vpop.permute.xlu0 %7334 }
 0xda8   : > { %v7517_v62 = vrot.slane %v7516_v20, 4  ;;  %v7330_v1 = vpop.permute.xlu1 %7329  ;;  %v7480_v35 = vmul.f32 %v7335_v46, %v6120_v10 }
 0xda9   : > { %v7511_v3 = vadd.f32 %v7510_v9, %v7509_v4  ;;  %v7479_v45 = vmul.f32 %v7330_v1, %v13062_v57 }
 0xdaa   : > { %v7518_v25 = vadd.f32 %v7517_v62, %v7516_v20  ;;  %v7530_v7 = vsel %vm6183_vm4, %v7480_v35, 0.0 }
 0xdab   : > { %v7512_v43 = vrot.slane %v7511_v3, 2  ;;  %v7523_v53 = vsel %vm6183_vm4, %v7479_v45, 0.0  ;;  %v7531_v6 = vrot.slane %v7530_v7, 4  ;;  %v7345_v52 = vpop.permute.xlu0 %7344 }
 0xdac   : > { %v7519_v41 = vrot.slane %v7518_v25, 2  ;;  %v7524_v22 = vrot.slane %v7523_v53, 4  ;;  %v7340_v37 = vpop.permute.xlu1 %7339  ;;  %v7482_v5 = vmul.f32 %v7345_v52, %v6121_v42 }
 0xdad   : > { %v7513_v34 = vadd.f32 %v7512_v43, %v7511_v3  ;;  %v7532_v11 = vadd.f32 %v7531_v6, %v7530_v7  ;;  %v7481_v16 = vmul.f32 %v7340_v37, %v13063_v59 }
 0xdae   : > { %v7520_v8 = vadd.f32 %v7519_v41, %v7518_v25  ;;  %v7525_v2 = vadd.f32 %v7524_v22, %v7523_v53  ;;  %v7544_v36 = vsel %vm6183_vm4, %v7482_v5, 0.0  ;;  %v13065_v25 = vld [vmem:[#allocation36_spill] sm:$0xff] }
 0xdaf   : > { %v7514_v13 = vrot.slane %v7513_v34, 1  ;;  %v7533_v38 = vrot.slane %v7532_v11, 2  ;;  %v7537_v44 = vsel %vm6183_vm4, %v7481_v16, 0.0  ;;  %v7545_v0 = vrot.slane %v7544_v36, 4  ;;  %v7355_v47 = vpop.permute.xlu0 %7354 }
 0xdb0   : > { %v7521_v55 = vrot.slane %v7520_v8, 1  ;;  %v7526_v15 = vrot.slane %v7525_v2, 2  ;;  %v7538_v31 = vrot.slane %v7537_v44, 4  ;;  %v7350_v12 = vpop.permute.xlu1 %7349  ;;  %v7484_v51 = vmul.f32 %v7355_v47, %v6122_v50 }
 0xdb1   : > { %v7515_v54 = vadd.f32 %v7514_v13, %v7513_v34  ;;  %v7534_v40 = vadd.f32 %v7533_v38, %v7532_v11  ;;  %v7546_v48 = vadd.f32 %v7545_v0, %v7544_v36  ;;  %v7483_v56 = vmul.f32 %v7350_v12, %v13064_v23  ;;  %v13066_v34 = vld [vmem:[#allocation107_spill] sm:$0xff] }
 0xdb2   : > { %v7522_v61 = vadd.f32 %v7521_v55, %v7520_v8  ;;  %v7527_v17 = vadd.f32 %v7526_v15, %v7525_v2  ;;  %v7539_v39 = vadd.f32 %v7538_v31, %v7537_v44  ;;  %v7558_v60 = vsel %vm6183_vm4, %v7484_v51, 0.0  ;;  %v13067_v15 = vld [vmem:[#allocation35_spill] sm:$0xff] }
 0xdb3   : > { %v7535_v49 = vrot.slane %v7534_v40, 1  ;;  %v7547_v28 = vrot.slane %v7546_v48, 2  ;;  %v7551_v19 = vsel %vm6183_vm4, %v7483_v56, 0.0  ;;  %v7559_v32 = vrot.slane %v7558_v60, 4 }
 0xdb4   : > { %v7528_v14 = vrot.slane %v7527_v17, 1  ;;  %v7540_v33 = vrot.slane %v7539_v39, 2  ;;  %v7552_v26 = vrot.slane %v7551_v19, 4  ;;  %v7765_v63 = vsel %vm6477_vm5, %v7522_v61, %v7515_v54 }
 0xdb5   : > { %v7548_v27 = vadd.f32 %v7547_v28, %v7546_v48  ;;  %v7560_v21 = vadd.f32 %v7559_v32, %v7558_v60  ;;  %v7536_v24 = vadd.f32 %v7535_v49, %v7534_v40  ;;  %v6123_v41 = vcombine.high %v13065_v25, %v13065_v25 }
 0xdb6   : > { %v7529_v18 = vadd.f32 %v7528_v14, %v7527_v17  ;;  %v7541_v58 = vadd.f32 %v7540_v33, %v7539_v39  ;;  %v7553_v30 = vadd.f32 %v7552_v26, %v7551_v19  ;;  %v6124_v44 = vcombine.high %v13066_v34, %v13066_v34  ;;  %v13068_v14 = vld [vmem:[#allocation26_spill] sm:$0xff] }
 0xdb7   : > { %v7549_v29 = vrot.slane %v7548_v27, 1  ;;  %v7561_v4 = vrot.slane %v7560_v21, 2  ;;  %v6125_v39 = vcombine.high %v13067_v15, %v13067_v15 }
 0xdb8   : > { %v7766_v57 = vsel %vm6479_vm6, %v7529_v18, %v7765_v63  ;;  %v7542_v10 = vrot.slane %v7541_v58, 1  ;;  %v7554_v20 = vrot.slane %v7553_v30, 2  ;;  %v6126_v63 = vcombine.high %v13068_v14, %v13068_v14 }
 0xdb9   : > { %v7562_v9 = vadd.f32 %v7561_v4, %v7560_v21  ;;  %v7767_v35 = vsel %vm6481_vm7, %v7536_v24, %v7766_v57  ;;  %v7550_v3 = vadd.f32 %v7549_v29, %v7548_v27 }
 0xdba   : > { %v7543_v46 = vadd.f32 %v7542_v10, %v7541_v58  ;;  %v7555_v62 = vadd.f32 %v7554_v20, %v7553_v30 }
 0xdbb   : > { %v7563_v45 = vrot.slane %v7562_v9, 1 }
 0xdbc   : > { %v7360_v1 = vpop.permute.xlu1 %7359  ;;  %v7768_v59 = vsel %vm6483_vm8, %v7543_v46, %v7767_v35  ;;  %v7556_v42 = vrot.slane %v7555_v62, 1 }
 0xdbd   : > { %v7485_v7 = vmul.f32 %v7360_v1, %v13065_v25  ;;  %v7564_v43 = vadd.f32 %v7563_v45, %v7562_v9  ;;  %v7769_v37 = vsel %vm6485_vm9, %v7550_v3, %v7768_v59 }
 0xdbe   : > { %v7557_v6 = vadd.f32 %v7556_v42, %v7555_v62  ;;  %v7365_v5 = vpop.permute.xlu0 %7364 }
 0xdbf   : > { %v7565_v53 = vsel %vm6183_vm4, %v7485_v7, 0.0  ;;  %v7486_v2 = vmul.f32 %v7365_v5, %v6123_v41 }
 0xdc0   : > { %v7566_v52 = vrot.slane %v7565_v53, 4  ;;  %v7370_v22 = vpop.permute.xlu1 %7369  ;;  %v7770_v16 = vsel %vm6487_vm10, %v7557_v6, %v7769_v37 }
 0xdc1   : > { %v7487_v11 = vmul.f32 %v7370_v22, %v13066_v34  ;;  %v7771_v36 = vsel %vm6489_vm11, %v7564_v43, %v7770_v16  ;;  %v7572_v13 = vsel %vm6183_vm4, %v7486_v2, 0.0 }
 0xdc2   : > { %v7567_v8 = vadd.f32 %v7566_v52, %v7565_v53  ;;  %7797 = vst [vmem:[%s12585_s10] sm:$0xff] %v7771_v36  ;;  %v7573_v47 = vrot.slane %v7572_v13, 4  ;;  %v7375_v55 = vpop.permute.xlu0 %7374 }
 0xdc3   : > { %v7579_v23 = vsel %vm6183_vm4, %v7487_v11, 0.0  ;;  %v7488_v54 = vmul.f32 %v7375_v55, %v6124_v44 }
 0xdc4   : > { %v7568_v50 = vrot.slane %v7567_v8, 2  ;;  %v7580_v38 = vrot.slane %v7579_v23, 4  ;;  %v7380_v0 = vpop.permute.xlu1 %7379  ;;  %v7574_v40 = vadd.f32 %v7573_v47, %v7572_v13 }
 0xdc5   : > { %v7489_v31 = vmul.f32 %v7380_v0, %v13067_v15  ;;  %v7586_v61 = vsel %vm6183_vm4, %v7488_v54, 0.0 }
 0xdc6   : > { %v7569_v12 = vadd.f32 %v7568_v50, %v7567_v8  ;;  %v7581_v51 = vadd.f32 %v7580_v38, %v7579_v23  ;;  %v7575_v28 = vrot.slane %v7574_v40, 2  ;;  %v7587_v19 = vrot.slane %v7586_v61, 4  ;;  %v7385_v32 = vpop.permute.xlu0 %7384 }
 0xdc7   : > { %v7593_v48 = vsel %vm6183_vm4, %v7489_v31, 0.0  ;;  %v7490_v21 = vmul.f32 %v7385_v32, %v6125_v39 }
 0xdc8   : > { %v7582_v56 = vrot.slane %v7581_v51, 2  ;;  %v7594_v17 = vrot.slane %v7593_v48, 4  ;;  %v7390_v60 = vpop.permute.xlu1 %7389  ;;  %v7570_v49 = vrot.slane %v7569_v12, 1  ;;  %v7576_v18 = vadd.f32 %v7575_v28, %v7574_v40 }
 0xdc9   : > { %v7491_v33 = vmul.f32 %v7390_v60, %v13068_v14  ;;  %v7588_v58 = vadd.f32 %v7587_v19, %v7586_v61  ;;  %v7600_v4 = vsel %vm6183_vm4, %v7490_v21, 0.0 }
 0xdca   : > { %v7583_v26 = vadd.f32 %v7582_v56, %v7581_v51  ;;  %v7595_v27 = vadd.f32 %v7594_v17, %v7593_v48  ;;  %v7571_v10 = vadd.f32 %v7570_v49, %v7569_v12  ;;  %v7577_v20 = vrot.slane %v7576_v18, 1  ;;  %v7395_v62 = vpop.permute.xlu0 %7394  ;;  %v13069_v51 = vld [vmem:[#allocation74_spill] sm:$0xff]  ;;  %v13070_v49 = vld [vmem:[#allocation108_spill] sm:$0xff] }
 0xdcb   : > { %v7607_v30 = vsel %vm6183_vm4, %v7491_v33, 0.0  ;;  %v7589_v9 = vrot.slane %v7588_v58, 2  ;;  %v7601_v46 = vrot.slane %v7600_v4, 4  ;;  %v7492_v45 = vmul.f32 %v7395_v62, %v6126_v63 }
 0xdcc   : > { %v7584_v24 = vrot.slane %v7583_v26, 1  ;;  %v7596_v29 = vrot.slane %v7595_v27, 2  ;;  %v7608_v57 = vrot.slane %v7607_v30, 4  ;;  %v7578_v25 = vadd.f32 %v7577_v20, %v7576_v18 }
 0xdcd   : > { %v7590_v7 = vadd.f32 %v7589_v9, %v7588_v58  ;;  %v7602_v59 = vadd.f32 %v7601_v46, %v7600_v4  ;;  %v7614_v53 = vsel %vm6183_vm4, %v7492_v45, 0.0  ;;  %v6127_v54 = vcombine.high %v13069_v51, %v13069_v51 }
 0xdce   : > { %v7585_v1 = vadd.f32 %v7584_v24, %v7583_v26  ;;  %v7597_v35 = vadd.f32 %v7596_v29, %v7595_v27  ;;  %v7609_v3 = vadd.f32 %v7608_v57, %v7607_v30  ;;  %v7772_v6 = vsel %vm6477_vm5, %v7578_v25, %v7571_v10  ;;  %v13071_v24 = vld [vmem:[#allocation38_spill] sm:$0xff] }
 0xdcf   : > { %v7591_v52 = vrot.slane %v7590_v7, 1  ;;  %v7603_v41 = vrot.slane %v7602_v59, 2  ;;  %v7615_v22 = vrot.slane %v7614_v53, 4  ;;  %v6128_v28 = vcombine.high %v13070_v49, %v13070_v49 }
 0xdd0   : > { %v7598_v42 = vrot.slane %v7597_v35, 1  ;;  %v7610_v43 = vrot.slane %v7609_v3, 2  ;;  %v7773_v37 = vsel %vm6479_vm6, %v7585_v1, %v7772_v6  ;;  %v6129_v29 = vcombine.high %v13071_v24, %v13071_v24 }
 0xdd1   : > { %v7592_v11 = vadd.f32 %v7591_v52, %v7590_v7  ;;  %v7604_v16 = vadd.f32 %v7603_v41, %v7602_v59  ;;  %v7616_v8 = vadd.f32 %v7615_v22, %v7614_v53  ;;  %v13073_v22 = vld [vmem:[#allocation109_spill] sm:$0xff] }
 0xdd2   : > { %v7599_v5 = vadd.f32 %v7598_v42, %v7597_v35  ;;  %v7611_v34 = vadd.f32 %v7610_v43, %v7609_v3  ;;  %v13072_v42 = vld [vmem:[#allocation75_spill] sm:$0xff] }
 0xdd3   : > { %v7774_v36 = vsel %vm6481_vm7, %v7592_v11, %v7773_v37  ;;  %v7605_v23 = vrot.slane %v7604_v16, 1  ;;  %v7617_v50 = vrot.slane %v7616_v8, 2  ;;  %v6131_v43 = vcombine.high %v13072_v42, %v13072_v42 }
 0xdd4   : > { %v7612_v2 = vrot.slane %v7611_v34, 1  ;;  %v7775_v13 = vsel %vm6483_vm8, %v7599_v5, %v7774_v36 }
 0xdd5   : > { %v7606_v44 = vadd.f32 %v7605_v23, %v7604_v16  ;;  %v7618_v0 = vadd.f32 %v7617_v50, %v7616_v8 }
 0xdd6   : > { %v7613_v38 = vadd.f32 %v7612_v2, %v7611_v34 }
 0xdd7   : > { %v7776_v47 = vsel %vm6485_vm9, %v7606_v44, %v7775_v13  ;;  %v7619_v55 = vrot.slane %v7618_v0, 1 }
 0xdd8   : > { %v7777_v15 = vsel %vm6487_vm10, %v7613_v38, %v7776_v47 }
 0xdd9   : > { %v7620_v31 = vadd.f32 %v7619_v55, %v7618_v0 }
 0xddb   : > { %v7778_v12 = vsel %vm6489_vm11, %v7620_v31, %v7777_v15  ;;  %v7400_v40 = vpop.permute.xlu0 %7399 }
 0xddc   : > { %7798 = vst [vmem:[%s12585_s10 + $0x8] sm:$0xff] %v7778_v12  ;;  %v7405_v48 = vpop.permute.xlu1 %7404  ;;  %v7493_v56 = vmul.f32 %v7400_v40, %v13069_v51  ;;  %v13074_v12 = vld [vmem:[#allocation71_spill] sm:$0xff] }
 0xddd   : > { %v7494_v61 = vmul.f32 %v7405_v48, %v6127_v54  ;;  %v6130_v54 = vcombine.high %v13073_v22, %v13073_v22 }
 0xdde   : > { %v7621_v17 = vsel %vm6183_vm4, %v7493_v56, 0.0 }
 0xddf   : > { %v7628_v39 = vsel %vm6183_vm4, %v7494_v61, 0.0  ;;  %v7622_v60 = vrot.slane %v7621_v17, 4  ;;  %v7410_v19 = vpop.permute.xlu0 %7409 }
 0xde0   : > { %v7629_v32 = vrot.slane %v7628_v39, 4  ;;  %v7415_v14 = vpop.permute.xlu1 %7414  ;;  %v7495_v33 = vmul.f32 %v7410_v19, %v13070_v49 }
 0xde1   : > { %v7623_v26 = vadd.f32 %v7622_v60, %v7621_v17  ;;  %v7496_v27 = vmul.f32 %v7415_v14, %v6128_v28  ;;  %v6132_v60 = vcombine.high %v13074_v12, %v13074_v12  ;;  %v13075_v28 = vld [vmem:[#allocation73_spill] sm:$0xff] }
 0xde2   : > { %v7630_v21 = vadd.f32 %v7629_v32, %v7628_v39  ;;  %v7635_v18 = vsel %vm6183_vm4, %v7495_v33, 0.0  ;;  %v6134_v19 = vcombine.high %v13075_v28, %v13075_v28 }
 0xde3   : > { %v7624_v58 = vrot.slane %v7623_v26, 2  ;;  %v7642_v30 = vsel %vm6183_vm4, %v7496_v27, 0.0  ;;  %v7636_v63 = vrot.slane %v7635_v18, 4  ;;  %v7420_v4 = vpop.permute.xlu0 %7419 }
 0xde4   : > { %v7631_v57 = vrot.slane %v7630_v21, 2  ;;  %v7643_v10 = vrot.slane %v7642_v30, 4  ;;  %v7425_v20 = vpop.permute.xlu1 %7424  ;;  %v7497_v9 = vmul.f32 %v7420_v4, %v13071_v24 }
 0xde5   : > { %v7625_v46 = vadd.f32 %v7624_v58, %v7623_v26  ;;  %v7637_v62 = vadd.f32 %v7636_v63, %v7635_v18  ;;  %v7498_v1 = vmul.f32 %v7425_v20, %v6129_v29  ;;  %v13076_v58 = vld [vmem:[#allocation33_spill] sm:$0xff] }
 0xde6   : > { %v7632_v35 = vadd.f32 %v7631_v57, %v7630_v21  ;;  %v7644_v3 = vadd.f32 %v7643_v10, %v7642_v30  ;;  %v7649_v45 = vsel %vm6183_vm4, %v7497_v9, 0.0  ;;  %v6133_v63 = vcombine.high %v13076_v58, %v13076_v58 }
 0xde7   : > { %v7638_v25 = vrot.slane %v7637_v62, 2  ;;  %v7656_v7 = vsel %vm6183_vm4, %v7498_v1, 0.0  ;;  %v7650_v59 = vrot.slane %v7649_v45, 4  ;;  %v7430_v53 = vpop.permute.xlu0 %7429  ;;  %v7626_v5 = vrot.slane %v7625_v46, 1 }
 0xde8   : > { %v7645_v6 = vrot.slane %v7644_v3, 2  ;;  %v7657_v52 = vrot.slane %v7656_v7, 4  ;;  %v7445_v41 = vpop.permute.xlu1 %7444  ;;  %v7499_v37 = vmul.f32 %v7430_v53, %v13073_v22  ;;  %v7633_v8 = vrot.slane %v7632_v35, 1 }
 0xde9   : > { %v7639_v34 = vadd.f32 %v7638_v25, %v7637_v62  ;;  %v7651_v11 = vadd.f32 %v7650_v59, %v7649_v45  ;;  %v7502_v16 = vmul.f32 %v7445_v41, %v6131_v43  ;;  %v7627_v15 = vadd.f32 %v7626_v5, %v7625_v46 }
 0xdea   : > { %v7658_v2 = vadd.f32 %v7657_v52, %v7656_v7  ;;  %v7663_v36 = vsel %vm6183_vm4, %v7499_v37, 0.0  ;;  %v7646_v23 = vadd.f32 %v7645_v6, %v7644_v3  ;;  %v7634_v40 = vadd.f32 %v7633_v8, %v7632_v35 }
 0xdeb   : > { %v7652_v50 = vrot.slane %v7651_v11, 2  ;;  %v7684_v13 = vsel %vm6183_vm4, %v7502_v16, 0.0  ;;  %v7440_v38 = vpop.permute.xlu0 %7439  ;;  %v7640_v44 = vrot.slane %v7639_v34, 1  ;;  %v7664_v47 = vrot.slane %v7663_v36, 4 }
 0xdec   : > { %v7685_v0 = vrot.slane %v7684_v13, 4  ;;  %v7450_v55 = vpop.permute.xlu1 %7449  ;;  %v7659_v31 = vrot.slane %v7658_v2, 2  ;;  %v7501_v61 = vmul.f32 %v7440_v38, %v13072_v42  ;;  %v7647_v17 = vrot.slane %v7646_v23, 1 }
 0xded   : > { %v7503_v51 = vmul.f32 %v7450_v55, %v13074_v12  ;;  %v7653_v48 = vadd.f32 %v7652_v50, %v7651_v11  ;;  %v7641_v32 = vadd.f32 %v7640_v44, %v7639_v34  ;;  %v7665_v33 = vadd.f32 %v7664_v47, %v7663_v36 }
 0xdee   : > { %v7686_v56 = vadd.f32 %v7685_v0, %v7684_v13  ;;  %v12639_v21 = vadd.f32 %v7659_v31, %v7658_v2  ;;  %v7677_v18 = vsel %vm6183_vm4, %v7501_v61, 0.0  ;;  %v7779_v24 = vsel %vm6477_vm5, %v7634_v40, %v7627_v15 }
 0xdef   : > { %v7691_v39 = vsel %vm6183_vm4, %v7503_v51, 0.0  ;;  %v7455_v49 = vpop.permute.xlu0 %7454  ;;  %v7654_v29 = vrot.slane %v7653_v48, 1  ;;  %v7678_v57 = vrot.slane %v7677_v18, 4  ;;  %v7648_v10 = vadd.f32 %v7647_v17, %v7646_v23 }
 0xdf0   : > { %v7687_v14 = vrot.slane %v7686_v56, 2  ;;  %v7692_v26 = vrot.slane %v7691_v39, 4  ;;  %v7460_v27 = vpop.permute.xlu1 %7459  ;;  %v7504_v46 = vmul.f32 %v7455_v49, %v6132_v60  ;;  %v7780_v1 = vsel %vm6479_vm6, %v7641_v32, %v7779_v24 }
 0xdf1   : > { %v7505_v30 = vmul.f32 %v7460_v27, %v13076_v58  ;;  %v7666_v35 = vrot.slane %v7665_v33, 2  ;;  %v7679_v45 = vadd.f32 %v7678_v57, %v7677_v18  ;;  %v7661_v7 = vrot.slane %v12639_v21, 1 }
 0xdf2   : > { %v7693_v4 = vadd.f32 %v7692_v26, %v7691_v39  ;;  %v7688_v20 = vadd.f32 %v7687_v14, %v7686_v56  ;;  %v7698_v42 = vsel %vm6183_vm4, %v7504_v46, 0.0  ;;  %v7655_v53 = vadd.f32 %v7654_v29, %v7653_v48 }
 0xdf3   : > { %v7705_v9 = vsel %vm6183_vm4, %v7505_v30, 0.0  ;;  %v7465_v62 = vpop.permute.xlu0 %7464  ;;  %v7680_v52 = vrot.slane %v7679_v45, 2  ;;  %v7699_v41 = vrot.slane %v7698_v42, 4  ;;  %v7667_v0 = vadd.f32 %v7666_v35, %v7665_v33 }
 0xdf4   : > { %v7694_v3 = vrot.slane %v7693_v4, 2  ;;  %v7470_v25 = vpop.permute.xlu1 %7469  ;;  %v7706_v59 = vrot.slane %v7705_v9, 4  ;;  %v7689_v22 = vrot.slane %v7688_v20, 1  ;;  %v7506_v34 = vmul.f32 %v7465_v62, %v6133_v63 }
 0xdf5   : > { %v7507_v43 = vmul.f32 %v7470_v25, %v13075_v28  ;;  %v7681_v8 = vadd.f32 %v7680_v52, %v7679_v45  ;;  %v7700_v2 = vadd.f32 %v7699_v41, %v7698_v42  ;;  %v7668_v33 = vrot.slane %v7667_v0, 1 }
 0xdf6   : > { %v7695_v6 = vadd.f32 %v7694_v3, %v7693_v4  ;;  %v7707_v37 = vadd.f32 %v7706_v59, %v7705_v9  ;;  %v7712_v13 = vsel %vm6183_vm4, %v7506_v34, 0.0  ;;  %v7690_v39 = vadd.f32 %v7689_v22, %v7688_v20 }
 0xdf7   : > { %v7719_v5 = vsel %vm6183_vm4, %v7507_v43, 0.0  ;;  %v7475_v11 = vpop.permute.xlu0 %7474  ;;  %v7682_v47 = vrot.slane %v7681_v8, 1  ;;  %v7701_v55 = vrot.slane %v7700_v2, 2  ;;  %v7713_v12 = vrot.slane %v7712_v13, 4 }
 0xdf8   : > { %v7696_v16 = vrot.slane %v7695_v6, 1  ;;  %v7720_v36 = vrot.slane %v7719_v5, 4  ;;  %v7435_v23 = vpop.permute.xlu1 %7434  ;;  %v7708_v50 = vrot.slane %v7707_v37, 2  ;;  %v7508_v44 = vmul.f32 %v7475_v11, %v6134_v19 }
 0xdf9   : > { %v7500_v38 = vmul.f32 %v7435_v23, %v6130_v54  ;;  %v7683_v48 = vadd.f32 %v7682_v47, %v7681_v8  ;;  %v7702_v56 = vadd.f32 %v7701_v55, %v7700_v2  ;;  %v7714_v49 = vadd.f32 %v7713_v12, %v7712_v13 }
 0xdfa   : > { %v7721_v15 = vadd.f32 %v7720_v36, %v7719_v5  ;;  %v7709_v31 = vadd.f32 %v7708_v50, %v7707_v37  ;;  %v7726_v40 = vsel %vm6183_vm4, %v7508_v44, 0.0  ;;  %v7697_v60 = vadd.f32 %v7696_v16, %v7695_v6 }
 0xdfb   : > { %v7670_v51 = vsel %vm6183_vm4, %v7500_v38, 0.0  ;;  %v7727_v28 = vrot.slane %v7726_v40, 4  ;;  %v7703_v19 = vrot.slane %v7702_v56, 1  ;;  %v7786_v26 = vsel %vm6477_vm5, %v7690_v39, %v7683_v48 }
 0xdfc   : > { %v7722_v61 = vrot.slane %v7721_v15, 2  ;;  %v7671_v17 = vrot.slane %v7670_v51, 4  ;;  %v7710_v54 = vrot.slane %v7709_v31, 1  ;;  %v7715_v27 = vrot.slane %v7714_v49, 2 }
 0xdfd   : > { %v7728_v18 = vadd.f32 %v7727_v28, %v7726_v40  ;;  %v7704_v58 = vadd.f32 %v7703_v19, %v7702_v56  ;;  %v7662_v24 = vadd.f32 %v7661_v7, %v12639_v21  ;;  %v7781_v29 = vsel %vm6481_vm7, %v7648_v10, %v7780_v1 }
 0xdfe   : > { %v7723_v32 = vadd.f32 %v7722_v61, %v7721_v15  ;;  %v7672_v14 = vadd.f32 %v7671_v17, %v7670_v51  ;;  %v7716_v4 = vadd.f32 %v7715_v27, %v7714_v49  ;;  %v7782_v20 = vsel %vm6483_vm8, %v7655_v53, %v7781_v29 }
 0xdff   : > { %v7729_v57 = vrot.slane %v7728_v18, 2  ;;  %v7711_v9 = vadd.f32 %v7710_v54, %v7709_v31  ;;  %v7787_v46 = vsel %vm6479_vm6, %v7697_v60, %v7786_v26  ;;  %v7669_v35 = vadd.f32 %v7668_v33, %v7667_v0 }
 0xe00   : > { %v7724_v30 = vrot.slane %v7723_v32, 1  ;;  %v7673_v63 = vrot.slane %v7672_v14, 2  ;;  %v7788_v3 = vsel %vm6481_vm7, %v7704_v58, %v7787_v46  ;;  %v7717_v45 = vrot.slane %v7716_v4, 1 }
 0xe01   : > { %v7730_v25 = vadd.f32 %v7729_v57, %v7728_v18  ;;  %v7783_v1 = vsel %vm6485_vm9, %v7662_v24, %v7782_v20  ;;  %v7789_v42 = vsel %vm6483_vm8, %v7711_v9, %v7788_v3 }
 0xe02   : > { %v7674_v62 = vadd.f32 %v7673_v63, %v7672_v14  ;;  %v7725_v59 = vadd.f32 %v7724_v30, %v7723_v32  ;;  %v7718_v7 = vadd.f32 %v7717_v45, %v7716_v4  ;;  %v7784_v53 = vsel %vm6487_vm10, %v7669_v35, %v7783_v1 }
 0xe03   : > { %v7731_v10 = vrot.slane %v7730_v25, 1 }
 0xe04   : > { %v7675_v21 = vrot.slane %v7674_v62, 1  ;;  %v7790_v6 = vsel %vm6485_vm9, %v7718_v7, %v7789_v42 }
 0xe05   : > { %v7732_v52 = vadd.f32 %v7731_v10, %v7730_v25  ;;  %v7791_v22 = vsel %vm6487_vm10, %v7725_v59, %v7790_v6 }
 0xe06   : > { %v7676_v43 = vadd.f32 %v7675_v21, %v7674_v62 }
 0xe07   : > { %v7792_v37 = vsel %vm6489_vm11, %v7732_v52, %v7791_v22 }
 0xe08   : > { %v7785_v41 = vsel %vm6489_vm11, %v7676_v43, %v7784_v53  ;;  %7800 = vst [vmem:[%s12585_s10 + $0x18] sm:$0xff] %v7792_v37 }
 0xe09   : > { %7799 = vst [vmem:[%s12585_s10 + $0x10] sm:$0xff] %v7785_v41 }
 0xe0a   : > { %10172 = shalt.err (!%p10169_p5)
}
 0xe0b   : > { %s10173_s16 = scalar_lea.hbm %s12672_s25, 512  ;;  %s10177_s10 = scalar_lea.hbm %s12726_s5, 1024 }
 0xe0c   : > { %p10174_p4 = scmp.ne.s32.totalorder %s12672_s25, %s10173_s16  ;;  %p10178_p13 = scmp.lt.s32.totalorder %s12672_s25, %s12726_s5 }
 0xe0d   : > { %p10179_p11 = scmp.lt.s32.totalorder %s10177_s10, %s10173_s16 }
 0xe0e   : > { %p10175_p6 = pnand %p10174_p4, %p13061_p2 }
 0xe0f   : > { %p10180_p1 = por %p10179_p11, %p10178_p13 }
 0xe10   : > { %p10176_p8 = pneg %p10175_p6 }
 0xe12   : > { %p10181_p12 = pnand %p10180_p1, %p10176_p8 }
 0xe14   : > { %10184 = shalt.err (!%p10181_p12)
}
 0xe15   : > { %8946 = dma.vmem_to_hbm [thread:$0]  (%p13061_p2), %s12674_s8, 512, %s12672_s25, %s7802_s20, %s10253_s9, %s10253_s9, %s10254_s17  }
 0xe16 PF: > { %s7851_s7 = sand.u32 1, %s10223_s21   ;;  %p13077_p7 = scmp.ne.s32.totalorder %s12814_s28, 0 }
 0xe17   : > { %p13078_p9 = scmp.ge.s32.totalorder %s10235_s24, 2  ;;  %s7852_s27 = scalar_lea.sflag [#allocation6], %s7851_s7 }
 0xe19   : > { %p8968_p0 = pnand %p13078_p9, %p13077_p7 }
 0xe1b   : > { %p8969_p10 = pneg %p8968_p0 }
 0xe1d   : > { %10214 = dma.done.wait (%p8969_p10), %s7852_s27, 512  }
 0xe1e   : > { %10216 = vsyncadd (%p8969_p10), %s7852_s27, 4294966784  ;;  %s7861_s29 = scalar_lea.sflag [#allocation15], %s7851_s7 }
 0xe1f   : > { %10218 = dma.done.wait (%p8969_p10), %s7861_s29, 2048  }
 0xe20   : > { %10220 = vsyncadd (%p8969_p10), %s7861_s29, 4294965248  ;;  %p25_p2 = scmp.ge.s32.totalorder %s10385_s12, 4   ;;  %s13079_s21 = smov %s10227_s22 }
 0xe21   : > { %s13080_s22 = smov %s10231_s23  ;;  %s13081_s23 = smov %s10394_s18 }
 0xe22   : > { %s13082_s24 = smov %s10385_s12  ;;  %27 = sbr.rel (!%p25_p2) target bundleno = 9 (0x9), region = 135 }
 0xe27   :  { %7866 = vsyncpa [#allocation5], 1 }
 0xe28   :  { %7868 = vsyncpa [#allocation5 + $0x1], 1 }
 0xe29   :  { %7869 = vsyncpa [#allocation8], 1 }
 0xe2a   :  { %7870 = vsyncpa [#allocation11], 1 }
 0xe2b   :  { %7871 = vsyncpa [#allocation6], 1 }
 0xe2c   :  { %7873 = vsyncpa [#allocation6 + $0x1], 1 }
 0xe2d   :  { %7874 = vsyncpa [#allocation15], 1 }
 0xe2e   :  { %7876 = vsyncpa [#allocation15 + $0x1], 1 }

</bundles_post_ra>
